<compile_context>
chip_gen: v6e
topology: v6e:2x2x1
jax: 0.10.0
libtpu: 0.0.40
codegen_flags: <defaults>
</compile_context>

<pallas_src>
import numpy as np

import jax
import jax.numpy as jnp
from jax.experimental import pallas as pl
from jax.experimental.pallas import tpu as pltpu

EPS = 1e-5
C = 8                                # channels after conv1 / conv2
C_IN, H_IN, W_IN = 3, 128, 128
H1 = (H_IN - 3) // 2 + 1             # 63  (conv1 output)
P1 = (H1 - 3) // 3 + 1               # 21  (pool1 output)
H2 = (P1 - 3) // 2 + 1               # 10  (conv2 output)
P2 = (H2 - 3) // 3 + 1               # 3   (pool2 output)
N_OUT = 40


# ------------------------------ Pallas kernel ------------------------------

def _fused_forward_kernel(xin_ref, sw_ref, lw_ref, g1_ref, be1_ref,
                          sv_ref, mw_ref, g2_ref, be2_ref,
                          sp1_ref, sp2_ref, pj_ref, wlr_ref, bl_ref,
                          g8_ref, o_ref):
    f32, bf16 = jnp.float32, jnp.bfloat16
    l1 = sw_ref.shape[2]              # N*63
    w1p = sp1_ref.shape[1] // 3       # N*21
    w2l = sv_ref.shape[2]             # N*10
    w3l = sp2_ref.shape[1] // 3       # N*3
    nb = pj_ref.shape[2]              # N

    g8_full = g8_ref[...]             # (8, 504) 0/1: row r belongs to channel r%8

    def bn_train(y_flat, rows_per_c, g_ref, be_ref):
        # Training-mode BatchNorm.  Per-channel reduction = lane-axis sum + one
        # tiny (8, rows) 0/1 matmul, so no leading-axis reduction is needed.
        # The conv bias that precedes BN cancels exactly and is never added.
        hc, lanes = y_flat.shape
        sel = g8_full[:, :hc]                                       # (8, hc)
        rsum = jnp.sum(y_flat, axis=1, keepdims=True)               # (hc, 1)
        rsq = jnp.sum(y_flat * y_flat, axis=1, keepdims=True)       # (hc, 1)
        cnt = float(rows_per_c * lanes)
        mean = jnp.dot(sel, rsum, preferred_element_type=f32) / cnt   # (8, 1)
        ex2 = jnp.dot(sel, rsq, preferred_element_type=f32) / cnt
        var = jnp.maximum(ex2 - mean * mean, 0.0)   # clamp: E[x^2]-m^2 can go <0
        a = g_ref[...] * jax.lax.rsqrt(var + EPS)                   # (8, 1)
        b = be_ref[...] - mean * a
        y3 = y_flat.reshape(hc // C, C, lanes)
        return y3 * a[None] + b[None]                               # (H, 8, L) f32

    def hmax3(y3):
        # MaxPool along the leading (row-block) axis: 3 window / stride 3, floor.
        hp = y3.shape[0] // 3
        u = y3[:3 * hp].reshape(hp, 3, C, y3.shape[2])
        return jnp.maximum(jnp.maximum(u[:, 0], u[:, 1]), u[:, 2])

    def wmax3(y_flat, sel, wout):
        # MaxPool along the lane axis: ONE selection GEMM places the 3 window
        # taps side by side ((dx, n, w) lane order), then 2 slices + 2 maxes.
        t = jnp.dot(y_flat.astype(sel.dtype), sel, preferred_element_type=f32)
        return jnp.maximum(jnp.maximum(t[:, :wout], t[:, wout:2 * wout]),
                           t[:, 2 * wout:])

    # ---- conv1 (3x3, stride 2, VALID): per kx tap one stride-2 column-gather
    #      GEMM + one weight GEMM with the (ky, ci) row gather folded into the
    #      host-built LHS.  M=504, K=384; 3 accumulated taps.
    xin = xin_ref[...]                                              # (384, N*128) bf16
    y1 = jnp.zeros((H1 * C, l1), f32)
    for kx in range(3):
        z = jnp.dot(xin, sw_ref[kx], preferred_element_type=f32).astype(bf16)
        y1 = y1 + jnp.dot(lw_ref[kx], z, preferred_element_type=f32)   # (504, N*63)

    # ---- bn1 + pool1 (3x3 / stride 3)
    y1 = bn_train(y1, H1, g1_ref, be1_ref)                          # (63, 8, N*63)
    a1 = wmax3(hmax3(y1).reshape(P1 * C, l1), sp1_ref[...], w1p)    # (168, N*21)
    a1 = a1.astype(bf16)          # exact: 0/1 gather of bf16-rounded values

    # ---- conv2 (3x3, stride 2, VALID): same 2-GEMMs-per-kx structure, M=80, K=168.
    y2 = jnp.zeros((H2 * C, w2l), f32)
    for kx in range(3):
        akx = jnp.dot(a1, sv_ref[kx], preferred_element_type=f32).astype(bf16)
        y2 = y2 + jnp.dot(mw_ref[kx], akx, preferred_element_type=f32)  # (80, N*10)

    # ---- bn2 + pool2 (3x3 / stride 3; floor mode drops row/col index 9)
    y2 = bn_train(y2, H2, g2_ref, be2_ref)                          # (10, 8, N*10)
    q = wmax3(hmax3(y2).reshape(P2 * C, w2l), sp2_ref[...], w3l)    # (24, N*3) f32

    # ---- flatten (PyTorch (C, H, W) order) + linear + sigmoid -> (40, N)
    out = jnp.broadcast_to(bl_ref[...], (N_OUT, nb))
    for w3 in range(3):
        col = jnp.dot(q, pj_ref[w3], preferred_element_type=f32)        # (24, N)
        out = out + jnp.dot(wlr_ref[w3], col, preferred_element_type=f32)
    # 1/(1+exp(-x)) never produces NaN here: inf intermediates resolve to 0/1.
    o_ref[...] = 1.0 / (1.0 + jnp.exp(-out))


# -------------------------------- JAX glue ---------------------------------

_VMEM = pl.BlockSpec(memory_space=pltpu.MemorySpace.VMEM)


@jax.jit
def feature_extraction_forward(x, kp):
    n = x.shape[0]
    # Single XLA-side layout op (the only pre-kernel glue):
    # (N, 3, 128, 128) -> (3*128, N*128) bf16, row = ci*128 + h, lane = n*128 + w.
    xin = jnp.transpose(x, (1, 2, 0, 3)).reshape(C_IN * H_IN, n * W_IN)
    xin = xin.astype(jnp.bfloat16)
    out_t = pl.pallas_call(
        _fused_forward_kernel,
        out_shape=jax.ShapeDtypeStruct((N_OUT, n), jnp.float32),
        in_specs=[_VMEM] * 15,
        out_specs=_VMEM,
        compiler_params=pltpu.CompilerParams(vmem_limit_bytes=32 * 1024 * 1024),
    )(xin, kp["sw"], kp["lw"], kp["g1"], kp["be1"],
      kp["sv"], kp["mw"], kp["g2"], kp["be2"],
      kp["sp1"], kp["sp2"], kp["pj"], kp["wlr"], kp["bl"], kp["g8"])
    return out_t.T                                                   # (N, 40)


# --------------------------- params & constants ----------------------------

def _fold_params(raw, n):
    """Kernel constant operands: 0/1 selection matrices for the merged
    (batch, W) lane axis, and conv/linear weights with the row gathers folded in."""
    w1 = np.asarray(raw["w1"], np.float32)     # (8, 3, 3, 3)  [c, ci, ky, kx]
    w2 = np.asarray(raw["w2"], np.float32)     # (8, 8, 3, 3)  [c, c', ky, kx]
    wl = np.asarray(raw["wl"], np.float32)     # (40, 72)

    # conv1 stride-2 column gather per kx phase:  n*128 + 2*w + kx  ->  n*63 + w
    sw = np.zeros((3, n * W_IN, n * H1), np.float32)
    for kx in range(3):
        for b in range(n):
            for w in range(H1):
                sw[kx, b * W_IN + 2 * w + kx, b * H1 + w] = 1.0

    # conv1 weights folded with the (ky, ci) row gather:
    #   lw[kx, h1*8 + c, ci*128 + (2*h1 + ky)] = w1[c, ci, ky, kx]
    lw = np.zeros((3, H1 * C, C_IN * H_IN), np.float32)
    for kx in range(3):
        for h1 in range(H1):
            for c in range(C):
                for ci in range(C_IN):
                    for ky in range(3):
                        lw[kx, h1 * C + c, ci * H_IN + 2 * h1 + ky] = w1[c, ci, ky, kx]

    # pool1 3-tap stride-3 lane gather, taps side by side: (dx, n, w) lane order.
    sp1 = np.zeros((n * H1, 3 * n * P1), np.float32)
    for dx in range(3):
        for b in range(n):
            for w in range(P1):
                sp1[b * H1 + 3 * w + dx, dx * n * P1 + b * P1 + w] = 1.0

    # conv2 stride-2 column gather per kx phase:  n*21 + 2*w + kx  ->  n*10 + w
    sv = np.zeros((3, n * P1, n * H2), np.float32)
    for kx in range(3):
        for b in range(n):
            for w in range(H2):
                sv[kx, b * P1 + 2 * w + kx, b * H2 + w] = 1.0

    # conv2 weights folded with the (ky, c') row gather:
    #   mw[kx, h2*8 + c, (2*h2 + ky)*8 + c'] = w2[c, c', ky, kx]
    mw = np.zeros((3, H2 * C, P1 * C), np.float32)
    for kx in range(3):
        for h2 in range(H2):
            for c in range(C):
                for cp in range(C):
                    for ky in range(3):
                        mw[kx, h2 * C + c, (2 * h2 + ky) * C + cp] = w2[c, cp, ky, kx]

    # pool2 3-tap stride-3 lane gather, taps side by side.
    sp2 = np.zeros((n * H2, 3 * n * P2), np.float32)
    for dx in range(3):
        for b in range(n):
            for w in range(P2):
                sp2[b * H2 + 3 * w + dx, dx * n * P2 + b * P2 + w] = 1.0

    # per-sample column extractor for the flatten:  n*3 + w3  ->  n
    pj = np.zeros((3, n * P2, n), np.float32)
    for w3 in range(3):
        for b in range(n):
            pj[w3, b * P2 + w3, b] = 1.0

    # linear weights regrouped per w3 tap (PyTorch flatten order c*9 + h3*3 + w3)
    wlr = np.zeros((3, N_OUT, P2 * C), np.float32)
    for w3 in range(3):
        for o in range(N_OUT):
            for h3 in range(P2):
                for c in range(C):
                    wlr[w3, o, h3 * C + c] = wl[o, c * 9 + h3 * 3 + w3]

    # per-channel row-membership matrix used by both BN stages (BN2 slices it).
    g8 = np.zeros((C, H1 * C), np.float32)
    for r in range(H1 * C):
        g8[r % C, r] = 1.0

    bf16 = jnp.bfloat16
    # Conv biases b1/b2 are intentionally NOT used: training-mode BatchNorm
    # directly after a conv cancels a per-channel bias exactly.
    return dict(
        sw=jnp.asarray(sw, bf16), lw=jnp.asarray(lw, bf16),
        g1=jnp.asarray(raw["g1"]).reshape(C, 1),
        be1=jnp.asarray(raw["be1"]).reshape(C, 1),
        sv=jnp.asarray(sv, bf16), mw=jnp.asarray(mw, bf16),
        g2=jnp.asarray(raw["g2"]).reshape(C, 1),
        be2=jnp.asarray(raw["be2"]).reshape(C, 1),
        sp1=jnp.asarray(sp1, bf16), sp2=jnp.asarray(sp2, jnp.float32),
        pj=jnp.asarray(pj, jnp.float32), wlr=jnp.asarray(wlr, jnp.float32),
        bl=jnp.asarray(raw["bl"]).reshape(N_OUT, 1),
        g8=jnp.asarray(g8, jnp.float32),
    )


def init_params(key, n):
    ks = jax.random.split(key, 11)
    raw = dict(
        w1=0.2 * jax.random.normal(ks[0], (8, 3, 3, 3), jnp.float32),
        b1=0.1 * jax.random.normal(ks[1], (8,), jnp.float32),
        g1=1.0 + 0.1 * jax.random.normal(ks[2], (8,), jnp.float32),
        be1=0.1 * jax.random.normal(ks[3], (8,), jnp.float32),
        w2=0.2 * jax.random.normal(ks[4], (8, 8, 3, 3), jnp.float32),
        b2=0.1 * jax.random.normal(ks[5], (8,), jnp.float32),
        g2=1.0 + 0.1 * jax.random.normal(ks[6], (8,), jnp.float32),
        be2=0.1 * jax.random.normal(ks[7], (8,), jnp.float32),
        wl=0.1 * jax.random.normal(ks[8], (40, 72), jnp.float32),
        bl=0.1 * jax.random.normal(ks[9], (40,), jnp.float32),
    )
    kp = _fold_params(raw, n)
    return raw, kp, ks[10]


# ------------------------------- reference ---------------------------------

def reference_forward(x, raw):
    """Pure-JAX reference with the PyTorch module's semantics
    (training-mode BatchNorm, VALID convs/pools, floor-mode pooling)."""
    def conv(y, w, b, s):
        out = jax.lax.conv_general_dilated(
            y, w, window_strides=(s, s), padding="VALID",
            dimension_numbers=("NCHW", "OIHW", "NCHW"))
        return out + b.reshape(1, -1, 1, 1)

    def bn(y, g, b):
        m = jnp.mean(y, axis=(0, 2, 3), keepdims=True)
        v = jnp.mean((y - m) ** 2, axis=(0, 2, 3), keepdims=True)
        return (y - m) * jax.lax.rsqrt(v + EPS) * g.reshape(1, -1, 1, 1) + b.reshape(1, -1, 1, 1)

    def pool(y):
        return jax.lax.reduce_window(y, -jnp.inf, jax.lax.max,
                                     (1, 1, 3, 3), (1, 1, 3, 3), "VALID")

    y = pool(bn(conv(x, raw["w1"], raw["b1"], 2), raw["g1"], raw["be1"]))
    y = pool(bn(conv(y, raw["w2"], raw["b2"], 2), raw["g2"], raw["be2"]))
    f = y.reshape(y.shape[0], -1)
    return jax.nn.sigmoid(f @ raw["wl"].T + raw["bl"])


if __name__ == "__main__":
    key = jax.random.PRNGKey(0)
    batch = 2
    raw, kp, x_key = init_params(key, batch)
    # 3 input channels are fixed by conv1; spatial 128x128 is what makes
    # x.view(-1, 3*3*8) valid after the two conv/pool stages.
    x = jax.random.normal(x_key, (batch, 3, 128, 128), jnp.float32)

    out = jax.block_until_ready(feature_extraction_forward(x, kp))

    assert out.shape == (batch, 40)
    assert bool(jnp.all(jnp.isfinite(out)))
    ref = reference_forward(x, raw)
    # Tolerance covers the bf16 conv operands / bf16 gathers (f32 accumulation).
    err = float(jnp.max(jnp.abs(out - ref)))
    assert err < 6e-2, err
    print("KERNEL_OK")
</pallas_src>

<mosaic_0001>
module attributes {stable_mosaic.version = 11 : i64} {
  func.func @_fused_forward_kernel(%arg0: memref<384x256xbf16, #tpu.memory_space<vmem>>, %arg1: memref<3x256x126xbf16, #tpu.memory_space<vmem>>, %arg2: memref<3x504x384xbf16, #tpu.memory_space<vmem>>, %arg3: memref<8x1xf32, #tpu.memory_space<vmem>>, %arg4: memref<8x1xf32, #tpu.memory_space<vmem>>, %arg5: memref<3x42x20xbf16, #tpu.memory_space<vmem>>, %arg6: memref<3x80x168xbf16, #tpu.memory_space<vmem>>, %arg7: memref<8x1xf32, #tpu.memory_space<vmem>>, %arg8: memref<8x1xf32, #tpu.memory_space<vmem>>, %arg9: memref<126x126xbf16, #tpu.memory_space<vmem>>, %arg10: memref<20x18xf32, #tpu.memory_space<vmem>>, %arg11: memref<3x6x2xf32, #tpu.memory_space<vmem>>, %arg12: memref<3x40x24xf32, #tpu.memory_space<vmem>>, %arg13: memref<40x1xf32, #tpu.memory_space<vmem>>, %arg14: memref<8x504xf32, #tpu.memory_space<vmem>>, %arg15: memref<40x2xf32, #tpu.memory_space<vmem>>) attributes {dimension_semantics = [], scalar_prefetch = 0 : i64, scratch_operands = 0 : i64, tpu.core_type = #tpu.core_type<tc>} {
    %c0 = arith.constant 0 : index
    %c0_0 = arith.constant 0 : index
    %0 = vector.load %arg14[%c0, %c0_0] : memref<8x504xf32, #tpu.memory_space<vmem>>, vector<8x504xf32>
    %c0_1 = arith.constant 0 : index
    %c0_2 = arith.constant 0 : index
    %1 = vector.load %arg0[%c0_1, %c0_2] : memref<384x256xbf16, #tpu.memory_space<vmem>>, vector<384x256xbf16>
    %cst = arith.constant 0.000000e+00 : f32
    %2 = vector.broadcast %cst : f32 to vector<504x126xf32>
    %c0_3 = arith.constant 0 : index
    %c0_4 = arith.constant 0 : index
    %c0_5 = arith.constant 0 : index
    %3 = vector.load %arg1[%c0_3, %c0_4, %c0_5] : memref<3x256x126xbf16, #tpu.memory_space<vmem>>, vector<1x256x126xbf16>
    %4 = vector.shape_cast %3 : vector<1x256x126xbf16> to vector<256x126xbf16>
    %cst_6 = arith.constant dense<0.000000e+00> : vector<384x126xf32>
    %5 = tpu.matmul %1, %4, %cst_6 {dimension_numbers = #tpu.dot_dimension_numbers<[1], [0], [0], [1], [0, 0, 1, 1], [], []>} : vector<384x256xbf16>, vector<256x126xbf16>, vector<384x126xf32> -> vector<384x126xf32>
    %6 = arith.truncf %5 : vector<384x126xf32> to vector<384x126xbf16>
    %c0_7 = arith.constant 0 : index
    %c0_8 = arith.constant 0 : index
    %c0_9 = arith.constant 0 : index
    %7 = vector.load %arg2[%c0_7, %c0_8, %c0_9] : memref<3x504x384xbf16, #tpu.memory_space<vmem>>, vector<1x504x384xbf16>
    %8 = vector.shape_cast %7 : vector<1x504x384xbf16> to vector<504x384xbf16>
    %cst_10 = arith.constant dense<0.000000e+00> : vector<504x126xf32>
    %9 = tpu.matmul %8, %6, %cst_10 {dimension_numbers = #tpu.dot_dimension_numbers<[1], [0], [0], [1], [0, 0, 1, 1], [], []>} : vector<504x384xbf16>, vector<384x126xbf16>, vector<504x126xf32> -> vector<504x126xf32>
    %10 = arith.addf %2, %9 : vector<504x126xf32>
    %c1 = arith.constant 1 : index
    %c0_11 = arith.constant 0 : index
    %c0_12 = arith.constant 0 : index
    %11 = vector.load %arg1[%c1, %c0_11, %c0_12] : memref<3x256x126xbf16, #tpu.memory_space<vmem>>, vector<1x256x126xbf16>
    %12 = vector.shape_cast %11 : vector<1x256x126xbf16> to vector<256x126xbf16>
    %cst_13 = arith.constant dense<0.000000e+00> : vector<384x126xf32>
    %13 = tpu.matmul %1, %12, %cst_13 {dimension_numbers = #tpu.dot_dimension_numbers<[1], [0], [0], [1], [0, 0, 1, 1], [], []>} : vector<384x256xbf16>, vector<256x126xbf16>, vector<384x126xf32> -> vector<384x126xf32>
    %14 = arith.truncf %13 : vector<384x126xf32> to vector<384x126xbf16>
    %c1_14 = arith.constant 1 : index
    %c0_15 = arith.constant 0 : index
    %c0_16 = arith.constant 0 : index
    %15 = vector.load %arg2[%c1_14, %c0_15, %c0_16] : memref<3x504x384xbf16, #tpu.memory_space<vmem>>, vector<1x504x384xbf16>
    %16 = vector.shape_cast %15 : vector<1x504x384xbf16> to vector<504x384xbf16>
    %cst_17 = arith.constant dense<0.000000e+00> : vector<504x126xf32>
    %17 = tpu.matmul %16, %14, %cst_17 {dimension_numbers = #tpu.dot_dimension_numbers<[1], [0], [0], [1], [0, 0, 1, 1], [], []>} : vector<504x384xbf16>, vector<384x126xbf16>, vector<504x126xf32> -> vector<504x126xf32>
    %18 = arith.addf %10, %17 : vector<504x126xf32>
    %c2 = arith.constant 2 : index
    %c0_18 = arith.constant 0 : index
    %c0_19 = arith.constant 0 : index
    %19 = vector.load %arg1[%c2, %c0_18, %c0_19] : memref<3x256x126xbf16, #tpu.memory_space<vmem>>, vector<1x256x126xbf16>
    %20 = vector.shape_cast %19 : vector<1x256x126xbf16> to vector<256x126xbf16>
    %cst_20 = arith.constant dense<0.000000e+00> : vector<384x126xf32>
    %21 = tpu.matmul %1, %20, %cst_20 {dimension_numbers = #tpu.dot_dimension_numbers<[1], [0], [0], [1], [0, 0, 1, 1], [], []>} : vector<384x256xbf16>, vector<256x126xbf16>, vector<384x126xf32> -> vector<384x126xf32>
    %22 = arith.truncf %21 : vector<384x126xf32> to vector<384x126xbf16>
    %c2_21 = arith.constant 2 : index
    %c0_22 = arith.constant 0 : index
    %c0_23 = arith.constant 0 : index
    %23 = vector.load %arg2[%c2_21, %c0_22, %c0_23] : memref<3x504x384xbf16, #tpu.memory_space<vmem>>, vector<1x504x384xbf16>
    %24 = vector.shape_cast %23 : vector<1x504x384xbf16> to vector<504x384xbf16>
    %cst_24 = arith.constant dense<0.000000e+00> : vector<504x126xf32>
    %25 = tpu.matmul %24, %22, %cst_24 {dimension_numbers = #tpu.dot_dimension_numbers<[1], [0], [0], [1], [0, 0, 1, 1], [], []>} : vector<504x384xbf16>, vector<384x126xbf16>, vector<504x126xf32> -> vector<504x126xf32>
    %26 = arith.addf %18, %25 : vector<504x126xf32>
    %cst_25 = arith.constant dense<0.000000e+00> : vector<504xf32>
    %27 = vector.multi_reduction <add>, %26, %cst_25 [1] : vector<504x126xf32> to vector<504xf32>
    %28 = vector.shape_cast %27 : vector<504xf32> to vector<504x1xf32>
    %29 = arith.mulf %26, %26 : vector<504x126xf32>
    %cst_26 = arith.constant dense<0.000000e+00> : vector<504xf32>
    %30 = vector.multi_reduction <add>, %29, %cst_26 [1] : vector<504x126xf32> to vector<504xf32>
    %31 = vector.shape_cast %30 : vector<504xf32> to vector<504x1xf32>
    %cst_27 = arith.constant dense<0.000000e+00> : vector<8x1xf32>
    %32 = tpu.matmul %0, %28, %cst_27 {dimension_numbers = #tpu.dot_dimension_numbers<[1], [0], [0], [1], [0, 0, 1, 1], [], []>} : vector<8x504xf32>, vector<504x1xf32>, vector<8x1xf32> -> vector<8x1xf32>
    %cst_28 = arith.constant 7.938000e+03 : f32
    %33 = vector.broadcast %cst_28 : f32 to vector<8x1xf32>
    %34 = arith.divf %32, %33 : vector<8x1xf32>
    %cst_29 = arith.constant dense<0.000000e+00> : vector<8x1xf32>
    %35 = tpu.matmul %0, %31, %cst_29 {dimension_numbers = #tpu.dot_dimension_numbers<[1], [0], [0], [1], [0, 0, 1, 1], [], []>} : vector<8x504xf32>, vector<504x1xf32>, vector<8x1xf32> -> vector<8x1xf32>
    %cst_30 = arith.constant 7.938000e+03 : f32
    %36 = vector.broadcast %cst_30 : f32 to vector<8x1xf32>
    %37 = arith.divf %35, %36 : vector<8x1xf32>
    %38 = arith.mulf %34, %34 : vector<8x1xf32>
    %39 = arith.subf %37, %38 : vector<8x1xf32>
    %cst_31 = arith.constant 0.000000e+00 : f32
    %40 = vector.broadcast %cst_31 : f32 to vector<8x1xf32>
    %41 = arith.maximumf %39, %40 : vector<8x1xf32>
    %c0_32 = arith.constant 0 : index
    %c0_33 = arith.constant 0 : index
    %42 = vector.load %arg3[%c0_32, %c0_33] : memref<8x1xf32, #tpu.memory_space<vmem>>, vector<8x1xf32>
    %cst_34 = arith.constant 9.99999974E-6 : f32
    %43 = vector.broadcast %cst_34 : f32 to vector<8x1xf32>
    %44 = arith.addf %41, %43 : vector<8x1xf32>
    %45 = math.rsqrt %44 : vector<8x1xf32>
    %46 = arith.mulf %42, %45 : vector<8x1xf32>
    %c0_35 = arith.constant 0 : index
    %c0_36 = arith.constant 0 : index
    %47 = vector.load %arg4[%c0_35, %c0_36] : memref<8x1xf32, #tpu.memory_space<vmem>>, vector<8x1xf32>
    %48 = arith.mulf %34, %46 : vector<8x1xf32>
    %49 = arith.subf %47, %48 : vector<8x1xf32>
    %50 = vector.shape_cast %26 : vector<504x126xf32> to vector<63x8x126xf32>
    %51 = vector.shape_cast %46 : vector<8x1xf32> to vector<1x8x1xf32>
    %52 = vector.broadcast %51 : vector<1x8x1xf32> to vector<63x8x126xf32>
    %53 = arith.mulf %50, %52 : vector<63x8x126xf32>
    %54 = vector.shape_cast %49 : vector<8x1xf32> to vector<1x8x1xf32>
    %55 = vector.broadcast %54 : vector<1x8x1xf32> to vector<63x8x126xf32>
    %56 = arith.addf %53, %55 : vector<63x8x126xf32>
    %57 = vector.shape_cast %56 : vector<63x8x126xf32> to vector<21x3x8x126xf32>
    %58 = vector.extract_strided_slice %57 {offsets = [0, 0, 0, 0], sizes = [21, 1, 8, 126], strides = [1, 1, 1, 1]} : vector<21x3x8x126xf32> to vector<21x1x8x126xf32>
    %59 = vector.shape_cast %58 : vector<21x1x8x126xf32> to vector<21x8x126xf32>
    %60 = vector.extract_strided_slice %57 {offsets = [0, 1, 0, 0], sizes = [21, 1, 8, 126], strides = [1, 1, 1, 1]} : vector<21x3x8x126xf32> to vector<21x1x8x126xf32>
    %61 = vector.shape_cast %60 : vector<21x1x8x126xf32> to vector<21x8x126xf32>
    %62 = arith.maximumf %59, %61 : vector<21x8x126xf32>
    %63 = vector.extract_strided_slice %57 {offsets = [0, 2, 0, 0], sizes = [21, 1, 8, 126], strides = [1, 1, 1, 1]} : vector<21x3x8x126xf32> to vector<21x1x8x126xf32>
    %64 = vector.shape_cast %63 : vector<21x1x8x126xf32> to vector<21x8x126xf32>
    %65 = arith.maximumf %62, %64 : vector<21x8x126xf32>
    %66 = vector.shape_cast %65 : vector<21x8x126xf32> to vector<168x126xf32>
    %c0_37 = arith.constant 0 : index
    %c0_38 = arith.constant 0 : index
    %67 = vector.load %arg9[%c0_37, %c0_38] : memref<126x126xbf16, #tpu.memory_space<vmem>>, vector<126x126xbf16>
    %68 = arith.truncf %66 : vector<168x126xf32> to vector<168x126xbf16>
    %cst_39 = arith.constant dense<0.000000e+00> : vector<168x126xf32>
    %69 = tpu.matmul %68, %67, %cst_39 {dimension_numbers = #tpu.dot_dimension_numbers<[1], [0], [0], [1], [0, 0, 1, 1], [], []>} : vector<168x126xbf16>, vector<126x126xbf16>, vector<168x126xf32> -> vector<168x126xf32>
    %70 = vector.extract_strided_slice %69 {offsets = [0, 0], sizes = [168, 42], strides = [1, 1]} : vector<168x126xf32> to vector<168x42xf32>
    %71 = vector.extract_strided_slice %69 {offsets = [0, 42], sizes = [168, 42], strides = [1, 1]} : vector<168x126xf32> to vector<168x42xf32>
    %72 = arith.maximumf %70, %71 : vector<168x42xf32>
    %73 = vector.extract_strided_slice %69 {offsets = [0, 84], sizes = [168, 42], strides = [1, 1]} : vector<168x126xf32> to vector<168x42xf32>
    %74 = arith.maximumf %72, %73 : vector<168x42xf32>
    %75 = arith.truncf %74 : vector<168x42xf32> to vector<168x42xbf16>
    %cst_40 = arith.constant 0.000000e+00 : f32
    %76 = vector.broadcast %cst_40 : f32 to vector<80x20xf32>
    %c0_41 = arith.constant 0 : index
    %c0_42 = arith.constant 0 : index
    %c0_43 = arith.constant 0 : index
    %77 = vector.load %arg5[%c0_41, %c0_42, %c0_43] : memref<3x42x20xbf16, #tpu.memory_space<vmem>>, vector<1x42x20xbf16>
    %78 = vector.shape_cast %77 : vector<1x42x20xbf16> to vector<42x20xbf16>
    %cst_44 = arith.constant dense<0.000000e+00> : vector<168x20xf32>
    %79 = tpu.matmul %75, %78, %cst_44 {dimension_numbers = #tpu.dot_dimension_numbers<[1], [0], [0], [1], [0, 0, 1, 1], [], []>} : vector<168x42xbf16>, vector<42x20xbf16>, vector<168x20xf32> -> vector<168x20xf32>
    %80 = arith.truncf %79 : vector<168x20xf32> to vector<168x20xbf16>
    %c0_45 = arith.constant 0 : index
    %c0_46 = arith.constant 0 : index
    %c0_47 = arith.constant 0 : index
    %81 = vector.load %arg6[%c0_45, %c0_46, %c0_47] : memref<3x80x168xbf16, #tpu.memory_space<vmem>>, vector<1x80x168xbf16>
    %82 = vector.shape_cast %81 : vector<1x80x168xbf16> to vector<80x168xbf16>
    %cst_48 = arith.constant dense<0.000000e+00> : vector<80x20xf32>
    %83 = tpu.matmul %82, %80, %cst_48 {dimension_numbers = #tpu.dot_dimension_numbers<[1], [0], [0], [1], [0, 0, 1, 1], [], []>} : vector<80x168xbf16>, vector<168x20xbf16>, vector<80x20xf32> -> vector<80x20xf32>
    %84 = arith.addf %76, %83 : vector<80x20xf32>
    %c1_49 = arith.constant 1 : index
    %c0_50 = arith.constant 0 : index
    %c0_51 = arith.constant 0 : index
    %85 = vector.load %arg5[%c1_49, %c0_50, %c0_51] : memref<3x42x20xbf16, #tpu.memory_space<vmem>>, vector<1x42x20xbf16>
    %86 = vector.shape_cast %85 : vector<1x42x20xbf16> to vector<42x20xbf16>
    %cst_52 = arith.constant dense<0.000000e+00> : vector<168x20xf32>
    %87 = tpu.matmul %75, %86, %cst_52 {dimension_numbers = #tpu.dot_dimension_numbers<[1], [0], [0], [1], [0, 0, 1, 1], [], []>} : vector<168x42xbf16>, vector<42x20xbf16>, vector<168x20xf32> -> vector<168x20xf32>
    %88 = arith.truncf %87 : vector<168x20xf32> to vector<168x20xbf16>
    %c1_53 = arith.constant 1 : index
    %c0_54 = arith.constant 0 : index
    %c0_55 = arith.constant 0 : index
    %89 = vector.load %arg6[%c1_53, %c0_54, %c0_55] : memref<3x80x168xbf16, #tpu.memory_space<vmem>>, vector<1x80x168xbf16>
    %90 = vector.shape_cast %89 : vector<1x80x168xbf16> to vector<80x168xbf16>
    %cst_56 = arith.constant dense<0.000000e+00> : vector<80x20xf32>
    %91 = tpu.matmul %90, %88, %cst_56 {dimension_numbers = #tpu.dot_dimension_numbers<[1], [0], [0], [1], [0, 0, 1, 1], [], []>} : vector<80x168xbf16>, vector<168x20xbf16>, vector<80x20xf32> -> vector<80x20xf32>
    %92 = arith.addf %84, %91 : vector<80x20xf32>
    %c2_57 = arith.constant 2 : index
    %c0_58 = arith.constant 0 : index
    %c0_59 = arith.constant 0 : index
    %93 = vector.load %arg5[%c2_57, %c0_58, %c0_59] : memref<3x42x20xbf16, #tpu.memory_space<vmem>>, vector<1x42x20xbf16>
    %94 = vector.shape_cast %93 : vector<1x42x20xbf16> to vector<42x20xbf16>
    %cst_60 = arith.constant dense<0.000000e+00> : vector<168x20xf32>
    %95 = tpu.matmul %75, %94, %cst_60 {dimension_numbers = #tpu.dot_dimension_numbers<[1], [0], [0], [1], [0, 0, 1, 1], [], []>} : vector<168x42xbf16>, vector<42x20xbf16>, vector<168x20xf32> -> vector<168x20xf32>
    %96 = arith.truncf %95 : vector<168x20xf32> to vector<168x20xbf16>
    %c2_61 = arith.constant 2 : index
    %c0_62 = arith.constant 0 : index
    %c0_63 = arith.constant 0 : index
    %97 = vector.load %arg6[%c2_61, %c0_62, %c0_63] : memref<3x80x168xbf16, #tpu.memory_space<vmem>>, vector<1x80x168xbf16>
    %98 = vector.shape_cast %97 : vector<1x80x168xbf16> to vector<80x168xbf16>
    %cst_64 = arith.constant dense<0.000000e+00> : vector<80x20xf32>
    %99 = tpu.matmul %98, %96, %cst_64 {dimension_numbers = #tpu.dot_dimension_numbers<[1], [0], [0], [1], [0, 0, 1, 1], [], []>} : vector<80x168xbf16>, vector<168x20xbf16>, vector<80x20xf32> -> vector<80x20xf32>
    %100 = arith.addf %92, %99 : vector<80x20xf32>
    %101 = vector.extract_strided_slice %0 {offsets = [0, 0], sizes = [8, 80], strides = [1, 1]} : vector<8x504xf32> to vector<8x80xf32>
    %cst_65 = arith.constant dense<0.000000e+00> : vector<80xf32>
    %102 = vector.multi_reduction <add>, %100, %cst_65 [1] : vector<80x20xf32> to vector<80xf32>
    %103 = vector.shape_cast %102 : vector<80xf32> to vector<80x1xf32>
    %104 = arith.mulf %100, %100 : vector<80x20xf32>
    %cst_66 = arith.constant dense<0.000000e+00> : vector<80xf32>
    %105 = vector.multi_reduction <add>, %104, %cst_66 [1] : vector<80x20xf32> to vector<80xf32>
    %106 = vector.shape_cast %105 : vector<80xf32> to vector<80x1xf32>
    %cst_67 = arith.constant dense<0.000000e+00> : vector<8x1xf32>
    %107 = tpu.matmul %101, %103, %cst_67 {dimension_numbers = #tpu.dot_dimension_numbers<[1], [0], [0], [1], [0, 0, 1, 1], [], []>} : vector<8x80xf32>, vector<80x1xf32>, vector<8x1xf32> -> vector<8x1xf32>
    %cst_68 = arith.constant 2.000000e+02 : f32
    %108 = vector.broadcast %cst_68 : f32 to vector<8x1xf32>
    %109 = arith.divf %107, %108 : vector<8x1xf32>
    %cst_69 = arith.constant dense<0.000000e+00> : vector<8x1xf32>
    %110 = tpu.matmul %101, %106, %cst_69 {dimension_numbers = #tpu.dot_dimension_numbers<[1], [0], [0], [1], [0, 0, 1, 1], [], []>} : vector<8x80xf32>, vector<80x1xf32>, vector<8x1xf32> -> vector<8x1xf32>
    %cst_70 = arith.constant 2.000000e+02 : f32
    %111 = vector.broadcast %cst_70 : f32 to vector<8x1xf32>
    %112 = arith.divf %110, %111 : vector<8x1xf32>
    %113 = arith.mulf %109, %109 : vector<8x1xf32>
    %114 = arith.subf %112, %113 : vector<8x1xf32>
    %cst_71 = arith.constant 0.000000e+00 : f32
    %115 = vector.broadcast %cst_71 : f32 to vector<8x1xf32>
    %116 = arith.maximumf %114, %115 : vector<8x1xf32>
    %c0_72 = arith.constant 0 : index
    %c0_73 = arith.constant 0 : index
    %117 = vector.load %arg7[%c0_72, %c0_73] : memref<8x1xf32, #tpu.memory_space<vmem>>, vector<8x1xf32>
    %cst_74 = arith.constant 9.99999974E-6 : f32
    %118 = vector.broadcast %cst_74 : f32 to vector<8x1xf32>
    %119 = arith.addf %116, %118 : vector<8x1xf32>
    %120 = math.rsqrt %119 : vector<8x1xf32>
    %121 = arith.mulf %117, %120 : vector<8x1xf32>
    %c0_75 = arith.constant 0 : index
    %c0_76 = arith.constant 0 : index
    %122 = vector.load %arg8[%c0_75, %c0_76] : memref<8x1xf32, #tpu.memory_space<vmem>>, vector<8x1xf32>
    %123 = arith.mulf %109, %121 : vector<8x1xf32>
    %124 = arith.subf %122, %123 : vector<8x1xf32>
    %125 = vector.shape_cast %100 : vector<80x20xf32> to vector<10x8x20xf32>
    %126 = vector.shape_cast %121 : vector<8x1xf32> to vector<1x8x1xf32>
    %127 = vector.broadcast %126 : vector<1x8x1xf32> to vector<10x8x20xf32>
    %128 = arith.mulf %125, %127 : vector<10x8x20xf32>
    %129 = vector.shape_cast %124 : vector<8x1xf32> to vector<1x8x1xf32>
    %130 = vector.broadcast %129 : vector<1x8x1xf32> to vector<10x8x20xf32>
    %131 = arith.addf %128, %130 : vector<10x8x20xf32>
    %132 = vector.extract_strided_slice %131 {offsets = [0, 0, 0], sizes = [9, 8, 20], strides = [1, 1, 1]} : vector<10x8x20xf32> to vector<9x8x20xf32>
    %133 = vector.shape_cast %132 : vector<9x8x20xf32> to vector<3x3x8x20xf32>
    %134 = vector.extract_strided_slice %133 {offsets = [0, 0, 0, 0], sizes = [3, 1, 8, 20], strides = [1, 1, 1, 1]} : vector<3x3x8x20xf32> to vector<3x1x8x20xf32>
    %135 = vector.shape_cast %134 : vector<3x1x8x20xf32> to vector<3x8x20xf32>
    %136 = vector.extract_strided_slice %133 {offsets = [0, 1, 0, 0], sizes = [3, 1, 8, 20], strides = [1, 1, 1, 1]} : vector<3x3x8x20xf32> to vector<3x1x8x20xf32>
    %137 = vector.shape_cast %136 : vector<3x1x8x20xf32> to vector<3x8x20xf32>
    %138 = arith.maximumf %135, %137 : vector<3x8x20xf32>
    %139 = vector.extract_strided_slice %133 {offsets = [0, 2, 0, 0], sizes = [3, 1, 8, 20], strides = [1, 1, 1, 1]} : vector<3x3x8x20xf32> to vector<3x1x8x20xf32>
    %140 = vector.shape_cast %139 : vector<3x1x8x20xf32> to vector<3x8x20xf32>
    %141 = arith.maximumf %138, %140 : vector<3x8x20xf32>
    %142 = vector.shape_cast %141 : vector<3x8x20xf32> to vector<24x20xf32>
    %c0_77 = arith.constant 0 : index
    %c0_78 = arith.constant 0 : index
    %143 = vector.load %arg10[%c0_77, %c0_78] : memref<20x18xf32, #tpu.memory_space<vmem>>, vector<20x18xf32>
    %cst_79 = arith.constant dense<0.000000e+00> : vector<24x18xf32>
    %144 = tpu.matmul %142, %143, %cst_79 {dimension_numbers = #tpu.dot_dimension_numbers<[1], [0], [0], [1], [0, 0, 1, 1], [], []>} : vector<24x20xf32>, vector<20x18xf32>, vector<24x18xf32> -> vector<24x18xf32>
    %145 = vector.extract_strided_slice %144 {offsets = [0, 0], sizes = [24, 6], strides = [1, 1]} : vector<24x18xf32> to vector<24x6xf32>
    %146 = vector.extract_strided_slice %144 {offsets = [0, 6], sizes = [24, 6], strides = [1, 1]} : vector<24x18xf32> to vector<24x6xf32>
    %147 = arith.maximumf %145, %146 : vector<24x6xf32>
    %148 = vector.extract_strided_slice %144 {offsets = [0, 12], sizes = [24, 6], strides = [1, 1]} : vector<24x18xf32> to vector<24x6xf32>
    %149 = arith.maximumf %147, %148 : vector<24x6xf32>
    %c0_80 = arith.constant 0 : index
    %c0_81 = arith.constant 0 : index
    %150 = vector.load %arg13[%c0_80, %c0_81] : memref<40x1xf32, #tpu.memory_space<vmem>>, vector<40x1xf32>
    %151 = vector.shape_cast %150 : vector<40x1xf32> to vector<40x1xf32>
    %152 = vector.broadcast %151 : vector<40x1xf32> to vector<40x2xf32>
    %c0_82 = arith.constant 0 : index
    %c0_83 = arith.constant 0 : index
    %c0_84 = arith.constant 0 : index
    %153 = vector.load %arg11[%c0_82, %c0_83, %c0_84] : memref<3x6x2xf32, #tpu.memory_space<vmem>>, vector<1x6x2xf32>
    %154 = vector.shape_cast %153 : vector<1x6x2xf32> to vector<6x2xf32>
    %cst_85 = arith.constant dense<0.000000e+00> : vector<24x2xf32>
    %155 = tpu.matmul %149, %154, %cst_85 {dimension_numbers = #tpu.dot_dimension_numbers<[1], [0], [0], [1], [0, 0, 1, 1], [], []>} : vector<24x6xf32>, vector<6x2xf32>, vector<24x2xf32> -> vector<24x2xf32>
    %c0_86 = arith.constant 0 : index
    %c0_87 = arith.constant 0 : index
    %c0_88 = arith.constant 0 : index
    %156 = vector.load %arg12[%c0_86, %c0_87, %c0_88] : memref<3x40x24xf32, #tpu.memory_space<vmem>>, vector<1x40x24xf32>
    %157 = vector.shape_cast %156 : vector<1x40x24xf32> to vector<40x24xf32>
    %cst_89 = arith.constant dense<0.000000e+00> : vector<40x2xf32>
    %158 = tpu.matmul %157, %155, %cst_89 {dimension_numbers = #tpu.dot_dimension_numbers<[1], [0], [0], [1], [0, 0, 1, 1], [], []>} : vector<40x24xf32>, vector<24x2xf32>, vector<40x2xf32> -> vector<40x2xf32>
    %159 = arith.addf %152, %158 : vector<40x2xf32>
    %c1_90 = arith.constant 1 : index
    %c0_91 = arith.constant 0 : index
    %c0_92 = arith.constant 0 : index
    %160 = vector.load %arg11[%c1_90, %c0_91, %c0_92] : memref<3x6x2xf32, #tpu.memory_space<vmem>>, vector<1x6x2xf32>
    %161 = vector.shape_cast %160 : vector<1x6x2xf32> to vector<6x2xf32>
    %cst_93 = arith.constant dense<0.000000e+00> : vector<24x2xf32>
    %162 = tpu.matmul %149, %161, %cst_93 {dimension_numbers = #tpu.dot_dimension_numbers<[1], [0], [0], [1], [0, 0, 1, 1], [], []>} : vector<24x6xf32>, vector<6x2xf32>, vector<24x2xf32> -> vector<24x2xf32>
    %c1_94 = arith.constant 1 : index
    %c0_95 = arith.constant 0 : index
    %c0_96 = arith.constant 0 : index
    %163 = vector.load %arg12[%c1_94, %c0_95, %c0_96] : memref<3x40x24xf32, #tpu.memory_space<vmem>>, vector<1x40x24xf32>
    %164 = vector.shape_cast %163 : vector<1x40x24xf32> to vector<40x24xf32>
    %cst_97 = arith.constant dense<0.000000e+00> : vector<40x2xf32>
    %165 = tpu.matmul %164, %162, %cst_97 {dimension_numbers = #tpu.dot_dimension_numbers<[1], [0], [0], [1], [0, 0, 1, 1], [], []>} : vector<40x24xf32>, vector<24x2xf32>, vector<40x2xf32> -> vector<40x2xf32>
    %166 = arith.addf %159, %165 : vector<40x2xf32>
    %c2_98 = arith.constant 2 : index
    %c0_99 = arith.constant 0 : index
    %c0_100 = arith.constant 0 : index
    %167 = vector.load %arg11[%c2_98, %c0_99, %c0_100] : memref<3x6x2xf32, #tpu.memory_space<vmem>>, vector<1x6x2xf32>
    %168 = vector.shape_cast %167 : vector<1x6x2xf32> to vector<6x2xf32>
    %cst_101 = arith.constant dense<0.000000e+00> : vector<24x2xf32>
    %169 = tpu.matmul %149, %168, %cst_101 {dimension_numbers = #tpu.dot_dimension_numbers<[1], [0], [0], [1], [0, 0, 1, 1], [], []>} : vector<24x6xf32>, vector<6x2xf32>, vector<24x2xf32> -> vector<24x2xf32>
    %c2_102 = arith.constant 2 : index
    %c0_103 = arith.constant 0 : index
    %c0_104 = arith.constant 0 : index
    %170 = vector.load %arg12[%c2_102, %c0_103, %c0_104] : memref<3x40x24xf32, #tpu.memory_space<vmem>>, vector<1x40x24xf32>
    %171 = vector.shape_cast %170 : vector<1x40x24xf32> to vector<40x24xf32>
    %cst_105 = arith.constant dense<0.000000e+00> : vector<40x2xf32>
    %172 = tpu.matmul %171, %169, %cst_105 {dimension_numbers = #tpu.dot_dimension_numbers<[1], [0], [0], [1], [0, 0, 1, 1], [], []>} : vector<40x24xf32>, vector<24x2xf32>, vector<40x2xf32> -> vector<40x2xf32>
    %173 = arith.addf %166, %172 : vector<40x2xf32>
    %cst_106 = arith.constant 0.000000e+00 : f32
    %174 = vector.broadcast %cst_106 : f32 to vector<40x2xf32>
    %175 = arith.subf %174, %173 : vector<40x2xf32>
    %176 = math.exp %175 : vector<40x2xf32>
    %cst_107 = arith.constant 1.000000e+00 : f32
    %177 = vector.broadcast %cst_107 : f32 to vector<40x2xf32>
    %178 = arith.addf %177, %176 : vector<40x2xf32>
    %cst_108 = arith.constant 1.000000e+00 : f32
    %179 = vector.broadcast %cst_108 : f32 to vector<40x2xf32>
    %180 = arith.divf %179, %178 : vector<40x2xf32>
    %c0_109 = arith.constant 0 : index
    %c0_110 = arith.constant 0 : index
    %181 = vector.load %arg15[%c0_109, %c0_110] : memref<40x2xf32, #tpu.memory_space<vmem>>, vector<40x2xf32>
    tpu.vector_store %arg15[%c0_109, %c0_110], %180 {strides = array<i32>} : memref<40x2xf32, #tpu.memory_space<vmem>>, vector<40x2xf32>,
    return
  }
}

</mosaic_0001>

<bundles_post_ra>
// kernel: feature_extraction_forward.1
= control target key start
LH: loop header
LB: loop body
LE: loop exit
PB: predicated region body
PF: predicated region fallthrough
CT: control target
= control target key end

     0   :  { %v15559_v0 = vmov 0   ;;  %vm5168_vm0 = vcmask 1031168   ;;  %vm5610_vm1 = vcmask 982016   ;;  %vm6192_vm2 = vcmask 1046528   ;;  %s11104_s16 = smov 86   ;;  %s11105_s17 = smov 44   ;;  %s15543_s1 = inlined_call_operand.vmem [shape: bf16[3,256,126], index: 1, kind: input, shape index: {}]   ;;  %s15544_s0 = inlined_call_operand.vmem [shape: bf16[384,256], index: 0, kind: input, shape index: {}]   ;;  %s15545_s2 = inlined_call_operand.vmem [shape: bf16[3,504,384], index: 2, kind: input, shape index: {}]   ;;  %s15546_s14 = inlined_call_operand.vmem [shape: f32[8,504], index: 14, kind: input, shape index: {}]   ;;  %s15547_s9 = inlined_call_operand.vmem [shape: bf16[126,126], index: 9, kind: input, shape index: {}]   ;;  %s15548_s3 = inlined_call_operand.vmem [shape: f32[8,1], index: 3, kind: input, shape index: {}]   ;;  %s15549_s4 = inlined_call_operand.vmem [shape: f32[8,1], index: 4, kind: input, shape index: {}]   ;;  %s15550_s5 = inlined_call_operand.vmem [shape: bf16[3,42,20], index: 5, kind: input, shape index: {}]   ;;  %s15551_s6 = inlined_call_operand.vmem [shape: bf16[3,80,168], index: 6, kind: input, shape index: {}]   ;;  %s15552_s7 = inlined_call_operand.vmem [shape: f32[8,1], index: 7, kind: input, shape index: {}]   ;;  %s15553_s8 = inlined_call_operand.vmem [shape: f32[8,1], index: 8, kind: input, shape index: {}]   ;;  %s15554_s10 = inlined_call_operand.vmem [shape: f32[20,18], index: 10, kind: input, shape index: {}]   ;;  %s15555_s11 = inlined_call_operand.vmem [shape: f32[3,6,2], index: 11, kind: input, shape index: {}]   ;;  %s15556_s13 = inlined_call_operand.vmem [shape: f32[40,1], index: 13, kind: input, shape index: {}]   ;;  %s15557_s12 = inlined_call_operand.vmem [shape: f32[3,40,24], index: 12, kind: input, shape index: {}]   ;;  %s15558_s15 = inlined_call_operand.vmem [shape: f32[40,2], index: 15, kind: output, shape index: {}]  }
   0x1   :  { %975 = vmatprep.subr.bf16.mxu1 %v15559_v0  ;;  %v10465_v1 = vld [vmem:[%s15543_s1 + $0xb8] sm:$0xff]   ;;  %471 = vmatprep.subr.bf16.mxu0 %v15559_v0  ;;  %v10466_v2 = vld [vmem:[%s15543_s1 + $0xb0] sm:$0xff]   ;;  %v10467_v3 = vld [vmem:[%s15543_s1 + $0xa8] sm:$0xff]   ;;  %vm11103_vm3 = vmmov 0   ;;  %vm6573_vm4 = vcmask 1044480   ;;  %vm6539_vm5 = vcmask 343040  }
   0x2   :  { %10363 = vset.pattern.permute.xlu0 %v15559_v0  ;;  %10364 = vset.pattern.permute.xlu1 %v15559_v0  ;;  %v10468_v4 = vld [vmem:[%s15543_s1 + $0xa0] sm:$0xff]   ;;  %v10469_v5 = vld [vmem:[%s15543_s1 + $0x98] sm:$0xff]   ;;  %v10470_v7 = vld [vmem:[%s15543_s1 + $0x90] sm:$0xff]   ;;  %vm6932_vm6 = vcmask 326656   ;;  %vm6948_vm7 = vcmask 1043456   ;;  %vm7476_vm8 = vcmask 162816  }
   0x3   :  { %976 = vmatpush1.bf16.msra.mxu1 %v10465_v1  ;;  %v10481_v6 = vld [vmem:[%s15544_s0 + $0x4] ss:$8 sps:$4 sm:$0xff]   ;;  %v10484_v8 = vld [vmem:[%s15543_s1 + $0x38] sm:$0xff]   ;;  %v10485_v9 = vld [vmem:[%s15543_s1 + $0x30] sm:$0xff]   ;;  %vm7547_vm9 = vcmask 654336   ;;  %vm7901_vm10 = vcmask 1045504  }
   0x4   :  { %977 = vmatprep.subr.bf16.mxu1 %v15559_v0  ;;  %1007 = vmatprep.mubr.bf16.mxu1 %v10481_v6  ;;  %v10471_v10 = vld [vmem:[%s15543_s1 + $0x88] sm:$0xff]   ;;  %v10472_v12 = vld [vmem:[%s15543_s1 + $0x80] sm:$0xff]   ;;  %v10473_v14 = vld [vmem:[%s15543_s1 + $0xf8] sm:$0xff]   ;;  %s11107_s24 = smov 122   ;;  %vm7891_vm11 = vcmask 48128   ;;  %vm7990_vm12 = vcmask 195584  }
   0x5   :  { %503 = vmatprep.mubr.bf16.mxu0 %v10481_v6  ;;  %472 = vmatpush1.bf16.msra.mxu0 %v10484_v8  ;;  %v10489_v11 = vld [vmem:[%s15543_s1 + $0x28] sm:$0xff]   ;;  %v10490_v13 = vld [vmem:[%s15543_s1 + $0x20] sm:$0xff]   ;;  %v10494_v15 = vld [vmem:[%s15543_s1 + $0x18] sm:$0xff]   ;;  %vm8533_vm13 = vcmask 15360  }
   0x6   :  { %473 = vmatprep.subr.bf16.mxu0 %v15559_v0  ;;  %v10474_v16 = vld [vmem:[%s15543_s1 + $0xf0] sm:$0xff]   ;;  %v10475_v18 = vld [vmem:[%s15543_s1 + $0xe8] sm:$0xff]   ;;  %v10476_v20 = vld [vmem:[%s15543_s1 + $0xe0] sm:$0xff]  }
   0x7   :  { %978 = vmatpush1.bf16.msra.mxu1 %v10466_v2  ;;  %v10495_v17 = vld [vmem:[%s15543_s1 + $0x10] sm:$0xff]   ;;  %v10499_v19 = vld [vmem:[%s15543_s1 + $0x8] sm:$0xff]   ;;  %v10500_v21 = vld [vmem:[%s15543_s1] sm:$0xff]  }
   0x8   :  { %979 = vmatprep.subr.bf16.mxu1 %v15559_v0  ;;  %v10477_v22 = vld [vmem:[%s15543_s1 + $0xd8] sm:$0xff]   ;;  %v10478_v24 = vld [vmem:[%s15543_s1 + $0xd0] sm:$0xff]   ;;  %v10479_v26 = vld [vmem:[%s15543_s1 + $0xc8] sm:$0xff]  }
   0x9   :  { %474 = vmatpush1.bf16.msra.mxu0 %v10485_v9  ;;  %v10504_v23 = vld [vmem:[%s15543_s1 + $0x78] sm:$0xff]   ;;  %v10505_v25 = vld [vmem:[%s15543_s1 + $0x70] sm:$0xff]   ;;  %v10509_v27 = vld [vmem:[%s15543_s1 + $0x68] sm:$0xff]  }
   0xa   :  { %475 = vmatprep.subr.bf16.mxu0 %v15559_v0  ;;  %v10480_v28 = vld [vmem:[%s15543_s1 + $0xc0] sm:$0xff]   ;;  %v10486_v31 = vld [vmem:[%s15544_s0 + $0x14] ss:$8 sps:$4 sm:$0xff]   ;;  %v10488_v34 = vld [vmem:[%s15544_s0 + $0x10] ss:$8 sps:$4 sm:$0xff]  }
   0xb   :  { %980 = vmatpush1.bf16.msra.mxu1 %v10467_v3  ;;  %v10510_v29 = vld [vmem:[%s15543_s1 + $0x60] sm:$0xff]   ;;  %v10514_v32 = vld [vmem:[%s15543_s1 + $0x58] sm:$0xff]   ;;  %v10515_v33 = vld [vmem:[%s15543_s1 + $0x50] sm:$0xff]  }
   0xc   :  { %981 = vmatprep.subr.bf16.mxu1 %v15559_v0  ;;  %v10483_v30 = vld [vmem:[%s15544_s0] ss:$8 sps:$4 sm:$0xff]   ;;  %v10491_v35 = vld [vmem:[%s15544_s0 + $0x24] ss:$8 sps:$4 sm:$0xff]   ;;  %v10496_v39 = vld [vmem:[%s15544_s0 + $0x34] ss:$8 sps:$4 sm:$0xff]  }
   0xd   :  { %476 = vmatpush1.bf16.msra.mxu0 %v10489_v11  ;;  %v10519_v36 = vld [vmem:[%s15543_s1 + $0x48] sm:$0xff]   ;;  %v10520_v37 = vld [vmem:[%s15543_s1 + $0x40] sm:$0xff]   ;;  %v10498_v40 = vld [vmem:[%s15544_s0 + $0x30] ss:$8 sps:$4 sm:$0xff]  }
   0xe   :  { %477 = vmatprep.subr.bf16.mxu0 %v15559_v0  ;;  %v10493_v38 = vld [vmem:[%s15544_s0 + $0x20] ss:$8 sps:$4 sm:$0xff]   ;;  %v10501_v41 = vld [vmem:[%s15544_s0 + $0x44] ss:$8 sps:$4 sm:$0xff]   ;;  %v10506_v43 = vld [vmem:[%s15544_s0 + $0x54] ss:$8 sps:$4 sm:$0xff]  }
   0xf   :  { %982 = vmatpush1.bf16.msra.mxu1 %v10468_v4  ;;  %v10503_v42 = vld [vmem:[%s15544_s0 + $0x40] ss:$8 sps:$4 sm:$0xff]   ;;  %v10508_v44 = vld [vmem:[%s15544_s0 + $0x50] ss:$8 sps:$4 sm:$0xff]   ;;  %v10511_v45 = vld [vmem:[%s15544_s0 + $0x64] ss:$8 sps:$4 sm:$0xff]  }
  0x10   :  { %983 = vmatprep.subr.bf16.mxu1 %v15559_v0  ;;  %v10513_v46 = vld [vmem:[%s15544_s0 + $0x60] ss:$8 sps:$4 sm:$0xff]   ;;  %v10516_v47 = vld [vmem:[%s15544_s0 + $0x74] ss:$8 sps:$4 sm:$0xff]   ;;  %v10518_v48 = vld [vmem:[%s15544_s0 + $0x70] ss:$8 sps:$4 sm:$0xff]  }
  0x11   :  { %478 = vmatpush1.bf16.msra.mxu0 %v10490_v13  ;;  %v10521_v49 = vld [vmem:[%s15544_s0 + $0x84] ss:$8 sps:$4 sm:$0xff]   ;;  %v10523_v50 = vld [vmem:[%s15544_s0 + $0x80] ss:$8 sps:$4 sm:$0xff]   ;;  %v10524_v51 = vld [vmem:[%s15544_s0 + $0x94] ss:$8 sps:$4 sm:$0xff]  }
  0x12   :  { %479 = vmatprep.subr.bf16.mxu0 %v15559_v0  ;;  %v10526_v52 = vld [vmem:[%s15544_s0 + $0x90] ss:$8 sps:$4 sm:$0xff]   ;;  %v10527_v53 = vld [vmem:[%s15544_s0 + $0xa4] ss:$8 sps:$4 sm:$0xff]   ;;  %v10529_v54 = vld [vmem:[%s15544_s0 + $0xa0] ss:$8 sps:$4 sm:$0xff]  }
  0x13   :  { %984 = vmatpush1.bf16.msra.mxu1 %v10469_v5  ;;  %v10530_v55 = vld [vmem:[%s15544_s0 + $0xb4] ss:$8 sps:$4 sm:$0xff]   ;;  %v10532_v56 = vld [vmem:[%s15544_s0 + $0xb0] ss:$8 sps:$4 sm:$0xff]   ;;  %v10533_v57 = vld [vmem:[%s15544_s0 + $0xc4] ss:$8 sps:$4 sm:$0xff]  }
  0x14   :  { %985 = vmatprep.subr.bf16.mxu1 %v15559_v0  ;;  %v10535_v58 = vld [vmem:[%s15544_s0 + $0xc0] ss:$8 sps:$4 sm:$0xff]   ;;  %v10536_v59 = vld [vmem:[%s15544_s0 + $0xd4] ss:$8 sps:$4 sm:$0xff]   ;;  %v10538_v60 = vld [vmem:[%s15544_s0 + $0xd0] ss:$8 sps:$4 sm:$0xff]  }
  0x15   :  { %480 = vmatpush1.bf16.msra.mxu0 %v10494_v15  ;;  %v10539_v61 = vld [vmem:[%s15544_s0 + $0xe4] ss:$8 sps:$4 sm:$0xff]   ;;  %v10541_v62 = vld [vmem:[%s15544_s0 + $0xe0] ss:$8 sps:$4 sm:$0xff]   ;;  %v10542_v63 = vld [vmem:[%s15544_s0 + $0xf4] ss:$8 sps:$4 sm:$0xff]  }
  0x16   :  { %481 = vmatprep.subr.bf16.mxu0 %v15559_v0  ;;  %v10544_v1 = vld [vmem:[%s15544_s0 + $0xf0] ss:$8 sps:$4 sm:$0xff]   ;;  %v10545_v2 = vld [vmem:[%s15544_s0 + $0x104] ss:$8 sps:$4 sm:$0xff]   ;;  %v10547_v3 = vld [vmem:[%s15544_s0 + $0x100] ss:$8 sps:$4 sm:$0xff]  }
  0x17   :  { %986 = vmatpush1.bf16.msra.mxu1 %v10470_v7  ;;  %v10548_v4 = vld [vmem:[%s15544_s0 + $0x114] ss:$8 sps:$4 sm:$0xff]   ;;  %v10550_v5 = vld [vmem:[%s15544_s0 + $0x110] ss:$8 sps:$4 sm:$0xff]   ;;  %v10551_v6 = vld [vmem:[%s15544_s0 + $0x124] ss:$8 sps:$4 sm:$0xff]  }
  0x18   :  { %987 = vmatprep.subr.bf16.mxu1 %v15559_v0  ;;  %v10553_v7 = vld [vmem:[%s15544_s0 + $0x120] ss:$8 sps:$4 sm:$0xff]   ;;  %v10554_v8 = vld [vmem:[%s15544_s0 + $0x134] ss:$8 sps:$4 sm:$0xff]   ;;  %v10556_v9 = vld [vmem:[%s15544_s0 + $0x130] ss:$8 sps:$4 sm:$0xff]  }
  0x19   :  { %482 = vmatpush1.bf16.msra.mxu0 %v10495_v17  ;;  %v10559_v11 = vld [vmem:[%s15544_s0 + $0x140] ss:$8 sps:$4 sm:$0xff]   ;;  %v10562_v13 = vld [vmem:[%s15544_s0 + $0x150] ss:$8 sps:$4 sm:$0xff]  }
  0x1a   :  { %483 = vmatprep.subr.bf16.mxu0 %v15559_v0  ;;  %v10565_v15 = vld [vmem:[%s15544_s0 + $0x160] ss:$8 sps:$4 sm:$0xff]   ;;  %v10568_v17 = vld [vmem:[%s15544_s0 + $0x170] ss:$8 sps:$4 sm:$0xff]  }
  0x1b   :  { %988 = vmatpush1.bf16.msra.mxu1 %v10471_v10  ;;  %v10557_v10 = vld [vmem:[%s15544_s0 + $0x144] ss:$8 sps:$4 sm:$0xff]  }
  0x1c   :  { %989 = vmatprep.subr.bf16.mxu1 %v15559_v0 }
  0x1d   :  { %484 = vmatpush1.bf16.msra.mxu0 %v10499_v19 }
  0x1e   :  { %485 = vmatprep.subr.bf16.mxu0 %v15559_v0 }
  0x1f   :  { %990 = vmatpush1.bf16.msra.mxu1 %v10472_v12  ;;  %v10560_v12 = vld [vmem:[%s15544_s0 + $0x154] ss:$8 sps:$4 sm:$0xff]  }
  0x20   :  { %991 = vmatprep.subr.bf16.mxu1 %v15559_v0 }
  0x21   :  { %486 = vmatpush1.bf16.msra.mxu0 %v10500_v21 }
  0x22   :  { %487 = vmatprep.subr.bf16.mxu0 %v15559_v0 }
  0x23   :  { %992 = vmatpush2.bf16.msra.mxu1 %v10473_v14  ;;  %v10563_v14 = vld [vmem:[%s15544_s0 + $0x164] ss:$8 sps:$4 sm:$0xff]  }
  0x24   :  { %993 = vmatprep.subr.bf16.mxu1 %v15559_v0 }
  0x25   :  { %488 = vmatpush2.bf16.msra.mxu0 %v10504_v23 }
  0x26   :  { %489 = vmatprep.subr.bf16.mxu0 %v15559_v0 }
  0x27   :  { %994 = vmatpush2.bf16.msra.mxu1 %v10474_v16  ;;  %v10566_v16 = vld [vmem:[%s15544_s0 + $0x174] ss:$8 sps:$4 sm:$0xff]  }
  0x28   :  { %995 = vmatprep.subr.bf16.mxu1 %v15559_v0 }
  0x29   :  { %490 = vmatpush2.bf16.msra.mxu0 %v10505_v25 }
  0x2a   :  { %491 = vmatprep.subr.bf16.mxu0 %v15559_v0 }
  0x2b   :  { %996 = vmatpush2.bf16.msra.mxu1 %v10475_v18 }
  0x2c   :  { %997 = vmatprep.subr.bf16.mxu1 %v15559_v0 }
  0x2d   :  { %492 = vmatpush2.bf16.msra.mxu0 %v10509_v27 }
  0x2e   :  { %493 = vmatprep.subr.bf16.mxu0 %v15559_v0 }
  0x2f   :  { %998 = vmatpush2.bf16.msra.mxu1 %v10476_v20 }
  0x30   :  { %999 = vmatprep.subr.bf16.mxu1 %v15559_v0 }
  0x31   :  { %494 = vmatpush2.bf16.msra.mxu0 %v10510_v29 }
  0x32   :  { %495 = vmatprep.subr.bf16.mxu0 %v15559_v0 }
  0x33   :  { %1000 = vmatpush2.bf16.msra.mxu1 %v10477_v22 }
  0x34   :  { %1001 = vmatprep.subr.bf16.mxu1 %v15559_v0 }
  0x35   :  { %496 = vmatpush2.bf16.msra.mxu0 %v10514_v32 }
  0x36   :  { %497 = vmatprep.subr.bf16.mxu0 %v15559_v0 }
  0x37   :  { %1002 = vmatpush2.bf16.msra.mxu1 %v10478_v24 }
  0x38   :  { %1003 = vmatprep.subr.bf16.mxu1 %v15559_v0 }
  0x39   :  { %498 = vmatpush2.bf16.msra.mxu0 %v10515_v33 }
  0x3a   :  { %499 = vmatprep.subr.bf16.mxu0 %v15559_v0 }
  0x3b   :  { %1004 = vmatpush2.bf16.msra.mxu1 %v10479_v26 }
  0x3c   :  { %1005 = vmatprep.subr.bf16.mxu1 %v15559_v0 }
  0x3d   :  { %500 = vmatpush2.bf16.msra.mxu0 %v10519_v36 }
  0x3e   :  { %501 = vmatprep.subr.bf16.mxu0 %v15559_v0 }
  0x3f   :  { %1006 = vmatpush2.bf16.msra.mxu1 %v10480_v28 }
  0x41   :  { %502 = vmatpush2.bf16.msra.mxu0 %v10520_v37 }
  0x42   :  { %1008 = vmatmul.mubr.bf16.vlgmr.msra.gmra.mxu1 %v10483_v30  ;;  %1858 = vmatprep.subr.bf16.mxu0 %v15559_v0 }
  0x43   :  { %1015 = vmatprep.mubr.bf16.mxu1 %v10486_v31 }
  0x44   :  { %504 = vmatmul.mubr.bf16.vlgmr.msra.gmra.mxu0 %v10483_v30 }
  0x45   :  { %511 = vmatprep.mubr.bf16.mxu0 %v10486_v31 }
  0x4a   :  { %1016 = vmatmul.mubr.bf16.gmra.mxu1 %v10488_v34 }
  0x4b   :  { %1023 = vmatprep.mubr.bf16.mxu1 %v10491_v35 }
  0x4c   :  { %512 = vmatmul.mubr.bf16.gmra.mxu0 %v10488_v34 }
  0x4d   :  { %519 = vmatprep.mubr.bf16.mxu0 %v10491_v35 }
  0x52   :  { %1024 = vmatmul.mubr.bf16.gmra.mxu1 %v10493_v38 }
  0x53   :  { %1031 = vmatprep.mubr.bf16.mxu1 %v10496_v39 }
  0x54   :  { %520 = vmatmul.mubr.bf16.gmra.mxu0 %v10493_v38 }
  0x55   :  { %527 = vmatprep.mubr.bf16.mxu0 %v10496_v39 }
  0x5a   :  { %1032 = vmatmul.mubr.bf16.gmra.mxu1 %v10498_v40 }
  0x5b   :  { %1039 = vmatprep.mubr.bf16.mxu1 %v10501_v41 }
  0x5c   :  { %528 = vmatmul.mubr.bf16.gmra.mxu0 %v10498_v40  ;;  %v10571_v40 = vld [vmem:[%s15545_s2 + $0x2f8] ss:$12 sps:$4 sm:$0xff]  }
  0x5d   :  { %535 = vmatprep.mubr.bf16.mxu0 %v10501_v41 }
  0x62   :  { %1040 = vmatmul.mubr.bf16.gmra.mxu1 %v10503_v42 }
  0x63   :  { %1047 = vmatprep.mubr.bf16.mxu1 %v10506_v43 }
  0x64   :  { %536 = vmatmul.mubr.bf16.gmra.mxu0 %v10503_v42 }
  0x65   :  { %543 = vmatprep.mubr.bf16.mxu0 %v10506_v43 }
  0x6a   :  { %1048 = vmatmul.mubr.bf16.gmra.mxu1 %v10508_v44 }
  0x6b   :  { %1055 = vmatprep.mubr.bf16.mxu1 %v10511_v45 }
  0x6c   :  { %544 = vmatmul.mubr.bf16.gmra.mxu0 %v10508_v44 }
  0x6d   :  { %551 = vmatprep.mubr.bf16.mxu0 %v10511_v45 }
  0x72   :  { %1056 = vmatmul.mubr.bf16.gmra.mxu1 %v10513_v46 }
  0x73   :  { %1063 = vmatprep.mubr.bf16.mxu1 %v10516_v47 }
  0x74   :  { %552 = vmatmul.mubr.bf16.gmra.mxu0 %v10513_v46 }
  0x75   :  { %559 = vmatprep.mubr.bf16.mxu0 %v10516_v47 }
  0x7a   :  { %1064 = vmatmul.mubr.bf16.gmra.mxu1 %v10518_v48 }
  0x7b   :  { %1071 = vmatprep.mubr.bf16.mxu1 %v10521_v49 }
  0x7c   :  { %560 = vmatmul.mubr.bf16.gmra.mxu0 %v10518_v48 }
  0x7d   :  { %567 = vmatprep.mubr.bf16.mxu0 %v10521_v49 }
  0x82   :  { %1072 = vmatmul.mubr.bf16.gmra.mxu1 %v10523_v50 }
  0x83   :  { %1079 = vmatprep.mubr.bf16.mxu1 %v10524_v51 }
  0x84   :  { %568 = vmatmul.mubr.bf16.gmra.mxu0 %v10523_v50 }
  0x85   :  { %575 = vmatprep.mubr.bf16.mxu0 %v10524_v51 }
  0x8a   :  { %1080 = vmatmul.mubr.bf16.gmra.mxu1 %v10526_v52 }
  0x8b   :  { %1087 = vmatprep.mubr.bf16.mxu1 %v10527_v53 }
  0x8c   :  { %576 = vmatmul.mubr.bf16.gmra.mxu0 %v10526_v52 }
  0x8d   :  { %583 = vmatprep.mubr.bf16.mxu0 %v10527_v53 }
  0x92   :  { %1088 = vmatmul.mubr.bf16.gmra.mxu1 %v10529_v54 }
  0x93   :  { %1095 = vmatprep.mubr.bf16.mxu1 %v10530_v55 }
  0x94   :  { %584 = vmatmul.mubr.bf16.gmra.mxu0 %v10529_v54  ;;  %v10583_v54 = vld [vmem:[%s15545_s2 + $0x358] ss:$12 sps:$4 sm:$0xff]  }
  0x95   :  { %591 = vmatprep.mubr.bf16.mxu0 %v10530_v55 }
  0x9a   :  { %1096 = vmatmul.mubr.bf16.gmra.mxu1 %v10532_v56 }
  0x9b   :  { %1103 = vmatprep.mubr.bf16.mxu1 %v10533_v57 }
  0x9c   :  { %592 = vmatmul.mubr.bf16.gmra.mxu0 %v10532_v56 }
  0x9d   :  { %599 = vmatprep.mubr.bf16.mxu0 %v10533_v57 }
  0xa2   :  { %1104 = vmatmul.mubr.bf16.gmra.mxu1 %v10535_v58 }
  0xa3   :  { %1111 = vmatprep.mubr.bf16.mxu1 %v10536_v59 }
  0xa4   :  { %600 = vmatmul.mubr.bf16.gmra.mxu0 %v10535_v58 }
  0xa5   :  { %607 = vmatprep.mubr.bf16.mxu0 %v10536_v59 }
  0xaa   :  { %1112 = vmatmul.mubr.bf16.gmra.mxu1 %v10538_v60 }
  0xab   :  { %1119 = vmatprep.mubr.bf16.mxu1 %v10539_v61 }
  0xac   :  { %608 = vmatmul.mubr.bf16.gmra.mxu0 %v10538_v60 }
  0xad   :  { %615 = vmatprep.mubr.bf16.mxu0 %v10539_v61 }
  0xb2   :  { %1120 = vmatmul.mubr.bf16.gmra.mxu1 %v10541_v62 }
  0xb3   :  { %1127 = vmatprep.mubr.bf16.mxu1 %v10542_v63 }
  0xb4   :  { %616 = vmatmul.mubr.bf16.gmra.mxu0 %v10541_v62 }
  0xb5   :  { %623 = vmatprep.mubr.bf16.mxu0 %v10542_v63 }
  0xba   :  { %1128 = vmatmul.mubr.bf16.gmra.mxu1 %v10544_v1 }
  0xbb   :  { %1135 = vmatprep.mubr.bf16.mxu1 %v10545_v2 }
  0xbc   :  { %624 = vmatmul.mubr.bf16.gmra.mxu0 %v10544_v1 }
  0xbd   :  { %631 = vmatprep.mubr.bf16.mxu0 %v10545_v2 }
  0xc2   :  { %1136 = vmatmul.mubr.bf16.gmra.mxu1 %v10547_v3 }
  0xc3   :  { %1143 = vmatprep.mubr.bf16.mxu1 %v10548_v4 }
  0xc4   :  { %632 = vmatmul.mubr.bf16.gmra.mxu0 %v10547_v3 }
  0xc5   :  { %639 = vmatprep.mubr.bf16.mxu0 %v10548_v4 }
  0xca   :  { %1144 = vmatmul.mubr.bf16.gmra.mxu1 %v10550_v5 }
  0xcb   :  { %1151 = vmatprep.mubr.bf16.mxu1 %v10551_v6 }
  0xcc   :  { %640 = vmatmul.mubr.bf16.gmra.mxu0 %v10550_v5 }
  0xcd   :  { %647 = vmatprep.mubr.bf16.mxu0 %v10551_v6 }
  0xd2   :  { %1152 = vmatmul.mubr.bf16.gmra.mxu1 %v10553_v7 }
  0xd3   :  { %1159 = vmatprep.mubr.bf16.mxu1 %v10554_v8 }
  0xd4   :  { %648 = vmatmul.mubr.bf16.gmra.mxu0 %v10553_v7 }
  0xd5   :  { %655 = vmatprep.mubr.bf16.mxu0 %v10554_v8 }
  0xda   :  { %1160 = vmatmul.mubr.bf16.gmra.mxu1 %v10556_v9 }
  0xdb   :  { %1167 = vmatprep.mubr.bf16.mxu1 %v10557_v10 }
  0xdc   :  { %656 = vmatmul.mubr.bf16.gmra.mxu0 %v10556_v9 }
  0xdd   :  { %663 = vmatprep.mubr.bf16.mxu0 %v10557_v10 }
  0xe2   :  { %1168 = vmatmul.mubr.bf16.gmra.mxu1 %v10559_v11 }
  0xe3   :  { %1175 = vmatprep.mubr.bf16.mxu1 %v10560_v12 }
  0xe4   :  { %664 = vmatmul.mubr.bf16.gmra.mxu0 %v10559_v11 }
  0xe5   :  { %671 = vmatprep.mubr.bf16.mxu0 %v10560_v12 }
  0xea   :  { %1176 = vmatmul.mubr.bf16.gmra.mxu1 %v10562_v13 }
  0xeb   :  { %1183 = vmatprep.mubr.bf16.mxu1 %v10563_v14 }
  0xec   :  { %672 = vmatmul.mubr.bf16.gmra.mxu0 %v10562_v13 }
  0xed   :  { %679 = vmatprep.mubr.bf16.mxu0 %v10563_v14 }
  0xf2   :  { %1184 = vmatmul.mubr.bf16.gmra.mxu1 %v10565_v15 }
  0xf3   :  { %1191 = vmatprep.mubr.bf16.mxu1 %v10566_v16 }
  0xf4   :  { %680 = vmatmul.mubr.bf16.gmra.mxu0 %v10565_v15 }
  0xf5   :  { %687 = vmatprep.mubr.bf16.mxu0 %v10566_v16 }
  0xfa   :  { %1192 = vmatmul.mubr.bf16.gmra.mxu1 %v10568_v17 }
  0xfc   :  { %688 = vmatmul.mubr.bf16.gmra.mxu0 %v10568_v17 }
  0xfd   :  { %1890 = vmatprep.mubr.bf16.mxu0 %v10571_v40 }
 0x102   :  { %v11463_v18 = vpop.f32.mrf.mxu1 }
 0x104   :  { %v1011_v19 = vpop.f32.mrf.mxu1  ;;  %v11477_v30 = vpop.f32.mrf.mxu0 }
 0x106   :  { %v11465_v20 = vpop.f32.mrf.mxu1  ;;  %v507_v32 = vpop.f32.mrf.mxu0 }
 0x107   :  { %v1200_v21 = vpack.c.bf16 %v11465_v20, %v11463_v18 }
 0x108   :  { %v1014_v22 = vpop.f32.mrf.mxu1  ;;  %v11481_v34 = vpop.f32.mrf.mxu0 }
 0x10a   :  { %v11469_v23 = vpop.f32.mrf.mxu1  ;;  %v510_v37 = vpop.f32.mrf.mxu0 }
 0x10c   :  { %v1019_v24 = vpop.f32.mrf.mxu1  ;;  %v11487_v39 = vpop.f32.mrf.mxu0 }
 0x10e   :  { %v11471_v25 = vpop.f32.mrf.mxu1  ;;  %v515_v42 = vpop.f32.mrf.mxu0 }
 0x10f   :  { %v1201_v26 = vpack.c.bf16 %v11471_v25, %v11469_v23  ;;  %v10596_v25 = vld [vmem:[%s15545_s2 + $0x2fc] ss:$12 sps:$4 sm:$0xff]  }
 0x110   :  { %v1022_v27 = vpop.f32.mrf.mxu1  ;;  %v11494_v44 = vpop.f32.mrf.mxu0  ;;  %9759 = vmatprep.mubr.bf16.mxu1 %v10596_v25 }
 0x112   :  { %v11475_v28 = vpop.f32.mrf.mxu1  ;;  %v518_v47 = vpop.f32.mrf.mxu0 }
 0x114   :  { %v1027_v29 = vpop.f32.mrf.mxu1  ;;  %v11498_v49 = vpop.f32.mrf.mxu0 }
 0x116   :  { %v11479_v31 = vpop.f32.mrf.mxu1  ;;  %v523_v51 = vpop.f32.mrf.mxu0 }
 0x118   :  { %v1030_v33 = vpop.f32.mrf.mxu1  ;;  %v11500_v53 = vpop.f32.mrf.mxu0 }
 0x11a   :  { %v11485_v36 = vpop.f32.mrf.mxu1  ;;  %v526_v56 = vpop.f32.mrf.mxu0 }
 0x11c   :  { %v1035_v38 = vpop.f32.mrf.mxu1  ;;  %v11504_v58 = vpop.f32.mrf.mxu0 }
 0x11e   :  { %v11492_v41 = vpop.f32.mrf.mxu1  ;;  %v531_v60 = vpop.f32.mrf.mxu0 }
 0x120   :  { %v1038_v43 = vpop.f32.mrf.mxu1  ;;  %v11506_v62 = vpop.f32.mrf.mxu0 }
 0x122   :  { %v1041_v46 = vpop.f32.mrf.mxu1  ;;  %v534_v2 = vpop.f32.mrf.mxu0 }
 0x124   :  { %v1043_v48 = vpop.f32.mrf.mxu1  ;;  %v11510_v4 = vpop.f32.mrf.mxu0 }
 0x125   :  { %v10586_v48 = vld [vmem:[%s15545_s2 + $0x370] ss:$12 sps:$4 sm:$0xff]  }
 0x126   :  { %v1044_v50 = vpop.f32.mrf.mxu1  ;;  %v539_v6 = vpop.f32.mrf.mxu0 }
 0x127   :  { %v1204_v56 = vpack.c.bf16 %v1044_v50, %v1041_v46  ;;  %v1202_v6 = vpack.c.bf16 %v11479_v31, %v11475_v28 }
 0x128   :  { %v1046_v52 = vpop.f32.mrf.mxu1  ;;  %v11512_v8 = vpop.f32.mrf.mxu0 }
 0x12a   :  { %v1049_v55 = vpop.f32.mrf.mxu1  ;;  %v542_v11 = vpop.f32.mrf.mxu0 }
 0x12c   :  { %v1051_v57 = vpop.f32.mrf.mxu1  ;;  %v11516_v13 = vpop.f32.mrf.mxu0 }
 0x12e   :  { %v1052_v59 = vpop.f32.mrf.mxu1  ;;  %v547_v15 = vpop.f32.mrf.mxu0 }
 0x12f   :  { %v1205_v40 = vpack.c.bf16 %v1052_v59, %v1049_v55 }
 0x130   :  { %v1054_v61 = vpop.f32.mrf.mxu1  ;;  %v11518_v19 = vpop.f32.mrf.mxu0 }
 0x131   :  { %v1203_v61 = vpack.c.bf16 %v11492_v41, %v11485_v36 }
 0x132   :  { %v1057_v1 = vpop.f32.mrf.mxu1  ;;  %v550_v27 = vpop.f32.mrf.mxu0 }
 0x134   :  { %v1059_v3 = vpop.f32.mrf.mxu1  ;;  %v11525_v33 = vpop.f32.mrf.mxu0 }
 0x136   :  { %v1060_v5 = vpop.f32.mrf.mxu1  ;;  %v555_v38 = vpop.f32.mrf.mxu0 }
 0x137   :  { %v1206_v29 = vpack.c.bf16 %v1060_v5, %v1057_v1 }
 0x138   :  { %v1062_v7 = vpop.f32.mrf.mxu1  ;;  %v11532_v47 = vpop.f32.mrf.mxu0 }
 0x13a   :  { %v1065_v10 = vpop.f32.mrf.mxu1  ;;  %v558_v52 = vpop.f32.mrf.mxu0 }
 0x13c   :  { %v1067_v12 = vpop.f32.mrf.mxu1  ;;  %v11539_v60 = vpop.f32.mrf.mxu0 }
 0x13e   :  { %v1068_v14 = vpop.f32.mrf.mxu1  ;;  %v563_v59 = vpop.f32.mrf.mxu0 }
 0x13f   :  { %v1207_v16 = vpack.c.bf16 %v1068_v14, %v1065_v10 }
 0x140   :  { %v1070_v17 = vpop.f32.mrf.mxu1  ;;  %v11548_v3 = vpop.f32.mrf.mxu0 }
 0x141   :  { %1859 = vmatpush1.bf16.msra.mxu0 %v1207_v16 }
 0x142   :  { %v11522_v24 = vpop.f32.mrf.mxu1  ;;  %1860 = vmatprep.subr.bf16.mxu0 %v15559_v0  ;;  %v566_v5 = vpop.f32.mrf.mxu0 }
 0x144   :  { %v1075_v32 = vpop.f32.mrf.mxu1  ;;  %v11557_v36 = vpop.f32.mrf.mxu0 }
 0x145   :  { %1861 = vmatpush1.bf16.msra.mxu0 %v1206_v29  ;;  %15629 = vst [vmem:[#allocation2_spill] sm:$0xff] %v11557_v36 }
 0x146   :  { %v11527_v37 = vpop.f32.mrf.mxu1  ;;  %1862 = vmatprep.subr.bf16.mxu0 %v15559_v0  ;;  %v571_v10 = vpop.f32.mrf.mxu0 }
 0x147   :  { %v1208_v42 = vpack.c.bf16 %v11527_v37, %v11522_v24  ;;  %v10575_v37 = vld [vmem:[%s15545_s2 + $0x328] ss:$12 sps:$4 sm:$0xff]  }
 0x148   :  { %v1078_v43 = vpop.f32.mrf.mxu1  ;;  %v11562_v12 = vpop.f32.mrf.mxu0 }
 0x149   :  { %1863 = vmatpush1.bf16.msra.mxu0 %v1205_v40  ;;  %15630 = vst [vmem:[#allocation3_spill] sm:$0xff] %v11562_v12 }
 0x14a   :  { %v11536_v51 = vpop.f32.mrf.mxu1  ;;  %1864 = vmatprep.subr.bf16.mxu0 %v15559_v0  ;;  %v574_v31 = vpop.f32.mrf.mxu0 }
 0x14c   :  { %v1083_v57 = vpop.f32.mrf.mxu1  ;;  %v11572_v16 = vpop.f32.mrf.mxu0 }
 0x14d   :  { %1865 = vmatpush1.bf16.msra.mxu0 %v1204_v56 }
 0x14e   :  { %v11541_v55 = vpop.f32.mrf.mxu1  ;;  %1866 = vmatprep.subr.bf16.mxu0 %v15559_v0  ;;  %v579_v23 = vpop.f32.mrf.mxu0 }
 0x14f   :  { %v1209_v1 = vpack.c.bf16 %v11541_v55, %v11536_v51  ;;  %v10572_v51 = vld [vmem:[%s15545_s2 + $0x310] ss:$12 sps:$4 sm:$0xff]  }
 0x150   :  { %v1086_v2 = vpop.f32.mrf.mxu1  ;;  %v11583_v27 = vpop.f32.mrf.mxu0 }
 0x151   :  { %1867 = vmatpush1.bf16.msra.mxu0 %v1203_v61 }
 0x152   :  { %v11552_v50 = vpop.f32.mrf.mxu1  ;;  %1868 = vmatprep.subr.bf16.mxu0 %v15559_v0  ;;  %v582_v38 = vpop.f32.mrf.mxu0 }
 0x154   :  { %v1091_v7 = vpop.f32.mrf.mxu1  ;;  %v11587_v20 = vpop.f32.mrf.mxu0 }
 0x155   :  { %1869 = vmatpush1.bf16.msra.mxu0 %v1202_v6 }
 0x156   :  { %v11559_v41 = vpop.f32.mrf.mxu1  ;;  %1870 = vmatprep.subr.bf16.mxu0 %v15559_v0  ;;  %v587_v40 = vpop.f32.mrf.mxu0 }
 0x158   :  { %v1094_v11 = vpop.f32.mrf.mxu1  ;;  %v11589_v52 = vpop.f32.mrf.mxu0 }
 0x159   :  { %1871 = vmatpush1.bf16.msra.mxu0 %v1201_v26 }
 0x15a   :  { %v11569_v28 = vpop.f32.mrf.mxu1  ;;  %1872 = vmatprep.subr.bf16.mxu0 %v15559_v0  ;;  %v590_v59 = vpop.f32.mrf.mxu0 }
 0x15c   :  { %v1099_v15 = vpop.f32.mrf.mxu1  ;;  %v11593_v2 = vpop.f32.mrf.mxu0 }
 0x15d   :  { %1873 = vmatpush1.bf16.msra.mxu0 %v1200_v21 }
 0x15e   :  { %v11577_v17 = vpop.f32.mrf.mxu1  ;;  %1874 = vmatprep.subr.bf16.mxu0 %v15559_v0  ;;  %v595_v6 = vpop.f32.mrf.mxu0 }
 0x160   :  { %v1102_v26 = vpop.f32.mrf.mxu1  ;;  %v11595_v10 = vpop.f32.mrf.mxu0 }
 0x162   :  { %v1105_v32 = vpop.f32.mrf.mxu1  ;;  %v598_v15 = vpop.f32.mrf.mxu0 }
 0x164   :  { %v1107_v18 = vpop.f32.mrf.mxu1  ;;  %v11599_v25 = vpop.f32.mrf.mxu0 }
 0x166   :  { %v1108_v21 = vpop.f32.mrf.mxu1  ;;  %v603_v38 = vpop.f32.mrf.mxu0 }
 0x168   :  { %v1110_v43 = vpop.f32.mrf.mxu1  ;;  %v11601_v40 = vpop.f32.mrf.mxu0 }
 0x16a   :  { %v1113_v57 = vpop.f32.mrf.mxu1 }
 0x16c   :  { %v1115_v61 = vpop.f32.mrf.mxu1 }
 0x16d   :  { %v606_v61 = vpop.f32.mrf.mxu0 }
 0x16e   :  { %v1116_v5 = vpop.f32.mrf.mxu1 }
 0x170   :  { %v1118_v7 = vpop.f32.mrf.mxu1 }
 0x171   :  { %v11605_v7 = vpop.f32.mrf.mxu0 }
 0x172   :  { %v1121_v31 = vpop.f32.mrf.mxu1 }
 0x173   :  { %v611_v29 = vpop.f32.mrf.mxu0 }
 0x174   :  { %v1123_v23 = vpop.f32.mrf.mxu1  ;;  %v1213_v29 = vpack.c.bf16 %v1116_v5, %v1113_v57  ;;  %v1211_v5 = vpack.c.bf16 %v11577_v17, %v11569_v28 }
 0x175   :  { %v11607_v23 = vpop.f32.mrf.mxu0 }
 0x176   :  { %v1124_v26 = vpop.f32.mrf.mxu1 }
 0x177   :  { %v614_v11 = vpop.f32.mrf.mxu0  ;;  %v1214_v43 = vpack.c.bf16 %v1124_v26, %v1121_v31  ;;  %v1212_v31 = vpack.c.bf16 %v1108_v21, %v1105_v32 }
 0x178   :  { %v1126_v18 = vpop.f32.mrf.mxu1 }
 0x179   :  { %v11612_v61 = vpop.f32.mrf.mxu0 }
 0x17a   :  { %v1129_v59 = vpop.f32.mrf.mxu1 }
 0x17c   :  { %v1131_v6 = vpop.f32.mrf.mxu1 }
 0x17e   :  { %v1132_v14 = vpop.f32.mrf.mxu1 }
 0x17f   :  { %v1215_v56 = vpack.c.bf16 %v1132_v14, %v1129_v59  ;;  %v619_v14 = vpop.f32.mrf.mxu0 }
 0x180   :  { %v1134_v15 = vpop.f32.mrf.mxu1 }
 0x181   :  { %1875 = vmatpush2.bf16.msra.mxu0 %v1215_v56  ;;  %v11617_v15 = vpop.f32.mrf.mxu0 }
 0x182   :  { %v1137_v18 = vpop.f32.mrf.mxu1  ;;  %1876 = vmatprep.subr.bf16.mxu0 %v15559_v0 }
 0x184   :  { %v1139_v35 = vpop.f32.mrf.mxu1 }
 0x185   :  { %1877 = vmatpush2.bf16.msra.mxu0 %v1214_v43  ;;  %v622_v35 = vpop.f32.mrf.mxu0 }
 0x186   :  { %v1140_v6 = vpop.f32.mrf.mxu1  ;;  %1878 = vmatprep.subr.bf16.mxu0 %v15559_v0  ;;  %v1210_v35 = vpack.c.bf16 %v11559_v41, %v11552_v50  ;;  %v10569_v50 = vld [vmem:[%s15545_s2 + $0x2f4] ss:$12 sps:$4 sm:$0xff]  }
 0x187   :  { %v11615_v59 = vpack.c.bf16 %v1140_v6, %v1137_v18  ;;  %v11622_v43 = vpop.f32.mrf.mxu0 }
 0x188   :  { %v1142_v56 = vpop.f32.mrf.mxu1 }
 0x189   :  { %1879 = vmatpush2.bf16.msra.mxu0 %v1213_v29  ;;  %v627_v57 = vpop.f32.mrf.mxu0 }
 0x18a   :  { %v1145_v11 = vpop.f32.mrf.mxu1  ;;  %1880 = vmatprep.subr.bf16.mxu0 %v15559_v0 }
 0x18b   :  { %v11629_v29 = vpop.f32.mrf.mxu0 }
 0x18c   :  { %v1147_v26 = vpop.f32.mrf.mxu1 }
 0x18d   :  { %1881 = vmatpush2.bf16.msra.mxu0 %v1212_v31  ;;  %v630_v56 = vpop.f32.mrf.mxu0 }
 0x18e   :  { %v1148_v14 = vpop.f32.mrf.mxu1  ;;  %1882 = vmatprep.subr.bf16.mxu0 %v15559_v0 }
 0x18f   :  { %v11627_v18 = vpack.c.bf16 %v1148_v14, %v1145_v11  ;;  %v633_v26 = vpop.f32.mrf.mxu0 }
 0x190   :  { %v1150_v6 = vpop.f32.mrf.mxu1 }
 0x191   :  { %1883 = vmatpush2.bf16.msra.mxu0 %v1211_v5  ;;  %v635_v17 = vpop.f32.mrf.mxu0 }
 0x192   :  { %v11633_v21 = vpop.f32.mrf.mxu1  ;;  %1884 = vmatprep.subr.bf16.mxu0 %v15559_v0 }
 0x193   :  { %v636_v14 = vpop.f32.mrf.mxu0 }
 0x194   :  { %v1155_v31 = vpop.f32.mrf.mxu1  ;;  %v11644_v57 = vpack.c.bf16 %v636_v14, %v633_v26 }
 0x195   :  { %1885 = vmatpush2.bf16.msra.mxu0 %v1210_v35  ;;  %v638_v41 = vpop.f32.mrf.mxu0 }
 0x196   :  { %v11638_v28 = vpop.f32.mrf.mxu1  ;;  %1886 = vmatprep.subr.bf16.mxu0 %v15559_v0 }
 0x197   :  { %v641_v56 = vpop.f32.mrf.mxu0 }
 0x198   :  { %v1158_v11 = vpop.f32.mrf.mxu1 }
 0x199   :  { %1887 = vmatpush2.bf16.msra.mxu0 %v1209_v1  ;;  %v643_v1 = vpop.f32.mrf.mxu0  ;;  %v10574_v11 = vld [vmem:[%s15545_s2 + $0x30c] ss:$12 sps:$4 sm:$0xff]  }
 0x19a   :  { %v11646_v5 = vpop.f32.mrf.mxu1  ;;  %1888 = vmatprep.subr.bf16.mxu0 %v15559_v0  ;;  %v10577_v1 = vld [vmem:[%s15545_s2 + $0x324] ss:$12 sps:$4 sm:$0xff]  }
 0x19b   :  { %v644_v31 = vpop.f32.mrf.mxu0 }
 0x19c   :  { %v1163_v6 = vpop.f32.mrf.mxu1  ;;  %v11660_v26 = vpack.c.bf16 %v644_v31, %v641_v56 }
 0x19d   :  { %1889 = vmatpush2.bf16.msra.mxu0 %v1208_v42  ;;  %v646_v24 = vpop.f32.mrf.mxu0 }
 0x19e   :  { %v11658_v55 = vpop.f32.mrf.mxu1 }
 0x19f   :  { %v11668_v14 = vpop.f32.mrf.mxu0 }
 0x1a0   :  { %v1166_v35 = vpop.f32.mrf.mxu1  ;;  %1891 = vmatmul.mubr.bf16.vlgmr.msra.gmra.mxu0 %v10569_v50 }
 0x1a1   :  { %1898 = vmatprep.mubr.bf16.mxu0 %v10572_v51  ;;  %v651_v6 = vpop.f32.mrf.mxu0 }
 0x1a2   :  { %v1169_v17 = vpop.f32.mrf.mxu1 }
 0x1a3   :  { %v11670_v51 = vpop.f32.mrf.mxu0 }
 0x1a4   :  { %v1171_v42 = vpop.f32.mrf.mxu1 }
 0x1a5   :  { %v654_v35 = vpop.f32.mrf.mxu0  ;;  %v10578_v42 = vld [vmem:[%s15545_s2 + $0x340] ss:$12 sps:$4 sm:$0xff]  }
 0x1a6   :  { %v1172_v41 = vpop.f32.mrf.mxu1  ;;  %v10580_v35 = vld [vmem:[%s15545_s2 + $0x33c] ss:$12 sps:$4 sm:$0xff]  }
 0x1a7   :  { %v11675_v24 = vpop.f32.mrf.mxu0 }
 0x1a8   :  { %v1174_v50 = vpop.f32.mrf.mxu1  ;;  %1899 = vmatmul.mubr.bf16.gmra.mxu0 %v10574_v11 }
 0x1a9   :  { %1906 = vmatprep.mubr.bf16.mxu0 %v10575_v37  ;;  %v659_v6 = vpop.f32.mrf.mxu0 }
 0x1aa   :  { %v1177_v56 = vpop.f32.mrf.mxu1 }
 0x1ab   :  { %v11680_v11 = vpop.f32.mrf.mxu0 }
 0x1ac   :  { %v1179_v31 = vpop.f32.mrf.mxu1 }
 0x1ad   :  { %v662_v32 = vpop.f32.mrf.mxu0 }
 0x1ae   :  { %v1180_v38 = vpop.f32.mrf.mxu1 }
 0x1af   :  { %v11685_v31 = vpop.f32.mrf.mxu0 }
 0x1b0   :  { %v1182_v50 = vpop.f32.mrf.mxu1  ;;  %1907 = vmatmul.mubr.bf16.gmra.mxu0 %v10577_v1 }
 0x1b1   :  { %1914 = vmatprep.mubr.bf16.mxu0 %v10578_v42  ;;  %v667_v6 = vpop.f32.mrf.mxu0 }
 0x1b2   :  { %v1185_v37 = vpop.f32.mrf.mxu1 }
 0x1b3   :  { %v668_v1 = vpop.f32.mrf.mxu0 }
 0x1b4   :  { %v1187_v45 = vpop.f32.mrf.mxu1 }
 0x1b5   :  { %v670_v9 = vpop.f32.mrf.mxu0  ;;  %v10581_v45 = vld [vmem:[%s15545_s2 + $0x354] ss:$12 sps:$4 sm:$0xff]  }
 0x1b6   :  { %v1188_v63 = vpop.f32.mrf.mxu1  ;;  %v1221_v9 = vpack.c.bf16 %v1180_v38, %v1177_v56  ;;  %v1219_v38 = vpack.c.bf16 %v11658_v55, %v11646_v5  ;;  %v10587_v56 = vld [vmem:[%s15545_s2 + $0x384] ss:$12 sps:$4 sm:$0xff]  }
 0x1b7   :  { %v673_v22 = vpop.f32.mrf.mxu0  ;;  %v1222_v36 = vpack.c.bf16 %v1188_v63, %v1185_v37 }
 0x1b8   :  { %v1190_v50 = vpop.f32.mrf.mxu1  ;;  %1915 = vmatmul.mubr.bf16.gmra.mxu0 %v10580_v35 }
 0x1b9   :  { %1922 = vmatprep.mubr.bf16.mxu0 %v10583_v54  ;;  %v675_v0 = vpop.f32.mrf.mxu0 }
 0x1ba   :  { %v1193_v42 = vpop.f32.mrf.mxu1  ;;  %v10589_v0 = vld [vmem:[%s15545_s2 + $0x388] ss:$12 sps:$4 sm:$0xff]  }
 0x1bb   :  { %v676_v35 = vpop.f32.mrf.mxu0 }
 0x1bc   :  { %v1195_v32 = vpop.f32.mrf.mxu1 }
 0x1bd   :  { %v678_v54 = vpop.f32.mrf.mxu0  ;;  %v10584_v32 = vld [vmem:[%s15545_s2 + $0x36c] ss:$12 sps:$4 sm:$0xff]  }
 0x1be   :  { %v1196_v46 = vpop.f32.mrf.mxu1  ;;  %v10595_v54 = vld [vmem:[%s15545_s2 + $0x3b8] ss:$12 sps:$4 sm:$0xff]  }
 0x1bf   :  { %v1223_v6 = vpack.c.bf16 %v1196_v46, %v1193_v42  ;;  %v681_v12 = vpop.f32.mrf.mxu0  ;;  %v1220_v46 = vpack.c.bf16 %v1172_v41, %v1169_v17  ;;  %v1218_v41 = vpack.c.bf16 %v11638_v28, %v11633_v21  ;;  %v717_v21 = vpack.c.bf16 %v676_v35, %v673_v22  ;;  %v10593_v28 = vld [vmem:[%s15545_s2 + $0x3b4] ss:$12 sps:$4 sm:$0xff]   ;;  %v10600_v35 = vld [vmem:[%s15545_s2 + $0x3d0] ss:$12 sps:$4 sm:$0xff]  }
 0x1c0   :  { %1923 = vmatmul.mubr.bf16.gmra.mxu0 %v10581_v45  ;;  %v1198_v50 = vpop.f32.mrf.mxu1  ;;  %v10597_v22 = vld [vmem:[%s15545_s2 + $0x314] ss:$12 sps:$4 sm:$0xff]  }
 0x1c1   :  { %9743 = vmatprep.subr.bf16.mxu1 %v1223_v6  ;;  %1930 = vmatprep.mubr.bf16.mxu0 %v10586_v48  ;;  %v683_v63 = vpop.f32.mrf.mxu0  ;;  %v10590_v50 = vld [vmem:[%s15545_s2 + $0x39c] ss:$12 sps:$4 sm:$0xff]  }
 0x1c2   :  { %9744 = vmatpush3.bf16.msra.mxu1 %v1223_v6  ;;  %v10620_v63 = vld [vmem:[%s15545_s2 + $0x430] ss:$12 sps:$4 sm:$0xff]  }
 0x1c3   :  { %9745 = vmatprep.subr.bf16.mxu1 %v1222_v36  ;;  %v684_v37 = vpop.f32.mrf.mxu0 }
 0x1c4   :  { %v718_v5 = vpack.c.bf16 %v684_v37, %v681_v12  ;;  %v716_v12 = vpack.c.bf16 %v668_v1, %v11685_v31  ;;  %v15631_v31 = vmov 0   ;;  %v715_v1 = vpack.c.bf16 %v11680_v11, %v11675_v24  ;;  %v10602_v24 = vld [vmem:[%s15545_s2 + $0x344] ss:$12 sps:$4 sm:$0xff]   ;;  %v10610_v11 = vld [vmem:[%s15545_s2 + $0x400] ss:$12 sps:$4 sm:$0xff]  }
 0x1c5   :  { %v686_v48 = vpop.f32.mrf.mxu0  ;;  %v10625_v37 = vld [vmem:[%s15545_s2 + $0x448] ss:$12 sps:$4 sm:$0xff]  }
 0x1c6   :  { %9746 = vmatpush3.bf16.msra.mxu1 %v1222_v36  ;;  %v10592_v36 = vld [vmem:[%s15545_s2 + $0x3a0] ss:$12 sps:$4 sm:$0xff]   ;;  %v15641_v48 = vpack.c.bf16 %v11617_v15, %v11612_v61  ;;  %v10623_v61 = vld [vmem:[%s15545_s2 + $0x444] ss:$12 sps:$4 sm:$0xff]  }
 0x1c7   :  { %9747 = vmatprep.subr.bf16.mxu1 %v1221_v9  ;;  %v689_v42 = vpop.f32.mrf.mxu0  ;;  %v10627_v15 = vld [vmem:[%s15545_s2 + $0x434] ss:$12 sps:$4 sm:$0xff]  }
 0x1c8   :  { %1931 = vmatmul.mubr.bf16.gmra.mxu0 %v10584_v32  ;;  %v10598_v32 = vld [vmem:[%s15545_s2 + $0x3cc] ss:$12 sps:$4 sm:$0xff]  }
 0x1c9   :  { %1938 = vmatprep.mubr.bf16.mxu0 %v10589_v0  ;;  %v691_v17 = vpop.f32.mrf.mxu0  ;;  %v15636_v0 = vpack.c.bf16 %v11506_v62, %v11504_v58  ;;  %v10615_v58 = vld [vmem:[%s15545_s2 + $0x418] ss:$12 sps:$4 sm:$0xff]   ;;  %v15637_v62 = vpack.c.bf16 %v11500_v53, %v11498_v49  ;;  %v10613_v49 = vld [vmem:[%s15545_s2 + $0x414] ss:$12 sps:$4 sm:$0xff]  }
 0x1ca   :  { %9748 = vmatpush3.bf16.msra.mxu1 %v1221_v9  ;;  %v15632_v9 = vpack.c.bf16 %v11548_v3, %v11539_v60  ;;  %v10605_v60 = vld [vmem:[%s15545_s2 + $0x3e8] ss:$12 sps:$4 sm:$0xff]   ;;  %v15633_v3 = vpack.c.bf16 %v11532_v47, %v11525_v33  ;;  %v10603_v33 = vld [vmem:[%s15545_s2 + $0x3e4] ss:$12 sps:$4 sm:$0xff]  }
 0x1cb   :  { %9749 = vmatprep.subr.bf16.mxu1 %v1220_v46  ;;  %v692_v45 = vpop.f32.mrf.mxu0  ;;  %v10607_v47 = vld [vmem:[%s15545_s2 + $0x374] ss:$12 sps:$4 sm:$0xff]   ;;  %v10640_v17 = vld [vmem:[%s15545_s2 + $0x490] ss:$12 sps:$4 sm:$0xff]  }
 0x1cc   :  { %v719_v55 = vpack.c.bf16 %v692_v45, %v689_v42  ;;  %v10617_v53 = vld [vmem:[%s15545_s2 + $0x3d4] ss:$12 sps:$4 sm:$0xff]   ;;  %v10635_v42 = vld [vmem:[%s15545_s2 + $0x478] ss:$12 sps:$4 sm:$0xff]  }
 0x1cd   :  { %v694_v6 = vpop.f32.mrf.mxu0  ;;  %v15648_v45 = vld [vmem:[#allocation2_spill] sm:$0xff] }
 0x1ce   :  { %9750 = vmatpush3.bf16.msra.mxu1 %v1220_v46  ;;  %9823 = vmatprep.subr.bf16.mxu0 %v719_v55  ;;  %v15639_v46 = vpack.c.bf16 %v11481_v34, %v11477_v30  ;;  %v10618_v30 = vld [vmem:[%s15545_s2 + $0x42c] ss:$12 sps:$4 sm:$0xff]   ;;  %v10622_v34 = vld [vmem:[%s15545_s2 + $0x404] ss:$12 sps:$4 sm:$0xff]   ;;  %v10645_v6 = vld [vmem:[%s15545_s2 + $0x4a8] ss:$12 sps:$4 sm:$0xff]  }
 0x1cf   :  { %9751 = vmatprep.subr.bf16.mxu1 %v1219_v38  ;;  %9824 = vmatpush3.bf16.msra.mxu0 %v719_v55  ;;  %v10642_v55 = vld [vmem:[%s15545_s2 + $0x4c4] ss:$12 sps:$4 sm:$0xff]  }
 0x1d0   :  { %1939 = vmatmul.mubr.bf16.gmra.mxu0 %v10587_v56  ;;  %9825 = vmatprep.subr.bf16.mxu0 %v718_v5  ;;  %v15643_v56 = vpack.c.bf16 %v11601_v40, %v11599_v25  ;;  %v10628_v25 = vld [vmem:[%s15545_s2 + $0x45c] ss:$12 sps:$4 sm:$0xff]   ;;  %v10632_v40 = vld [vmem:[%s15545_s2 + $0x464] ss:$12 sps:$4 sm:$0xff]  }
 0x1d1   :  { %1946 = vmatprep.mubr.bf16.mxu0 %v10592_v36  ;;  %v15645_v36 = vpack.c.bf16 %v11589_v52, %v11587_v20  ;;  %v10633_v20 = vld [vmem:[%s15545_s2 + $0x474] ss:$12 sps:$4 sm:$0xff]  }
 0x1d2   :  { %9752 = vmatpush3.bf16.msra.mxu1 %v1219_v38  ;;  %v10630_v38 = vld [vmem:[%s15545_s2 + $0x460] ss:$12 sps:$4 sm:$0xff]  }
 0x1d3   :  { %9753 = vmatprep.subr.bf16.mxu1 %v1218_v41  ;;  %9826 = vmatpush3.bf16.msra.mxu0 %v718_v5  ;;  %v10637_v52 = vld [vmem:[%s15545_s2 + $0x494] ss:$12 sps:$4 sm:$0xff]  }
 0x1d4   :  { %9827 = vmatprep.subr.bf16.mxu0 %v717_v21 }
 0x1d6   :  { %9754 = vmatpush3.bf16.msra.mxu1 %v1218_v41  ;;  %v15647_v41 = vld [vmem:[#allocation3_spill] sm:$0xff] }
 0x1d7   :  { %9755 = vmatprep.subr.bf16.mxu1 %v11627_v18  ;;  %9828 = vmatpush3.bf16.msra.mxu0 %v717_v21  ;;  %v15649_v5 = vpack.c.bf16 %v15647_v41, %v15648_v45  ;;  %v10647_v21 = vld [vmem:[%s15545_s2 + $0x4f4] ss:$12 sps:$4 sm:$0xff]  }
 0x1d8   :  { %1947 = vmatmul.mubr.bf16.gmra.mxu0 %v10590_v50  ;;  %9829 = vmatprep.subr.bf16.mxu0 %v716_v12  ;;  %v10646_v50 = vld [vmem:[%s15545_s2 + $0x4dc] ss:$12 sps:$4 sm:$0xff]   ;;  %v10697_v41 = vld [vmem:[%s15545_s2 + $0x594] ss:$12 sps:$4 sm:$0xff]  }
 0x1d9   :  { %1954 = vmatprep.mubr.bf16.mxu0 %v10595_v54  ;;  %v10643_v54 = vld [vmem:[%s15545_s2 + $0x4a4] ss:$12 sps:$4 sm:$0xff]   ;;  %v10700_v45 = vld [vmem:[%s15545_s2 + $0x60] ss:$12 sps:$4 sm:$0xff]  }
 0x1da   :  { %9756 = vmatpush3.bf16.msra.mxu1 %v11627_v18  ;;  %v10601_v18 = vld [vmem:[%s15545_s2 + $0x32c] ss:$12 sps:$4 sm:$0xff]  }
 0x1db   :  { %9757 = vmatprep.subr.bf16.mxu1 %v11615_v59  ;;  %9830 = vmatpush3.bf16.msra.mxu0 %v716_v12  ;;  %v10650_v12 = vld [vmem:[%s15545_s2 + $0x4c0] ss:$12 sps:$4 sm:$0xff]  }
 0x1dc   :  { %9831 = vmatprep.subr.bf16.mxu0 %v715_v1 }
 0x1de   :  { %9758 = vmatpush3.bf16.msra.mxu1 %v11615_v59  ;;  %v714_v59 = vpack.c.bf16 %v11670_v51, %v11668_v14  ;;  %v10606_v14 = vld [vmem:[%s15545_s2 + $0x35c] ss:$12 sps:$4 sm:$0xff]   ;;  %v15634_v51 = vpack.c.bf16 %v11518_v19, %v11516_v13  ;;  %v15635_v13 = vpack.c.bf16 %v11512_v8, %v11510_v4  ;;  %v10611_v19 = vld [vmem:[%s15545_s2 + $0x38c] ss:$12 sps:$4 sm:$0xff]   ;;  %v10612_v8 = vld [vmem:[%s15545_s2 + $0x3a4] ss:$12 sps:$4 sm:$0xff]  }
 0x1df   :  { %2941 = vmatprep.subr.bf16.mxu1 %v15631_v31  ;;  %9832 = vmatpush3.bf16.msra.mxu0 %v715_v1  ;;  %v10608_v4 = vld [vmem:[%s15545_s2 + $0x3fc] ss:$12 sps:$4 sm:$0xff]  }
 0x1e0   :  { %1955 = vmatmul.mubr.bf16.gmra.mxu0 %v10593_v28  ;;  %9833 = vmatprep.subr.bf16.mxu0 %v714_v59  ;;  %v10651_v28 = vld [vmem:[%s15545_s2 + $0x50c] ss:$12 sps:$4 sm:$0xff]   ;;  %v10656_v1 = vld [vmem:[%s15545_s2 + $0x53c] ss:$12 sps:$4 sm:$0xff]  }
 0x1e1   :  { %9760 = vmatmul.mubr.bf16.vlgmr.msra.gmra.mxu1 %v10597_v22  ;;  %1962 = vmatprep.mubr.bf16.mxu0 %v10600_v35  ;;  %v10648_v22 = vld [vmem:[%s15545_s2 + $0x4bc] ss:$12 sps:$4 sm:$0xff]   ;;  %v10652_v35 = vld [vmem:[%s15545_s2 + $0x524] ss:$12 sps:$4 sm:$0xff]  }
 0x1e2   :  { %2942 = vmatpush1.bf16.msra.mxu1 %v15632_v9  ;;  %9763 = vmatprep.mubr.bf16.mxu1 %v10601_v18  ;;  %v10655_v18 = vld [vmem:[%s15545_s2 + $0x4d8] ss:$12 sps:$4 sm:$0xff]   ;;  %v10653_v9 = vld [vmem:[%s15545_s2 + $0x4d4] ss:$12 sps:$4 sm:$0xff]  }
 0x1e3   :  { %2943 = vmatprep.subr.bf16.mxu1 %v15631_v31  ;;  %9834 = vmatpush3.bf16.msra.mxu0 %v714_v59  ;;  %v10657_v59 = vld [vmem:[%s15545_s2 + $0x554] ss:$12 sps:$4 sm:$0xff]  }
 0x1e4   :  { %9835 = vmatprep.subr.bf16.mxu0 %v11660_v26 }
 0x1e6   :  { %2944 = vmatpush1.bf16.msra.mxu1 %v15633_v3  ;;  %v10662_v3 = vld [vmem:[%s15545_s2 + $0x584] ss:$12 sps:$4 sm:$0xff]  }
 0x1e7   :  { %2945 = vmatprep.subr.bf16.mxu1 %v15631_v31  ;;  %9836 = vmatpush3.bf16.msra.mxu0 %v11660_v26  ;;  %v15638_v26 = vpack.c.bf16 %v11494_v44, %v11487_v39  ;;  %v10621_v39 = vld [vmem:[%s15545_s2 + $0x3ec] ss:$12 sps:$4 sm:$0xff]   ;;  %v15640_v44 = vpack.c.bf16 %v11629_v29, %v11622_v43  ;;  %v10626_v43 = vld [vmem:[%s15545_s2 + $0x41c] ss:$12 sps:$4 sm:$0xff]   ;;  %v15642_v29 = vpack.c.bf16 %v11607_v23, %v11605_v7 }
 0x1e8   :  { %1963 = vmatmul.mubr.bf16.gmra.mxu0 %v10598_v32  ;;  %9837 = vmatprep.subr.bf16.mxu0 %v11644_v57  ;;  %v10631_v7 = vld [vmem:[%s15545_s2 + $0x44c] ss:$12 sps:$4 sm:$0xff]   ;;  %v15644_v23 = vpack.c.bf16 %v11595_v10, %v11593_v2  ;;  %v10636_v2 = vld [vmem:[%s15545_s2 + $0x47c] ss:$12 sps:$4 sm:$0xff]   ;;  %v15646_v10 = vpack.c.bf16 %v11583_v27, %v11572_v16 }
 0x1e9   :  { %9764 = vmatmul.mubr.bf16.gmra.mxu1 %v10602_v24  ;;  %1970 = vmatprep.mubr.bf16.mxu0 %v10605_v60  ;;  %v10641_v16 = vld [vmem:[%s15545_s2 + $0x4ac] ss:$12 sps:$4 sm:$0xff]   ;;  %v10660_v32 = vld [vmem:[%s15545_s2 + $0x4f0] ss:$12 sps:$4 sm:$0xff]  }
 0x1ea   :  { %2946 = vmatpush1.bf16.msra.mxu1 %v15634_v51  ;;  %9767 = vmatprep.mubr.bf16.mxu1 %v10606_v14  ;;  %v10638_v27 = vld [vmem:[%s15545_s2 + $0x48c] ss:$12 sps:$4 sm:$0xff]   ;;  %v10665_v14 = vld [vmem:[%s15545_s2 + $0x508] ss:$12 sps:$4 sm:$0xff]  }
 0x1eb   :  { %2947 = vmatprep.subr.bf16.mxu1 %v15631_v31  ;;  %9838 = vmatpush3.bf16.msra.mxu0 %v11644_v57  ;;  %v10616_v57 = vld [vmem:[%s15545_s2 + $0x3bc] ss:$12 sps:$4 sm:$0xff]   ;;  %v10661_v24 = vld [vmem:[%s15545_s2 + $0x56c] ss:$12 sps:$4 sm:$0xff]  }
 0x1ec   :  { %3646 = vmatprep.subr.bf16.mxu0 %v15631_v31  ;;  %v10658_v60 = vld [vmem:[%s15545_s2 + $0x4ec] ss:$12 sps:$4 sm:$0xff]   ;;  %v10666_v51 = vld [vmem:[%s15545_s2 + $0x59c] ss:$12 sps:$4 sm:$0xff]  }
 0x1ee   :  { %2948 = vmatpush1.bf16.msra.mxu1 %v15635_v13  ;;  %v10671_v13 = vld [vmem:[%s15545_s2 + $0x5cc] ss:$12 sps:$4 sm:$0xff]  }
 0x1ef   :  { %2949 = vmatprep.subr.bf16.mxu1 %v15631_v31 }
 0x1f0   :  { %1971 = vmatmul.mubr.bf16.gmra.mxu0 %v10603_v33  ;;  %v10663_v33 = vld [vmem:[%s15545_s2 + $0x504] ss:$12 sps:$4 sm:$0xff]  }
 0x1f1   :  { %9768 = vmatmul.mubr.bf16.gmra.mxu1 %v10607_v47  ;;  %1978 = vmatprep.mubr.bf16.mxu0 %v10610_v11  ;;  %v10667_v47 = vld [vmem:[%s15545_s2 + $0x5b4] ss:$12 sps:$4 sm:$0xff]  }
 0x1f2   :  { %2950 = vmatpush1.bf16.msra.mxu1 %v15636_v0  ;;  %9771 = vmatprep.mubr.bf16.mxu1 %v10611_v19  ;;  %v10670_v11 = vld [vmem:[%s15545_s2 + $0x520] ss:$12 sps:$4 sm:$0xff]   ;;  %v10668_v19 = vld [vmem:[%s15545_s2 + $0x51c] ss:$12 sps:$4 sm:$0xff]   ;;  %v10672_v0 = vld [vmem:[%s15545_s2 + $0x5e4] ss:$0 sps:$4 sm:$0xff]  }
 0x1f3   :  { %2951 = vmatprep.subr.bf16.mxu1 %v15631_v31 }
 0x1f6   :  { %2952 = vmatpush1.bf16.msra.mxu1 %v15637_v62  ;;  %v10676_v62 = vld [vmem:[%s15545_s2] ss:$12 sps:$4 sm:$0xff]  }
 0x1f7   :  { %2953 = vmatprep.subr.bf16.mxu1 %v15631_v31 }
 0x1f8   :  { %1979 = vmatmul.mubr.bf16.gmra.mxu0 %v10608_v4  ;;  %v10675_v4 = vld [vmem:[%s15545_s2 + $0x538] ss:$12 sps:$4 sm:$0xff]  }
 0x1f9   :  { %9772 = vmatmul.mubr.bf16.gmra.mxu1 %v10612_v8  ;;  %1986 = vmatprep.mubr.bf16.mxu0 %v10615_v58  ;;  %v10678_v8 = vld [vmem:[%s15545_s2 + $0x4] ss:$12 sps:$4 sm:$0xff]   ;;  %v10673_v58 = vld [vmem:[%s15545_s2 + $0x534] ss:$12 sps:$4 sm:$0xff]  }
 0x1fa   :  { %2954 = vmatpush1.bf16.msra.mxu1 %v15638_v26  ;;  %9775 = vmatprep.mubr.bf16.mxu1 %v10616_v57  ;;  %v10681_v57 = vld [vmem:[%s15545_s2 + $0x550] ss:$12 sps:$4 sm:$0xff]  }
 0x1fb   :  { %2955 = vmatprep.subr.bf16.mxu1 %v15631_v31  ;;  %v10684_v26 = vld [vmem:[%s15545_s2 + $0x1c] ss:$12 sps:$4 sm:$0xff]  }
 0x1fe   :  { %2956 = vmatpush1.bf16.msra.mxu1 %v15639_v46  ;;  %v10679_v46 = vld [vmem:[%s15545_s2 + $0x54c] ss:$12 sps:$4 sm:$0xff]  }
 0x1ff   :  { %2957 = vmatprep.subr.bf16.mxu1 %v15631_v31 }
 0x200   :  { %1987 = vmatmul.mubr.bf16.gmra.mxu0 %v10613_v49 }
 0x201   :  { %9776 = vmatmul.mubr.bf16.gmra.mxu1 %v10617_v53  ;;  %1994 = vmatprep.mubr.bf16.mxu0 %v10620_v63 }
 0x202   :  { %2958 = vmatpush2.bf16.msra.mxu1 %v15640_v44  ;;  %9779 = vmatprep.mubr.bf16.mxu1 %v10621_v39  ;;  %v10682_v39 = vld [vmem:[%s15545_s2 + $0x18] ss:$12 sps:$4 sm:$0xff]   ;;  %v10687_v44 = vld [vmem:[%s15545_s2 + $0x568] ss:$12 sps:$4 sm:$0xff]  }
 0x203   :  { %2959 = vmatprep.subr.bf16.mxu1 %v15631_v31 }
 0x206   :  { %2960 = vmatpush2.bf16.msra.mxu1 %v15641_v48 }
 0x207   :  { %2961 = vmatprep.subr.bf16.mxu1 %v15631_v31 }
 0x208   :  { %1995 = vmatmul.mubr.bf16.gmra.mxu0 %v10618_v30 }
 0x209   :  { %9780 = vmatmul.mubr.bf16.gmra.mxu1 %v10622_v34  ;;  %2002 = vmatprep.mubr.bf16.mxu0 %v10625_v37  ;;  %v10690_v34 = vld [vmem:[%s15545_s2 + $0x34] ss:$12 sps:$4 sm:$0xff]  }
 0x20a   :  { %2962 = vmatpush2.bf16.msra.mxu1 %v15642_v29  ;;  %9783 = vmatprep.mubr.bf16.mxu1 %v10626_v43  ;;  %v10685_v29 = vld [vmem:[%s15545_s2 + $0x564] ss:$12 sps:$4 sm:$0xff]  }
 0x20b   :  { %2963 = vmatprep.subr.bf16.mxu1 %v15631_v31 }
 0x20e   :  { %2964 = vmatpush2.bf16.msra.mxu1 %v15643_v56  ;;  %v10696_v56 = vld [vmem:[%s15545_s2 + $0x4c] ss:$12 sps:$4 sm:$0xff]  }
 0x20f   :  { %2965 = vmatprep.subr.bf16.mxu1 %v15631_v31 }
 0x210   :  { %2003 = vmatmul.mubr.bf16.gmra.mxu0 %v10623_v61  ;;  %v10688_v61 = vld [vmem:[%s15545_s2 + $0x30] ss:$12 sps:$4 sm:$0xff]  }
 0x211   :  { %9784 = vmatmul.mubr.bf16.gmra.mxu1 %v10627_v15  ;;  %2010 = vmatprep.mubr.bf16.mxu0 %v10630_v38  ;;  %v10693_v15 = vld [vmem:[%s15545_s2 + $0x580] ss:$12 sps:$4 sm:$0xff]  }
 0x212   :  { %2966 = vmatpush2.bf16.msra.mxu1 %v15644_v23  ;;  %9787 = vmatprep.mubr.bf16.mxu1 %v10631_v7 }
 0x213   :  { %2967 = vmatprep.subr.bf16.mxu1 %v15631_v31 }
 0x216   :  { %2968 = vmatpush2.bf16.msra.mxu1 %v15645_v36  ;;  %v10699_v36 = vld [vmem:[%s15545_s2 + $0x598] ss:$12 sps:$4 sm:$0xff]  }
 0x217   :  { %2969 = vmatprep.subr.bf16.mxu1 %v15631_v31 }
 0x218   :  { %2011 = vmatmul.mubr.bf16.gmra.mxu0 %v10628_v25 }
 0x219   :  { %9788 = vmatmul.mubr.bf16.gmra.mxu1 %v10632_v40  ;;  %2018 = vmatprep.mubr.bf16.mxu0 %v10635_v42  ;;  %v10691_v40 = vld [vmem:[%s15545_s2 + $0x57c] ss:$12 sps:$4 sm:$0xff]  }
 0x21a   :  { %2970 = vmatpush2.bf16.msra.mxu1 %v15646_v10  ;;  %9791 = vmatprep.mubr.bf16.mxu1 %v10636_v2  ;;  %v10694_v42 = vld [vmem:[%s15545_s2 + $0x48] ss:$12 sps:$4 sm:$0xff]   ;;  %v10702_v10 = vld [vmem:[%s15545_s2 + $0x64] ss:$12 sps:$4 sm:$0xff]  }
 0x21b   :  { %2971 = vmatprep.subr.bf16.mxu1 %v15631_v31 }
 0x21e   :  { %2972 = vmatpush2.bf16.msra.mxu1 %v15649_v5  ;;  %v10705_v5 = vld [vmem:[%s15545_s2 + $0x5b0] ss:$12 sps:$4 sm:$0xff]  }
 0x21f   :  { %4529 = vmatprep.subr.bf16.mxu1 %v15631_v31 }
 0x220   :  { %2019 = vmatmul.mubr.bf16.gmra.mxu0 %v10633_v20 }
 0x221   :  { %9792 = vmatmul.mubr.bf16.gmra.mxu1 %v10637_v52  ;;  %2026 = vmatprep.mubr.bf16.mxu0 %v10640_v17 }
 0x222   :  { %9795 = vmatprep.mubr.bf16.mxu1 %v10641_v16 }
 0x228   :  { %2027 = vmatmul.mubr.bf16.gmra.mxu0 %v10638_v27  ;;  %v10708_v27 = vld [vmem:[%s15545_s2 + $0x7c] ss:$12 sps:$4 sm:$0xff]  }
 0x229   :  { %9796 = vmatmul.mubr.bf16.gmra.mxu1 %v10642_v55  ;;  %2034 = vmatprep.mubr.bf16.mxu0 %v10645_v6 }
 0x22a   :  { %9799 = vmatprep.mubr.bf16.mxu1 %v10646_v50 }
 0x230   :  { %2035 = vmatmul.mubr.bf16.gmra.mxu0 %v10643_v54  ;;  %v10703_v54 = vld [vmem:[%s15545_s2 + $0x5ac] ss:$12 sps:$4 sm:$0xff]  }
 0x231   :  { %9800 = vmatmul.mubr.bf16.gmra.mxu1 %v10647_v21  ;;  %2042 = vmatprep.mubr.bf16.mxu0 %v10650_v12  ;;  %v10706_v21 = vld [vmem:[%s15545_s2 + $0x78] ss:$12 sps:$4 sm:$0xff]   ;;  %v10711_v12 = vld [vmem:[%s15545_s2 + $0x5c8] ss:$12 sps:$4 sm:$0xff]  }
 0x232   :  { %9803 = vmatprep.mubr.bf16.mxu1 %v10651_v28 }
 0x238   :  { %2043 = vmatmul.mubr.bf16.gmra.mxu0 %v10648_v22  ;;  %v10714_v22 = vld [vmem:[%s15545_s2 + $0x94] ss:$12 sps:$4 sm:$0xff]  }
 0x239   :  { %9804 = vmatmul.mubr.bf16.gmra.mxu1 %v10652_v35  ;;  %2050 = vmatprep.mubr.bf16.mxu0 %v10655_v18 }
 0x23a   :  { %9807 = vmatprep.mubr.bf16.mxu1 %v10656_v1  ;;  %v8779_v1 = vld [vmem:[%s15545_s2 + $0x5dc] sm:$0xff] }
 0x240   :  { %2051 = vmatmul.mubr.bf16.gmra.mxu0 %v10653_v9 }
 0x241   :  { %9808 = vmatmul.mubr.bf16.gmra.mxu1 %v10657_v59  ;;  %2058 = vmatprep.mubr.bf16.mxu0 %v10660_v32  ;;  %v10709_v59 = vld [vmem:[%s15545_s2 + $0x5c4] ss:$12 sps:$4 sm:$0xff]  }
 0x242   :  { %9811 = vmatprep.mubr.bf16.mxu1 %v10661_v24  ;;  %v10712_v32 = vld [vmem:[%s15545_s2 + $0x90] ss:$12 sps:$4 sm:$0xff]   ;;  %v8875_v24 = vcombine.high %v8779_v1, %v8779_v1 }
 0x248   :  { %2059 = vmatmul.mubr.bf16.gmra.mxu0 %v10658_v60 }
 0x249   :  { %9812 = vmatmul.mubr.bf16.gmra.mxu1 %v10662_v3  ;;  %2066 = vmatprep.mubr.bf16.mxu0 %v10665_v14  ;;  %v10719_v3 = vld [vmem:[%s15545_s2 + $0xac] ss:$12 sps:$4 sm:$0xff]  }
 0x24a   :  { %9815 = vmatprep.mubr.bf16.mxu1 %v10666_v51 }
 0x250   :  { %2067 = vmatmul.mubr.bf16.gmra.mxu0 %v10663_v33 }
 0x251   :  { %9816 = vmatmul.mubr.bf16.gmra.mxu1 %v10667_v47  ;;  %2074 = vmatprep.mubr.bf16.mxu0 %v10670_v11  ;;  %v8874_v47 = vcombine.low %v8779_v1, %v8779_v1  ;;  %v10717_v11 = vld [vmem:[%s15545_s2 + $0xa8] ss:$12 sps:$4 sm:$0xff]  }
 0x252   :  { %9819 = vmatprep.mubr.bf16.mxu1 %v10671_v13  ;;  %v10720_v13 = vld [vmem:[%s15545_s2 + $0x8] ss:$12 sps:$4 sm:$0xff]  }
 0x258   :  { %2075 = vmatmul.mubr.bf16.gmra.mxu0 %v10668_v19 }
 0x259   :  { %9820 = vmatmul.mubr.bf16.gmra.mxu1 %v10672_v0  ;;  %2082 = vmatprep.mubr.bf16.mxu0 %v10675_v4  ;;  %v10723_v0 = vld [vmem:[%s15545_s2 + $0xc4] ss:$12 sps:$4 sm:$0xff]  }
 0x25a   :  { %2973 = vmatprep.mubr.bf16.mxu1 %v10678_v8 }
 0x260   :  { %v12001_v49 = vpop.f32.mrf.mxu0  ;;  %2083 = vmatmul.mubr.bf16.gmra.mxu0 %v10673_v58 }
 0x261   :  { %2974 = vmatmul.mubr.bf16.vlgmr.msra.gmra.mxu1 %v10676_v62  ;;  %2090 = vmatprep.mubr.bf16.mxu0 %v10681_v57  ;;  %v10724_v62 = vld [vmem:[%s15545_s2 + $0x20] ss:$12 sps:$4 sm:$0xff]  }
 0x262   :  { %v1894_v53 = vpop.f32.mrf.mxu0  ;;  %2981 = vmatprep.mubr.bf16.mxu1 %v10684_v26  ;;  %v10721_v57 = vld [vmem:[%s15545_s2 + $0xc0] ss:$12 sps:$4 sm:$0xff]   ;;  %v10725_v26 = vld [vmem:[%s15545_s2 + $0x38] ss:$12 sps:$4 sm:$0xff]  }
 0x264   :  { %v12003_v63 = vpop.f32.mrf.mxu0 }
 0x266   :  { %v1897_v30 = vpop.f32.mrf.mxu0 }
 0x268   :  { %v12017_v37 = vpop.f32.mrf.mxu0  ;;  %2091 = vmatmul.mubr.bf16.gmra.mxu0 %v10679_v46  ;;  %v10728_v46 = vld [vmem:[%s15545_s2 + $0xdc] ss:$12 sps:$4 sm:$0xff]  }
 0x269   :  { %2982 = vmatmul.mubr.bf16.gmra.mxu1 %v10682_v39  ;;  %2098 = vmatprep.mubr.bf16.mxu0 %v10687_v44  ;;  %v10765_v39 = vld [vmem:[%s15543_s1 + $0x138] sm:$0xff]  }
 0x26a   :  { %v1902_v48 = vpop.f32.mrf.mxu0  ;;  %2989 = vmatprep.mubr.bf16.mxu1 %v10690_v34 }
 0x26c   :  { %v12019_v43 = vpop.f32.mrf.mxu0 }
 0x26e   :  { %v1905_v38 = vpop.f32.mrf.mxu0 }
 0x26f   :  { %v10729_v38 = vld [vmem:[%s15545_s2 + $0x50] ss:$12 sps:$4 sm:$0xff]  }
 0x270   :  { %v12033_v7 = vpop.f32.mrf.mxu0  ;;  %2099 = vmatmul.mubr.bf16.gmra.mxu0 %v10685_v29  ;;  %v10766_v29 = vld [vmem:[%s15543_s1 + $0x130] sm:$0xff]  }
 0x271   :  { %2990 = vmatmul.mubr.bf16.gmra.mxu1 %v10688_v61  ;;  %2106 = vmatprep.mubr.bf16.mxu0 %v10693_v15 }
 0x272   :  { %v1910_v23 = vpop.f32.mrf.mxu0  ;;  %2997 = vmatprep.mubr.bf16.mxu1 %v10696_v56 }
 0x273   :  { %v10730_v23 = vld [vmem:[%s15545_s2 + $0x68] ss:$12 sps:$4 sm:$0xff]  }
 0x274   :  { %v12035_v25 = vpop.f32.mrf.mxu0 }
 0x276   :  { %v1913_v2 = vpop.f32.mrf.mxu0 }
 0x277   :  { %v10772_v2 = vld [vmem:[%s15543_s1 + $0x128] sm:$0xff]  }
 0x278   :  { %v12049_v20 = vpop.f32.mrf.mxu0  ;;  %2107 = vmatmul.mubr.bf16.gmra.mxu0 %v10691_v40 }
 0x279   :  { %2998 = vmatmul.mubr.bf16.gmra.mxu1 %v10694_v42  ;;  %2114 = vmatprep.mubr.bf16.mxu0 %v10699_v36  ;;  %v10733_v36 = vld [vmem:[%s15545_s2 + $0xf4] ss:$12 sps:$4 sm:$0xff]  }
 0x27a   :  { %v1918_v52 = vpop.f32.mrf.mxu0  ;;  %3005 = vmatprep.mubr.bf16.mxu1 %v10702_v10 }
 0x27c   :  { %v12051_v17 = vpop.f32.mrf.mxu0 }
 0x27e   :  { %v1921_v16 = vpop.f32.mrf.mxu0 }
 0x280   :  { %v12065_v55 = vpop.f32.mrf.mxu0  ;;  %2115 = vmatmul.mubr.bf16.gmra.mxu0 %v10697_v41 }
 0x281   :  { %3006 = vmatmul.mubr.bf16.gmra.mxu1 %v10700_v45  ;;  %2122 = vmatprep.mubr.bf16.mxu0 %v10705_v5  ;;  %v10773_v5 = vld [vmem:[%s15543_s1 + $0x120] sm:$0xff]  }
 0x282   :  { %v1926_v6 = vpop.f32.mrf.mxu0  ;;  %3013 = vmatprep.mubr.bf16.mxu1 %v10708_v27 }
 0x284   :  { %v12067_v50 = vpop.f32.mrf.mxu0 }
 0x286   :  { %v1929_v28 = vpop.f32.mrf.mxu0 }
 0x288   :  { %v12081_v35 = vpop.f32.mrf.mxu0  ;;  %2123 = vmatmul.mubr.bf16.gmra.mxu0 %v10703_v54 }
 0x289   :  { %3014 = vmatmul.mubr.bf16.gmra.mxu1 %v10706_v21  ;;  %2130 = vmatprep.mubr.bf16.mxu0 %v10711_v12  ;;  %v10731_v21 = vld [vmem:[%s15545_s2 + $0xf0] ss:$12 sps:$4 sm:$0xff]   ;;  %v10735_v12 = vld [vmem:[%s15545_s2 + $0x98] ss:$12 sps:$4 sm:$0xff]  }
 0x28a   :  { %v1934_v18 = vpop.f32.mrf.mxu0  ;;  %3021 = vmatprep.mubr.bf16.mxu1 %v10714_v22  ;;  %v10738_v22 = vld [vmem:[%s15545_s2 + $0x10c] ss:$12 sps:$4 sm:$0xff]  }
 0x28b   :  { %v10779_v18 = vld [vmem:[%s15543_s1 + $0x118] sm:$0xff]  }
 0x28c   :  { %v12086_v9 = vpop.f32.mrf.mxu0 }
 0x28e   :  { %v1937_v60 = vpop.f32.mrf.mxu0 }
 0x290   :  { %v12097_v14 = vpop.f32.mrf.mxu0  ;;  %2131 = vmatmul.mubr.bf16.gmra.mxu0 %v10709_v59 }
 0x291   :  { %3022 = vmatmul.mubr.bf16.gmra.mxu1 %v10712_v32  ;;  %2138 = vmatprep.mubr.bf16.mxu0 %v8875_v24 }
 0x292   :  { %v1942_v51 = vpop.f32.mrf.mxu0  ;;  %3029 = vmatprep.mubr.bf16.mxu1 %v10719_v3  ;;  %v10780_v3 = vld [vmem:[%s15543_s1 + $0x110] sm:$0xff]  }
 0x294   :  { %v12099_v33 = vpop.f32.mrf.mxu0 }
 0x296   :  { %v1945_v19 = vpop.f32.mrf.mxu0 }
 0x297   :  { %v10740_v19 = vld [vmem:[%s15545_s2 + $0xc8] ss:$12 sps:$4 sm:$0xff]  }
 0x298   :  { %v12110_v4 = vpop.f32.mrf.mxu0  ;;  %2139 = vmatmul.mubr.bf16.gmra.mxu0 %v8874_v47 }
 0x299   :  { %3030 = vmatmul.mubr.bf16.gmra.mxu1 %v10717_v11  ;;  %9839 = vmatprep.mubr.bf16.mxu0 %v10720_v13  ;;  %v10736_v13 = vld [vmem:[%s15545_s2 + $0x108] ss:$12 sps:$4 sm:$0xff]  }
 0x29a   :  { %v1950_v8 = vpop.f32.mrf.mxu0  ;;  %3037 = vmatprep.mubr.bf16.mxu1 %v10723_v0 }
 0x29b   :  { %v10743_v8 = vld [vmem:[%s15545_s2 + $0x124] ss:$12 sps:$4 sm:$0xff]  }
 0x29c   :  { %v12112_v58 = vpop.f32.mrf.mxu0 }
 0x29e   :  { %v1953_v53 = vpop.f32.mrf.mxu0 }
 0x2a0   :  { %v12129_v44 = vpop.f32.mrf.mxu0  ;;  %9840 = vmatmul.mubr.bf16.vlgmr.msra.gmra.mxu0 %v10724_v62  ;;  %v10786_v62 = vld [vmem:[%s15543_s1 + $0x108] sm:$0xff]  }
 0x2a1   :  { %v9761_v30 = vpop.f32.mrf.mxu1  ;;  %3038 = vmatmul.mubr.bf16.gmra.mxu1 %v10721_v57  ;;  %9843 = vmatprep.mubr.bf16.mxu0 %v10725_v26 }
 0x2a2   :  { %v12132_v34 = vadd.f32 %v9761_v30, %v12017_v37  ;;  %v1958_v48 = vpop.f32.mrf.mxu0  ;;  %3045 = vmatprep.mubr.bf16.mxu1 %v10728_v46  ;;  %3647 = vmatpush1.bf16.msra.mxu0 %v10765_v39  ;;  %v10726_v37 = vld [vmem:[%s15545_s2 + $0xd8] ss:$12 sps:$4 sm:$0xff]  }
 0x2a3   :  { %v12137_v61 = vpop.f32.mrf.mxu1  ;;  %3648 = vmatprep.subr.bf16.mxu0 %v15631_v31  ;;  %v10787_v30 = vld [vmem:[%s15543_s1 + $0x100] sm:$0xff]  }
 0x2a4   :  { %v12140_v15 = vpop.f32.mrf.mxu0 }
 0x2a5   :  { %v9762_v56 = vpop.f32.mrf.mxu1 }
 0x2a6   :  { %v12152_v40 = vadd.f32 %v9762_v56, %v12019_v43  ;;  %v1961_v42 = vpop.f32.mrf.mxu0  ;;  %3649 = vmatpush1.bf16.msra.mxu0 %v10766_v29  ;;  %v10741_v56 = vld [vmem:[%s15545_s2 + $0x120] ss:$12 sps:$4 sm:$0xff]  }
 0x2a7   :  { %v12160_v10 = vpop.f32.mrf.mxu1  ;;  %3650 = vmatprep.subr.bf16.mxu0 %v15631_v31 }
 0x2a8   :  { %v12163_v52 = vpop.f32.mrf.mxu0  ;;  %9844 = vmatmul.mubr.bf16.gmra.mxu0 %v10729_v38  ;;  %v10744_v38 = vld [vmem:[%s15545_s2 + $0xe0] ss:$12 sps:$4 sm:$0xff]  }
 0x2a9   :  { %v9765_v41 = vpop.f32.mrf.mxu1  ;;  %3046 = vmatmul.mubr.bf16.gmra.mxu1 %v10726_v37  ;;  %9847 = vmatprep.mubr.bf16.mxu0 %v10730_v23  ;;  %v10745_v37 = vld [vmem:[%s15545_s2 + $0xf8] ss:$12 sps:$4 sm:$0xff]  }
 0x2aa   :  { %v12166_v43 = vadd.f32 %v9765_v41, %v12049_v20  ;;  %v1966_v45 = vpop.f32.mrf.mxu0  ;;  %3053 = vmatprep.mubr.bf16.mxu1 %v10733_v36  ;;  %3651 = vmatpush1.bf16.msra.mxu0 %v10772_v2  ;;  %v10734_v20 = vld [vmem:[%s15545_s2 + $0x80] ss:$12 sps:$4 sm:$0xff]   ;;  %v10793_v36 = vld [vmem:[%s15543_s1 + $0x178] sm:$0xff]  }
 0x2ab   :  { %v2196_v16 = vpop.f32.mrf.mxu1  ;;  %3652 = vmatprep.subr.bf16.mxu0 %v15631_v31 }
 0x2ac   :  { %v12173_v27 = vadd.f32 %v2196_v16, %v12033_v7  ;;  %v12175_v6 = vpop.f32.mrf.mxu0 }
 0x2ad   :  { %v9766_v54 = vpop.f32.mrf.mxu1 }
 0x2ae   :  { %v12187_v28 = vadd.f32 %v9766_v54, %v12051_v17  ;;  %v1969_v7 = vpop.f32.mrf.mxu0  ;;  %3653 = vmatpush1.bf16.msra.mxu0 %v10773_v5 }
 0x2af   :  { %v2199_v1 = vpop.f32.mrf.mxu1  ;;  %3654 = vmatprep.subr.bf16.mxu0 %v15631_v31  ;;  %v10746_v7 = vld [vmem:[%s15545_s2 + $0x138] ss:$12 sps:$4 sm:$0xff]  }
 0x2b0   :  { %v12197_v59 = vadd.f32 %v2199_v1, %v12035_v25  ;;  %v12199_v32 = vpop.f32.mrf.mxu0  ;;  %9848 = vmatmul.mubr.bf16.gmra.mxu0 %v10734_v20  ;;  %v10794_v20 = vld [vmem:[%s15543_s1 + $0x170] sm:$0xff]  }
 0x2b1   :  { %v9769_v17 = vpop.f32.mrf.mxu1  ;;  %3054 = vmatmul.mubr.bf16.gmra.mxu1 %v10731_v21  ;;  %9851 = vmatprep.mubr.bf16.mxu0 %v10735_v12  ;;  %v10753_v1 = vld [vmem:[%s15545_s2 + $0x154] ss:$12 sps:$4 sm:$0xff]  }
 0x2b2   :  { %v12202_v24 = vadd.f32 %v9769_v17, %v12081_v35  ;;  %v1974_v60 = vpop.f32.mrf.mxu0  ;;  %3061 = vmatprep.mubr.bf16.mxu1 %v10738_v22  ;;  %3655 = vmatpush1.bf16.msra.mxu0 %v10779_v18  ;;  %v10739_v35 = vld [vmem:[%s15545_s2 + $0xb0] ss:$12 sps:$4 sm:$0xff]   ;;  %v10750_v22 = vld [vmem:[%s15545_s2 + $0x128] ss:$12 sps:$4 sm:$0xff]  }
 0x2b3   :  { %v2212_v51 = vpop.f32.mrf.mxu1  ;;  %3656 = vmatprep.subr.bf16.mxu0 %v15631_v31  ;;  %v10800_v17 = vld [vmem:[%s15543_s1 + $0x168] sm:$0xff]  }
 0x2b4   :  { %v12209_v25 = vadd.f32 %v2212_v51, %v12065_v55  ;;  %v12211_v47 = vpop.f32.mrf.mxu0 }
 0x2b5   :  { %v9770_v11 = vpop.f32.mrf.mxu1 }
 0x2b6   :  { %v12223_v0 = vadd.f32 %v9770_v11, %v12086_v9  ;;  %v1977_v55 = vpop.f32.mrf.mxu0  ;;  %3657 = vmatpush1.bf16.msra.mxu0 %v10780_v3 }
 0x2b7   :  { %v2215_v57 = vpop.f32.mrf.mxu1  ;;  %3658 = vmatprep.subr.bf16.mxu0 %v15631_v31 }
 0x2b8   :  { %v12233_v26 = vadd.f32 %v2215_v57, %v12067_v50  ;;  %v1980_v53 = vpop.f32.mrf.mxu0  ;;  %9852 = vmatmul.mubr.bf16.gmra.mxu0 %v10739_v35  ;;  %v10751_v57 = vld [vmem:[%s15545_s2 + $0x150] ss:$12 sps:$4 sm:$0xff]  }
 0x2b9   :  { %v9773_v9 = vpop.f32.mrf.mxu1  ;;  %3062 = vmatmul.mubr.bf16.gmra.mxu1 %v10736_v13  ;;  %9855 = vmatprep.mubr.bf16.mxu0 %v10740_v19  ;;  %v10801_v13 = vld [vmem:[%s15543_s1 + $0x160] sm:$0xff]  }
 0x2ba   :  { %v12236_v46 = vadd.f32 %v9773_v9, %v12110_v4  ;;  %v1982_v39 = vpop.f32.mrf.mxu0  ;;  %3069 = vmatprep.mubr.bf16.mxu1 %v10743_v8  ;;  %3659 = vmatpush1.bf16.msra.mxu0 %v10786_v62  ;;  %v10754_v8 = vld [vmem:[%s15545_s2 + $0x140] ss:$12 sps:$4 sm:$0xff]  }
 0x2bb   :  { %v2228_v48 = vpop.f32.mrf.mxu1  ;;  %3660 = vmatprep.subr.bf16.mxu0 %v15631_v31 }
 0x2bc   :  { %v12243_v50 = vadd.f32 %v2228_v48, %v12097_v14  ;;  %v1983_v29 = vpop.f32.mrf.mxu0  ;;  %v10748_v14 = vld [vmem:[%s15545_s2 + $0x13c] ss:$12 sps:$4 sm:$0xff]  }
 0x2bd   :  { %v9774_v4 = vpop.f32.mrf.mxu1 }
 0x2be   :  { %v12255_v23 = vadd.f32 %v9774_v4, %v12112_v58  ;;  %v1985_v42 = vpop.f32.mrf.mxu0  ;;  %3661 = vmatpush1.bf16.msra.mxu0 %v10787_v30  ;;  %v10807_v30 = vld [vmem:[%s15543_s1 + $0x158] sm:$0xff]  }
 0x2bf   :  { %v2231_v2 = vpop.f32.mrf.mxu1  ;;  %3662 = vmatprep.subr.bf16.mxu0 %v15631_v31  ;;  %v10808_v42 = vld [vmem:[%s15543_s1 + $0x150] sm:$0xff]  }
 0x2c0   :  { %v12265_v41 = vadd.f32 %v2231_v2, %v12099_v33  ;;  %v12267_v45 = vpop.f32.mrf.mxu0  ;;  %9856 = vmatmul.mubr.bf16.gmra.mxu0 %v10744_v38  ;;  %v10759_v2 = vld [vmem:[%s15545_s2 + $0x170] ss:$12 sps:$4 sm:$0xff]  }
 0x2c1   :  { %v9777_v58 = vpop.f32.mrf.mxu1  ;;  %3070 = vmatmul.mubr.bf16.gmra.mxu1 %v10741_v56  ;;  %9859 = vmatprep.mubr.bf16.mxu0 %v10745_v37 }
 0x2c2   :  { %v12270_v5 = vadd.f32 %v9777_v58, %v12163_v52  ;;  %v1990_v16 = vpop.f32.mrf.mxu0  ;;  %3077 = vmatprep.mubr.bf16.mxu1 %v10748_v14  ;;  %3663 = vmatpush2.bf16.msra.mxu0 %v10793_v36  ;;  %v10749_v52 = vld [vmem:[%s15545_s2 + $0x110] ss:$12 sps:$4 sm:$0xff]  }
 0x2c3   :  { %v2244_v54 = vpop.f32.mrf.mxu1  ;;  %3664 = vmatprep.subr.bf16.mxu0 %v15631_v31  ;;  %v10756_v16 = vld [vmem:[%s15545_s2 + $0x168] ss:$12 sps:$4 sm:$0xff]  }
 0x2c4   :  { %v12277_v33 = vadd.f32 %v2244_v54, %v12129_v44  ;;  %v12279_v21 = vpop.f32.mrf.mxu0 }
 0x2c5   :  { %v9778_v12 = vpop.f32.mrf.mxu1 }
 0x2c6   :  { %v12291_v18 = vadd.f32 %v9778_v12, %v12175_v6  ;;  %v1993_v44 = vpop.f32.mrf.mxu0  ;;  %3665 = vmatpush2.bf16.msra.mxu0 %v10794_v20  ;;  %v10760_v20 = vld [vmem:[%s15545_s2 + $0x188] ss:$12 sps:$4 sm:$0xff]  }
 0x2c7   :  { %v2247_v60 = vpop.f32.mrf.mxu1  ;;  %3666 = vmatprep.subr.bf16.mxu0 %v15631_v31  ;;  %v10814_v12 = vld [vmem:[%s15543_s1 + $0x148] sm:$0xff]  }
 0x2c8   :  { %v12301_v3 = vadd.f32 %v2247_v60, %v12140_v15  ;;  %v1996_v51 = vpop.f32.mrf.mxu0  ;;  %9860 = vmatmul.mubr.bf16.gmra.mxu0 %v10749_v52 }
 0x2c9   :  { %v9781_v6 = vpop.f32.mrf.mxu1  ;;  %3078 = vmatmul.mubr.bf16.gmra.mxu1 %v10746_v7  ;;  %9863 = vmatprep.mubr.bf16.mxu0 %v10750_v22 }
 0x2ca   :  { %v12303_v35 = vadd.f32 %v9781_v6, %v1980_v53  ;;  %v1998_v11 = vpop.f32.mrf.mxu0  ;;  %3085 = vmatprep.mubr.bf16.mxu1 %v10753_v1  ;;  %3667 = vmatpush2.bf16.msra.mxu0 %v10800_v17  ;;  %v10755_v53 = vld [vmem:[%s15545_s2 + $0x158] ss:$12 sps:$4 sm:$0xff]  }
 0x2cb   :  { %v2260_v19 = vpop.f32.mrf.mxu1  ;;  %3668 = vmatprep.subr.bf16.mxu0 %v15631_v31 }
 0x2cc   :  { %v12310_v15 = vadd.f32 %v2260_v19, %v12199_v32  ;;  %v1999_v55 = vpop.f32.mrf.mxu0  ;;  %v10758_v32 = vld [vmem:[%s15545_s2 + $0x16c] ss:$12 sps:$4 sm:$0xff]  }
 0x2cd   :  { %v9782_v62 = vpop.f32.mrf.mxu1 }
 0x2ce   :  { %v12321_v9 = vadd.f32 %v9782_v62, %v1983_v29  ;;  %v2001_v39 = vpop.f32.mrf.mxu0  ;;  %3669 = vmatpush2.bf16.msra.mxu0 %v10801_v13  ;;  %v10764_v13 = vld [vmem:[%s15545_s2 + $0x1a0] ss:$12 sps:$4 sm:$0xff]  }
 0x2cf   :  { %v2263_v48 = vpop.f32.mrf.mxu1  ;;  %3670 = vmatprep.subr.bf16.mxu0 %v15631_v31 }
 0x2d0   :  { %v12331_v38 = vadd.f32 %v2263_v48, %v12211_v47  ;;  %v2004_v4 = vpop.f32.mrf.mxu0  ;;  %9864 = vmatmul.mubr.bf16.gmra.mxu0 %v10754_v8  ;;  %v10767_v8 = vld [vmem:[%s15545_s2 + $0x1b8] ss:$12 sps:$4 sm:$0xff]  }
 0x2d1   :  { %v9785_v29 = vpop.f32.mrf.mxu1  ;;  %3086 = vmatmul.mubr.bf16.gmra.mxu1 %v10751_v57  ;;  %9867 = vmatprep.mubr.bf16.mxu0 %v10755_v53  ;;  %v10770_v53 = vld [vmem:[%s15545_s2 + $0x19c] ss:$12 sps:$4 sm:$0xff]  }
 0x2d2   :  { %v12333_v56 = vadd.f32 %v9785_v29, %v1996_v51  ;;  %v2006_v37 = vpop.f32.mrf.mxu0  ;;  %3093 = vmatprep.mubr.bf16.mxu1 %v10758_v32  ;;  %3671 = vmatpush2.bf16.msra.mxu0 %v10807_v30  ;;  %v10815_v51 = vld [vmem:[%s15543_s1 + $0x140] sm:$0xff]  }
 0x2d3   :  { %v2276_v14 = vpop.f32.mrf.mxu1  ;;  %3672 = vmatprep.subr.bf16.mxu0 %v15631_v31 }
 0x2d4   :  { %v12340_v47 = vadd.f32 %v2276_v14, %v12267_v45  ;;  %v2007_v36 = vpop.f32.mrf.mxu0  ;;  %v10763_v45 = vld [vmem:[%s15545_s2 + $0x184] ss:$12 sps:$4 sm:$0xff]  }
 0x2d5   :  { %v9786_v58 = vpop.f32.mrf.mxu1  ;;  %v10771_v14 = vld [vmem:[%s15545_s2 + $0x1d0] ss:$12 sps:$4 sm:$0xff]  }
 0x2d6   :  { %v12351_v54 = vadd.f32 %v9786_v58, %v1999_v55  ;;  %v2009_v52 = vpop.f32.mrf.mxu0  ;;  %3673 = vmatpush2.bf16.msra.mxu0 %v10808_v42  ;;  %v10761_v55 = vld [vmem:[%s15545_s2 + $0x180] ss:$12 sps:$4 sm:$0xff]   ;;  %v10774_v58 = vld [vmem:[%s15545_s2 + $0x1e8] ss:$12 sps:$4 sm:$0xff]  }
 0x2d7   :  { %v2279_v7 = vpop.f32.mrf.mxu1  ;;  %3674 = vmatprep.subr.bf16.mxu0 %v15631_v31 }
 0x2d8   :  { %v12361_v22 = vadd.f32 %v2279_v7, %v12279_v21  ;;  %v2012_v44 = vpop.f32.mrf.mxu0  ;;  %9868 = vmatmul.mubr.bf16.gmra.mxu0 %v10759_v2 }
 0x2d9   :  { %v9789_v1 = vpop.f32.mrf.mxu1  ;;  %3094 = vmatmul.mubr.bf16.gmra.mxu1 %v10756_v16  ;;  %9871 = vmatprep.mubr.bf16.mxu0 %v10760_v20  ;;  %v10777_v20 = vld [vmem:[%s15545_s2 + $0x1b4] ss:$12 sps:$4 sm:$0xff]  }
 0x2da   :  { %v12363_v17 = vadd.f32 %v9789_v1, %v2012_v44  ;;  %v2014_v60 = vpop.f32.mrf.mxu0  ;;  %3101 = vmatprep.mubr.bf16.mxu1 %v10763_v45  ;;  %3675 = vmatpush2.bf16.msra.mxu0 %v10814_v12 }
 0x2db   :  { %v2292_v6 = vpop.f32.mrf.mxu1  ;;  %3676 = vmatprep.subr.bf16.mxu0 %v15631_v31 }
 0x2dc   :  { %v12369_v11 = vadd.f32 %v2292_v6, %v2004_v4  ;;  %v2015_v21 = vpop.f32.mrf.mxu0  ;;  %v10778_v6 = vld [vmem:[%s15545_s2 + $0x200] ss:$12 sps:$4 sm:$0xff]  }
 0x2dd   :  { %v9790_v19 = vpop.f32.mrf.mxu1 }
 0x2de   :  { %v12380_v62 = vadd.f32 %v9790_v19, %v2015_v21  ;;  %v2017_v57 = vpop.f32.mrf.mxu0  ;;  %3677 = vmatpush2.bf16.msra.mxu0 %v10815_v51  ;;  %v10775_v19 = vld [vmem:[%s15545_s2 + $0x1b0] ss:$12 sps:$4 sm:$0xff]  }
 0x2df   :  { %v2295_v39 = vpop.f32.mrf.mxu1  ;;  %v10784_v57 = vld [vmem:[%s15545_s2 + $0x1cc] ss:$12 sps:$4 sm:$0xff]  }
 0x2e0   :  { %v12385_v32 = vadd.f32 %v2295_v39, %v2007_v36  ;;  %v2020_v30 = vpop.f32.mrf.mxu0  ;;  %9872 = vmatmul.mubr.bf16.gmra.mxu0 %v10764_v13  ;;  %v10768_v36 = vld [vmem:[%s15545_s2 + $0x198] ss:$12 sps:$4 sm:$0xff]  }
 0x2e1   :  { %v9793_v48 = vpop.f32.mrf.mxu1  ;;  %3102 = vmatmul.mubr.bf16.gmra.mxu1 %v10761_v55  ;;  %9875 = vmatprep.mubr.bf16.mxu0 %v10767_v8  ;;  %v10781_v55 = vld [vmem:[%s15545_s2 + $0x218] ss:$12 sps:$4 sm:$0xff]  }
 0x2e2   :  { %v2022_v4 = vpop.f32.mrf.mxu0  ;;  %3109 = vmatprep.mubr.bf16.mxu1 %v10770_v53 }
 0x2e3   :  { %v2308_v29 = vpop.f32.mrf.mxu1 }
 0x2e4   :  { %v12387_v37 = vadd.f32 %v2308_v29, %v2020_v30  ;;  %v2023_v42 = vpop.f32.mrf.mxu0 }
 0x2e5   :  { %v9794_v2 = vpop.f32.mrf.mxu1 }
 0x2e6   :  { %v2025_v16 = vpop.f32.mrf.mxu0 }
 0x2e7   :  { %v2311_v52 = vpop.f32.mrf.mxu1  ;;  %v10788_v16 = vld [vmem:[%s15545_s2 + $0x248] ss:$12 sps:$4 sm:$0xff]  }
 0x2e8   :  { %v12401_v45 = vadd.f32 %v2311_v52, %v2023_v42  ;;  %v2028_v12 = vpop.f32.mrf.mxu0  ;;  %9876 = vmatmul.mubr.bf16.gmra.mxu0 %v10771_v14  ;;  %v10785_v14 = vld [vmem:[%s15545_s2 + $0x230] ss:$12 sps:$4 sm:$0xff]  }
 0x2e9   :  { %v12403_v7 = vadd.f32 %v9793_v48, %v2028_v12  ;;  %v9797_v44 = vpop.f32.mrf.mxu1  ;;  %3110 = vmatmul.mubr.bf16.gmra.mxu1 %v10768_v36  ;;  %9879 = vmatprep.mubr.bf16.mxu0 %v10774_v58  ;;  %v10782_v58 = vld [vmem:[%s15545_s2 + $0x1c8] ss:$12 sps:$4 sm:$0xff]   ;;  %v10791_v52 = vld [vmem:[%s15545_s2 + $0x1e4] ss:$12 sps:$4 sm:$0xff]  }
 0x2ea   :  { %v2030_v1 = vpop.f32.mrf.mxu0  ;;  %3117 = vmatprep.mubr.bf16.mxu1 %v10777_v20 }
 0x2eb   :  { %v2324_v60 = vpop.f32.mrf.mxu1 }
 0x2ec   :  { %v2031_v51 = vpop.f32.mrf.mxu0 }
 0x2ed   :  { %v12408_v21 = vadd.f32 %v9794_v2, %v2031_v51  ;;  %v9798_v13 = vpop.f32.mrf.mxu1 }
 0x2ee   :  { %v2033_v8 = vpop.f32.mrf.mxu0 }
 0x2ef   :  { %v2327_v53 = vpop.f32.mrf.mxu1  ;;  %v10792_v8 = vld [vmem:[%s15545_s2 + $0x260] ss:$12 sps:$4 sm:$0xff]  }
 0x2f0   :  { %v2036_v39 = vpop.f32.mrf.mxu0  ;;  %9880 = vmatmul.mubr.bf16.gmra.mxu0 %v10778_v6 }
 0x2f1   :  { %v12419_v30 = vadd.f32 %v2324_v60, %v2036_v39  ;;  %v9801_v48 = vpop.f32.mrf.mxu1  ;;  %3118 = vmatmul.mubr.bf16.gmra.mxu1 %v10775_v19  ;;  %9883 = vmatprep.mubr.bf16.mxu0 %v10781_v55  ;;  %v10795_v39 = vld [vmem:[%s15545_s2 + $0x278] ss:$12 sps:$4 sm:$0xff]  }
 0x2f2   :  { %v2038_v4 = vpop.f32.mrf.mxu0  ;;  %3125 = vmatprep.mubr.bf16.mxu1 %v10784_v57 }
 0x2f3   :  { %15650 = vst [vmem:[#allocation3_spill] sm:$0xff] %v12419_v30  ;;  %v2340_v29 = vpop.f32.mrf.mxu1 }
 0x2f4   :  { %v2039_v42 = vpop.f32.mrf.mxu0 }
 0x2f5   :  { %v12424_v2 = vadd.f32 %v2327_v53, %v2039_v42  ;;  %v9802_v36 = vpop.f32.mrf.mxu1  ;;  %v10798_v42 = vld [vmem:[%s15545_s2 + $0x1fc] ss:$12 sps:$4 sm:$0xff]  }
 0x2f6   :  { %v2041_v20 = vpop.f32.mrf.mxu0 }
 0x2f7   :  { %15651 = vst [vmem:[#allocation2_spill] sm:$0xff] %v12424_v2  ;;  %v2343_v12 = vpop.f32.mrf.mxu1 }
 0x2f8   :  { %v2044_v1 = vpop.f32.mrf.mxu0  ;;  %9884 = vmatmul.mubr.bf16.gmra.mxu0 %v10785_v14 }
 0x2f9   :  { %v12435_v60 = vadd.f32 %v9797_v44, %v2044_v1  ;;  %v12437_v51 = vpop.f32.mrf.mxu1  ;;  %3126 = vmatmul.mubr.bf16.gmra.mxu1 %v10782_v58  ;;  %9887 = vmatprep.mubr.bf16.mxu0 %v10788_v16  ;;  %v10789_v44 = vld [vmem:[%s15545_s2 + $0x1e0] ss:$12 sps:$4 sm:$0xff]  }
 0x2fa   :  { %v2046_v6 = vpop.f32.mrf.mxu0  ;;  %3133 = vmatprep.mubr.bf16.mxu1 %v10791_v52 }
 0x2fb   :  { %15652 = vst [vmem:[#allocation4_spill] sm:$0xff] %v12435_v60  ;;  %v2356_v19 = vpop.f32.mrf.mxu1  ;;  %v10799_v6 = vld [vmem:[%s15545_s2 + $0x290] ss:$12 sps:$4 sm:$0xff]  }
 0x2fc   :  { %v2047_v55 = vpop.f32.mrf.mxu0 }
 0x2fd   :  { %v12442_v57 = vadd.f32 %v9798_v13, %v2047_v55  ;;  %v12444_v53 = vpop.f32.mrf.mxu1 }
 0x2fe   :  { %v2049_v4 = vpop.f32.mrf.mxu0 }
 0x2ff   :  { %15653 = vst [vmem:[#allocation5_spill] sm:$0xff] %v12442_v57  ;;  %v2359_v14 = vpop.f32.mrf.mxu1 }
 0x300   :  { %v2052_v58 = vpop.f32.mrf.mxu0  ;;  %9888 = vmatmul.mubr.bf16.gmra.mxu0 %v10792_v8  ;;  %v10802_v8 = vld [vmem:[%s15545_s2 + $0x2a8] ss:$12 sps:$4 sm:$0xff]  }
 0x301   :  { %v12455_v13 = vadd.f32 %v2340_v29, %v2052_v58  ;;  %v12457_v16 = vpop.f32.mrf.mxu1  ;;  %3134 = vmatmul.mubr.bf16.gmra.mxu1 %v10789_v44  ;;  %9891 = vmatprep.mubr.bf16.mxu0 %v10795_v39  ;;  %v10796_v29 = vld [vmem:[%s15545_s2 + $0x1f8] ss:$12 sps:$4 sm:$0xff]   ;;  %v10805_v39 = vld [vmem:[%s15545_s2 + $0x214] ss:$12 sps:$4 sm:$0xff]  }
 0x302   :  { %v2054_v20 = vpop.f32.mrf.mxu0  ;;  %3141 = vmatprep.mubr.bf16.mxu1 %v10798_v42 }
 0x303   :  { %15654 = vst [vmem:[#allocation6_spill] sm:$0xff] %v12455_v13  ;;  %v12459_v52 = vpop.f32.mrf.mxu1 }
 0x304   :  { %v2055_v1 = vpop.f32.mrf.mxu0 }
 0x305   :  { %v12464_v55 = vadd.f32 %v2343_v12, %v2055_v1  ;;  %v12466_v4 = vpop.f32.mrf.mxu1 }
 0x306   :  { %v2057_v44 = vpop.f32.mrf.mxu0 }
 0x307   :  { %15655 = vst [vmem:[#allocation7_spill] sm:$0xff] %v12464_v55  ;;  %v12477_v42 = vpop.f32.mrf.mxu1  ;;  %v10806_v44 = vld [vmem:[%s15545_s2 + $0x2c0] ss:$12 sps:$4 sm:$0xff]  }
 0x308   :  { %v2060_v58 = vpop.f32.mrf.mxu0  ;;  %9892 = vmatmul.mubr.bf16.gmra.mxu0 %v10799_v6  ;;  %v10809_v6 = vld [vmem:[%s15545_s2 + $0x2d8] ss:$12 sps:$4 sm:$0xff]  }
 0x309   :  { %v12479_v12 = vadd.f32 %v9801_v48, %v2060_v58  ;;  %v12481_v20 = vpop.f32.mrf.mxu1  ;;  %3142 = vmatmul.mubr.bf16.gmra.mxu1 %v10796_v29  ;;  %9895 = vmatprep.mubr.bf16.mxu0 %v10802_v8  ;;  %v10803_v48 = vld [vmem:[%s15545_s2 + $0x210] ss:$12 sps:$4 sm:$0xff]   ;;  %v10812_v8 = vld [vmem:[%s15545_s2 + $0x22c] ss:$12 sps:$4 sm:$0xff]  }
 0x30a   :  { %v2062_v1 = vpop.f32.mrf.mxu0  ;;  %3149 = vmatprep.mubr.bf16.mxu1 %v10805_v39 }
 0x30b   :  { %15656 = vst [vmem:[#allocation8_spill] sm:$0xff] %v12479_v12  ;;  %v12483_v31 = vpop.f32.mrf.mxu1 }
 0x30c   :  { %v2063_v55 = vpop.f32.mrf.mxu0 }
 0x30d   :  { %v12488_v13 = vadd.f32 %v9802_v36, %v2063_v55  ;;  %v12490_v57 = vpop.f32.mrf.mxu1 }
 0x30e   :  { %v2065_v29 = vpop.f32.mrf.mxu0 }
 0x30f   :  { %15657 = vst [vmem:[#allocation9_spill] sm:$0xff] %v12488_v13  ;;  %v12501_v39 = vpop.f32.mrf.mxu1  ;;  %v10813_v29 = vld [vmem:[%s15545_s2 + $0x2f0] ss:$0 sps:$4 sm:$0xff]  }
 0x310   :  { %v2068_v58 = vpop.f32.mrf.mxu0  ;;  %9896 = vmatmul.mubr.bf16.gmra.mxu0 %v10806_v44 }
 0x311   :  { %v12503_v36 = vadd.f32 %v2356_v19, %v2068_v58  ;;  %v12505_v55 = vpop.f32.mrf.mxu1  ;;  %3150 = vmatmul.mubr.bf16.gmra.mxu1 %v10803_v48  ;;  %9899 = vmatprep.mubr.bf16.mxu0 %v10809_v6  ;;  %v10810_v19 = vld [vmem:[%s15545_s2 + $0x228] ss:$12 sps:$4 sm:$0xff]   ;;  %v10818_v48 = vld [vmem:[%s15545_s2 + $0x244] ss:$12 sps:$4 sm:$0xff]  }
 0x312   :  { %v2070_v1 = vpop.f32.mrf.mxu0  ;;  %3157 = vmatprep.mubr.bf16.mxu1 %v10812_v8 }
 0x313   :  { %15658 = vst [vmem:[#allocation10_spill] sm:$0xff] %v12503_v36  ;;  %v12507_v13 = vpop.f32.mrf.mxu1 }
 0x314   :  { %v2071_v12 = vpop.f32.mrf.mxu0 }
 0x315   :  { %v12512_v60 = vadd.f32 %v2359_v14, %v2071_v12  ;;  %v12514_v2 = vpop.f32.mrf.mxu1  ;;  %v11052_v12 = vld [vmem:[%s15544_s0 + $0x4] ss:$8 sps:$4 sm:$0xff]  }
 0x316   :  { %v2073_v44 = vpop.f32.mrf.mxu0 }
 0x317   :  { %15659 = vst [vmem:[#allocation11_spill] sm:$0xff] %v12512_v60  ;;  %v12522_v6 = vpop.f32.mrf.mxu1 }
 0x318   :  { %v2076_v8 = vpop.f32.mrf.mxu0  ;;  %9900 = vmatmul.mubr.bf16.gmra.mxu0 %v10813_v29 }
 0x319   :  { %v12525_v58 = vadd.f32 %v12437_v51, %v2076_v8  ;;  %v12527_v14 = vpop.f32.mrf.mxu1  ;;  %3158 = vmatmul.mubr.bf16.gmra.mxu1 %v10810_v19  ;;  %3678 = vmatprep.mubr.bf16.mxu0 %v11052_v12  ;;  %v10816_v51 = vld [vmem:[%s15545_s2 + $0x240] ss:$12 sps:$4 sm:$0xff]   ;;  %v10821_v19 = vld [vmem:[%s15545_s2 + $0x25c] ss:$12 sps:$4 sm:$0xff]  }
 0x31a   :  { %v2078_v1 = vpop.f32.mrf.mxu0  ;;  %3165 = vmatprep.mubr.bf16.mxu1 %v10818_v48  ;;  %v2181_v48 = vadd.f32 %v12137_v61, %v12001_v49  ;;  %v2184_v61 = vadd.f32 %v12160_v10, %v12003_v63  ;;  %v11055_v63 = vld [vmem:[%s15544_s0 + $0x10] ss:$8 sps:$4 sm:$0xff]  }
 0x31b   :  { %15660 = vst [vmem:[#allocation12_spill] sm:$0xff] %v12525_v58  ;;  %v12532_v44 = vpop.f32.mrf.mxu1 }
 0x31c   :  { %v2079_v60 = vpop.f32.mrf.mxu0 }
 0x31d   :  { %v12535_v36 = vadd.f32 %v12444_v53, %v2079_v60  ;;  %v9822_v29 = vpop.f32.mrf.mxu1  ;;  %v11053_v60 = vld [vmem:[%s15544_s0] ss:$8 sps:$4 sm:$0xff]  }
 0x31e   :  { %v2081_v8 = vpop.f32.mrf.mxu0  ;;  %v11054_v29 = vld [vmem:[%s15544_s0 + $0x14] ss:$8 sps:$4 sm:$0xff]  }
 0x31f   :  { %15661 = vst [vmem:[#allocation13_spill] sm:$0xff] %v12535_v36  ;;  %v12543_v58 = vpop.f32.mrf.mxu1 }
 0x320   :  { %v2084_v12 = vpop.f32.mrf.mxu0  ;;  %3679 = vmatmul.mubr.bf16.vlgmr.msra.gmra.mxu0 %v11053_v60 }
 0x321   :  { %v12551_v53 = vadd.f32 %v12459_v52, %v2084_v12  ;;  %v2975_v1 = vpop.f32.mrf.mxu1  ;;  %3166 = vmatmul.mubr.bf16.gmra.mxu1 %v10816_v51  ;;  %3686 = vmatprep.mubr.bf16.mxu0 %v11054_v29  ;;  %v10819_v51 = vld [vmem:[%s15545_s2 + $0x258] ss:$12 sps:$4 sm:$0xff]  }
 0x322   :  { %v12556_v8 = vadd.f32 %v2975_v1, %v2181_v48  ;;  %v2086_v36 = vpop.f32.mrf.mxu0  ;;  %3173 = vmatprep.mubr.bf16.mxu1 %v10821_v19 }
 0x323   :  { %v2977_v49 = vpop.f32.mrf.mxu1  ;;  %v10824_v36 = vld [vmem:[%s15545_s2 + $0x274] ss:$12 sps:$4 sm:$0xff]  }
 0x324   :  { %v2087_v30 = vpop.f32.mrf.mxu0 }
 0x325   :  { %v12561_v60 = vadd.f32 %v12477_v42, %v2087_v30  ;;  %v2978_v52 = vpop.f32.mrf.mxu1  ;;  %v11056_v42 = vld [vmem:[%s15544_s0 + $0x24] ss:$8 sps:$4 sm:$0xff]  }
 0x326   :  { %v12566_v12 = vadd.f32 %v2978_v52, %v2184_v61  ;;  %v2089_v29 = vpop.f32.mrf.mxu0 }
 0x327   :  { %v2980_v19 = vpop.f32.mrf.mxu1 }
 0x328   :  { %v2092_v48 = vpop.f32.mrf.mxu0  ;;  %3687 = vmatmul.mubr.bf16.gmra.mxu0 %v11055_v63 }
 0x329   :  { %v12575_v10 = vadd.f32 %v12457_v16, %v2092_v48  ;;  %v2983_v30 = vpop.f32.mrf.mxu1  ;;  %3174 = vmatmul.mubr.bf16.gmra.mxu1 %v10819_v51  ;;  %3694 = vmatprep.mubr.bf16.mxu0 %v11056_v42  ;;  %v10822_v16 = vld [vmem:[%s15545_s2 + $0x270] ss:$12 sps:$4 sm:$0xff]  }
 0x32a   :  { %v12581_v1 = vadd.f32 %v2983_v30, %v12132_v34  ;;  %v2094_v49 = vpop.f32.mrf.mxu0  ;;  %3181 = vmatprep.mubr.bf16.mxu1 %v10824_v36  ;;  %v10827_v34 = vld [vmem:[%s15545_s2 + $0x28c] ss:$12 sps:$4 sm:$0xff]  }
 0x32b   :  { %v2985_v61 = vpop.f32.mrf.mxu1 }
 0x32c   :  { %v2095_v52 = vpop.f32.mrf.mxu0 }
 0x32d   :  { %v12584_v29 = vadd.f32 %v12466_v4, %v2095_v52  ;;  %v2986_v19 = vpop.f32.mrf.mxu1  ;;  %v11057_v4 = vld [vmem:[%s15544_s0 + $0x20] ss:$8 sps:$4 sm:$0xff]  }
 0x32e   :  { %v12590_v51 = vadd.f32 %v2986_v19, %v12152_v40  ;;  %v2097_v48 = vpop.f32.mrf.mxu0  ;;  %v11058_v40 = vld [vmem:[%s15544_s0 + $0x34] ss:$8 sps:$4 sm:$0xff]  }
 0x32f   :  { %v2988_v63 = vpop.f32.mrf.mxu1 }
 0x330   :  { %v2100_v36 = vpop.f32.mrf.mxu0  ;;  %3695 = vmatmul.mubr.bf16.gmra.mxu0 %v11057_v4 }
 0x331   :  { %v12599_v30 = vadd.f32 %v12483_v31, %v2100_v36  ;;  %v2991_v42 = vpop.f32.mrf.mxu1  ;;  %3182 = vmatmul.mubr.bf16.gmra.mxu1 %v10822_v16  ;;  %3702 = vmatprep.mubr.bf16.mxu0 %v11058_v40  ;;  %v10825_v31 = vld [vmem:[%s15545_s2 + $0x288] ss:$12 sps:$4 sm:$0xff]  }
 0x332   :  { %v12605_v49 = vadd.f32 %v2991_v42, %v12173_v27  ;;  %v2102_v61 = vpop.f32.mrf.mxu0  ;;  %3189 = vmatprep.mubr.bf16.mxu1 %v10827_v34  ;;  %v10830_v27 = vld [vmem:[%s15545_s2 + $0x2a4] ss:$12 sps:$4 sm:$0xff]  }
 0x333   :  { %v2993_v52 = vpop.f32.mrf.mxu1 }
 0x334   :  { %v2103_v19 = vpop.f32.mrf.mxu0 }
 0x335   :  { %v12608_v48 = vadd.f32 %v12501_v39, %v2103_v19  ;;  %v2994_v63 = vpop.f32.mrf.mxu1  ;;  %v11059_v39 = vld [vmem:[%s15544_s0 + $0x30] ss:$8 sps:$4 sm:$0xff]  }
 0x336   :  { %v12614_v16 = vadd.f32 %v2994_v63, %v12197_v59  ;;  %v2105_v36 = vpop.f32.mrf.mxu0  ;;  %v11060_v59 = vld [vmem:[%s15544_s0 + $0x44] ss:$8 sps:$4 sm:$0xff]  }
 0x337   :  { %v2996_v4 = vpop.f32.mrf.mxu1 }
 0x338   :  { %v2108_v34 = vpop.f32.mrf.mxu0  ;;  %3703 = vmatmul.mubr.bf16.gmra.mxu0 %v11059_v39 }
 0x339   :  { %v12623_v42 = vadd.f32 %v12481_v20, %v2108_v34  ;;  %v2999_v40 = vpop.f32.mrf.mxu1  ;;  %3190 = vmatmul.mubr.bf16.gmra.mxu1 %v10825_v31  ;;  %3710 = vmatprep.mubr.bf16.mxu0 %v11060_v59  ;;  %v10828_v20 = vld [vmem:[%s15545_s2 + $0x2a0] ss:$12 sps:$4 sm:$0xff]  }
 0x33a   :  { %v12629_v61 = vadd.f32 %v2999_v40, %v12166_v43  ;;  %v2110_v52 = vpop.f32.mrf.mxu0  ;;  %3197 = vmatprep.mubr.bf16.mxu1 %v10830_v27  ;;  %v10833_v43 = vld [vmem:[%s15545_s2 + $0x2bc] ss:$12 sps:$4 sm:$0xff]  }
 0x33b   :  { %v3001_v19 = vpop.f32.mrf.mxu1 }
 0x33c   :  { %v2111_v63 = vpop.f32.mrf.mxu0 }
 0x33d   :  { %v12632_v36 = vadd.f32 %v12490_v57, %v2111_v63  ;;  %v3002_v4 = vpop.f32.mrf.mxu1  ;;  %v11061_v57 = vld [vmem:[%s15544_s0 + $0x40] ss:$8 sps:$4 sm:$0xff]  }
 0x33e   :  { %v12638_v31 = vadd.f32 %v3002_v4, %v12187_v28  ;;  %v2113_v34 = vpop.f32.mrf.mxu0  ;;  %v11062_v28 = vld [vmem:[%s15544_s0 + $0x54] ss:$8 sps:$4 sm:$0xff]  }
 0x33f   :  { %v3004_v39 = vpop.f32.mrf.mxu1 }
 0x340   :  { %v2116_v27 = vpop.f32.mrf.mxu0  ;;  %3711 = vmatmul.mubr.bf16.gmra.mxu0 %v11061_v57 }
 0x341   :  { %v12647_v40 = vadd.f32 %v12507_v13, %v2116_v27  ;;  %v3007_v59 = vpop.f32.mrf.mxu1  ;;  %3198 = vmatmul.mubr.bf16.gmra.mxu1 %v10828_v20  ;;  %3718 = vmatprep.mubr.bf16.mxu0 %v11062_v28  ;;  %v10831_v13 = vld [vmem:[%s15545_s2 + $0x2b8] ss:$12 sps:$4 sm:$0xff]  }
 0x342   :  { %v12653_v52 = vadd.f32 %v3007_v59, %v12209_v25  ;;  %v2118_v19 = vpop.f32.mrf.mxu0  ;;  %3205 = vmatprep.mubr.bf16.mxu1 %v10833_v43  ;;  %v10836_v25 = vld [vmem:[%s15545_s2 + $0x2d4] ss:$12 sps:$4 sm:$0xff]  }
 0x343   :  { %v3009_v63 = vpop.f32.mrf.mxu1 }
 0x344   :  { %v2119_v4 = vpop.f32.mrf.mxu0 }
 0x345   :  { %v12656_v34 = vadd.f32 %v12522_v6, %v2119_v4  ;;  %v3010_v39 = vpop.f32.mrf.mxu1  ;;  %v11063_v6 = vld [vmem:[%s15544_s0 + $0x50] ss:$8 sps:$4 sm:$0xff]  }
 0x346   :  { %v12662_v20 = vadd.f32 %v3010_v39, %v12233_v26  ;;  %v2121_v27 = vpop.f32.mrf.mxu0  ;;  %v11064_v26 = vld [vmem:[%s15544_s0 + $0x64] ss:$8 sps:$4 sm:$0xff]  }
 0x347   :  { %v3012_v57 = vpop.f32.mrf.mxu1  ;;  %v844_v39 = vld [vmem:[%s15545_s2 + $0x2e8] sm:$0xff] }
 0x348   :  { %v2124_v43 = vpop.f32.mrf.mxu0  ;;  %3719 = vmatmul.mubr.bf16.gmra.mxu0 %v11063_v6  ;;  %v10834_v57 = vld [vmem:[%s15545_s2 + $0x2d0] ss:$12 sps:$4 sm:$0xff]   ;;  %v8971_v6 = vcombine.high %v844_v39, %v844_v39 }
 0x349   :  { %v12671_v59 = vadd.f32 %v12505_v55, %v2124_v43  ;;  %v3015_v28 = vpop.f32.mrf.mxu1  ;;  %3206 = vmatmul.mubr.bf16.gmra.mxu1 %v10831_v13  ;;  %3726 = vmatprep.mubr.bf16.mxu0 %v11064_v26  ;;  %v11065_v26 = vld [vmem:[%s15544_s0 + $0x60] ss:$8 sps:$4 sm:$0xff]  }
 0x34a   :  { %v12677_v19 = vadd.f32 %v3015_v28, %v12202_v24  ;;  %v2126_v63 = vpop.f32.mrf.mxu0  ;;  %3213 = vmatprep.mubr.bf16.mxu1 %v10836_v25 }
 0x34b   :  { %v3017_v4 = vpop.f32.mrf.mxu1 }
 0x34c   :  { %v2127_v27 = vpop.f32.mrf.mxu0  ;;  %v11066_v4 = vld [vmem:[%s15544_s0 + $0x74] ss:$8 sps:$4 sm:$0xff]  }
 0x34d   :  { %v12683_v55 = vadd.f32 %v12514_v2, %v2127_v27  ;;  %v3018_v13 = vpop.f32.mrf.mxu1 }
 0x34e   :  { %v12689_v43 = vadd.f32 %v3018_v13, %v12223_v0  ;;  %v2129_v24 = vpop.f32.mrf.mxu0 }
 0x34f   :  { %15662 = vst [vmem:[#allocation14_spill] sm:$0xff] %v12683_v55  ;;  %v3020_v25 = vpop.f32.mrf.mxu1 }
 0x350   :  { %v2132_v28 = vpop.f32.mrf.mxu0  ;;  %3727 = vmatmul.mubr.bf16.gmra.mxu0 %v11065_v26 }
 0x351   :  { %v12695_v2 = vadd.f32 %v12532_v44, %v2132_v28  ;;  %v3023_v63 = vpop.f32.mrf.mxu1  ;;  %3214 = vmatmul.mubr.bf16.gmra.mxu1 %v10834_v57  ;;  %3734 = vmatprep.mubr.bf16.mxu0 %v11066_v4  ;;  %v8970_v44 = vcombine.low %v844_v39, %v844_v39 }
 0x352   :  { %v12701_v0 = vadd.f32 %v3023_v63, %v12243_v50  ;;  %v2134_v27 = vpop.f32.mrf.mxu0  ;;  %3221 = vmatprep.mubr.bf16.mxu1 %v8971_v6  ;;  %v11067_v50 = vld [vmem:[%s15544_s0 + $0x70] ss:$8 sps:$4 sm:$0xff]  }
 0x353   :  { %15663 = vst [vmem:[#allocation15_spill] sm:$0xff] %v12695_v2  ;;  %v3025_v13 = vpop.f32.mrf.mxu1 }
 0x354   :  { %v2135_v24 = vpop.f32.mrf.mxu0 }
 0x355   :  { %v12704_v25 = vadd.f32 %v12543_v58, %v2135_v24  ;;  %v3026_v26 = vpop.f32.mrf.mxu1  ;;  %v11068_v58 = vld [vmem:[%s15544_s0 + $0x84] ss:$8 sps:$4 sm:$0xff]  }
 0x356   :  { %v12707_v28 = vadd.f32 %v3026_v26, %v12265_v41  ;;  %v2137_v57 = vpop.f32.mrf.mxu0  ;;  %v11069_v26 = vld [vmem:[%s15544_s0 + $0x80] ss:$8 sps:$4 sm:$0xff]  }
 0x357   :  { %v3028_v2 = vpop.f32.mrf.mxu1  ;;  %v11070_v57 = vld [vmem:[%s15544_s0 + $0x94] ss:$8 sps:$4 sm:$0xff]  }
 0x358   :  { %v2140_v55 = vpop.f32.mrf.mxu0  ;;  %3735 = vmatmul.mubr.bf16.gmra.mxu0 %v11067_v50 }
 0x359   :  { %v12713_v6 = vadd.f32 %v12527_v14, %v2140_v55  ;;  %v3031_v63 = vpop.f32.mrf.mxu1  ;;  %3222 = vmatmul.mubr.bf16.gmra.mxu1 %v8970_v44  ;;  %3742 = vmatprep.mubr.bf16.mxu0 %v11068_v58 }
 0x35a   :  { %v12719_v41 = vadd.f32 %v3031_v63, %v12236_v46  ;;  %v2142_v39 = vpop.f32.mrf.mxu0 }
 0x35b   :  { %v3033_v2 = vpop.f32.mrf.mxu1 }
 0x35c   :  { %v2143_v4 = vpop.f32.mrf.mxu0 }
 0x35d   :  { %v3034_v27 = vpop.f32.mrf.mxu1 }
 0x35e   :  { %v12722_v13 = vadd.f32 %v3034_v27, %v12255_v23  ;;  %v2144_v24 = vpop.f32.mrf.mxu0 }
 0x35f   :  { %v3036_v14 = vpop.f32.mrf.mxu1 }
 0x360   :  { %v9841_v55 = vpop.f32.mrf.mxu0  ;;  %3743 = vmatmul.mubr.bf16.gmra.mxu0 %v11069_v26 }
 0x361   :  { %v12728_v44 = vadd.f32 %v9841_v55, %v12581_v1  ;;  %v3039_v46 = vpop.f32.mrf.mxu1  ;;  %3750 = vmatprep.mubr.bf16.mxu0 %v11070_v57 }
 0x362   :  { %v12734_v23 = vadd.f32 %v3039_v46, %v12277_v33  ;;  %v3263_v50 = vpop.f32.mrf.mxu0 }
 0x363   :  { %v12737_v63 = vadd.f32 %v3263_v50, %v12556_v8  ;;  %v3041_v58 = vpop.f32.mrf.mxu1  ;;  %v11071_v8 = vld [vmem:[%s15544_s0 + $0x90] ss:$8 sps:$4 sm:$0xff]  }
 0x364   :  { %v9842_v39 = vpop.f32.mrf.mxu0 }
 0x365   :  { %v12740_v2 = vadd.f32 %v9842_v39, %v12590_v51  ;;  %v3042_v1 = vpop.f32.mrf.mxu1 }
 0x366   :  { %v12743_v4 = vadd.f32 %v3042_v1, %v12301_v3  ;;  %v3266_v27 = vpop.f32.mrf.mxu0  ;;  %v11072_v3 = vld [vmem:[%s15544_s0 + $0xa4] ss:$8 sps:$4 sm:$0xff]  }
 0x367   :  { %v12746_v24 = vadd.f32 %v3266_v27, %v12566_v12  ;;  %v3044_v14 = vpop.f32.mrf.mxu1 }
 0x368   :  { %v9845_v33 = vpop.f32.mrf.mxu0  ;;  %3751 = vmatmul.mubr.bf16.gmra.mxu0 %v11071_v8 }
 0x369   :  { %v12752_v55 = vadd.f32 %v9845_v33, %v12629_v61  ;;  %v3047_v51 = vpop.f32.mrf.mxu1  ;;  %3758 = vmatprep.mubr.bf16.mxu0 %v11072_v3 }
 0x36a   :  { %v3048_v26 = vadd.f32 %v3047_v51, %v12270_v5  ;;  %v3279_v12 = vpop.f32.mrf.mxu0  ;;  %v11073_v5 = vld [vmem:[%s15544_s0 + $0xa0] ss:$8 sps:$4 sm:$0xff]  }
 0x36b   :  { %v12759_v46 = vadd.f32 %v3279_v12, %v12605_v49  ;;  %v3049_v57 = vpop.f32.mrf.mxu1 }
 0x36c   :  { %v9846_v50 = vpop.f32.mrf.mxu0 }
 0x36d   :  { %v12762_v58 = vadd.f32 %v9846_v50, %v12638_v31  ;;  %v3050_v39 = vpop.f32.mrf.mxu1  ;;  %v11074_v31 = vld [vmem:[%s15544_s0 + $0xb4] ss:$8 sps:$4 sm:$0xff]  }
 0x36e   :  { %v3051_v61 = vadd.f32 %v3050_v39, %v12291_v18  ;;  %v3282_v1 = vpop.f32.mrf.mxu0 }
 0x36f   :  { %v12766_v27 = vadd.f32 %v3282_v1, %v12614_v16  ;;  %v3052_v14 = vpop.f32.mrf.mxu1 }
 0x370   :  { %v9849_v33 = vpop.f32.mrf.mxu0  ;;  %3759 = vmatmul.mubr.bf16.gmra.mxu0 %v11073_v5 }
 0x371   :  { %v12772_v49 = vadd.f32 %v9849_v33, %v12677_v19  ;;  %v3055_v8 = vpop.f32.mrf.mxu1  ;;  %3766 = vmatprep.mubr.bf16.mxu0 %v11074_v31 }
 0x372   :  { %v3056_v18 = vadd.f32 %v3055_v8, %v12310_v15  ;;  %v3295_v16 = vpop.f32.mrf.mxu0  ;;  %v11075_v15 = vld [vmem:[%s15544_s0 + $0xb0] ss:$8 sps:$4 sm:$0xff]  }
 0x373   :  { %v12779_v51 = vadd.f32 %v3295_v16, %v12653_v52  ;;  %v3057_v3 = vpop.f32.mrf.mxu1 }
 0x374   :  { %v9850_v12 = vpop.f32.mrf.mxu0 }
 0x375   :  { %v12782_v57 = vadd.f32 %v9850_v12, %v12689_v43  ;;  %v3058_v50 = vpop.f32.mrf.mxu1  ;;  %v11076_v43 = vld [vmem:[%s15544_s0 + $0xc4] ss:$8 sps:$4 sm:$0xff]  }
 0x376   :  { %v3059_v19 = vadd.f32 %v3058_v50, %v12331_v38  ;;  %v3298_v39 = vpop.f32.mrf.mxu0 }
 0x377   :  { %v12786_v1 = vadd.f32 %v3298_v39, %v12662_v20  ;;  %v3060_v14 = vpop.f32.mrf.mxu1 }
 0x378   :  { %v9853_v33 = vpop.f32.mrf.mxu0  ;;  %3767 = vmatmul.mubr.bf16.gmra.mxu0 %v11075_v15 }
 0x379   :  { %v12792_v52 = vadd.f32 %v9853_v33, %v12719_v41  ;;  %v3063_v5 = vpop.f32.mrf.mxu1  ;;  %3774 = vmatprep.mubr.bf16.mxu0 %v11076_v43 }
 0x37a   :  { %v3064_v38 = vadd.f32 %v3063_v5, %v12303_v35  ;;  %v3311_v20 = vpop.f32.mrf.mxu0  ;;  %v11077_v35 = vld [vmem:[%s15544_s0 + $0xc0] ss:$8 sps:$4 sm:$0xff]  }
 0x37b   :  { %v12799_v8 = vadd.f32 %v3311_v20, %v12701_v0  ;;  %v3065_v31 = vpop.f32.mrf.mxu1 }
 0x37c   :  { %v9854_v16 = vpop.f32.mrf.mxu0 }
 0x37d   :  { %v12802_v3 = vadd.f32 %v9854_v16, %v12722_v13  ;;  %v3066_v12 = vpop.f32.mrf.mxu1  ;;  %v11078_v13 = vld [vmem:[%s15544_s0 + $0xd4] ss:$8 sps:$4 sm:$0xff]  }
 0x37e   :  { %v3067_v41 = vadd.f32 %v3066_v12, %v12321_v9  ;;  %v3314_v50 = vpop.f32.mrf.mxu0 }
 0x37f   :  { %v12806_v39 = vadd.f32 %v3314_v50, %v12707_v28  ;;  %v3068_v14 = vpop.f32.mrf.mxu1 }
 0x380   :  { %v9857_v33 = vpop.f32.mrf.mxu0  ;;  %3775 = vmatmul.mubr.bf16.gmra.mxu0 %v11077_v35 }
 0x381   :  { %v12811_v0 = vadd.f32 %v9857_v33, %v3048_v26  ;;  %v3071_v15 = vpop.f32.mrf.mxu1  ;;  %3782 = vmatprep.mubr.bf16.mxu0 %v11078_v13 }
 0x382   :  { %v3072_v9 = vadd.f32 %v3071_v15, %v12340_v47  ;;  %v3327_v5 = vpop.f32.mrf.mxu0  ;;  %v11079_v47 = vld [vmem:[%s15544_s0 + $0xd0] ss:$8 sps:$4 sm:$0xff]  }
 0x383   :  { %v12818_v28 = vadd.f32 %v3327_v5, %v12734_v23  ;;  %v3073_v43 = vpop.f32.mrf.mxu1 }
 0x384   :  { %v9858_v20 = vpop.f32.mrf.mxu0 }
 0x385   :  { %v12820_v31 = vadd.f32 %v9858_v20, %v3051_v61  ;;  %v3074_v16 = vpop.f32.mrf.mxu1  ;;  %v11080_v61 = vld [vmem:[%s15544_s0 + $0xe4] ss:$8 sps:$4 sm:$0xff]  }
 0x386   :  { %v3075_v26 = vadd.f32 %v3074_v16, %v12361_v22  ;;  %v3330_v12 = vpop.f32.mrf.mxu0 }
 0x387   :  { %v12824_v50 = vadd.f32 %v3330_v12, %v12743_v4  ;;  %v3076_v14 = vpop.f32.mrf.mxu1 }
 0x388   :  { %v9861_v33 = vpop.f32.mrf.mxu0  ;;  %3783 = vmatmul.mubr.bf16.gmra.mxu0 %v11079_v47  ;;  %v11081_v47 = vld [vmem:[%s15544_s0 + $0xe0] ss:$8 sps:$4 sm:$0xff]  }
 0x389   :  { %v12829_v23 = vadd.f32 %v9861_v33, %v3064_v38  ;;  %v3079_v35 = vpop.f32.mrf.mxu1  ;;  %3790 = vmatprep.mubr.bf16.mxu0 %v11080_v61 }
 0x38a   :  { %v3080_v22 = vadd.f32 %v3079_v35, %v12333_v56  ;;  %v3343_v15 = vpop.f32.mrf.mxu0 }
 0x38b   :  { %v12835_v4 = vadd.f32 %v3343_v15, %v3056_v18  ;;  %v3081_v13 = vpop.f32.mrf.mxu1 }
 0x38c   :  { %v9862_v5 = vpop.f32.mrf.mxu0 }
 0x38d   :  { %v12837_v43 = vadd.f32 %v9862_v5, %v3067_v41  ;;  %v3082_v20 = vpop.f32.mrf.mxu1  ;;  %v11082_v41 = vld [vmem:[%s15544_s0 + $0xf4] ss:$8 sps:$4 sm:$0xff]  }
 0x38e   :  { %v3083_v16 = vadd.f32 %v3082_v20, %v12351_v54  ;;  %v3346_v38 = vpop.f32.mrf.mxu0 }
 0x38f   :  { %v12840_v12 = vadd.f32 %v3346_v38, %v3059_v19  ;;  %v3084_v14 = vpop.f32.mrf.mxu1 }
 0x390   :  { %v9865_v33 = vpop.f32.mrf.mxu0  ;;  %3791 = vmatmul.mubr.bf16.gmra.mxu0 %v11081_v47  ;;  %v11083_v47 = vld [vmem:[%s15544_s0 + $0xf0] ss:$8 sps:$4 sm:$0xff]  }
 0x391   :  { %v12845_v56 = vadd.f32 %v9865_v33, %v3080_v22  ;;  %v3087_v18 = vpop.f32.mrf.mxu1  ;;  %3798 = vmatprep.mubr.bf16.mxu0 %v11082_v41 }
 0x392   :  { %v3088_v54 = vadd.f32 %v3087_v18, %v12369_v11  ;;  %v3359_v35 = vpop.f32.mrf.mxu0 }
 0x393   :  { %15664 = vst [vmem:[#allocation16_spill] sm:$0xff] %v12845_v56  ;;  %v12851_v19 = vadd.f32 %v3359_v35, %v3072_v9  ;;  %v3089_v61 = vpop.f32.mrf.mxu1  ;;  %v11084_v9 = vld [vmem:[%s15544_s0 + $0x104] ss:$8 sps:$4 sm:$0xff]  }
 0x394   :  { %v9866_v15 = vpop.f32.mrf.mxu0 }
 0x395   :  { %15665 = vst [vmem:[#allocation17_spill] sm:$0xff] %v12851_v19  ;;  %v12853_v13 = vadd.f32 %v9866_v15, %v3083_v16  ;;  %v3090_v5 = vpop.f32.mrf.mxu1 }
 0x396   :  { %v3091_v20 = vadd.f32 %v3090_v5, %v12385_v32  ;;  %v3362_v22 = vpop.f32.mrf.mxu0 }
 0x397   :  { %15666 = vst [vmem:[#allocation18_spill] sm:$0xff] %v12853_v13  ;;  %v12856_v38 = vadd.f32 %v3362_v22, %v3075_v26  ;;  %v3092_v14 = vpop.f32.mrf.mxu1 }
 0x398   :  { %v9869_v33 = vpop.f32.mrf.mxu0  ;;  %3799 = vmatmul.mubr.bf16.gmra.mxu0 %v11083_v47 }
 0x399   :  { %15667 = vst [vmem:[#allocation19_spill] sm:$0xff] %v12856_v38  ;;  %v3095_v11 = vpop.f32.mrf.mxu1  ;;  %3806 = vmatprep.mubr.bf16.mxu0 %v11084_v9 }
 0x39a   :  { %v3096_v16 = vadd.f32 %v3095_v11, %v12363_v17  ;;  %v3375_v18 = vpop.f32.mrf.mxu0  ;;  %v11085_v17 = vld [vmem:[%s15544_s0 + $0x100] ss:$8 sps:$4 sm:$0xff]  }
 0x39b   :  { %v12865_v32 = vadd.f32 %v3375_v18, %v3088_v54  ;;  %v3097_v26 = vpop.f32.mrf.mxu1 }
 0x39c   :  { %v12867_v41 = vadd.f32 %v9869_v33, %v3096_v16  ;;  %v9870_v35 = vpop.f32.mrf.mxu0  ;;  %v11086_v33 = vld [vmem:[%s15544_s0 + $0x114] ss:$8 sps:$4 sm:$0xff]  }
 0x39d   :  { %15668 = vst [vmem:[#allocation20_spill] sm:$0xff] %v12865_v32  ;;  %v3098_v61 = vpop.f32.mrf.mxu1 }
 0x39e   :  { %15669 = vst [vmem:[#allocation21_spill] sm:$0xff] %v12867_v41  ;;  %v3099_v15 = vadd.f32 %v3098_v61, %v12380_v62  ;;  %v3378_v5 = vpop.f32.mrf.mxu0 }
 0x39f   :  { %v12870_v22 = vadd.f32 %v3378_v5, %v3091_v20  ;;  %v3100_v14 = vpop.f32.mrf.mxu1 }
 0x3a0   :  { %v12872_v47 = vadd.f32 %v9870_v35, %v3099_v15  ;;  %v9873_v38 = vpop.f32.mrf.mxu0  ;;  %3807 = vmatmul.mubr.bf16.gmra.mxu0 %v11085_v17  ;;  %v11087_v14 = vld [vmem:[%s15544_s0 + $0x110] ss:$8 sps:$4 sm:$0xff]  }
 0x3a1   :  { %15670 = vst [vmem:[#allocation22_spill] sm:$0xff] %v12870_v22  ;;  %v3103_v54 = vpop.f32.mrf.mxu1  ;;  %3814 = vmatprep.mubr.bf16.mxu0 %v11086_v33  ;;  %v11089_v22 = vld [vmem:[%s15544_s0 + $0x120] ss:$8 sps:$4 sm:$0xff]  }
 0x3a2   :  { %15671 = vst [vmem:[#allocation23_spill] sm:$0xff] %v12872_v47  ;;  %v3104_v62 = vadd.f32 %v3103_v54, %v12387_v37  ;;  %v3391_v11 = vpop.f32.mrf.mxu0  ;;  %v11088_v37 = vld [vmem:[%s15544_s0 + $0x124] ss:$8 sps:$4 sm:$0xff]  }
 0x3a3   :  { %v3105_v20 = vpop.f32.mrf.mxu1 }
 0x3a4   :  { %v12881_v9 = vadd.f32 %v3391_v11, %v3104_v62  ;;  %v9874_v16 = vpop.f32.mrf.mxu0 }
 0x3a5   :  { %v3106_v18 = vpop.f32.mrf.mxu1 }
 0x3a6   :  { %15672 = vst [vmem:[#allocation24_spill] sm:$0xff] %v12881_v9  ;;  %v3107_v26 = vadd.f32 %v3106_v18, %v12401_v45  ;;  %v3394_v35 = vpop.f32.mrf.mxu0 }
 0x3a7   :  { %v3108_v61 = vpop.f32.mrf.mxu1 }
 0x3a8   :  { %v12884_v15 = vadd.f32 %v3394_v35, %v3107_v26  ;;  %v9877_v5 = vpop.f32.mrf.mxu0  ;;  %3815 = vmatmul.mubr.bf16.gmra.mxu0 %v11087_v14 }
 0x3a9   :  { %v3111_v17 = vpop.f32.mrf.mxu1  ;;  %3822 = vmatprep.mubr.bf16.mxu0 %v11088_v37 }
 0x3aa   :  { %15673 = vst [vmem:[#allocation25_spill] sm:$0xff] %v12884_v15  ;;  %v3112_v54 = vadd.f32 %v3111_v17, %v12403_v7  ;;  %v3407_v33 = vpop.f32.mrf.mxu0  ;;  %v11090_v7 = vld [vmem:[%s15544_s0 + $0x134] ss:$8 sps:$4 sm:$0xff]  }
 0x3ab   :  { %v3113_v45 = vpop.f32.mrf.mxu1 }
 0x3ac   :  { %v12893_v62 = vadd.f32 %v9873_v38, %v3112_v54  ;;  %v9878_v11 = vpop.f32.mrf.mxu0  ;;  %v15676_v38 = vld [vmem:[#allocation3_spill] sm:$0xff] }
 0x3ad   :  { %v3114_v20 = vpop.f32.mrf.mxu1 }
 0x3ae   :  { %15674 = vst [vmem:[#allocation26_spill] sm:$0xff] %v12893_v62  ;;  %v3115_v18 = vadd.f32 %v3114_v20, %v12408_v21  ;;  %v3410_v26 = vpop.f32.mrf.mxu0 }
 0x3af   :  { %v3116_v35 = vpop.f32.mrf.mxu1 }
 0x3b0   :  { %v12896_v61 = vadd.f32 %v9874_v16, %v3115_v18  ;;  %v9881_v14 = vpop.f32.mrf.mxu0  ;;  %3823 = vmatmul.mubr.bf16.gmra.mxu0 %v11089_v22  ;;  %v15678_v18 = vld [vmem:[#allocation2_spill] sm:$0xff] }
 0x3b1   :  { %v3119_v37 = vpop.f32.mrf.mxu1  ;;  %3830 = vmatprep.mubr.bf16.mxu0 %v11090_v7  ;;  %v11091_v7 = vld [vmem:[%s15544_s0 + $0x130] ss:$8 sps:$4 sm:$0xff]  }
 0x3b2   :  { %15675 = vst [vmem:[#allocation27_spill] sm:$0xff] %v12896_v61  ;;  %v3120_v17 = vadd.f32 %v3119_v37, %v15676_v38  ;;  %v3423_v54 = vpop.f32.mrf.mxu0  ;;  %v15680_v38 = vld [vmem:[#allocation4_spill] sm:$0xff] }
 0x3b3   :  { %v3121_v21 = vpop.f32.mrf.mxu1 }
 0x3b4   :  { %v12905_v45 = vadd.f32 %v3407_v33, %v3120_v17  ;;  %v9882_v16 = vpop.f32.mrf.mxu0  ;;  %v11092_v33 = vld [vmem:[%s15544_s0 + $0x144] ss:$8 sps:$4 sm:$0xff]  }
 0x3b5   :  { %v3122_v20 = vpop.f32.mrf.mxu1 }
 0x3b6   :  { %15677 = vst [vmem:[#allocation3_spill] sm:$0xff] %v12905_v45  ;;  %v3123_v35 = vadd.f32 %v3122_v20, %v15678_v18  ;;  %v3426_v47 = vpop.f32.mrf.mxu0 }
 0x3b7   :  { %v3124_v32 = vpop.f32.mrf.mxu1 }
 0x3b8   :  { %v12908_v61 = vadd.f32 %v3410_v26, %v3123_v35  ;;  %v12910_v22 = vpop.f32.mrf.mxu0  ;;  %3831 = vmatmul.mubr.bf16.gmra.mxu0 %v11091_v7  ;;  %v15682_v35 = vld [vmem:[#allocation5_spill] sm:$0xff] }
 0x3b9   :  { %v3127_v37 = vpop.f32.mrf.mxu1  ;;  %3838 = vmatprep.mubr.bf16.mxu0 %v11092_v33  ;;  %v11093_v33 = vld [vmem:[%s15544_s0 + $0x140] ss:$8 sps:$4 sm:$0xff]  }
 0x3ba   :  { %15679 = vst [vmem:[#allocation2_spill] sm:$0xff] %v12908_v61  ;;  %v3128_v17 = vadd.f32 %v3127_v37, %v15680_v38  ;;  %v3439_v21 = vpop.f32.mrf.mxu0  ;;  %v15684_v38 = vld [vmem:[#allocation6_spill] sm:$0xff] }
 0x3bb   :  { %v3129_v20 = vpop.f32.mrf.mxu1 }
 0x3bc   :  { %v12919_v32 = vadd.f32 %v9877_v5, %v3128_v17  ;;  %v12921_v26 = vpop.f32.mrf.mxu0  ;;  %v11094_v5 = vld [vmem:[%s15544_s0 + $0x154] ss:$8 sps:$4 sm:$0xff]  }
 0x3bd   :  { %v3130_v18 = vpop.f32.mrf.mxu1 }
 0x3be   :  { %15681 = vst [vmem:[#allocation4_spill] sm:$0xff] %v12919_v32  ;;  %v3131_v61 = vadd.f32 %v3130_v18, %v15682_v35  ;;  %v3442_v45 = vpop.f32.mrf.mxu0  ;;  %v15686_v35 = vld [vmem:[#allocation7_spill] sm:$0xff] }
 0x3bf   :  { %v3132_v62 = vpop.f32.mrf.mxu1 }
 0x3c0   :  { %v12924_v7 = vadd.f32 %v9878_v11, %v3131_v61  ;;  %v12926_v15 = vpop.f32.mrf.mxu0  ;;  %3839 = vmatmul.mubr.bf16.gmra.mxu0 %v11093_v33 }
 0x3c1   :  { %v3135_v37 = vpop.f32.mrf.mxu1  ;;  %3846 = vmatprep.mubr.bf16.mxu0 %v11094_v5 }
 0x3c2   :  { %15683 = vst [vmem:[#allocation5_spill] sm:$0xff] %v12924_v7  ;;  %v3136_v17 = vadd.f32 %v3135_v37, %v15684_v38  ;;  %v3455_v20 = vpop.f32.mrf.mxu0  ;;  %v11095_v37 = vld [vmem:[%s15544_s0 + $0x150] ss:$8 sps:$4 sm:$0xff]  }
 0x3c3   :  { %v3137_v18 = vpop.f32.mrf.mxu1  ;;  %v15689_v38 = vld [vmem:[#allocation8_spill] sm:$0xff] }
 0x3c4   :  { %v12935_v62 = vadd.f32 %v3423_v54, %v3136_v17  ;;  %v12937_v11 = vpop.f32.mrf.mxu0  ;;  %v11096_v54 = vld [vmem:[%s15544_s0 + $0x164] ss:$8 sps:$4 sm:$0xff]  }
 0x3c5   :  { %v3138_v61 = vpop.f32.mrf.mxu1 }
 0x3c6   :  { %15685 = vst [vmem:[#allocation6_spill] sm:$0xff] %v12935_v62  ;;  %v3139_v7 = vadd.f32 %v3138_v61, %v15686_v35  ;;  %v12940_v32 = vpop.f32.mrf.mxu0 }
 0x3c7   :  { %15687 = vst [vmem:[#allocation7_spill] sm:$0xff] %v12940_v32  ;;  %v3140_v33 = vpop.f32.mrf.mxu1 }
 0x3c8   :  { %v12942_v13 = vadd.f32 %v3426_v47, %v3139_v7  ;;  %v12944_v9 = vpop.f32.mrf.mxu0  ;;  %3847 = vmatmul.mubr.bf16.gmra.mxu0 %v11095_v37  ;;  %v15691_v33 = vld [vmem:[#allocation9_spill] sm:$0xff] }
 0x3c9   :  { %v3143_v5 = vpop.f32.mrf.mxu1  ;;  %3854 = vmatprep.mubr.bf16.mxu0 %v11096_v54 }
 0x3ca   :  { %15688 = vst [vmem:[#allocation28_spill] sm:$0xff] %v12942_v13  ;;  %v3144_v17 = vadd.f32 %v3143_v5, %v15689_v38  ;;  %v12953_v18 = vpop.f32.mrf.mxu0  ;;  %v11097_v5 = vld [vmem:[%s15544_s0 + $0x160] ss:$8 sps:$4 sm:$0xff]  }
 0x3cb   :  { %v3145_v61 = vpop.f32.mrf.mxu1  ;;  %v15694_v38 = vld [vmem:[#allocation10_spill] sm:$0xff] }
 0x3cc   :  { %v12955_v47 = vadd.f32 %v9881_v14, %v3144_v17  ;;  %v12957_v7 = vpop.f32.mrf.mxu0  ;;  %v11098_v14 = vld [vmem:[%s15544_s0 + $0x174] ss:$8 sps:$4 sm:$0xff]  }
 0x3cd   :  { %v3146_v35 = vpop.f32.mrf.mxu1 }
 0x3ce   :  { %15690 = vst [vmem:[#allocation8_spill] sm:$0xff] %v12955_v47  ;;  %v3147_v32 = vadd.f32 %v3146_v35, %v15691_v33  ;;  %v12960_v13 = vpop.f32.mrf.mxu0 }
 0x3cf   :  { %15692 = vst [vmem:[#allocation9_spill] sm:$0xff] %v12960_v13  ;;  %v3148_v37 = vpop.f32.mrf.mxu1 }
 0x3d0   :  { %v12962_v62 = vadd.f32 %v9882_v16, %v3147_v32  ;;  %v12964_v19 = vpop.f32.mrf.mxu0  ;;  %3855 = vmatmul.mubr.bf16.gmra.mxu0 %v11097_v5  ;;  %v15696_v37 = vld [vmem:[#allocation11_spill] sm:$0xff] }
 0x3d1   :  { %v3151_v54 = vpop.f32.mrf.mxu1  ;;  %3862 = vmatprep.mubr.bf16.mxu0 %v11098_v14 }
 0x3d2   :  { %15693 = vst [vmem:[#allocation29_spill] sm:$0xff] %v12962_v62  ;;  %v3152_v17 = vadd.f32 %v3151_v54, %v15694_v38  ;;  %v12973_v61 = vpop.f32.mrf.mxu0  ;;  %v11099_v54 = vld [vmem:[%s15544_s0 + $0x170] ss:$8 sps:$4 sm:$0xff]  }
 0x3d3   :  { %v3153_v35 = vpop.f32.mrf.mxu1 }
 0x3d4   :  { %v12975_v16 = vadd.f32 %v3439_v21, %v3152_v17  ;;  %v12977_v32 = vpop.f32.mrf.mxu0  ;;  %v15700_v21 = vld [vmem:[#allocation12_spill] sm:$0xff] }
 0x3d5   :  { %v3154_v33 = vpop.f32.mrf.mxu1 }
 0x3d6   :  { %15695 = vst [vmem:[#allocation10_spill] sm:$0xff] %v12975_v16  ;;  %v3155_v13 = vadd.f32 %v3154_v33, %v15696_v37  ;;  %v12980_v62 = vpop.f32.mrf.mxu0 }
 0x3d7   :  { %15697 = vst [vmem:[#allocation11_spill] sm:$0xff] %v12980_v62  ;;  %v3156_v5 = vpop.f32.mrf.mxu1 }
 0x3d8   :  { %v12982_v47 = vadd.f32 %v3442_v45, %v3155_v13  ;;  %v12984_v56 = vpop.f32.mrf.mxu0  ;;  %3863 = vmatmul.mubr.bf16.gmra.mxu0 %v11099_v54  ;;  %v15701_v13 = vld [vmem:[#allocation13_spill] sm:$0xff] }
 0x3d9   :  { %15699 = vst [vmem:[#allocation31_spill] sm:$0xff] %v12984_v56  ;;  %v3159_v14 = vpop.f32.mrf.mxu1 }
 0x3da   :  { %15698 = vst [vmem:[#allocation30_spill] sm:$0xff] %v12982_v47  ;;  %v3160_v38 = vadd.f32 %v3159_v14, %v15700_v21  ;;  %v12990_v17 = vpop.f32.mrf.mxu0 }
 0x3db   :  { %v3161_v35 = vpop.f32.mrf.mxu1 }
 0x3dc   :  { %v12993_v33 = vadd.f32 %v12910_v22, %v3160_v38  ;;  %v9902_v37 = vpop.f32.mrf.mxu0 }
 0x3dd   :  { %v3162_v5 = vpop.f32.mrf.mxu1 }
 0x3de   :  { %v3163_v45 = vadd.f32 %v3162_v5, %v15701_v13  ;;  %v12996_v62 = vpop.f32.mrf.mxu0 }
 0x3df   :  { %15702 = vst [vmem:[#allocation12_spill] sm:$0xff] %v12996_v62  ;;  %v3164_v56 = vpop.f32.mrf.mxu1 }
 0x3e0   :  { %v12999_v47 = vadd.f32 %v12921_v26, %v3163_v45  ;;  %v13001_v54 = vpop.f32.mrf.mxu0 }
 0x3e1   :  { %v3167_v16 = vpop.f32.mrf.mxu1 }
 0x3e2   :  { %v3168_v14 = vadd.f32 %v3167_v16, %v12551_v53  ;;  %v3682_v21 = vpop.f32.mrf.mxu0 }
 0x3e3   :  { %v3169_v35 = vpop.f32.mrf.mxu1 }
 0x3e4   :  { %v13004_v41 = vadd.f32 %v3455_v20, %v3168_v14  ;;  %v13006_v22 = vpop.f32.mrf.mxu0 }
 0x3e5   :  { %v3170_v37 = vpop.f32.mrf.mxu1 }
 0x3e6   :  { %15703 = vst [vmem:[#allocation13_spill] sm:$0xff] %v13004_v41  ;;  %v13011_v56 = vadd.f32 %v3170_v37, %v12561_v60  ;;  %v3685_v26 = vpop.f32.mrf.mxu0 }
 0x3e7   :  { %v3172_v5 = vpop.f32.mrf.mxu1 }
 0x3e8   :  { %v13013_v13 = vpop.f32.mrf.mxu0 }
 0x3e9   :  { %v3175_v45 = vpop.f32.mrf.mxu1 }
 0x3ea   :  { %v3176_v53 = vadd.f32 %v3175_v45, %v12575_v10  ;;  %v3690_v16 = vpop.f32.mrf.mxu0 }
 0x3eb   :  { %v3177_v21 = vpop.f32.mrf.mxu1 }
 0x3ec   :  { %v13017_v20 = vadd.f32 %v12926_v15, %v3176_v53  ;;  %v13019_v14 = vpop.f32.mrf.mxu0 }
 0x3ed   :  { %v3178_v38 = vpop.f32.mrf.mxu1 }
 0x3ee   :  { %v3179_v60 = vadd.f32 %v3178_v38, %v12584_v29  ;;  %v3693_v37 = vpop.f32.mrf.mxu0 }
 0x3ef   :  { %v3180_v26 = vpop.f32.mrf.mxu1 }
 0x3f0   :  { %v13025_v5 = vadd.f32 %v12937_v11, %v3179_v60  ;;  %v13027_v62 = vpop.f32.mrf.mxu0 }
 0x3f1   :  { %v3183_v10 = vpop.f32.mrf.mxu1 }
 0x3f2   :  { %v3184_v45 = vadd.f32 %v3183_v10, %v12599_v30  ;;  %v3698_v15 = vpop.f32.mrf.mxu0 }
 0x3f3   :  { %v3185_v53 = vpop.f32.mrf.mxu1 }
 0x3f4   :  { %v13031_v16 = vadd.f32 %v12953_v18, %v3184_v45  ;;  %v13033_v21 = vpop.f32.mrf.mxu0  ;;  %v10841_v18 = vld [vmem:[%s15545_s2 + $0x5ec] ss:$12 sps:$4 sm:$0xff]  }
 0x3f5   :  { %v3186_v35 = vpop.f32.mrf.mxu1  ;;  %4561 = vmatprep.mubr.bf16.mxu1 %v10841_v18 }
 0x3f6   :  { %15704 = vst [vmem:[#allocation32_spill] sm:$0xff] %v13031_v16  ;;  %v13036_v29 = vadd.f32 %v3186_v35, %v12608_v48  ;;  %v3701_v38 = vpop.f32.mrf.mxu0 }
 0x3f7   :  { %v3188_v37 = vpop.f32.mrf.mxu1 }
 0x3f8   :  { %v13038_v11 = vpop.f32.mrf.mxu0 }
 0x3f9   :  { %v3191_v60 = vpop.f32.mrf.mxu1 }
 0x3fa   :  { %v3192_v26 = vadd.f32 %v3191_v60, %v12623_v42  ;;  %v3706_v41 = vpop.f32.mrf.mxu0 }
 0x3fb   :  { %v3193_v30 = vpop.f32.mrf.mxu1 }
 0x3fc   :  { %v13045_v10 = vadd.f32 %v12944_v9, %v3192_v26  ;;  %v13047_v45 = vpop.f32.mrf.mxu0 }
 0x3fd   :  { %v3194_v48 = vpop.f32.mrf.mxu1 }
 0x3fe   :  { %15705 = vst [vmem:[#allocation33_spill] sm:$0xff] %v13045_v10  ;;  %v3195_v35 = vadd.f32 %v3194_v48, %v12632_v36  ;;  %v3709_v15 = vpop.f32.mrf.mxu0 }
 0x3ff   :  { %v3196_v53 = vpop.f32.mrf.mxu1 }
 0x400   :  { %v13051_v38 = vadd.f32 %v12957_v7, %v3195_v35  ;;  %v3712_v42 = vpop.f32.mrf.mxu0 }
 0x401   :  { %v3199_v41 = vpop.f32.mrf.mxu1 }
 0x402   :  { %15706 = vst [vmem:[#allocation34_spill] sm:$0xff] %v13051_v38  ;;  %v3200_v37 = vadd.f32 %v3199_v41, %v12647_v40  ;;  %v3714_v60 = vpop.f32.mrf.mxu0 }
 0x403   :  { %v3201_v30 = vpop.f32.mrf.mxu1 }
 0x404   :  { %v13055_v9 = vadd.f32 %v12973_v61, %v3200_v37  ;;  %v3715_v26 = vpop.f32.mrf.mxu0  ;;  %v15709_v61 = vld [vmem:[#allocation14_spill] sm:$0xff] }
 0x405   :  { %v3202_v16 = vpop.f32.mrf.mxu1 }
 0x406   :  { %15707 = vst [vmem:[#allocation35_spill] sm:$0xff] %v13055_v9  ;;  %v13058_v18 = vadd.f32 %v3202_v16, %v12656_v34  ;;  %v3717_v36 = vpop.f32.mrf.mxu0 }
 0x407   :  { %v3204_v48 = vpop.f32.mrf.mxu1 }
 0x408   :  { %15708 = vst [vmem:[#allocation36_spill] sm:$0xff] %v13058_v18  ;;  %v3720_v15 = vpop.f32.mrf.mxu0  ;;  %v15710_v48 = vld [vmem:[#allocation15_spill] sm:$0xff] }
 0x409   :  { %v3207_v53 = vpop.f32.mrf.mxu1 }
 0x40a   :  { %v3208_v7 = vadd.f32 %v3207_v53, %v12671_v59  ;;  %v3722_v35 = vpop.f32.mrf.mxu0 }
 0x40b   :  { %v3209_v38 = vpop.f32.mrf.mxu1 }
 0x40c   :  { %v13062_v40 = vadd.f32 %v12964_v19, %v3208_v7  ;;  %v3723_v41 = vpop.f32.mrf.mxu0 }
 0x40d   :  { %v3210_v60 = vpop.f32.mrf.mxu1 }
 0x40e   :  { %v3211_v37 = vadd.f32 %v3210_v60, %v15709_v61  ;;  %v3725_v30 = vpop.f32.mrf.mxu0 }
 0x40f   :  { %v3212_v9 = vpop.f32.mrf.mxu1 }
 0x410   :  { %v13066_v34 = vadd.f32 %v12977_v32, %v3211_v37  ;;  %v3728_v16 = vpop.f32.mrf.mxu0 }
 0x411   :  { %v3215_v36 = vpop.f32.mrf.mxu1 }
 0x412   :  { %v3216_v18 = vadd.f32 %v3215_v36, %v15710_v48  ;;  %v3730_v10 = vpop.f32.mrf.mxu0 }
 0x413   :  { %v3217_v59 = vpop.f32.mrf.mxu1 }
 0x414   :  { %v13070_v38 = vadd.f32 %v12990_v17, %v3216_v18  ;;  %v3731_v19 = vpop.f32.mrf.mxu0 }
 0x415   :  { %v3218_v53 = vpop.f32.mrf.mxu1 }
 0x416   :  { %15711 = vst [vmem:[#allocation14_spill] sm:$0xff] %v13070_v38  ;;  %v13073_v7 = vadd.f32 %v3218_v53, %v12704_v25  ;;  %v3733_v35 = vpop.f32.mrf.mxu0  ;;  %v15712_v38 = vmov 0   ;;  %v3877_v25 = vpack.c.bf16 %v3731_v19, %v3728_v16  ;;  %v3874_v19 = vpack.c.bf16 %v13047_v45, %v13038_v11 }
 0x417   :  { %v3220_v60 = vpop.f32.mrf.mxu1  ;;  %v15713_v11 = vpack.c.bf16 %v13019_v14, %v13013_v13 }
 0x418   :  { %v3736_v9 = vpop.f32.mrf.mxu0 }
 0x419   :  { %v3223_v61 = vpop.f32.mrf.mxu1 }
 0x41a   :  { %v13076_v32 = vadd.f32 %v3223_v61, %v12713_v6  ;;  %v3738_v37 = vpop.f32.mrf.mxu0  ;;  %v3876_v6 = vpack.c.bf16 %v3723_v41, %v3720_v15 }
 0x41b   :  { %v3225_v30 = vpop.f32.mrf.mxu1  ;;  %v3875_v37 = vpack.c.bf16 %v3715_v26, %v3712_v42  ;;  %v3873_v42 = vpack.c.bf16 %v13033_v21, %v13027_v62  ;;  %v10866_v62 = vld [vmem:[%s15545_s2 + $0x5f0] ss:$12 sps:$4 sm:$0xff]  }
 0x41c   :  { %v3739_v36 = vpop.f32.mrf.mxu0  ;;  %9919 = vmatprep.mubr.bf16.mxu0 %v10866_v62 }
 0x41d   :  { %v3878_v10 = vpack.c.bf16 %v3739_v36, %v3736_v9  ;;  %v3226_v48 = vpop.f32.mrf.mxu1 }
 0x41e   :  { %v3741_v59 = vpop.f32.mrf.mxu0 }
 0x41f   :  { %4530 = vmatpush1.bf16.msra.mxu1 %v3878_v10  ;;  %v3227_v17 = vpop.f32.mrf.mxu1 }
 0x420   :  { %v13078_v18 = vpop.f32.mrf.mxu0  ;;  %4531 = vmatprep.subr.bf16.mxu1 %v15712_v38  ;;  %v15714_v17 = vpack.c.bf16 %v13006_v22, %v13001_v54 }
 0x422   :  { %v3746_v53 = vpop.f32.mrf.mxu0 }
 0x423   :  { %4532 = vmatpush1.bf16.msra.mxu1 %v3877_v25 }
 0x424   :  { %v13081_v35 = vpop.f32.mrf.mxu0  ;;  %4533 = vmatprep.subr.bf16.mxu1 %v15712_v38 }
 0x425   :  { %v3879_v60 = vpack.c.bf16 %v13081_v35, %v13078_v18 }
 0x426   :  { %v3749_v9 = vpop.f32.mrf.mxu0 }
 0x427   :  { %4534 = vmatpush1.bf16.msra.mxu1 %v3876_v6 }
 0x428   :  { %v13086_v61 = vpop.f32.mrf.mxu0  ;;  %4535 = vmatprep.subr.bf16.mxu1 %v15712_v38 }
 0x42a   :  { %v3754_v30 = vpop.f32.mrf.mxu0 }
 0x42b   :  { %4536 = vmatpush1.bf16.msra.mxu1 %v3875_v37 }
 0x42c   :  { %v13089_v16 = vpop.f32.mrf.mxu0  ;;  %4537 = vmatprep.subr.bf16.mxu1 %v15712_v38 }
 0x42d   :  { %v3880_v15 = vpack.c.bf16 %v13089_v16, %v13086_v61 }
 0x42e   :  { %v3757_v41 = vpop.f32.mrf.mxu0 }
 0x42f   :  { %4538 = vmatpush1.bf16.msra.mxu1 %v3874_v19 }
 0x430   :  { %v3760_v36 = vpop.f32.mrf.mxu0  ;;  %4539 = vmatprep.subr.bf16.mxu1 %v15712_v38 }
 0x432   :  { %v3762_v26 = vpop.f32.mrf.mxu0 }
 0x433   :  { %4540 = vmatpush1.bf16.msra.mxu1 %v3873_v42 }
 0x434   :  { %v3763_v10 = vpop.f32.mrf.mxu0  ;;  %4541 = vmatprep.subr.bf16.mxu1 %v15712_v38 }
 0x436   :  { %v3765_v48 = vpop.f32.mrf.mxu0 }
 0x437   :  { %4542 = vmatpush1.bf16.msra.mxu1 %v15713_v11 }
 0x438   :  { %v3768_v45 = vpop.f32.mrf.mxu0  ;;  %4543 = vmatprep.subr.bf16.mxu1 %v15712_v38 }
 0x43a   :  { %v3770_v59 = vpop.f32.mrf.mxu0 }
 0x43b   :  { %4544 = vmatpush1.bf16.msra.mxu1 %v15714_v17 }
 0x43c   :  { %v3771_v25 = vpop.f32.mrf.mxu0  ;;  %4545 = vmatprep.subr.bf16.mxu1 %v15712_v38 }
 0x43e   :  { %v3773_v21 = vpop.f32.mrf.mxu0 }
 0x440   :  { %v3776_v53 = vpop.f32.mrf.mxu0 }
 0x442   :  { %v3778_v13 = vpop.f32.mrf.mxu0 }
 0x444   :  { %v3779_v14 = vpop.f32.mrf.mxu0 }
 0x446   :  { %v3781_v6 = vpop.f32.mrf.mxu0 }
 0x448   :  { %v3784_v9 = vpop.f32.mrf.mxu0 }
 0x44a   :  { %v3786_v37 = vpop.f32.mrf.mxu0 }
 0x44c   :  { %v3787_v30 = vpop.f32.mrf.mxu0 }
 0x44d   :  { %v3884_v37 = vpack.c.bf16 %v3787_v30, %v3784_v9  ;;  %v3881_v9 = vpack.c.bf16 %v3763_v10, %v3760_v36  ;;  %v10844_v36 = vld [vmem:[%s15545_s2 + $0x604] ss:$12 sps:$4 sm:$0xff]  }
 0x44e   :  { %v3789_v19 = vpop.f32.mrf.mxu0 }
 0x450   :  { %v3792_v41 = vpop.f32.mrf.mxu0 }
 0x452   :  { %v3794_v54 = vpop.f32.mrf.mxu0 }
 0x454   :  { %v3795_v22 = vpop.f32.mrf.mxu0 }
 0x455   :  { %v3885_v62 = vpack.c.bf16 %v3795_v22, %v3792_v41  ;;  %v3882_v41 = vpack.c.bf16 %v3771_v25, %v3768_v45 }
 0x456   :  { %v3797_v42 = vpop.f32.mrf.mxu0 }
 0x458   :  { %v3800_v26 = vpop.f32.mrf.mxu0 }
 0x45a   :  { %v3802_v48 = vpop.f32.mrf.mxu0 }
 0x45c   :  { %v3803_v11 = vpop.f32.mrf.mxu0 }
 0x45d   :  { %v3886_v59 = vpack.c.bf16 %v3803_v11, %v3800_v26  ;;  %v3883_v26 = vpack.c.bf16 %v3779_v14, %v3776_v53  ;;  %v10839_v14 = vld [vmem:[%s15545_s2 + $0x5e8] ss:$12 sps:$4 sm:$0xff]  }
 0x45e   :  { %v3805_v17 = vpop.f32.mrf.mxu0 }
 0x45f   :  { %4546 = vmatpush2.bf16.msra.mxu1 %v3886_v59 }
 0x460   :  { %v3808_v21 = vpop.f32.mrf.mxu0  ;;  %4547 = vmatprep.subr.bf16.mxu1 %v15712_v38 }
 0x462   :  { %v3810_v13 = vpop.f32.mrf.mxu0 }
 0x463   :  { %4548 = vmatpush2.bf16.msra.mxu1 %v3885_v62  ;;  %v10847_v13 = vld [vmem:[%s15545_s2 + $0x61c] ss:$12 sps:$4 sm:$0xff]  }
 0x464   :  { %v3811_v6 = vpop.f32.mrf.mxu0  ;;  %4549 = vmatprep.subr.bf16.mxu1 %v15712_v38 }
 0x465   :  { %v13113_v19 = vpack.c.bf16 %v3811_v6, %v3808_v21 }
 0x466   :  { %v3813_v54 = vpop.f32.mrf.mxu0 }
 0x467   :  { %4550 = vmatpush2.bf16.msra.mxu1 %v3884_v37  ;;  %v10845_v37 = vld [vmem:[%s15545_s2 + $0x618] ss:$12 sps:$4 sm:$0xff]   ;;  %v10850_v54 = vld [vmem:[%s15545_s2 + $0x634] ss:$12 sps:$4 sm:$0xff]  }
 0x468   :  { %v3816_v42 = vpop.f32.mrf.mxu0  ;;  %4551 = vmatprep.subr.bf16.mxu1 %v15712_v38 }
 0x46a   :  { %v3818_v48 = vpop.f32.mrf.mxu0 }
 0x46b   :  { %4552 = vmatpush2.bf16.msra.mxu1 %v3883_v26 }
 0x46c   :  { %v3819_v11 = vpop.f32.mrf.mxu0  ;;  %4553 = vmatprep.subr.bf16.mxu1 %v15712_v38 }
 0x46d   :  { %v13117_v22 = vpack.c.bf16 %v3819_v11, %v3816_v42 }
 0x46e   :  { %v3821_v59 = vpop.f32.mrf.mxu0 }
 0x46f   :  { %4554 = vmatpush2.bf16.msra.mxu1 %v3882_v41  ;;  %v10848_v41 = vld [vmem:[%s15545_s2 + $0x630] ss:$12 sps:$4 sm:$0xff]   ;;  %v10853_v59 = vld [vmem:[%s15545_s2 + $0x64c] ss:$12 sps:$4 sm:$0xff]  }
 0x470   :  { %v13119_v17 = vpop.f32.mrf.mxu0  ;;  %4555 = vmatprep.subr.bf16.mxu1 %v15712_v38 }
 0x472   :  { %v3826_v30 = vpop.f32.mrf.mxu0 }
 0x473   :  { %4556 = vmatpush2.bf16.msra.mxu1 %v3881_v9 }
 0x474   :  { %v13122_v21 = vpop.f32.mrf.mxu0  ;;  %4557 = vmatprep.subr.bf16.mxu1 %v15712_v38 }
 0x476   :  { %v3829_v53 = vpop.f32.mrf.mxu0 }
 0x477   :  { %4558 = vmatpush2.bf16.msra.mxu1 %v3880_v15  ;;  %v10842_v15 = vld [vmem:[%s15545_s2 + $0x600] ss:$12 sps:$4 sm:$0xff]  }
 0x478   :  { %v3832_v45 = vpop.f32.mrf.mxu0  ;;  %4559 = vmatprep.subr.bf16.mxu1 %v15712_v38 }
 0x47a   :  { %v3834_v25 = vpop.f32.mrf.mxu0 }
 0x47b   :  { %4560 = vmatpush2.bf16.msra.mxu1 %v3879_v60 }
 0x47c   :  { %v3835_v10 = vpop.f32.mrf.mxu0 }
 0x47e   :  { %v3837_v62 = vpop.f32.mrf.mxu0  ;;  %4562 = vmatmul.mubr.bf16.vlgmr.msra.gmra.mxu1 %v10839_v14  ;;  %v10851_v14 = vld [vmem:[%s15545_s2 + $0x648] ss:$12 sps:$4 sm:$0xff]  }
 0x47f   :  { %4569 = vmatprep.mubr.bf16.mxu1 %v10844_v36  ;;  %v10856_v36 = vld [vmem:[%s15545_s2 + $0x664] ss:$12 sps:$4 sm:$0xff]  }
 0x480   :  { %v3840_v61 = vpop.f32.mrf.mxu0 }
 0x482   :  { %v3842_v16 = vpop.f32.mrf.mxu0 }
 0x484   :  { %v3843_v18 = vpop.f32.mrf.mxu0 }
 0x486   :  { %v3845_v35 = vpop.f32.mrf.mxu0  ;;  %4570 = vmatmul.mubr.bf16.gmra.mxu1 %v10842_v15 }
 0x487   :  { %4577 = vmatprep.mubr.bf16.mxu1 %v10847_v13  ;;  %v10854_v35 = vld [vmem:[%s15545_s2 + $0x660] ss:$12 sps:$4 sm:$0xff]  }
 0x488   :  { %v3848_v60 = vpop.f32.mrf.mxu0 }
 0x48a   :  { %v3850_v6 = vpop.f32.mrf.mxu0 }
 0x48c   :  { %v3851_v42 = vpop.f32.mrf.mxu0 }
 0x48d   :  { %v3892_v6 = vpack.c.bf16 %v3851_v42, %v3848_v60  ;;  %v10862_v60 = vld [vmem:[%s15545_s2 + $0x694] ss:$12 sps:$4 sm:$0xff]   ;;  %v3889_v42 = vpack.c.bf16 %v13122_v21, %v13119_v17 }
 0x48e   :  { %v3853_v26 = vpop.f32.mrf.mxu0  ;;  %4578 = vmatmul.mubr.bf16.gmra.mxu1 %v10845_v37  ;;  %v10859_v37 = vld [vmem:[%s15545_s2 + $0x67c] ss:$12 sps:$4 sm:$0xff]  }
 0x48f   :  { %4585 = vmatprep.mubr.bf16.mxu1 %v10850_v54  ;;  %v3891_v54 = vpack.c.bf16 %v3843_v18, %v3840_v61  ;;  %v10857_v26 = vld [vmem:[%s15545_s2 + $0x678] ss:$12 sps:$4 sm:$0xff]   ;;  %v10860_v61 = vld [vmem:[%s15545_s2 + $0x690] ss:$12 sps:$4 sm:$0xff]   ;;  %v10863_v17 = vld [vmem:[%s15545_s2 + $0x6a8] ss:$12 sps:$4 sm:$0xff]  }
 0x490   :  { %v3856_v48 = vpop.f32.mrf.mxu0  ;;  %v10867_v21 = vld [vmem:[%s15545_s2 + $0x608] ss:$12 sps:$4 sm:$0xff]   ;;  %v10868_v18 = vld [vmem:[%s15545_s2 + $0x6c0] ss:$12 sps:$4 sm:$0xff]  }
 0x492   :  { %v3858_v11 = vpop.f32.mrf.mxu0 }
 0x493   :  { %v10872_v11 = vld [vmem:[%s15545_s2 + $0x638] ss:$12 sps:$4 sm:$0xff]  }
 0x494   :  { %v3859_v9 = vpop.f32.mrf.mxu0 }
 0x495   :  { %v3893_v13 = vpack.c.bf16 %v3859_v9, %v3856_v48  ;;  %v3890_v48 = vpack.c.bf16 %v3835_v10, %v3832_v45  ;;  %v10865_v45 = vld [vmem:[%s15545_s2 + $0x6ac] ss:$12 sps:$4 sm:$0xff]   ;;  %v10870_v10 = vld [vmem:[%s15545_s2 + $0x6c4] ss:$12 sps:$4 sm:$0xff]   ;;  %v10877_v9 = vld [vmem:[%s15545_s2 + $0x668] ss:$12 sps:$4 sm:$0xff]  }
 0x496   :  { %v3861_v30 = vpop.f32.mrf.mxu0  ;;  %4586 = vmatmul.mubr.bf16.gmra.mxu1 %v10848_v41  ;;  %v10876_v41 = vld [vmem:[%s15545_s2 + $0x650] ss:$12 sps:$4 sm:$0xff]  }
 0x497   :  { %4593 = vmatprep.mubr.bf16.mxu1 %v10853_v59  ;;  %v10873_v59 = vld [vmem:[%s15545_s2 + $0x6d8] ss:$12 sps:$4 sm:$0xff]   ;;  %v10880_v30 = vld [vmem:[%s15545_s2 + $0x6f4] ss:$12 sps:$4 sm:$0xff]  }
 0x498   :  { %v3864_v53 = vpop.f32.mrf.mxu0 }
 0x49a   :  { %v3866_v25 = vpop.f32.mrf.mxu0 }
 0x49b   :  { %v10878_v25 = vld [vmem:[%s15545_s2 + $0x6f0] ss:$12 sps:$4 sm:$0xff]  }
 0x49c   :  { %v3867_v62 = vpop.f32.mrf.mxu0 }
 0x49d   :  { %v3894_v16 = vpack.c.bf16 %v3867_v62, %v3864_v53  ;;  %v10881_v53 = vld [vmem:[%s15545_s2 + $0x680] ss:$12 sps:$4 sm:$0xff]   ;;  %v10886_v62 = vld [vmem:[%s15545_s2 + $0x6b0] ss:$12 sps:$4 sm:$0xff]  }
 0x49e   :  { %v3869_v15 = vpop.f32.mrf.mxu0  ;;  %4594 = vmatmul.mubr.bf16.gmra.mxu1 %v10851_v14  ;;  %v10882_v14 = vld [vmem:[%s15545_s2 + $0x698] ss:$12 sps:$4 sm:$0xff]  }
 0x49f   :  { %9903 = vmatprep.subr.bf16.mxu0 %v3894_v16  ;;  %4601 = vmatprep.mubr.bf16.mxu1 %v10856_v36  ;;  %v10885_v36 = vld [vmem:[%s15545_s2 + $0x70c] ss:$12 sps:$4 sm:$0xff]   ;;  %v10887_v15 = vld [vmem:[%s15545_s2 + $0x6c8] ss:$12 sps:$4 sm:$0xff]  }
 0x4a0   :  { %9904 = vmatpush3.bf16.msra.mxu0 %v3894_v16  ;;  %v10883_v16 = vld [vmem:[%s15545_s2 + $0x708] ss:$12 sps:$4 sm:$0xff]  }
 0x4a1   :  { %9905 = vmatprep.subr.bf16.mxu0 %v3893_v13 }
 0x4a4   :  { %9906 = vmatpush3.bf16.msra.mxu0 %v3893_v13  ;;  %v10890_v13 = vld [vmem:[%s15545_s2 + $0x724] ss:$12 sps:$4 sm:$0xff]  }
 0x4a5   :  { %9907 = vmatprep.subr.bf16.mxu0 %v3892_v6 }
 0x4a6   :  { %4602 = vmatmul.mubr.bf16.gmra.mxu1 %v10854_v35  ;;  %v10891_v35 = vld [vmem:[%s15545_s2 + $0x6e0] ss:$12 sps:$4 sm:$0xff]  }
 0x4a7   :  { %4609 = vmatprep.mubr.bf16.mxu1 %v10859_v37  ;;  %v10892_v37 = vld [vmem:[%s15545_s2 + $0x6f8] ss:$12 sps:$4 sm:$0xff]  }
 0x4a8   :  { %9908 = vmatpush3.bf16.msra.mxu0 %v3892_v6  ;;  %v10888_v6 = vld [vmem:[%s15545_s2 + $0x720] ss:$12 sps:$4 sm:$0xff]  }
 0x4a9   :  { %9909 = vmatprep.subr.bf16.mxu0 %v3891_v54 }
 0x4ac   :  { %9910 = vmatpush3.bf16.msra.mxu0 %v3891_v54  ;;  %v10895_v54 = vld [vmem:[%s15545_s2 + $0x73c] ss:$12 sps:$4 sm:$0xff]  }
 0x4ad   :  { %9911 = vmatprep.subr.bf16.mxu0 %v3890_v48 }
 0x4ae   :  { %4610 = vmatmul.mubr.bf16.gmra.mxu1 %v10857_v26  ;;  %v10896_v26 = vld [vmem:[%s15545_s2 + $0x710] ss:$12 sps:$4 sm:$0xff]  }
 0x4af   :  { %4617 = vmatprep.mubr.bf16.mxu1 %v10862_v60  ;;  %v10897_v60 = vld [vmem:[%s15545_s2 + $0x728] ss:$12 sps:$4 sm:$0xff]  }
 0x4b0   :  { %9912 = vmatpush3.bf16.msra.mxu0 %v3890_v48  ;;  %v10893_v48 = vld [vmem:[%s15545_s2 + $0x738] ss:$12 sps:$4 sm:$0xff]  }
 0x4b1   :  { %9913 = vmatprep.subr.bf16.mxu0 %v3889_v42 }
 0x4b4   :  { %9914 = vmatpush3.bf16.msra.mxu0 %v3889_v42  ;;  %v10900_v42 = vld [vmem:[%s15545_s2 + $0x754] ss:$12 sps:$4 sm:$0xff]  }
 0x4b5   :  { %9915 = vmatprep.subr.bf16.mxu0 %v13117_v22 }
 0x4b6   :  { %4618 = vmatmul.mubr.bf16.gmra.mxu1 %v10860_v61  ;;  %v10901_v61 = vld [vmem:[%s15545_s2 + $0x740] ss:$12 sps:$4 sm:$0xff]  }
 0x4b7   :  { %4625 = vmatprep.mubr.bf16.mxu1 %v10865_v45  ;;  %v10898_v45 = vld [vmem:[%s15545_s2 + $0x750] ss:$12 sps:$4 sm:$0xff]  }
 0x4b8   :  { %9916 = vmatpush3.bf16.msra.mxu0 %v13117_v22  ;;  %v10871_v22 = vld [vmem:[%s15545_s2 + $0x620] ss:$12 sps:$4 sm:$0xff]  }
 0x4b9   :  { %9917 = vmatprep.subr.bf16.mxu0 %v13113_v19 }
 0x4bc   :  { %9918 = vmatpush3.bf16.msra.mxu0 %v13113_v19  ;;  %v10875_v19 = vld [vmem:[%s15545_s2 + $0x6dc] ss:$12 sps:$4 sm:$0xff]  }
 0x4be   :  { %4626 = vmatmul.mubr.bf16.gmra.mxu1 %v10863_v17  ;;  %v10902_v17 = vld [vmem:[%s15545_s2 + $0x758] ss:$12 sps:$4 sm:$0xff]  }
 0x4bf   :  { %9920 = vmatmul.mubr.bf16.vlgmr.msra.gmra.mxu0 %v10867_v21  ;;  %4633 = vmatprep.mubr.bf16.mxu1 %v10870_v10  ;;  %v10905_v21 = vld [vmem:[%s15545_s2 + $0x76c] ss:$12 sps:$4 sm:$0xff]   ;;  %v10906_v10 = vld [vmem:[%s15545_s2 + $0x770] ss:$12 sps:$4 sm:$0xff]  }
 0x4c0   :  { %9923 = vmatprep.mubr.bf16.mxu0 %v10871_v22  ;;  %v10903_v22 = vld [vmem:[%s15545_s2 + $0x768] ss:$12 sps:$4 sm:$0xff]  }
 0x4c6   :  { %4634 = vmatmul.mubr.bf16.gmra.mxu1 %v10868_v18  ;;  %v10907_v18 = vld [vmem:[%s15545_s2 + $0x788] ss:$12 sps:$4 sm:$0xff]  }
 0x4c7   :  { %9924 = vmatmul.mubr.bf16.gmra.mxu0 %v10872_v11  ;;  %4641 = vmatprep.mubr.bf16.mxu1 %v10875_v19  ;;  %v10910_v11 = vld [vmem:[%s15545_s2 + $0x784] ss:$12 sps:$4 sm:$0xff]   ;;  %v10911_v19 = vld [vmem:[%s15545_s2 + $0x7a0] ss:$12 sps:$4 sm:$0xff]  }
 0x4c8   :  { %9927 = vmatprep.mubr.bf16.mxu0 %v10876_v41  ;;  %v10908_v41 = vld [vmem:[%s15545_s2 + $0x780] ss:$12 sps:$4 sm:$0xff]  }
 0x4ce   :  { %4642 = vmatmul.mubr.bf16.gmra.mxu1 %v10873_v59  ;;  %v10912_v59 = vld [vmem:[%s15545_s2 + $0x7b8] ss:$12 sps:$4 sm:$0xff]  }
 0x4cf   :  { %9928 = vmatmul.mubr.bf16.gmra.mxu0 %v10877_v9  ;;  %4649 = vmatprep.mubr.bf16.mxu1 %v10880_v30  ;;  %v10915_v9 = vld [vmem:[%s15545_s2 + $0x79c] ss:$12 sps:$4 sm:$0xff]  }
 0x4d0   :  { %9931 = vmatprep.mubr.bf16.mxu0 %v10881_v53  ;;  %v10919_v30 = vld [vmem:[%s15545_s2 + $0x7d0] ss:$12 sps:$4 sm:$0xff]   ;;  %v10913_v53 = vld [vmem:[%s15545_s2 + $0x798] ss:$12 sps:$4 sm:$0xff]  }
 0x4d6   :  { %4650 = vmatmul.mubr.bf16.gmra.mxu1 %v10878_v25  ;;  %v10918_v25 = vld [vmem:[%s15545_s2 + $0x7b4] ss:$12 sps:$4 sm:$0xff]  }
 0x4d7   :  { %9932 = vmatmul.mubr.bf16.gmra.mxu0 %v10882_v14  ;;  %4657 = vmatprep.mubr.bf16.mxu1 %v10885_v36  ;;  %v10920_v14 = vld [vmem:[%s15545_s2 + $0x7e8] ss:$12 sps:$4 sm:$0xff]   ;;  %v10927_v36 = vld [vmem:[%s15545_s2 + $0x800] ss:$12 sps:$4 sm:$0xff]  }
 0x4d8   :  { %9935 = vmatprep.mubr.bf16.mxu0 %v10886_v62  ;;  %v10916_v62 = vld [vmem:[%s15545_s2 + $0x7b0] ss:$12 sps:$4 sm:$0xff]  }
 0x4de   :  { %4658 = vmatmul.mubr.bf16.gmra.mxu1 %v10883_v16  ;;  %v10923_v16 = vld [vmem:[%s15545_s2 + $0x7cc] ss:$12 sps:$4 sm:$0xff]  }
 0x4df   :  { %9936 = vmatmul.mubr.bf16.gmra.mxu0 %v10887_v15  ;;  %4665 = vmatprep.mubr.bf16.mxu1 %v10890_v13  ;;  %v10928_v15 = vld [vmem:[%s15545_s2 + $0x818] ss:$12 sps:$4 sm:$0xff]   ;;  %v10935_v13 = vld [vmem:[%s15545_s2 + $0x830] ss:$12 sps:$4 sm:$0xff]  }
 0x4e0   :  { %9939 = vmatprep.mubr.bf16.mxu0 %v10891_v35  ;;  %v10921_v35 = vld [vmem:[%s15545_s2 + $0x7c8] ss:$12 sps:$4 sm:$0xff]  }
 0x4e6   :  { %4666 = vmatmul.mubr.bf16.gmra.mxu1 %v10888_v6  ;;  %v10926_v6 = vld [vmem:[%s15545_s2 + $0x7e4] ss:$12 sps:$4 sm:$0xff]  }
 0x4e7   :  { %9940 = vmatmul.mubr.bf16.gmra.mxu0 %v10892_v37  ;;  %4673 = vmatprep.mubr.bf16.mxu1 %v10895_v54  ;;  %v10936_v37 = vld [vmem:[%s15545_s2 + $0x848] ss:$12 sps:$4 sm:$0xff]   ;;  %v10943_v54 = vld [vmem:[%s15545_s2 + $0x860] ss:$12 sps:$4 sm:$0xff]  }
 0x4e8   :  { %9943 = vmatprep.mubr.bf16.mxu0 %v10896_v26  ;;  %v10924_v26 = vld [vmem:[%s15545_s2 + $0x7e0] ss:$12 sps:$4 sm:$0xff]  }
 0x4ee   :  { %4674 = vmatmul.mubr.bf16.gmra.mxu1 %v10893_v48  ;;  %v10931_v48 = vld [vmem:[%s15545_s2 + $0x7fc] ss:$12 sps:$4 sm:$0xff]  }
 0x4ef   :  { %9944 = vmatmul.mubr.bf16.gmra.mxu0 %v10897_v60  ;;  %4681 = vmatprep.mubr.bf16.mxu1 %v10900_v42  ;;  %v10944_v60 = vld [vmem:[%s15545_s2 + $0x878] ss:$12 sps:$4 sm:$0xff]   ;;  %v10951_v42 = vld [vmem:[%s15545_s2 + $0x890] ss:$12 sps:$4 sm:$0xff]  }
 0x4f0   :  { %9947 = vmatprep.mubr.bf16.mxu0 %v10901_v61  ;;  %v10929_v61 = vld [vmem:[%s15545_s2 + $0x7f8] ss:$12 sps:$4 sm:$0xff]  }
 0x4f6   :  { %4682 = vmatmul.mubr.bf16.gmra.mxu1 %v10898_v45  ;;  %v10934_v45 = vld [vmem:[%s15545_s2 + $0x814] ss:$12 sps:$4 sm:$0xff]  }
 0x4f7   :  { %9948 = vmatmul.mubr.bf16.gmra.mxu0 %v10902_v17  ;;  %4689 = vmatprep.mubr.bf16.mxu1 %v10905_v21  ;;  %v10952_v17 = vld [vmem:[%s15545_s2 + $0x8a8] ss:$12 sps:$4 sm:$0xff]   ;;  %v10959_v21 = vld [vmem:[%s15545_s2 + $0x8c0] ss:$12 sps:$4 sm:$0xff]  }
 0x4f8   :  { %9951 = vmatprep.mubr.bf16.mxu0 %v10906_v10  ;;  %v10932_v10 = vld [vmem:[%s15545_s2 + $0x810] ss:$12 sps:$4 sm:$0xff]  }
 0x4fe   :  { %4690 = vmatmul.mubr.bf16.gmra.mxu1 %v10903_v22  ;;  %v10939_v22 = vld [vmem:[%s15545_s2 + $0x82c] ss:$12 sps:$4 sm:$0xff]  }
 0x4ff   :  { %9952 = vmatmul.mubr.bf16.gmra.mxu0 %v10907_v18  ;;  %4697 = vmatprep.mubr.bf16.mxu1 %v10910_v11  ;;  %v10960_v18 = vld [vmem:[%s15545_s2 + $0x8d8] ss:$0 sps:$4 sm:$0xff]   ;;  %v10937_v11 = vld [vmem:[%s15545_s2 + $0x828] ss:$12 sps:$4 sm:$0xff]  }
 0x500   :  { %9955 = vmatprep.mubr.bf16.mxu0 %v10911_v19  ;;  %v10942_v19 = vld [vmem:[%s15545_s2 + $0x844] ss:$12 sps:$4 sm:$0xff]  }
 0x506   :  { %4698 = vmatmul.mubr.bf16.gmra.mxu1 %v10908_v41 }
 0x507   :  { %9956 = vmatmul.mubr.bf16.gmra.mxu0 %v10912_v59  ;;  %4705 = vmatprep.mubr.bf16.mxu1 %v10915_v9 }
 0x508   :  { %9959 = vmatprep.mubr.bf16.mxu0 %v10919_v30  ;;  %v10940_v30 = vld [vmem:[%s15545_s2 + $0x840] ss:$12 sps:$4 sm:$0xff]  }
 0x50e   :  { %4706 = vmatmul.mubr.bf16.gmra.mxu1 %v10913_v53  ;;  %v10947_v53 = vld [vmem:[%s15545_s2 + $0x85c] ss:$12 sps:$4 sm:$0xff]  }
 0x50f   :  { %4713 = vmatprep.mubr.bf16.mxu1 %v10918_v25  ;;  %9960 = vmatmul.mubr.bf16.gmra.mxu0 %v10920_v14 }
 0x510   :  { %9963 = vmatprep.mubr.bf16.mxu0 %v10927_v36 }
 0x516   :  { %4714 = vmatmul.mubr.bf16.gmra.mxu1 %v10916_v62 }
 0x517   :  { %4721 = vmatprep.mubr.bf16.mxu1 %v10923_v16  ;;  %9964 = vmatmul.mubr.bf16.gmra.mxu0 %v10928_v15  ;;  %v10945_v16 = vld [vmem:[%s15545_s2 + $0x858] ss:$12 sps:$4 sm:$0xff]   ;;  %v10950_v15 = vld [vmem:[%s15545_s2 + $0x874] ss:$12 sps:$4 sm:$0xff]  }
 0x518   :  { %9967 = vmatprep.mubr.bf16.mxu0 %v10935_v13 }
 0x51e   :  { %4722 = vmatmul.mubr.bf16.gmra.mxu1 %v10921_v35 }
 0x51f   :  { %4729 = vmatprep.mubr.bf16.mxu1 %v10926_v6  ;;  %9968 = vmatmul.mubr.bf16.gmra.mxu0 %v10936_v37 }
 0x520   :  { %9971 = vmatprep.mubr.bf16.mxu0 %v10943_v54  ;;  %v10948_v54 = vld [vmem:[%s15545_s2 + $0x870] ss:$12 sps:$4 sm:$0xff]  }
 0x526   :  { %4730 = vmatmul.mubr.bf16.gmra.mxu1 %v10924_v26  ;;  %v10955_v26 = vld [vmem:[%s15545_s2 + $0x88c] ss:$12 sps:$4 sm:$0xff]  }
 0x527   :  { %4737 = vmatprep.mubr.bf16.mxu1 %v10931_v48  ;;  %9972 = vmatmul.mubr.bf16.gmra.mxu0 %v10944_v60 }
 0x528   :  { %9975 = vmatprep.mubr.bf16.mxu0 %v10951_v42 }
 0x52e   :  { %4738 = vmatmul.mubr.bf16.gmra.mxu1 %v10929_v61 }
 0x52f   :  { %4745 = vmatprep.mubr.bf16.mxu1 %v10934_v45  ;;  %9976 = vmatmul.mubr.bf16.gmra.mxu0 %v10952_v17  ;;  %v10953_v45 = vld [vmem:[%s15545_s2 + $0x888] ss:$12 sps:$4 sm:$0xff]   ;;  %v10958_v17 = vld [vmem:[%s15545_s2 + $0x8a4] ss:$12 sps:$4 sm:$0xff]  }
 0x530   :  { %9979 = vmatprep.mubr.bf16.mxu0 %v10959_v21 }
 0x536   :  { %4746 = vmatmul.mubr.bf16.gmra.mxu1 %v10932_v10 }
 0x537   :  { %4753 = vmatprep.mubr.bf16.mxu1 %v10939_v22  ;;  %9980 = vmatmul.mubr.bf16.gmra.mxu0 %v10960_v18 }
 0x53e   :  { %v13381_v41 = vpop.f32.mrf.mxu1  ;;  %4754 = vmatmul.mubr.bf16.gmra.mxu1 %v10937_v11  ;;  %v10956_v11 = vld [vmem:[%s15545_s2 + $0x8a0] ss:$12 sps:$4 sm:$0xff]  }
 0x53f   :  { %4761 = vmatprep.mubr.bf16.mxu1 %v10942_v19  ;;  %v10963_v19 = vld [vmem:[%s15545_s2 + $0x8bc] ss:$12 sps:$4 sm:$0xff]  }
 0x540   :  { %v4565_v59 = vpop.f32.mrf.mxu1 }
 0x542   :  { %v13383_v9 = vpop.f32.mrf.mxu1 }
 0x544   :  { %v4568_v25 = vpop.f32.mrf.mxu1 }
 0x545   :  { %v9145_v25 = vld [vmem:[%s15545_s2 + $0x8d0] sm:$0xff] }
 0x546   :  { %v4571_v14 = vpop.f32.mrf.mxu1  ;;  %4762 = vmatmul.mubr.bf16.gmra.mxu1 %v10940_v30 }
 0x547   :  { %4769 = vmatprep.mubr.bf16.mxu1 %v10947_v53 }
 0x548   :  { %v4573_v36 = vpop.f32.mrf.mxu1 }
 0x54a   :  { %v4574_v62 = vpop.f32.mrf.mxu1 }
 0x54c   :  { %v4576_v13 = vpop.f32.mrf.mxu1 }
 0x54e   :  { %v13397_v35 = vpop.f32.mrf.mxu1  ;;  %4770 = vmatmul.mubr.bf16.gmra.mxu1 %v10945_v16  ;;  %v10961_v16 = vld [vmem:[%s15545_s2 + $0x8b8] ss:$12 sps:$4 sm:$0xff]  }
 0x54f   :  { %4777 = vmatprep.mubr.bf16.mxu1 %v10950_v15  ;;  %v9241_v15 = vcombine.high %v9145_v25, %v9145_v25 }
 0x550   :  { %v4581_v6 = vpop.f32.mrf.mxu1 }
 0x552   :  { %v13399_v37 = vpop.f32.mrf.mxu1 }
 0x554   :  { %v4584_v48 = vpop.f32.mrf.mxu1 }
 0x555   :  { %v9240_v48 = vcombine.low %v9145_v25, %v9145_v25 }
 0x556   :  { %v13407_v60 = vpop.f32.mrf.mxu1  ;;  %4778 = vmatmul.mubr.bf16.gmra.mxu1 %v10948_v54 }
 0x557   :  { %4785 = vmatprep.mubr.bf16.mxu1 %v10955_v26 }
 0x558   :  { %v4589_v42 = vpop.f32.mrf.mxu1 }
 0x55a   :  { %v13409_v61 = vpop.f32.mrf.mxu1 }
 0x55c   :  { %v4592_v21 = vpop.f32.mrf.mxu1 }
 0x55e   :  { %v13417_v10 = vpop.f32.mrf.mxu1  ;;  %4786 = vmatmul.mubr.bf16.gmra.mxu1 %v10953_v45 }
 0x55f   :  { %4793 = vmatprep.mubr.bf16.mxu1 %v10958_v17 }
 0x560   :  { %v4597_v22 = vpop.f32.mrf.mxu1 }
 0x562   :  { %v13419_v18 = vpop.f32.mrf.mxu1 }
 0x564   :  { %v4600_v59 = vpop.f32.mrf.mxu1 }
 0x566   :  { %v13427_v30 = vpop.f32.mrf.mxu1  ;;  %4794 = vmatmul.mubr.bf16.gmra.mxu1 %v10956_v11 }
 0x567   :  { %4801 = vmatprep.mubr.bf16.mxu1 %v10963_v19 }
 0x568   :  { %v4605_v53 = vpop.f32.mrf.mxu1 }
 0x56a   :  { %v13432_v36 = vpop.f32.mrf.mxu1 }
 0x56c   :  { %v4608_v13 = vpop.f32.mrf.mxu1 }
 0x56e   :  { %v13437_v6 = vpop.f32.mrf.mxu1  ;;  %4802 = vmatmul.mubr.bf16.gmra.mxu1 %v10961_v16 }
 0x56f   :  { %4809 = vmatprep.mubr.bf16.mxu1 %v9241_v15 }
 0x570   :  { %v4613_v54 = vpop.f32.mrf.mxu1 }
 0x572   :  { %v13439_v26 = vpop.f32.mrf.mxu1 }
 0x574   :  { %v4616_v42 = vpop.f32.mrf.mxu1 }
 0x576   :  { %v4619_v45 = vpop.f32.mrf.mxu1  ;;  %4810 = vmatmul.mubr.bf16.gmra.mxu1 %v9240_v48 }
 0x578   :  { %v4621_v17 = vpop.f32.mrf.mxu1 }
 0x57a   :  { %v13441_v21 = vpop.f32.mrf.mxu1 }
 0x57c   :  { %v4624_v22 = vpop.f32.mrf.mxu1 }
 0x57e   :  { %v13443_v11 = vpop.f32.mrf.mxu1 }
 0x57f   :  { %v9921_v19 = vpop.f32.mrf.mxu0 }
 0x580   :  { %v4860_v59 = vadd.f32 %v9921_v19, %v4571_v14  ;;  %v4629_v53 = vpop.f32.mrf.mxu1 }
 0x581   :  { %v4851_v13 = vpop.f32.mrf.mxu0 }
 0x582   :  { %v13446_v16 = vadd.f32 %v4860_v59, %v12728_v44  ;;  %v4852_v15 = vadd.f32 %v4851_v13, %v13381_v41  ;;  %v13449_v25 = vpop.f32.mrf.mxu1 }
 0x583   :  { %v9922_v54 = vpop.f32.mrf.mxu0 }
 0x584   :  { %15715 = vst [vmem:[#allocation15_spill] sm:$0xff] %v13446_v16  ;;  %v13452_v48 = vadd.f32 %v4852_v15, %v12737_v63  ;;  %v4863_v42 = vadd.f32 %v9922_v54, %v4574_v62  ;;  %v4632_v17 = vpop.f32.mrf.mxu1  ;;  %v5175_v22 = vsel %vm5168_vm0, %v13446_v16, 0.0 }
 0x585   :  { %5176 = vadd.xlane.f32.xlu1 %v5175_v22  ;;  %v4854_v14 = vpop.f32.mrf.mxu0 }
 0x586   :  { %15716 = vst [vmem:[#allocation37_spill] sm:$0xff] %v13452_v48  ;;  %v13456_v19 = vpop.f32.mrf.mxu1  ;;  %v13459_v44 = vadd.f32 %v4863_v42, %v12740_v2  ;;  %v4855_v41 = vadd.f32 %v4854_v14, %v13383_v9  ;;  %v5169_v63 = vsel %vm5168_vm0, %v13452_v48, 0.0 }
 0x587   :  { %v9925_v53 = vpop.f32.mrf.mxu0 }
 0x588   :  { %15717 = vst [vmem:[#allocation38_spill] sm:$0xff] %v13459_v44  ;;  %v4637_v59 = vpop.f32.mrf.mxu1  ;;  %v13468_v17 = vadd.f32 %v4855_v41, %v12746_v24  ;;  %v4876_v22 = vadd.f32 %v9925_v53, %v13407_v60  ;;  %v5178_v42 = vsel %vm5168_vm0, %v13459_v44, 0.0 }
 0x589   :  { %v4867_v13 = vpop.f32.mrf.mxu0  ;;  %5170 = vadd.xlane.f32.xlu1 %v5169_v63 }
 0x58a   :  { %v4868_v62 = vadd.f32 %v4867_v13, %v13397_v35  ;;  %v13465_v15 = vpop.f32.mrf.mxu1  ;;  %15718 = vst [vmem:[#allocation39_spill] sm:$0xff] %v13468_v17  ;;  %v13480_v13 = vadd.f32 %v4876_v22, %v12752_v55 }
 0x58b   :  { %v9926_v54 = vpop.f32.mrf.mxu0 }
 0x58c   :  { %v13472_v2 = vadd.f32 %v4868_v62, %v12759_v46  ;;  %v4640_v9 = vpop.f32.mrf.mxu1  ;;  %15720 = vst [vmem:[#allocation41_spill] sm:$0xff] %v13480_v13  ;;  %v5172_v46 = vsel %vm5168_vm0, %v13468_v17, 0.0 }
 0x58d   :  { %v4870_v14 = vpop.f32.mrf.mxu0  ;;  %5179 = vadd.xlane.f32.xlu1 %v5178_v42  ;;  %v4879_v9 = vadd.f32 %v9926_v54, %v13409_v61 }
 0x58e   :  { %15719 = vst [vmem:[#allocation40_spill] sm:$0xff] %v13472_v2  ;;  %v4871_v59 = vadd.f32 %v4870_v14, %v13399_v37  ;;  %v13477_v35 = vpop.f32.mrf.mxu1  ;;  %v5181_v54 = vsel %vm5168_vm0, %v13472_v2, 0.0 }
 0x58f   :  { %v9929_v63 = vpop.f32.mrf.mxu0 }
 0x590   :  { %v13483_v24 = vadd.f32 %v4871_v59, %v12766_v27  ;;  %v4645_v60 = vpop.f32.mrf.mxu1  ;;  %v5187_v27 = vsel %vm5168_vm0, %v13480_v13, 0.0 }
 0x591   :  { %v4883_v53 = vpop.f32.mrf.mxu0  ;;  %5173 = vadd.xlane.f32.xlu1 %v5172_v46 }
 0x592   :  { %v4884_v41 = vadd.f32 %v4883_v53, %v13417_v10  ;;  %v13488_v62 = vpop.f32.mrf.mxu1  ;;  %v13500_v10 = vadd.f32 %v4879_v9, %v12762_v58  ;;  %v4892_v58 = vadd.f32 %v9929_v63, %v13427_v30 }
 0x593   :  { %v9930_v37 = vpop.f32.mrf.mxu0 }
 0x594   :  { %v13492_v42 = vadd.f32 %v4884_v41, %v12779_v51  ;;  %v4648_v55 = vpop.f32.mrf.mxu1 }
 0x595   :  { %v4886_v22 = vpop.f32.mrf.mxu0  ;;  %5188 = vadd.xlane.f32.xlu1 %v5187_v27 }
 0x596   :  { %v4887_v14 = vadd.f32 %v4886_v22, %v13419_v18  ;;  %v13497_v59 = vpop.f32.mrf.mxu1  ;;  %v5190_v22 = vsel %vm5168_vm0, %v13500_v10, 0.0 }
 0x597   :  { %v9933_v60 = vpop.f32.mrf.mxu0 }
 0x598   :  { %v13503_v46 = vadd.f32 %v4887_v14, %v12786_v1  ;;  %v4908_v61 = vadd.f32 %v9933_v60, %v4619_v45  ;;  %v4653_v51 = vpop.f32.mrf.mxu1  ;;  %v13530_v60 = vadd.f32 %v4892_v58, %v12772_v49 }
 0x599   :  { %v4899_v53 = vpop.f32.mrf.mxu0  ;;  %5182 = vadd.xlane.f32.xlu1 %v5181_v54 }
 0x59a   :  { %v13508_v41 = vadd.f32 %v4908_v61, %v12792_v52  ;;  %v4900_v18 = vadd.f32 %v4899_v53, %v13437_v6  ;;  %v13511_v55 = vpop.f32.mrf.mxu1 }
 0x59b   :  { %v9934_v9 = vpop.f32.mrf.mxu0 }
 0x59c   :  { %15721 = vst [vmem:[#allocation42_spill] sm:$0xff] %v13508_v41  ;;  %v13515_v1 = vadd.f32 %v4900_v18, %v12799_v8  ;;  %v4911_v45 = vadd.f32 %v9934_v9, %v13441_v21  ;;  %v4656_v27 = vpop.f32.mrf.mxu1  ;;  %v5372_v52 = vmul.f32 %v13508_v41, %v13508_v41 }
 0x59d   :  { %v4902_v14 = vpop.f32.mrf.mxu0  ;;  %5191 = vadd.xlane.f32.xlu1 %v5190_v22 }
 0x59e   :  { %15722 = vst [vmem:[#allocation43_spill] sm:$0xff] %v13515_v1  ;;  %v13523_v6 = vadd.f32 %v4911_v45, %v12802_v3  ;;  %v4903_v30 = vadd.f32 %v4902_v14, %v13439_v26  ;;  %v13526_v63 = vpop.f32.mrf.mxu1  ;;  %v5463_v8 = vsel %vm5168_vm0, %v5372_v52, 0.0  ;;  %v5184_v3 = vsel %vm5168_vm0, %v13483_v24, 0.0 }
 0x59f   :  { %5464 = vadd.xlane.f32.xlu0 %v5463_v8  ;;  %v9937_v21 = vpop.f32.mrf.mxu0  ;;  %v5199_v45 = vsel %vm5168_vm0, %v13530_v60, 0.0 }
 0x5a0   :  { %15723 = vst [vmem:[#allocation44_spill] sm:$0xff] %v13523_v6  ;;  %v13533_v61 = vadd.f32 %v4903_v30, %v12806_v39  ;;  %v4924_v51 = vadd.f32 %v9937_v21, %v13456_v19  ;;  %v4661_v54 = vpop.f32.mrf.mxu1  ;;  %v5214_v49 = vsel %vm5168_vm0, %v13523_v6, 0.0  ;;  %v4895_v19 = vadd.f32 %v9930_v37, %v13432_v36 }
 0x5a1   :  { %v4915_v53 = vpop.f32.mrf.mxu0  ;;  %5185 = vadd.xlane.f32.xlu1 %v5184_v3  ;;  %v5193_v37 = vsel %vm5168_vm0, %v13492_v42, 0.0 }
 0x5a2   :  { %15724 = vst [vmem:[#allocation45_spill] sm:$0xff] %v13533_v61  ;;  %v13539_v26 = vadd.f32 %v4924_v51, %v12811_v0  ;;  %v4916_v18 = vadd.f32 %v4915_v53, %v13443_v11  ;;  %v13542_v9 = vpop.f32.mrf.mxu1  ;;  %v13556_v30 = vadd.f32 %v4895_v19, %v12782_v57 }
 0x5a3   :  { %5215 = vadd.xlane.f32.xlu0 %v5214_v49  ;;  %v9938_v39 = vpop.f32.mrf.mxu0 }
 0x5a4   :  { %15725 = vst [vmem:[#allocation46_spill] sm:$0xff] %v13539_v26  ;;  %v4664_v58 = vpop.f32.mrf.mxu1  ;;  %v13550_v0 = vadd.f32 %v4916_v18, %v12818_v28  ;;  %v4927_v11 = vadd.f32 %v9938_v39, %v13465_v15  ;;  %v5223_v52 = vsel %vm5168_vm0, %v13539_v26, 0.0  ;;  %v5202_v3 = vsel %vm5168_vm0, %v13556_v30, 0.0 }
 0x5a5   :  { %v4918_v27 = vpop.f32.mrf.mxu0  ;;  %5200 = vadd.xlane.f32.xlu1 %v5199_v45  ;;  %v5196_v58 = vsel %vm5168_vm0, %v13503_v46, 0.0 }
 0x5a6   :  { %15726 = vst [vmem:[#allocation47_spill] sm:$0xff] %v13550_v0  ;;  %v4667_v22 = vpop.f32.mrf.mxu1  ;;  %v13561_v28 = vadd.f32 %v4927_v11, %v12820_v31  ;;  %v4919_v15 = vadd.f32 %v4918_v27, %v13449_v25  ;;  %v5217_v51 = vsel %vm5168_vm0, %v13550_v0, 0.0 }
 0x5a7   :  { %5224 = vadd.xlane.f32.xlu0 %v5223_v52  ;;  %v9941_v14 = vpop.f32.mrf.mxu0 }
 0x5a8   :  { %v4669_v36 = vpop.f32.mrf.mxu1  ;;  %15727 = vst [vmem:[#allocation48_spill] sm:$0xff] %v13561_v28  ;;  %v13571_v18 = vadd.f32 %v4919_v15, %v12824_v50  ;;  %v4940_v31 = vadd.f32 %v9941_v14, %v13497_v59  ;;  %v5226_v25 = vsel %vm5168_vm0, %v13561_v28, 0.0 }
 0x5a9   :  { %v4931_v8 = vpop.f32.mrf.mxu0  ;;  %5194 = vadd.xlane.f32.xlu1 %v5193_v37  ;;  %v5211_v36 = vsel %vm5168_vm0, %v13508_v41, 0.0 }
 0x5aa   :  { %v13564_v21 = vpop.f32.mrf.mxu1  ;;  %15728 = vst [vmem:[#allocation49_spill] sm:$0xff] %v13571_v18  ;;  %v13581_v27 = vadd.f32 %v4940_v31, %v12829_v23  ;;  %v4932_v50 = vadd.f32 %v4931_v8, %v13477_v35  ;;  %v5220_v59 = vsel %vm5168_vm0, %v13571_v18, 0.0 }
 0x5ab   :  { %v9942_v54 = vpop.f32.mrf.mxu0  ;;  %5218 = vadd.xlane.f32.xlu0 %v5217_v51 }
 0x5ac   :  { %v4672_v57 = vpop.f32.mrf.mxu1  ;;  %15729 = vst [vmem:[#allocation50_spill] sm:$0xff] %v13581_v27  ;;  %v13591_v15 = vadd.f32 %v4932_v50, %v12835_v4  ;;  %v4943_v23 = vadd.f32 %v9942_v54, %v13511_v55  ;;  %v5235_v35 = vsel %vm5168_vm0, %v13581_v27, 0.0 }
 0x5ad   :  { %v4934_v53 = vpop.f32.mrf.mxu0  ;;  %5203 = vadd.xlane.f32.xlu1 %v5202_v3  ;;  %v5205_v3 = vsel %vm5168_vm0, %v13515_v1, 0.0 }
 0x5ae   :  { %v13574_v49 = vpop.f32.mrf.mxu1  ;;  %15730 = vst [vmem:[#allocation51_spill] sm:$0xff] %v13591_v15  ;;  %v4935_v4 = vadd.f32 %v4934_v53, %v13488_v62  ;;  %v5229_v55 = vsel %vm5168_vm0, %v13591_v15, 0.0 }
 0x5af   :  { %v9945_v39 = vpop.f32.mrf.mxu0  ;;  %5227 = vadd.xlane.f32.xlu0 %v5226_v25  ;;  %v13601_v25 = vadd.f32 %v4943_v23, %v12837_v43 }
 0x5b0   :  { %v4677_v19 = vpop.f32.mrf.mxu1  ;;  %v13617_v62 = vadd.f32 %v4935_v4, %v12840_v12  ;;  %v4956_v53 = vadd.f32 %v9945_v39, %v4667_v22 }
 0x5b1   :  { %v4947_v45 = vpop.f32.mrf.mxu0  ;;  %5197 = vadd.xlane.f32.xlu1 %v5196_v58  ;;  %15731 = vst [vmem:[#allocation52_spill] sm:$0xff] %v13601_v25  ;;  %v5238_v23 = vsel %vm5168_vm0, %v13601_v25, 0.0 }
 0x5b2   :  { %v13584_v11 = vpop.f32.mrf.mxu1  ;;  %15732 = vst [vmem:[#allocation53_spill] sm:$0xff] %v13617_v62  ;;  %v4948_v12 = vadd.f32 %v4947_v45, %v13526_v63  ;;  %v5232_v39 = vsel %vm5168_vm0, %v13617_v62, 0.0 }
 0x5b3   :  { %v9946_v52 = vpop.f32.mrf.mxu0  ;;  %5221 = vadd.xlane.f32.xlu0 %v5220_v59  ;;  %v5208_v59 = vsel %vm5168_vm0, %v13533_v61, 0.0 }
 0x5b4   :  { %v4680_v14 = vpop.f32.mrf.mxu1  ;;  %v4959_v63 = vadd.f32 %v9946_v52, %v13564_v21 }
 0x5b5   :  { %v4950_v37 = vpop.f32.mrf.mxu0  ;;  %5212 = vadd.xlane.f32.xlu1 %v5211_v36  ;;  %v5373_v14 = vmul.f32 %v13523_v6, %v13523_v6 }
 0x5b6   :  { %v4683_v51 = vpop.f32.mrf.mxu1  ;;  %v4951_v21 = vadd.f32 %v4950_v37, %v13542_v9  ;;  %v15747_v9 = vld [vmem:[#allocation19_spill] sm:$0xff] }
 0x5b7   :  { %v9949_v8 = vpop.f32.mrf.mxu0  ;;  %5236 = vadd.xlane.f32.xlu0 %v5235_v35 }
 0x5b8   :  { %v4685_v57 = vpop.f32.mrf.mxu1  ;;  %v4972_v58 = vadd.f32 %v9949_v8, %v4683_v51  ;;  %v15733_v51 = vld [vmem:[#allocation21_spill] sm:$0xff]  ;;  %v13662_v37 = vadd.f32 %v4951_v21, %v15747_v9 }
 0x5b9   :  { %v13598_v31 = vpop.f32.mrf.mxu0  ;;  %5206 = vadd.xlane.f32.xlu1 %v5205_v3  ;;  %v5466_v3 = vsel %vm5168_vm0, %v5373_v14, 0.0 }
 0x5ba   :  { %v13604_v19 = vpop.f32.mrf.mxu1  ;;  %v13622_v8 = vadd.f32 %v4972_v58, %v15733_v51  ;;  %15748 = vst [vmem:[#allocation19_spill] sm:$0xff] %v13662_v37 }
 0x5bb   :  { %v13608_v54 = vpop.f32.mrf.mxu0  ;;  %5230 = vadd.xlane.f32.xlu0 %v5229_v55 }
 0x5bc   :  { %v4688_v50 = vpop.f32.mrf.mxu1  ;;  %15734 = vst [vmem:[#allocation21_spill] sm:$0xff] %v13622_v8  ;;  %v5259_v58 = vsel %vm5168_vm0, %v13622_v8, 0.0  ;;  %v5388_v14 = vmul.f32 %v13622_v8, %v13622_v8 }
 0x5bd   :  { %v13614_v43 = vpop.f32.mrf.mxu0  ;;  %5209 = vadd.xlane.f32.xlu1 %v5208_v59  ;;  %v15735_v50 = vld [vmem:[#allocation16_spill] sm:$0xff] }
 0x5be   :  { %v4691_v36 = vpop.f32.mrf.mxu1  ;;  %v13626_v59 = vadd.f32 %v4956_v53, %v15735_v50  ;;  %v15737_v53 = vld [vmem:[#allocation17_spill] sm:$0xff] }
 0x5bf   :  { %v9953_v35 = vpop.f32.mrf.mxu0  ;;  %5239 = vadd.xlane.f32.xlu0 %v5238_v23 }
 0x5c0   :  { %v4693_v57 = vpop.f32.mrf.mxu1  ;;  %15736 = vst [vmem:[#allocation16_spill] sm:$0xff] %v13626_v59 }
 0x5c1   :  { %v4979_v55 = vpop.f32.mrf.mxu0  ;;  %5467 = vadd.xlane.f32.xlu1 %v5466_v3  ;;  %v13636_v57 = vadd.f32 %v4948_v12, %v15737_v53  ;;  %v5247_v3 = vsel %vm5168_vm0, %v13626_v59, 0.0  ;;  %v15741_v53 = vld [vmem:[#allocation18_spill] sm:$0xff] }
 0x5c2   :  { %v4694_v22 = vpop.f32.mrf.mxu1  ;;  %v4980_v23 = vadd.f32 %v4979_v55, %v4691_v36  ;;  %v13648_v41 = vadd.f32 %v4959_v63, %v15741_v53 }
 0x5c3   :  { %v9954_v4 = vpop.f32.mrf.mxu0  ;;  %5233 = vadd.xlane.f32.xlu0 %v5232_v39  ;;  %15738 = vst [vmem:[#allocation17_spill] sm:$0xff] %v13636_v57 }
 0x5c4   :  { %v4696_v38 = vpop.f32.mrf.mxu1  ;;  %15742 = vst [vmem:[#allocation18_spill] sm:$0xff] %v13648_v41 }
 0x5c5   :  { %v4982_v51 = vpop.f32.mrf.mxu0  ;;  %5260 = vadd.xlane.f32.xlu1 %v5259_v58  ;;  %v15739_v38 = vld [vmem:[#allocation24_spill] sm:$0xff]  ;;  %v5511_v58 = vsel %vm5168_vm0, %v5388_v14, 0.0 }
 0x5c6   :  { %v4699_v45 = vpop.f32.mrf.mxu1  ;;  %v13644_v55 = vadd.f32 %v4980_v23, %v15739_v38  ;;  %v4983_v50 = vadd.f32 %v4982_v51, %v4694_v22  ;;  %v15743_v23 = vld [vmem:[#allocation25_spill] sm:$0xff] }
 0x5c7   :  { %5248 = vadd.xlane.f32.xlu0 %v5247_v3  ;;  %v13641_v36 = vpop.f32.mrf.mxu0  ;;  %v4988_v39 = vadd.f32 %v9953_v35, %v4699_v45  ;;  %v5241_v3 = vsel %vm5168_vm0, %v13636_v57, 0.0  ;;  %v15745_v35 = vld [vmem:[#allocation26_spill] sm:$0xff]  ;;  %v4964_v45 = vadd.f32 %v13598_v31, %v13574_v49  ;;  %v15751_v49 = vld [vmem:[#allocation20_spill] sm:$0xff] }
 0x5c8   :  { %15740 = vst [vmem:[#allocation24_spill] sm:$0xff] %v13644_v55  ;;  %v4701_v8 = vpop.f32.mrf.mxu1  ;;  %v13654_v38 = vadd.f32 %v4983_v50, %v15743_v23  ;;  %v5265_v51 = vsel %vm5168_vm0, %v13644_v55, 0.0  ;;  %v5250_v50 = vsel %vm5168_vm0, %v13648_v41, 0.0 }
 0x5c9   :  { %5512 = vadd.xlane.f32.xlu1 %v5511_v58  ;;  %v4995_v12 = vpop.f32.mrf.mxu0  ;;  %v13657_v8 = vadd.f32 %v4988_v39, %v15745_v35  ;;  %v13678_v31 = vadd.f32 %v4964_v45, %v15751_v49  ;;  %v4975_v35 = vadd.f32 %v13608_v54, %v13604_v19  ;;  %v15753_v49 = vld [vmem:[#allocation23_spill] sm:$0xff]  ;;  %v4967_v19 = vadd.f32 %v13614_v43, %v13584_v11  ;;  %v15759_v11 = vld [vmem:[#allocation22_spill] sm:$0xff] }
 0x5ca   :  { %v4702_v52 = vpop.f32.mrf.mxu1  ;;  %15744 = vst [vmem:[#allocation25_spill] sm:$0xff] %v13654_v38  ;;  %v5391_v21 = vmul.f32 %v13654_v38, %v13654_v38 }
 0x5cb   :  { %5242 = vadd.xlane.f32.xlu0 %v5241_v3  ;;  %v9958_v6 = vpop.f32.mrf.mxu0  ;;  %15746 = vst [vmem:[#allocation26_spill] sm:$0xff] %v13657_v8  ;;  %v4991_v22 = vadd.f32 %v9954_v4, %v4702_v52  ;;  %v15749_v4 = vld [vmem:[#allocation27_spill] sm:$0xff]  ;;  %v5271_v3 = vsel %vm5168_vm0, %v13657_v8, 0.0  ;;  %15752 = vst [vmem:[#allocation20_spill] sm:$0xff] %v13678_v31  ;;  %v13690_v48 = vadd.f32 %v4975_v35, %v15753_v49 }
 0x5cc   :  { %v4704_v14 = vpop.f32.mrf.mxu1  ;;  %v13708_v43 = vadd.f32 %v4967_v19, %v15759_v11 }
 0x5cd   :  { %5266 = vadd.xlane.f32.xlu1 %v5265_v51  ;;  %v4998_v63 = vpop.f32.mrf.mxu0  ;;  %v13671_v53 = vadd.f32 %v4991_v22, %v15749_v4  ;;  %v5244_v22 = vsel %vm5168_vm0, %v13662_v37, 0.0  ;;  %15754 = vst [vmem:[#allocation23_spill] sm:$0xff] %v13690_v48  ;;  %v5389_v11 = vmul.f32 %v13690_v48, %v13690_v48 }
 0x5ce   :  { %v4707_v58 = vpop.f32.mrf.mxu1  ;;  %15760 = vst [vmem:[#allocation22_spill] sm:$0xff] %v13708_v43 }
 0x5cf   :  { %5251 = vadd.xlane.f32.xlu0 %v5250_v50  ;;  %v13668_v39 = vpop.f32.mrf.mxu0  ;;  %15750 = vst [vmem:[#allocation27_spill] sm:$0xff] %v13671_v53  ;;  %v4996_v9 = vadd.f32 %v4995_v12, %v4707_v58  ;;  %v5514_v17 = vsel %vm5168_vm0, %v5389_v11, 0.0 }
 0x5d0   :  { %v4709_v52 = vpop.f32.mrf.mxu1 }
 0x5d1   :  { %5272 = vadd.xlane.f32.xlu1 %v5271_v3  ;;  %v5011_v23 = vpop.f32.mrf.mxu0  ;;  %v5520_v52 = vsel %vm5168_vm0, %v5391_v21, 0.0  ;;  %v5393_v3 = vmul.f32 %v13671_v53, %v13671_v53  ;;  %v15757_v21 = vld [vmem:[#allocation2_spill] sm:$0xff] }
 0x5d2   :  { %v4710_v14 = vpop.f32.mrf.mxu1 }
 0x5d3   :  { %5245 = vadd.xlane.f32.xlu0 %v5244_v22  ;;  %v13684_v51 = vpop.f32.mrf.mxu0  ;;  %v4999_v50 = vadd.f32 %v4998_v63, %v4710_v14  ;;  %v5253_v22 = vsel %vm5168_vm0, %v13678_v31, 0.0  ;;  %v15755_v63 = vld [vmem:[#allocation3_spill] sm:$0xff]  ;;  %v5526_v35 = vsel %vm5168_vm0, %v5393_v3, 0.0 }
 0x5d4   :  { %v4712_v4 = vpop.f32.mrf.mxu1  ;;  %v13699_v58 = vadd.f32 %v4996_v9, %v15755_v63 }
 0x5d5   :  { %5521 = vadd.xlane.f32.xlu1 %v5520_v52  ;;  %v5014_v45 = vpop.f32.mrf.mxu0  ;;  %v13702_v14 = vadd.f32 %v4999_v50, %v15757_v21 }
 0x5d6   :  { %v4715_v54 = vpop.f32.mrf.mxu1  ;;  %15756 = vst [vmem:[#allocation3_spill] sm:$0xff] %v13699_v58  ;;  %v5277_v3 = vsel %vm5168_vm0, %v13699_v58, 0.0 }
 0x5d7   :  { %5254 = vadd.xlane.f32.xlu0 %v5253_v22  ;;  %v13696_v12 = vpop.f32.mrf.mxu0  ;;  %15758 = vst [vmem:[#allocation2_spill] sm:$0xff] %v13702_v14  ;;  %v5262_v22 = vsel %vm5168_vm0, %v13690_v48, 0.0  ;;  %v5004_v9 = vadd.f32 %v13641_v36, %v4715_v54  ;;  %v5395_v21 = vmul.f32 %v13702_v14, %v13702_v14  ;;  %v15763_v54 = vld [vmem:[#allocation5_spill] sm:$0xff] }
 0x5d8   :  { %v4717_v4 = vpop.f32.mrf.mxu1 }
 0x5d9   :  { %5527 = vadd.xlane.f32.xlu1 %v5526_v35  ;;  %v13705_v52 = vpop.f32.mrf.mxu0  ;;  %v5256_v35 = vsel %vm5168_vm0, %v13708_v43, 0.0 }
 0x5da   :  { %v4718_v49 = vpop.f32.mrf.mxu1 }
 0x5db   :  { %5263 = vadd.xlane.f32.xlu0 %v5262_v22  ;;  %v13712_v18 = vpop.f32.mrf.mxu0  ;;  %v5007_v50 = vadd.f32 %v9958_v6, %v4718_v49  ;;  %v15761_v6 = vld [vmem:[#allocation4_spill] sm:$0xff] }
 0x5dc   :  { %v4720_v63 = vpop.f32.mrf.mxu1  ;;  %v13726_v36 = vadd.f32 %v5004_v9, %v15761_v6 }
 0x5dd   :  { %5278 = vadd.xlane.f32.xlu1 %v5277_v3  ;;  %v5030_v19 = vpop.f32.mrf.mxu0  ;;  %v13729_v49 = vadd.f32 %v5007_v50, %v15763_v54  ;;  %v5532_v3 = vsel %vm5168_vm0, %v5395_v21, 0.0  ;;  %v5268_v54 = vsel %vm5168_vm0, %v13654_v38, 0.0 }
 0x5de   :  { %v4723_v4 = vpop.f32.mrf.mxu1  ;;  %15762 = vst [vmem:[#allocation4_spill] sm:$0xff] %v13726_v36  ;;  %v5283_v9 = vsel %vm5168_vm0, %v13726_v36, 0.0 }
 0x5df   :  { %5257 = vadd.xlane.f32.xlu0 %v5256_v35  ;;  %v13723_v22 = vpop.f32.mrf.mxu0  ;;  %15764 = vst [vmem:[#allocation5_spill] sm:$0xff] %v13729_v49  ;;  %v5012_v35 = vadd.f32 %v5011_v23, %v4723_v4  ;;  %v5397_v50 = vmul.f32 %v13729_v49, %v13729_v49 }
 0x5e0   :  { %v4725_v63 = vpop.f32.mrf.mxu1 }
 0x5e1   :  { %5533 = vadd.xlane.f32.xlu1 %v5532_v3  ;;  %v13732_v0 = vpop.f32.mrf.mxu0  ;;  %v5538_v63 = vsel %vm5168_vm0, %v5397_v50, 0.0 }
 0x5e2   :  { %v4726_v16 = vpop.f32.mrf.mxu1 }
 0x5e3   :  { %5515 = vadd.xlane.f32.xlu0 %v5514_v17  ;;  %v13735_v48 = vpop.f32.mrf.mxu0  ;;  %v5015_v28 = vadd.f32 %v5014_v45, %v4726_v16  ;;  %v5392_v17 = vmul.f32 %v13657_v8, %v13657_v8  ;;  %v15765_v16 = vld [vmem:[#allocation6_spill] sm:$0xff]  ;;  %v15767_v45 = vld [vmem:[#allocation28_spill] sm:$0xff] }
 0x5e4   :  { %v4728_v26 = vpop.f32.mrf.mxu1 }
 0x5e5   :  { %5284 = vadd.xlane.f32.xlu1 %v5283_v9  ;;  %v13741_v21 = vpop.f32.mrf.mxu0  ;;  %v13750_v26 = vadd.f32 %v5012_v35, %v15765_v16  ;;  %v13753_v4 = vadd.f32 %v5015_v28, %v15767_v45  ;;  %v5523_v38 = vsel %vm5168_vm0, %v5392_v17, 0.0  ;;  %v5394_v17 = vmul.f32 %v13699_v58, %v13699_v58 }
 0x5e6   :  { %v4731_v6 = vpop.f32.mrf.mxu1 }
 0x5e7   :  { %5269 = vadd.xlane.f32.xlu0 %v5268_v54  ;;  %v13747_v23 = vpop.f32.mrf.mxu0  ;;  %15766 = vst [vmem:[#allocation6_spill] sm:$0xff] %v13750_v26  ;;  %15768 = vst [vmem:[#allocation28_spill] sm:$0xff] %v13753_v4  ;;  %v5020_v54 = vadd.f32 %v13668_v39, %v4731_v6  ;;  %v5289_v28 = vsel %vm5168_vm0, %v13750_v26, 0.0  ;;  %v5399_v50 = vmul.f32 %v13753_v4, %v13753_v4 }
 0x5e8   :  { %v4733_v11 = vpop.f32.mrf.mxu1 }
 0x5e9   :  { %5539 = vadd.xlane.f32.xlu1 %v5538_v63  ;;  %v13756_v3 = vpop.f32.mrf.mxu0  ;;  %v15771_v63 = vld [vmem:[#allocation29_spill] sm:$0xff] }
 0x5ea   :  { %v4734_v9 = vpop.f32.mrf.mxu1 }
 0x5eb   :  { %5524 = vadd.xlane.f32.xlu0 %v5523_v38  ;;  %v13759_v8 = vpop.f32.mrf.mxu0  ;;  %v5023_v35 = vadd.f32 %v13684_v51, %v4734_v9  ;;  %v5274_v38 = vsel %vm5168_vm0, %v13671_v53, 0.0  ;;  %v15769_v51 = vld [vmem:[#allocation8_spill] sm:$0xff]  ;;  %v5529_v53 = vsel %vm5168_vm0, %v5394_v17, 0.0  ;;  %v5280_v17 = vsel %vm5168_vm0, %v13702_v14, 0.0 }
 0x5ec   :  { %v4736_v16 = vpop.f32.mrf.mxu1  ;;  %v13776_v6 = vadd.f32 %v5020_v54, %v15769_v51 }
 0x5ed   :  { %5290 = vadd.xlane.f32.xlu1 %v5289_v28  ;;  %v13767_v45 = vpop.f32.mrf.mxu0  ;;  %v13779_v9 = vadd.f32 %v5023_v35, %v15771_v63  ;;  %v5544_v28 = vsel %vm5168_vm0, %v5399_v50, 0.0 }
 0x5ee   :  { %v4739_v11 = vpop.f32.mrf.mxu1  ;;  %15770 = vst [vmem:[#allocation8_spill] sm:$0xff] %v13776_v6  ;;  %v5295_v35 = vsel %vm5168_vm0, %v13776_v6, 0.0 }
 0x5ef   :  { %5275 = vadd.xlane.f32.xlu0 %v5274_v38  ;;  %v13773_v39 = vpop.f32.mrf.mxu0  ;;  %15772 = vst [vmem:[#allocation29_spill] sm:$0xff] %v13779_v9  ;;  %v5028_v38 = vadd.f32 %v13705_v52, %v4739_v11  ;;  %v5401_v51 = vmul.f32 %v13779_v9, %v13779_v9  ;;  %v15775_v11 = vld [vmem:[#allocation30_spill] sm:$0xff] }
 0x5f0   :  { %v4741_v16 = vpop.f32.mrf.mxu1 }
 0x5f1   :  { %5545 = vadd.xlane.f32.xlu1 %v5544_v28  ;;  %v13782_v2 = vpop.f32.mrf.mxu0 }
 0x5f2   :  { %v4742_v44 = vpop.f32.mrf.mxu1 }
 0x5f3   :  { %5530 = vadd.xlane.f32.xlu0 %v5529_v53  ;;  %v13785_v58 = vpop.f32.mrf.mxu0  ;;  %v5031_v62 = vadd.f32 %v5030_v19, %v4742_v44  ;;  %v5396_v53 = vmul.f32 %v13726_v36, %v13726_v36  ;;  %v15773_v44 = vld [vmem:[#allocation10_spill] sm:$0xff] }
 0x5f4   :  { %v4744_v54 = vpop.f32.mrf.mxu1  ;;  %v13801_v19 = vadd.f32 %v5028_v38, %v15773_v44 }
 0x5f5   :  { %5296 = vadd.xlane.f32.xlu1 %v5295_v35  ;;  %v13792_v50 = vpop.f32.mrf.mxu0  ;;  %v13804_v16 = vadd.f32 %v5031_v62, %v15775_v11  ;;  %v5550_v54 = vsel %vm5168_vm0, %v5401_v51, 0.0  ;;  %v5535_v14 = vsel %vm5168_vm0, %v5396_v53, 0.0  ;;  %v5286_v11 = vsel %vm5168_vm0, %v13729_v49, 0.0 }
 0x5f6   :  { %v4747_v63 = vpop.f32.mrf.mxu1  ;;  %15774 = vst [vmem:[#allocation10_spill] sm:$0xff] %v13801_v19  ;;  %v5301_v62 = vsel %vm5168_vm0, %v13801_v19, 0.0 }
 0x5f7   :  { %5281 = vadd.xlane.f32.xlu0 %v5280_v17  ;;  %v13798_v52 = vpop.f32.mrf.mxu0  ;;  %15776 = vst [vmem:[#allocation30_spill] sm:$0xff] %v13804_v16  ;;  %v5036_v17 = vadd.f32 %v13696_v12, %v4747_v63  ;;  %v5403_v44 = vmul.f32 %v13804_v16, %v13804_v16 }
 0x5f8   :  { %v4749_v28 = vpop.f32.mrf.mxu1 }
 0x5f9   :  { %5551 = vadd.xlane.f32.xlu1 %v5550_v54  ;;  %v13807_v35 = vpop.f32.mrf.mxu0  ;;  %v13821_v12 = vadd.f32 %v5036_v17, %v12993_v33 }
 0x5fa   :  { %v4750_v13 = vpop.f32.mrf.mxu1 }
 0x5fb   :  { %5536 = vadd.xlane.f32.xlu0 %v5535_v14  ;;  %v9982_v36 = vpop.f32.mrf.mxu0  ;;  %v5039_v15 = vadd.f32 %v13712_v18, %v4750_v13  ;;  %v5398_v14 = vmul.f32 %v13750_v26, %v13750_v26  ;;  %15777 = vst [vmem:[#allocation54_spill] sm:$0xff] %v13821_v12  ;;  %v5370_v26 = vmul.f32 %v13515_v1, %v13515_v1 }
 0x5fc   :  { %v4752_v38 = vpop.f32.mrf.mxu1  ;;  %v5556_v36 = vsel %vm5168_vm0, %v5403_v44, 0.0  ;;  %v5400_v44 = vmul.f32 %v13776_v6, %v13776_v6  ;;  %v15797_v6 = vld [vmem:[#allocation31_spill] sm:$0xff] }
 0x5fd   :  { %5302 = vadd.xlane.f32.xlu1 %v5301_v62  ;;  %v13824_v13 = vadd.f32 %v5039_v15, %v12999_v47  ;;  %v5541_v53 = vsel %vm5168_vm0, %v5398_v14, 0.0  ;;  %v5307_v38 = vsel %vm5168_vm0, %v13821_v12, 0.0  ;;  %v15779_v47 = vld [vmem:[#allocation7_spill] sm:$0xff]  ;;  %v5292_v62 = vsel %vm5168_vm0, %v13753_v4, 0.0 }
 0x5fe   :  { %v4755_v51 = vpop.f32.mrf.mxu1  ;;  %v3459_v15 = vadd.f32 %v15779_v47, %v13011_v56  ;;  %v5402_v47 = vmul.f32 %v13801_v19, %v13801_v19  ;;  %v3512_v4 = vadd.f32 %v15797_v6, %v13076_v32 }
 0x5ff   :  { %5287 = vadd.xlane.f32.xlu0 %v5286_v11  ;;  %15778 = vst [vmem:[#allocation55_spill] sm:$0xff] %v13824_v13  ;;  %v5405_v33 = vmul.f32 %v13824_v13, %v13824_v13 }
 0x600   :  { %v4757_v18 = vpop.f32.mrf.mxu1 }
 0x601   :  { %5557 = vadd.xlane.f32.xlu1 %v5556_v36  ;;  %v5562_v18 = vsel %vm5168_vm0, %v5405_v33, 0.0 }
 0x602   :  { %v4758_v63 = vpop.f32.mrf.mxu1 }
 0x603   :  { %5542 = vadd.xlane.f32.xlu0 %v5541_v53  ;;  %v5047_v28 = vadd.f32 %v13741_v21, %v4758_v63  ;;  %v5547_v63 = vsel %vm5168_vm0, %v5400_v44, 0.0  ;;  %v15780_v44 = vld [vmem:[#allocation9_spill] sm:$0xff] }
 0x604   :  { %v4760_v54 = vpop.f32.mrf.mxu1 }
 0x605   :  { %5308 = vadd.xlane.f32.xlu1 %v5307_v38  ;;  %v13840_v11 = vadd.f32 %v5047_v28, %v3459_v15 }
 0x606   :  { %v4763_v17 = vpop.f32.mrf.mxu1 }
 0x607   :  { %v5052_v21 = vadd.f32 %v13723_v22, %v4763_v17  ;;  %5293 = vadd.xlane.f32.xlu0 %v5292_v62  ;;  %v5316_v22 = vsel %vm5168_vm0, %v13840_v11, 0.0 }
 0x608   :  { %v4765_v14 = vpop.f32.mrf.mxu1 }
 0x609   :  { %v13844_v36 = vadd.f32 %v5052_v21, %v13017_v20  ;;  %5563 = vadd.xlane.f32.xlu1 %v5562_v18  ;;  %v5298_v20 = vsel %vm5168_vm0, %v13779_v9, 0.0  ;;  %v3475_v21 = vadd.f32 %v15780_v44, %v13036_v29 }
 0x60a   :  { %v4766_v56 = vpop.f32.mrf.mxu1 }
 0x60b   :  { %v5055_v53 = vadd.f32 %v13735_v48, %v4766_v56  ;;  %5548 = vadd.xlane.f32.xlu0 %v5547_v63 }
 0x60c   :  { %v4768_v54 = vpop.f32.mrf.mxu1 }
 0x60d   :  { %v13851_v28 = vadd.f32 %v5055_v53, %v13025_v5  ;;  %5317 = vadd.xlane.f32.xlu1 %v5316_v22  ;;  %v5553_v5 = vsel %vm5168_vm0, %v5402_v47, 0.0  ;;  %v5304_v54 = vsel %vm5168_vm0, %v13804_v16, 0.0  ;;  %v5404_v22 = vmul.f32 %v13821_v12, %v13821_v12  ;;  %v15781_v47 = vld [vmem:[#allocation33_spill] sm:$0xff]  ;;  %v15795_v16 = vld [vmem:[#allocation14_spill] sm:$0xff] }
 0x60e   :  { %v4771_v38 = vpop.f32.mrf.mxu1  ;;  %v13853_v33 = vpop.xlane.xlu1 %5176 }
 0x60f   :  { %5299 = vadd.xlane.f32.xlu0 %v5298_v20  ;;  %v5322_v48 = vsel %vm5168_vm0, %v13851_v28, 0.0  ;;  %v5559_v44 = vsel %vm5168_vm0, %v5404_v22, 0.0 }
 0x610   :  { %v4773_v15 = vpop.f32.mrf.mxu1 }
 0x611   :  { %5323 = vadd.xlane.f32.xlu1 %v5322_v48  ;;  %v5044_v15 = vadd.f32 %v13732_v0, %v4755_v51  ;;  %v5310_v0 = vsel %vm5168_vm0, %v13824_v13, 0.0  ;;  %v5319_v13 = vsel %vm5168_vm0, %v13844_v36, 0.0 }
 0x612   :  { %v4774_v17 = vpop.f32.mrf.mxu1  ;;  %v13861_v62 = vpop.xlane.xlu1 %5170 }
 0x613   :  { %v5063_v14 = vadd.f32 %v13767_v45, %v4774_v17  ;;  %5554 = vadd.xlane.f32.xlu0 %v5553_v5 }
 0x614   :  { %v4776_v18 = vpop.f32.mrf.mxu1 }
 0x615   :  { %v13867_v56 = vadd.f32 %v5063_v14, %v3475_v21  ;;  %v15782_v14 = vld [vmem:[#allocation34_spill] sm:$0xff] }
 0x616   :  { %v4779_v63 = vpop.f32.mrf.mxu1  ;;  %v13869_v53 = vpop.xlane.xlu1 %5179 }
 0x617   :  { %v5068_v20 = vadd.f32 %v13747_v23, %v4779_v63  ;;  %5305 = vadd.xlane.f32.xlu0 %v5304_v54  ;;  %v5328_v29 = vsel %vm5168_vm0, %v13867_v56, 0.0  ;;  %v15784_v63 = vld [vmem:[#allocation13_spill] sm:$0xff] }
 0x618   :  { %v4781_v45 = vpop.f32.mrf.mxu1  ;;  %5329 = vadd.xlane.f32.xlu1 %v5328_v29  ;;  %v13890_v54 = vadd.f32 %v5044_v15, %v15784_v63 }
 0x619   :  { %v13879_v48 = vadd.f32 %v5068_v20, %v15781_v47 }
 0x61a   :  { %v4782_v17 = vpop.f32.mrf.mxu1  ;;  %v13882_v5 = vpop.xlane.xlu1 %5173  ;;  %v5313_v15 = vsel %vm5168_vm0, %v13890_v54, 0.0 }
 0x61b   :  { %v5071_v21 = vadd.f32 %v13759_v8, %v4782_v17  ;;  %5560 = vadd.xlane.f32.xlu0 %v5559_v44  ;;  %v5060_v8 = vadd.f32 %v13756_v3, %v4771_v38  ;;  %v15785_v17 = vld [vmem:[#allocation36_spill] sm:$0xff]  ;;  %v15786_v44 = vld [vmem:[#allocation11_spill] sm:$0xff] }
 0x61c   :  { %v4784_v23 = vpop.f32.mrf.mxu1  ;;  %v15788_v3 = vld [vmem:[#allocation32_spill] sm:$0xff] }
 0x61d   :  { %v13887_v18 = vadd.f32 %v5071_v21, %v15782_v14  ;;  %v3491_v21 = vadd.f32 %v15786_v44, %v15785_v17  ;;  %v13912_v38 = vadd.f32 %v5060_v8, %v15788_v3 }
 0x61e   :  { %v4787_v29 = vpop.f32.mrf.mxu1  ;;  %v13892_v20 = vpop.xlane.xlu1 %5188 }
 0x61f   :  { %15783 = vst [vmem:[#allocation7_spill] sm:$0xff] %v13887_v18  ;;  %5311 = vadd.xlane.f32.xlu0 %v5310_v0  ;;  %v5334_v51 = vsel %vm5168_vm0, %v13887_v18, 0.0  ;;  %v52_v0 = vld [vmem:[%s15546_s14 + $0x8] sm:$0xff]  ;;  %v5076_v44 = vadd.f32 %v13782_v2, %v4787_v29  ;;  %v5331_v29 = vsel %vm5168_vm0, %v13879_v48, 0.0 }
 0x620   :  { %v4789_v22 = vpop.f32.mrf.mxu1  ;;  %5335 = vadd.xlane.f32.xlu1 %v5334_v51  ;;  %5678 = vmatprep.mubr.f32.mxu1 %v52_v0 }
 0x621   :  { %5820 = vmatprep.mubr.f32.mxu0 %v52_v0 }
 0x622   :  { %v4790_v45 = vpop.f32.mrf.mxu1  ;;  %v13899_v47 = vpop.xlane.xlu1 %5182 }
 0x623   :  { %v5079_v23 = vadd.f32 %v13792_v50, %v4790_v45  ;;  %5314 = vadd.xlane.f32.xlu0 %v5313_v15 }
 0x624   :  { %v4792_v14 = vpop.f32.mrf.mxu1 }
 0x625   :  { %v13906_v63 = vadd.f32 %v5079_v23, %v3491_v21  ;;  %v5325_v14 = vsel %vm5168_vm0, %v13912_v38, 0.0 }
 0x626   :  { %v4795_v51 = vpop.f32.mrf.mxu1  ;;  %v13914_v22 = vpop.xlane.xlu1 %5191 }
 0x627   :  { %15787 = vst [vmem:[#allocation9_spill] sm:$0xff] %v13906_v63  ;;  %v5084_v50 = vadd.f32 %v13773_v39, %v4795_v51  ;;  %5320 = vadd.xlane.f32.xlu0 %v5319_v13  ;;  %v5340_v45 = vsel %vm5168_vm0, %v13906_v63, 0.0  ;;  %v15791_v51 = vld [vmem:[#allocation35_spill] sm:$0xff] }
 0x628   :  { %v4797_v15 = vpop.f32.mrf.mxu1  ;;  %v13921_v17 = vpop.xlane.xlu0 %5464  ;;  %5341 = vadd.xlane.f32.xlu1 %v5340_v45 }
 0x629   :  { %v13924_v8 = vadd.f32 %v5084_v50, %v13062_v40  ;;  %v13938_v40 = vadd.f32 %v5076_v44, %v15791_v51  ;;  %v5094_v45 = vpop.f32.mrf.mxu0 }
 0x62a   :  { %v4798_v21 = vpop.f32.mrf.mxu1  ;;  %v13927_v23 = vpop.xlane.xlu1 %5185 }
 0x62b   :  { %15789 = vst [vmem:[#allocation33_spill] sm:$0xff] %v13924_v8  ;;  %v5087_v39 = vadd.f32 %v13785_v58, %v4798_v21  ;;  %5326 = vadd.xlane.f32.xlu0 %v5325_v14  ;;  %15792 = vst [vmem:[#allocation13_spill] sm:$0xff] %v13938_v40  ;;  %v5343_v9 = vsel %vm5168_vm0, %v13924_v8, 0.0 }
 0x62c   :  { %v4800_v13 = vpop.f32.mrf.mxu1  ;;  %v13932_v0 = vpop.xlane.xlu0 %5215 }
 0x62d   :  { %v13935_v3 = vadd.f32 %v5087_v39, %v13066_v34  ;;  %v5337_v39 = vsel %vm5168_vm0, %v13938_v40, 0.0  ;;  %v15793_v13 = vld [vmem:[#allocation12_spill] sm:$0xff] }
 0x62e   :  { %v4803_v50 = vpop.f32.mrf.mxu1  ;;  %v13940_v2 = vpop.xlane.xlu1 %5200  ;;  %v3507_v51 = vadd.f32 %v15793_v13, %v13073_v7 }
 0x62f   :  { %15790 = vst [vmem:[#allocation34_spill] sm:$0xff] %v13935_v3  ;;  %5332 = vadd.xlane.f32.xlu0 %v5331_v29  ;;  %v5346_v58 = vsel %vm5168_vm0, %v13935_v3, 0.0  ;;  %v5092_v34 = vadd.f32 %v13807_v35, %v4803_v50 }
 0x630   :  { %v4805_v15 = vpop.f32.mrf.mxu1  ;;  %v13946_v21 = vpop.xlane.xlu0 %5224  ;;  %5347 = vadd.xlane.f32.xlu1 %v5346_v58 }
 0x631   :  { %v13960_v58 = vadd.f32 %v5092_v34, %v15795_v16 }
 0x632   :  { %v4806_v14 = vpop.f32.mrf.mxu1  ;;  %v13949_v44 = vpop.xlane.xlu1 %5194 }
 0x633   :  { %v5095_v29 = vadd.f32 %v5094_v45, %v4806_v14  ;;  %5338 = vadd.xlane.f32.xlu0 %v5337_v39  ;;  %15796 = vst [vmem:[#allocation11_spill] sm:$0xff] %v13960_v58  ;;  %v5371_v45 = vmul.f32 %v13533_v61, %v13533_v61  ;;  %v5349_v32 = vsel %vm5168_vm0, %v13960_v58, 0.0 }
 0x634   :  { %v4808_v19 = vpop.f32.mrf.mxu1  ;;  %v13955_v12 = vpop.xlane.xlu0 %5218 }
 0x635   :  { %v13957_v15 = vadd.f32 %v5095_v29, %v3507_v51 }
 0x636   :  { %v4811_v35 = vpop.f32.mrf.mxu1  ;;  %v13962_v50 = vpop.xlane.xlu1 %5203 }
 0x637   :  { %15794 = vst [vmem:[#allocation36_spill] sm:$0xff] %v13957_v15  ;;  %v5100_v7 = vadd.f32 %v13798_v52, %v4811_v35  ;;  %5344 = vadd.xlane.f32.xlu0 %v5343_v9  ;;  %v5352_v19 = vsel %vm5168_vm0, %v13957_v15, 0.0  ;;  %v5460_v9 = vsel %vm5168_vm0, %v5371_v45, 0.0  ;;  %v5386_v52 = vmul.f32 %v13678_v31, %v13678_v31 }
 0x638   :  { %v13973_v16 = vpop.xlane.xlu0 %5227  ;;  %5353 = vadd.xlane.f32.xlu1 %v5352_v19  ;;  %v4813_v34 = vpop.f32.mrf.mxu1  ;;  %v5387_v35 = vmul.f32 %v13708_v43, %v13708_v43  ;;  %v5369_v19 = vmul.f32 %v13556_v30, %v13556_v30 }
 0x639   :  { %v13975_v14 = vadd.f32 %v5100_v7, %v3512_v4  ;;  %v5505_v7 = vsel %vm5168_vm0, %v5386_v52, 0.0 }
 0x63a   :  { %v13977_v39 = vpop.xlane.xlu1 %5197  ;;  %v4814_v6 = vpop.f32.mrf.mxu1 }
 0x63b   :  { %15798 = vst [vmem:[#allocation32_spill] sm:$0xff] %v13975_v14  ;;  %5350 = vadd.xlane.f32.xlu0 %v5349_v32  ;;  %v5355_v4 = vsel %vm5168_vm0, %v13975_v14, 0.0  ;;  %v5508_v32 = vsel %vm5168_vm0, %v5387_v35, 0.0  ;;  %v5390_v6 = vmul.f32 %v13644_v55, %v13644_v55  ;;  %v5385_v55 = vmul.f32 %v13648_v41, %v13648_v41 }
 0x63c   :  { %v13984_v13 = vpop.xlane.xlu0 %5221  ;;  %5461 = vadd.xlane.f32.xlu1 %v5460_v9  ;;  %v4815_v51 = vpop.f32.mrf.mxu1  ;;  %v5454_v9 = vsel %vm5168_vm0, %v5369_v19, 0.0  ;;  %v5383_v41 = vmul.f32 %v13662_v37, %v13662_v37 }
 0x63d   :  { %v5384_v51 = vmul.f32 %v13626_v59, %v13626_v59  ;;  %v5502_v43 = vsel %vm5168_vm0, %v5385_v55, 0.0 }
 0x63e   :  { %v13986_v29 = vpop.xlane.xlu1 %5212 }
 0x63f   :  { %5356 = vadd.xlane.f32.xlu0 %v5355_v4  ;;  %v5499_v35 = vsel %vm5168_vm0, %v5384_v51, 0.0 }
 0x640   :  { %v13995_v45 = vpop.xlane.xlu0 %5236  ;;  %5506 = vadd.xlane.f32.xlu1 %v5505_v7  ;;  %v5517_v7 = vsel %vm5168_vm0, %v5390_v6, 0.0 }
 0x642   :  { %v13997_v34 = vpop.xlane.xlu1 %5206 }
 0x643   :  { %5509 = vadd.xlane.f32.xlu0 %v5508_v32  ;;  %v5418_v32 = vmul.f32 %v13960_v58, %v13960_v58 }
 0x644   :  { %v14005_v52 = vpop.xlane.xlu0 %5230  ;;  %5455 = vadd.xlane.f32.xlu1 %v5454_v9  ;;  %v5457_v9 = vsel %vm5168_vm0, %v5370_v26, 0.0 }
 0x645   :  { %v5601_v6 = vsel %vm5168_vm0, %v5418_v32, 0.0 }
 0x646   :  { %v14007_v4 = vpop.xlane.xlu1 %5209 }
 0x647   :  { %5518 = vadd.xlane.f32.xlu0 %v5517_v7  ;;  %v5367_v7 = vmul.f32 %v13503_v46, %v13503_v46 }
 0x648   :  { %v14015_v19 = vpop.xlane.xlu0 %5239  ;;  %5500 = vadd.xlane.f32.xlu1 %v5499_v35  ;;  %v5419_v35 = vmul.f32 %v13957_v15, %v13957_v15 }
 0x649   :  { %v5448_v26 = vsel %vm5168_vm0, %v5367_v7, 0.0 }
 0x64a   :  { %v14017_v49 = vpop.xlane.xlu1 %5467  ;;  %v5604_v31 = vsel %vm5168_vm0, %v5419_v35, 0.0 }
 0x64b   :  { %5458 = vadd.xlane.f32.xlu0 %v5457_v9  ;;  %v5382_v9 = vmul.f32 %v13636_v57, %v13636_v57 }
 0x64c   :  { %v14025_v51 = vpop.xlane.xlu0 %5233  ;;  %5602 = vadd.xlane.f32.xlu1 %v5601_v6  ;;  %v5368_v6 = vmul.f32 %v13530_v60, %v13530_v60 }
 0x64d   :  { %v5493_v55 = vsel %vm5168_vm0, %v5382_v9, 0.0 }
 0x64e   :  { %v5261_v58 = vpop.xlane.xlu1 %5260 }
 0x64f   :  { %5503 = vadd.xlane.f32.xlu0 %v5502_v43  ;;  %v5416_v43 = vmul.f32 %v13924_v8, %v13924_v8  ;;  %v5496_v8 = vsel %vm5168_vm0, %v5383_v41, 0.0 }
 0x650   :  { %v14033_v59 = vpop.xlane.xlu0 %5248  ;;  %5449 = vadd.xlane.f32.xlu1 %v5448_v26  ;;  %v5451_v26 = vsel %vm5168_vm0, %v5368_v6, 0.0 }
 0x651   :  { %v5595_v35 = vsel %vm5168_vm0, %v5416_v43, 0.0 }
 0x652   :  { %v14035_v32 = vpop.xlane.xlu1 %5512 }
 0x653   :  { %5605 = vadd.xlane.f32.xlu0 %v5604_v31  ;;  %v5365_v31 = vmul.f32 %v13500_v10, %v13500_v10 }
 0x654   :  { %v14043_v7 = vpop.xlane.xlu0 %5242  ;;  %5494 = vadd.xlane.f32.xlu1 %v5493_v55  ;;  %v5417_v55 = vmul.f32 %v13935_v3, %v13935_v3 }
 0x655   :  { %v5442_v6 = vsel %vm5168_vm0, %v5365_v31, 0.0 }
 0x656   :  { %v14045_v15 = vpop.xlane.xlu1 %5266  ;;  %v5598_v61 = vsel %vm5168_vm0, %v5417_v55, 0.0 }
 0x657   :  { %5452 = vadd.xlane.f32.xlu0 %v5451_v26  ;;  %v5380_v26 = vmul.f32 %v13581_v27, %v13581_v27 }
 0x658   :  { %v5252_v9 = vpop.xlane.xlu0 %5251  ;;  %5596 = vadd.xlane.f32.xlu1 %v5595_v35  ;;  %v5366_v35 = vmul.f32 %v13492_v42, %v13492_v42 }
 0x659   :  { %v5487_v41 = vsel %vm5168_vm0, %v5380_v26, 0.0 }
 0x65a   :  { %v14053_v57 = vpop.xlane.xlu1 %5272  ;;  %v5445_v27 = vsel %vm5168_vm0, %v5366_v35, 0.0  ;;  %v5415_v35 = vmul.f32 %v13906_v63, %v13906_v63 }
 0x65b   :  { %5497 = vadd.xlane.f32.xlu0 %v5496_v8  ;;  %v5414_v8 = vmul.f32 %v13938_v40, %v13938_v40 }
 0x65c   :  { %v5246_v37 = vpop.xlane.xlu0 %5245  ;;  %5443 = vadd.xlane.f32.xlu1 %v5442_v6  ;;  %v5381_v6 = vmul.f32 %v13601_v25, %v13601_v25 }
 0x65d   :  { %v5589_v55 = vsel %vm5168_vm0, %v5414_v8, 0.0  ;;  %v15799_v8 = vld [vmem:[#allocation51_spill] sm:$0xff] }
 0x65e   :  { %v14061_v43 = vpop.xlane.xlu1 %5521  ;;  %v5378_v40 = vmul.f32 %v15799_v8, %v15799_v8 }
 0x65f   :  { %5599 = vadd.xlane.f32.xlu0 %v5598_v61  ;;  %v5363_v61 = vmul.f32 %v13483_v24, %v13483_v24 }
 0x660   :  { %v5255_v3 = vpop.xlane.xlu0 %5254  ;;  %5488 = vadd.xlane.f32.xlu1 %v5487_v41  ;;  %v5490_v41 = vsel %vm5168_vm0, %v5381_v6, 0.0  ;;  %v15800_v6 = vld [vmem:[#allocation41_spill] sm:$0xff] }
 0x662   :  { %v14069_v31 = vpop.xlane.xlu1 %5527 }
 0x663   :  { %5446 = vadd.xlane.f32.xlu0 %v5445_v27  ;;  %v5436_v27 = vsel %vm5168_vm0, %v5363_v61, 0.0  ;;  %v5412_v61 = vmul.f32 %v13879_v48, %v13879_v48 }
 0x664   :  { %v5264_v1 = vpop.xlane.xlu0 %5263  ;;  %5590 = vadd.xlane.f32.xlu1 %v5589_v55  ;;  %v5364_v55 = vmul.f32 %v15800_v6, %v15800_v6 }
 0x665   :  { %9548 = vmatprep.subr.mxu1 %v5264_v1 }
 0x666   :  { %9549 = vmatpush3.msra.mxu1 %v13932_v0  ;;  %v14078_v26 = vpop.xlane.xlu1 %5278  ;;  %v5592_v0 = vsel %vm5168_vm0, %v5415_v35, 0.0  ;;  %v15802_v35 = vld [vmem:[#allocation38_spill] sm:$0xff] }
 0x667   :  { %5491 = vadd.xlane.f32.xlu0 %v5490_v41  ;;  %9550 = vmatprep.subr.mxu1 %v5261_v58  ;;  %v5481_v58 = vsel %vm5168_vm0, %v5378_v40, 0.0 }
 0x668   :  { %v5258_v25 = vpop.xlane.xlu0 %5257  ;;  %5437 = vadd.xlane.f32.xlu1 %v5436_v27  ;;  %9551 = vmatpush3.msra.mxu1 %v13986_v29  ;;  %v5439_v29 = vsel %vm5168_vm0, %v5364_v55, 0.0  ;;  %v5361_v27 = vmul.f32 %v15802_v35, %v15802_v35 }
 0x669   :  { %9552 = vmatprep.subr.mxu1 %v5258_v25 }
 0x66a   :  { %9553 = vmatpush3.msra.mxu1 %v14007_v4  ;;  %v14088_v1 = vpop.xlane.xlu1 %5533  ;;  %v5583_v4 = vsel %vm5168_vm0, %v5412_v61, 0.0  ;;  %v5430_v55 = vsel %vm5168_vm0, %v5361_v27, 0.0 }
 0x66b   :  { %5593 = vadd.xlane.f32.xlu0 %v5592_v0  ;;  %9554 = vmatprep.subr.mxu1 %v5255_v3  ;;  %v15801_v3 = vld [vmem:[#allocation53_spill] sm:$0xff] }
 0x66c   :  { %v5516_v41 = vpop.xlane.xlu0 %5515  ;;  %5482 = vadd.xlane.f32.xlu1 %v5481_v58  ;;  %9555 = vmatpush3.msra.mxu1 %v13997_v34  ;;  %v5379_v40 = vmul.f32 %v15801_v3, %v15801_v3  ;;  %v5420_v34 = vmul.f32 %v13975_v14, %v13975_v14 }
 0x66d   :  { %9556 = vmatprep.subr.mxu1 %v5252_v9  ;;  %9583 = vmatprep.subr.mxu0 %v5516_v41 }
 0x66e   :  { %9557 = vmatpush3.msra.mxu1 %v13962_v50  ;;  %9584 = vmatpush3.msra.mxu0 %v14017_v49  ;;  %v14099_v25 = vpop.xlane.xlu1 %5284  ;;  %v5484_v9 = vsel %vm5168_vm0, %v5379_v40, 0.0 }
 0x66f   :  { %5440 = vadd.xlane.f32.xlu0 %v5439_v29  ;;  %9558 = vmatprep.subr.mxu1 %v14033_v59  ;;  %v5413_v59 = vmul.f32 %v13887_v18, %v13887_v18 }
 0x670   :  { %9585 = vmatprep.subr.mxu0 %v14035_v32  ;;  %v14109_v50 = vpop.xlane.xlu0 %5269  ;;  %5584 = vadd.xlane.f32.xlu1 %v5583_v4  ;;  %v5607_v32 = vsel %vm5168_vm0, %v5420_v34, 0.0 }
 0x671   :  { %9559 = vmatpush3.msra.mxu1 %v13940_v2  ;;  %9586 = vmatpush3.msra.mxu0 %v13921_v17  ;;  %v15803_v17 = vld [vmem:[#allocation40_spill] sm:$0xff] }
 0x672   :  { %9560 = vmatprep.subr.mxu1 %v5246_v37  ;;  %v14113_v49 = vpop.xlane.xlu1 %5539  ;;  %v5586_v37 = vsel %vm5168_vm0, %v5413_v59, 0.0 }
 0x673   :  { %9561 = vmatpush3.msra.mxu1 %v13977_v39  ;;  %5485 = vadd.xlane.f32.xlu0 %v5484_v9  ;;  %v5362_v39 = vmul.f32 %v15803_v17, %v15803_v17 }
 0x674   :  { %9562 = vmatprep.subr.mxu1 %v14043_v7  ;;  %v14123_v2 = vpop.xlane.xlu0 %5524  ;;  %5608 = vadd.xlane.f32.xlu1 %v5607_v32  ;;  %v15804_v7 = vld [vmem:[#allocation46_spill] sm:$0xff] }
 0x675   :  { %9563 = vmatpush3.msra.mxu1 %v13949_v44  ;;  %v5376_v58 = vmul.f32 %v15804_v7, %v15804_v7 }
 0x676   :  { %9564 = vmatprep.subr.mxu1 %v14015_v19  ;;  %v14131_v0 = vpop.xlane.xlu1 %5290  ;;  %v5433_v19 = vsel %vm5168_vm0, %v5362_v39, 0.0 }
 0x677   :  { %9565 = vmatpush3.msra.mxu1 %v13914_v22  ;;  %5587 = vadd.xlane.f32.xlu0 %v5586_v37  ;;  %v15805_v22 = vld [vmem:[#allocation48_spill] sm:$0xff]  ;;  %v5475_v41 = vsel %vm5168_vm0, %v5376_v58, 0.0  ;;  %v15809_v37 = vld [vmem:[#allocation49_spill] sm:$0xff]  ;;  %v5408_v58 = vmul.f32 %v13844_v36, %v13844_v36 }
 0x678   :  { %9566 = vmatprep.subr.mxu1 %v13995_v45  ;;  %v14137_v44 = vpop.xlane.xlu0 %5275  ;;  %5431 = vadd.xlane.f32.xlu1 %v5430_v55  ;;  %v5377_v61 = vmul.f32 %v15805_v22, %v15805_v22  ;;  %v5410_v45 = vmul.f32 %v13912_v38, %v13912_v38  ;;  %v5375_v39 = vmul.f32 %v15809_v37, %v15809_v37  ;;  %v15624_v55 = vmov 0.0  }
 0x679   :  { %9567 = vmatpush3.msra.mxu1 %v13892_v20 }
 0x67a   :  { %9568 = vmatprep.subr.mxu1 %v14025_v51  ;;  %v14151_v20 = vpop.xlane.xlu1 %5545  ;;  %v5478_v51 = vsel %vm5168_vm0, %v5377_v61, 0.0  ;;  %v5577_v40 = vsel %vm5168_vm0, %v5410_v45, 0.0  ;;  %v5472_v61 = vsel %vm5168_vm0, %v5375_v39, 0.0  ;;  %v5571_v45 = vsel %vm5168_vm0, %v5408_v58, 0.0 }
 0x67b   :  { %9569 = vmatpush3.msra.mxu1 %v13927_v23  ;;  %5434 = vadd.xlane.f32.xlu0 %v5433_v19  ;;  %v5411_v23 = vmul.f32 %v13867_v56, %v13867_v56  ;;  %v5407_v39 = vmul.f32 %v13840_v11, %v13840_v11 }
 0x67c   :  { %9570 = vmatprep.subr.mxu1 %v14005_v52  ;;  %v14149_v29 = vpop.xlane.xlu0 %5530  ;;  %5476 = vadd.xlane.f32.xlu1 %v5475_v41  ;;  %v15806_v52 = vld [vmem:[#allocation39_spill] sm:$0xff]  ;;  %v5409_v41 = vmul.f32 %v13851_v28, %v13851_v28 }
 0x67d   :  { %9571 = vmatpush3.msra.mxu1 %v13899_v47  ;;  %v5359_v4 = vmul.f32 %v15806_v52, %v15806_v52  ;;  %v5580_v47 = vsel %vm5168_vm0, %v5411_v23, 0.0 }
 0x67e   :  { %9572 = vmatprep.subr.mxu1 %v13973_v16  ;;  %v15807_v16 = vld [vmem:[#allocation15_spill] sm:$0xff]  ;;  %v14170_v9 = vpop.xlane.xlu1 %5296 }
 0x67f   :  { %9573 = vmatpush3.msra.mxu1 %v13869_v53  ;;  %5479 = vadd.xlane.f32.xlu0 %v5478_v51  ;;  %v5360_v53 = vmul.f32 %v15807_v16, %v15807_v16  ;;  %v5424_v59 = vsel %vm5168_vm0, %v5359_v4, 0.0  ;;  %v5406_v51 = vmul.f32 %v13890_v54, %v13890_v54  ;;  %v15810_v4 = vld [vmem:[#allocation37_spill] sm:$0xff] }
 0x680   :  { %9574 = vmatprep.subr.mxu1 %v13946_v21  ;;  %v14163_v34 = vpop.xlane.xlu0 %5281  ;;  %5578 = vadd.xlane.f32.xlu1 %v5577_v40  ;;  %v15808_v21 = vld [vmem:[#allocation47_spill] sm:$0xff]  ;;  %v5574_v40 = vsel %vm5168_vm0, %v5409_v41, 0.0 }
 0x681   :  { %9575 = vmatpush3.msra.mxu1 %v13853_v33  ;;  %v5374_v32 = vmul.f32 %v15808_v21, %v15808_v21  ;;  %v14179_v33 = vld [vmem:[%s15546_s14] sm:$0xff]  ;;  %v5427_v27 = vsel %vm5168_vm0, %v5360_v53, 0.0 }
 0x682   :  { %9576 = vmatprep.subr.mxu1 %v13984_v13  ;;  %v14200_v19 = vpop.xlane.xlu1 %5551 }
 0x683   :  { %9577 = vmatpush3.msra.mxu1 %v13882_v5  ;;  %5581 = vadd.xlane.f32.xlu0 %v5580_v47  ;;  %v14187_v5 = vld [vmem:[%s15546_s14 + $0x18] sm:$0xff]  ;;  %v5358_v47 = vmul.f32 %v15810_v4, %v15810_v4 }
 0x684   :  { %9578 = vmatprep.subr.mxu1 %v13955_v12  ;;  %v14182_v13 = vpop.xlane.xlu0 %5536  ;;  %5425 = vadd.xlane.f32.xlu1 %v5424_v59  ;;  %v5469_v12 = vsel %vm5168_vm0, %v5374_v32, 0.0  ;;  %v5565_v59 = vsel %vm5168_vm0, %v5406_v51, 0.0 }
 0x685   :  { %9579 = vmatpush3.msra.mxu1 %v13861_v62 }
 0x686   :  { %5684 = vmatprep.subr.mxu1 %v15624_v55  ;;  %5679 = vmatmul.mubr.f32.vlgmr.msra.gmra.mxu1 %v14179_v33  ;;  %v5303_v53 = vpop.xlane.xlu1 %5302 }
 0x687   :  { %5428 = vadd.xlane.f32.xlu0 %v5427_v27  ;;  %9243 = vmatprep.mubr.msk.f32.mxu1 %vm5610_vm1, %v14187_v5  ;;  %v5421_v27 = vsel %vm5168_vm0, %v5358_v47, 0.0 }
 0x688   :  { %v5288_v62 = vpop.xlane.xlu0 %5287  ;;  %5470 = vadd.xlane.f32.xlu1 %v5469_v12 }
 0x68a   :  { %v14219_v58 = vpop.xlane.xlu1 %5557 }
 0x68b   :  { %5473 = vadd.xlane.f32.xlu0 %v5472_v61  ;;  %v5568_v61 = vsel %vm5168_vm0, %v5407_v39, 0.0 }
 0x68c   :  { %v14208_v23 = vpop.xlane.xlu0 %5542  ;;  %5572 = vadd.xlane.f32.xlu1 %v5571_v45 }
 0x68e   :  { %v5309_v45 = vpop.xlane.xlu1 %5308 }
 0x68f   :  { %5575 = vadd.xlane.f32.xlu0 %v5574_v40 }
 0x690   :  { %v5294_v32 = vpop.xlane.xlu0 %5293  ;;  %5566 = vadd.xlane.f32.xlu1 %v5565_v59 }
 0x692   :  { %v14224_v55 = vpop.xlane.xlu1 %5563 }
 0x693   :  { %5422 = vadd.xlane.f32.xlu0 %v5421_v27  ;;  %v15811_v27 = vmov 0.0  }
 0x694   :  { %v14217_v12 = vpop.xlane.xlu0 %5548 }
 0x696   :  { %v14228_v47 = vpop.xlane.xlu1 %5317 }
 0x697   :  { %5569 = vadd.xlane.f32.xlu0 %v5568_v61 }
 0x698   :  { %v5300_v41 = vpop.xlane.xlu0 %5299 }
 0x69a   :  { %v14234_v39 = vpop.xlane.xlu1 %5323 }
 0x69c   :  { %v14222_v40 = vpop.xlane.xlu0 %5554 }
 0x6a0   :  { %v5306_v51 = vpop.xlane.xlu0 %5305 }
 0x6a1   :  { %v14240_v18 = vpop.xlane.xlu1 %5329 }
 0x6a4   :  { %v14226_v59 = vpop.xlane.xlu0 %5560 }
 0x6a8   :  { %v5312_v14 = vpop.xlane.xlu0 %5311 }
 0x6a9   :  { %5685 = vmatpush1.msra.mxu1 %v5312_v14 }
 0x6aa   :  { %5686 = vmatprep.subr.mxu1 %v15811_v27 }
 0x6ab   :  { %5687 = vmatpush1.msra.mxu1 %v5309_v45  ;;  %v5336_v45 = vpop.xlane.xlu1 %5335 }
 0x6ac   :  { %v14231_v63 = vpop.xlane.xlu0 %5314  ;;  %5688 = vmatprep.subr.mxu1 %v15811_v27 }
 0x6ad   :  { %5689 = vmatpush1.msra.mxu1 %v5306_v51 }
 0x6ae   :  { %5690 = vmatprep.subr.mxu1 %v15811_v27 }
 0x6af   :  { %5691 = vmatpush1.msra.mxu1 %v5303_v53 }
 0x6b0   :  { %v14237_v61 = vpop.xlane.xlu0 %5320  ;;  %5692 = vmatprep.subr.mxu1 %v15811_v27 }
 0x6b1   :  { %5693 = vmatpush1.msra.mxu1 %v5300_v41  ;;  %v5342_v51 = vpop.xlane.xlu1 %5341 }
 0x6b2   :  { %5694 = vmatprep.subr.mxu1 %v15811_v27 }
 0x6b3   :  { %5695 = vmatpush1.msra.mxu1 %v14170_v9 }
 0x6b4   :  { %v14244_v14 = vpop.xlane.xlu0 %5326  ;;  %5696 = vmatprep.subr.mxu1 %v15811_v27 }
 0x6b5   :  { %5697 = vmatpush1.msra.mxu1 %v5294_v32 }
 0x6b6   :  { %5698 = vmatprep.subr.mxu1 %v15811_v27 }
 0x6b7   :  { %5699 = vmatpush1.msra.mxu1 %v14131_v0 }
 0x6b8   :  { %v5333_v53 = vpop.xlane.xlu0 %5332  ;;  %5700 = vmatprep.subr.mxu1 %v15811_v27 }
 0x6b9   :  { %5701 = vmatpush1.msra.mxu1 %v5288_v62  ;;  %v5348_v41 = vpop.xlane.xlu1 %5347 }
 0x6ba   :  { %5702 = vmatprep.subr.mxu1 %v15811_v27 }
 0x6bb   :  { %5703 = vmatpush1.msra.mxu1 %v14099_v25 }
 0x6bc   :  { %v5339_v9 = vpop.xlane.xlu0 %5338  ;;  %5704 = vmatprep.subr.mxu1 %v15811_v27 }
 0x6bd   :  { %5705 = vmatpush1.msra.mxu1 %v14163_v34 }
 0x6be   :  { %5706 = vmatprep.subr.mxu1 %v15811_v27 }
 0x6bf   :  { %5707 = vmatpush1.msra.mxu1 %v14078_v26 }
 0x6c0   :  { %v5345_v0 = vpop.xlane.xlu0 %5344  ;;  %5708 = vmatprep.subr.mxu1 %v15811_v27 }
 0x6c1   :  { %5709 = vmatpush1.msra.mxu1 %v14137_v44  ;;  %v5354_v62 = vpop.xlane.xlu1 %5353 }
 0x6c2   :  { %5710 = vmatprep.subr.mxu1 %v15811_v27 }
 0x6c3   :  { %5711 = vmatpush1.msra.mxu1 %v14053_v57 }
 0x6c4   :  { %v5351_v25 = vpop.xlane.xlu0 %5350  ;;  %5712 = vmatprep.subr.mxu1 %v15811_v27 }
 0x6c5   :  { %5713 = vmatpush1.msra.mxu1 %v14109_v50  ;;  %v5462_v34 = vpop.xlane.xlu1 %5461 }
 0x6c6   :  { %5714 = vmatprep.subr.mxu1 %v15811_v27 }
 0x6c7   :  { %5715 = vmatpush1.msra.mxu1 %v14045_v15 }
 0x6c8   :  { %v5357_v26 = vpop.xlane.xlu0 %5356  ;;  %5718 = vmatprep.subr.mxu1 %v15811_v27 }
 0x6c9   :  { %5719 = vmatpush2.msra.mxu1 %v5357_v26  ;;  %v5507_v44 = vpop.xlane.xlu1 %5506 }
 0x6ca   :  { %5720 = vmatprep.subr.mxu1 %v15811_v27 }
 0x6cb   :  { %5721 = vmatpush2.msra.mxu1 %v5354_v62 }
 0x6cc   :  { %v5510_v32 = vpop.xlane.xlu0 %5509  ;;  %5722 = vmatprep.subr.mxu1 %v15811_v27 }
 0x6cd   :  { %5723 = vmatpush2.msra.mxu1 %v5351_v25  ;;  %9587 = vmatprep.subr.mxu0 %v5510_v32  ;;  %v5456_v57 = vpop.xlane.xlu1 %5455 }
 0x6ce   :  { %5724 = vmatprep.subr.mxu1 %v15811_v27  ;;  %9588 = vmatpush3.msra.mxu0 %v5462_v34 }
 0x6cf   :  { %5725 = vmatpush2.msra.mxu1 %v5348_v41  ;;  %9589 = vmatprep.subr.mxu0 %v5507_v44 }
 0x6d0   :  { %v14268_v15 = vpop.xlane.xlu0 %5518  ;;  %5726 = vmatprep.subr.mxu1 %v15811_v27 }
 0x6d1   :  { %5727 = vmatpush2.msra.mxu1 %v5345_v0  ;;  %v5501_v50 = vpop.xlane.xlu1 %5500 }
 0x6d2   :  { %5728 = vmatprep.subr.mxu1 %v15811_v27 }
 0x6d3   :  { %5729 = vmatpush2.msra.mxu1 %v5342_v51 }
 0x6d4   :  { %v5459_v62 = vpop.xlane.xlu0 %5458  ;;  %5730 = vmatprep.subr.mxu1 %v15811_v27 }
 0x6d5   :  { %5731 = vmatpush2.msra.mxu1 %v5339_v9  ;;  %9590 = vmatpush3.msra.mxu0 %v5459_v62  ;;  %v14273_v25 = vpop.xlane.xlu1 %5602 }
 0x6d6   :  { %5732 = vmatprep.subr.mxu1 %v15811_v27 }
 0x6d7   :  { %5733 = vmatpush2.msra.mxu1 %v5336_v45 }
 0x6d8   :  { %v5504_v41 = vpop.xlane.xlu0 %5503  ;;  %5734 = vmatprep.subr.mxu1 %v15811_v27 }
 0x6d9   :  { %5735 = vmatpush2.msra.mxu1 %v5333_v53  ;;  %9591 = vmatprep.subr.mxu0 %v5504_v41  ;;  %v5450_v0 = vpop.xlane.xlu1 %5449 }
 0x6da   :  { %5736 = vmatprep.subr.mxu1 %v15811_v27  ;;  %9592 = vmatpush3.msra.mxu0 %v5456_v57 }
 0x6db   :  { %5737 = vmatpush2.msra.mxu1 %v14240_v18  ;;  %9593 = vmatprep.subr.mxu0 %v5501_v50 }
 0x6dc   :  { %v14279_v51 = vpop.xlane.xlu0 %5605  ;;  %5738 = vmatprep.subr.mxu1 %v15811_v27 }
 0x6dd   :  { %5739 = vmatpush2.msra.mxu1 %v14244_v14  ;;  %v5495_v9 = vpop.xlane.xlu1 %5494  ;;  %v14295_v14 = vld [vmem:[%s15546_s14 + $0x10] sm:$0xff] }
 0x6de   :  { %5740 = vmatprep.subr.mxu1 %v15811_v27 }
 0x6df   :  { %5741 = vmatpush2.msra.mxu1 %v14234_v39 }
 0x6e0   :  { %v5453_v45 = vpop.xlane.xlu0 %5452  ;;  %5742 = vmatprep.subr.mxu1 %v15811_v27 }
 0x6e1   :  { %5743 = vmatpush2.msra.mxu1 %v14237_v61  ;;  %9594 = vmatpush3.msra.mxu0 %v5453_v45  ;;  %v14287_v53 = vpop.xlane.xlu1 %5596  ;;  %v10970_v45 = vld [vmem:[%s15547_s9 + $0x18] sm:$0xff]  }
 0x6e2   :  { %5744 = vmatprep.subr.mxu1 %v15811_v27 }
 0x6e3   :  { %5745 = vmatpush2.msra.mxu1 %v14228_v47 }
 0x6e4   :  { %v5498_v18 = vpop.xlane.xlu0 %5497  ;;  %5746 = vmatprep.subr.mxu1 %v15811_v27 }
 0x6e5   :  { %5747 = vmatpush2.msra.mxu1 %v14231_v63  ;;  %9595 = vmatprep.subr.mxu0 %v5498_v18  ;;  %v5444_v39 = vpop.xlane.xlu1 %5443 }
 0x6e6   :  { %9596 = vmatpush3.msra.mxu0 %v5450_v0  ;;  %5826 = vmatprep.subr.mxu1 %v15811_v27  ;;  %v10967_v0 = vld [vmem:[%s15547_s9 + $0x30] sm:$0xff]  }
 0x6e7   :  { %5749 = vmatmul.mubr.f32.vlgmr.msra.gmra.mxu1 %v14295_v14  ;;  %9597 = vmatprep.subr.mxu0 %v5495_v9  ;;  %v10969_v9 = vld [vmem:[%s15547_s9 + $0x20] sm:$0xff]  }
 0x6e8   :  { %5827 = vmatpush1.msra.mxu1 %v14224_v55  ;;  %v14301_v47 = vpop.xlane.xlu0 %5599  ;;  %9244 = vmatprep.mubr.msk.f32.mxu1 %vm5610_vm1, %v14187_v5 }
 0x6e9   :  { %5828 = vmatprep.subr.mxu1 %v15811_v27  ;;  %v5489_v61 = vpop.xlane.xlu1 %5488 }
 0x6ea   :  { %5829 = vmatpush1.msra.mxu1 %v14226_v59 }
 0x6eb   :  { %5830 = vmatprep.subr.mxu1 %v15811_v27 }
 0x6ec   :  { %5831 = vmatpush1.msra.mxu1 %v14219_v58  ;;  %v5447_v63 = vpop.xlane.xlu0 %5446 }
 0x6ed   :  { %5832 = vmatprep.subr.mxu1 %v15811_v27  ;;  %9598 = vmatpush3.msra.mxu0 %v5447_v63  ;;  %v14310_v34 = vpop.xlane.xlu1 %5590 }
 0x6ee   :  { %5833 = vmatpush1.msra.mxu1 %v14222_v40 }
 0x6ef   :  { %5834 = vmatprep.subr.mxu1 %v15811_v27 }
 0x6f0   :  { %5835 = vmatpush1.msra.mxu1 %v14200_v19  ;;  %v5492_v5 = vpop.xlane.xlu0 %5491 }
 0x6f1   :  { %5836 = vmatprep.subr.mxu1 %v15811_v27  ;;  %9599 = vmatprep.subr.mxu0 %v5492_v5  ;;  %v5438_v55 = vpop.xlane.xlu1 %5437 }
 0x6f2   :  { %5837 = vmatpush1.msra.mxu1 %v14217_v12  ;;  %9600 = vmatpush3.msra.mxu0 %v5444_v39 }
 0x6f3   :  { %5838 = vmatprep.subr.mxu1 %v15811_v27  ;;  %9601 = vmatprep.subr.mxu0 %v5489_v61 }
 0x6f4   :  { %5839 = vmatpush1.msra.mxu1 %v14151_v20  ;;  %v5594_v58 = vpop.xlane.xlu0 %5593 }
 0x6f5   :  { %5840 = vmatprep.subr.mxu1 %v15811_v27  ;;  %v5483_v40 = vpop.xlane.xlu1 %5482 }
 0x6f6   :  { %5841 = vmatpush1.msra.mxu1 %v14208_v23 }
 0x6f7   :  { %5842 = vmatprep.subr.mxu1 %v15811_v27 }
 0x6f8   :  { %5843 = vmatpush1.msra.mxu1 %v14113_v49  ;;  %v5441_v19 = vpop.xlane.xlu0 %5440 }
 0x6f9   :  { %5844 = vmatprep.subr.mxu1 %v15811_v27  ;;  %9602 = vmatpush3.msra.mxu0 %v5441_v19  ;;  %v5585_v12 = vpop.xlane.xlu1 %5584 }
 0x6fa   :  { %5845 = vmatpush1.msra.mxu1 %v14182_v13 }
 0x6fb   :  { %5846 = vmatprep.subr.mxu1 %v15811_v27 }
 0x6fc   :  { %5847 = vmatpush1.msra.mxu1 %v14088_v1  ;;  %v5486_v20 = vpop.xlane.xlu0 %5485 }
 0x6fd   :  { %5848 = vmatprep.subr.mxu1 %v15811_v27  ;;  %9603 = vmatprep.subr.mxu0 %v5486_v20  ;;  %v5609_v23 = vpop.xlane.xlu1 %5608 }
 0x6fe   :  { %5849 = vmatpush1.msra.mxu1 %v14149_v29  ;;  %9604 = vmatpush3.msra.mxu0 %v5438_v55 }
 0x6ff   :  { %5850 = vmatprep.subr.mxu1 %v15811_v27  ;;  %9605 = vmatprep.subr.mxu0 %v5483_v40 }
 0x700   :  { %5851 = vmatpush1.msra.mxu1 %v14069_v31  ;;  %v5588_v49 = vpop.xlane.xlu0 %5587 }
 0x701   :  { %5852 = vmatprep.subr.mxu1 %v15811_v27  ;;  %v5432_v13 = vpop.xlane.xlu1 %5431 }
 0x702   :  { %5853 = vmatpush1.msra.mxu1 %v14123_v2 }
 0x703   :  { %5854 = vmatprep.subr.mxu1 %v15811_v27 }
 0x704   :  { %5855 = vmatpush1.msra.mxu1 %v14061_v43  ;;  %v5435_v1 = vpop.xlane.xlu0 %5434 }
 0x705   :  { %5856 = vmatprep.subr.mxu1 %v15811_v27  ;;  %9606 = vmatpush3.msra.mxu0 %v5435_v1  ;;  %v5477_v29 = vpop.xlane.xlu1 %5476  ;;  %v5900_v1 = vld [vmem:[%s15548_s3] sm:$0xff] }
 0x706   :  { %5857 = vmatpush1.msra.mxu1 %v14268_v15 }
 0x707   :  { %5860 = vmatprep.subr.mxu1 %v15811_v27 }
 0x708   :  { %5861 = vmatpush2.msra.mxu1 %v5609_v23  ;;  %v5480_v31 = vpop.xlane.xlu0 %5479 }
 0x709   :  { %5862 = vmatprep.subr.mxu1 %v15811_v27  ;;  %9607 = vmatprep.subr.mxu0 %v5480_v31  ;;  %v5579_v2 = vpop.xlane.xlu1 %5578 }
 0x70a   :  { %5863 = vmatpush2.msra.mxu1 %v14279_v51  ;;  %9608 = vmatpush3.msra.mxu0 %v5432_v13  ;;  %v10968_v51 = vld [vmem:[%s15547_s9 + $0x28] sm:$0xff]  }
 0x70b   :  { %5864 = vmatprep.subr.mxu1 %v15811_v27  ;;  %9609 = vmatprep.subr.mxu0 %v5477_v29  ;;  %v10971_v29 = vld [vmem:[%s15547_s9 + $0x10] sm:$0xff]  }
 0x70c   :  { %5865 = vmatpush2.msra.mxu1 %v14273_v25  ;;  %v5582_v43 = vpop.xlane.xlu0 %5581 }
 0x70d   :  { %5866 = vmatprep.subr.mxu1 %v15811_v27  ;;  %v5426_v59 = vpop.xlane.xlu1 %5425 }
 0x70e   :  { %5867 = vmatpush2.msra.mxu1 %v14301_v47 }
 0x70f   :  { %5868 = vmatprep.subr.mxu1 %v15811_v27 }
 0x710   :  { %5869 = vmatpush2.msra.mxu1 %v14287_v53  ;;  %v5429_v26 = vpop.xlane.xlu0 %5428 }
 0x711   :  { %5870 = vmatprep.subr.mxu1 %v15811_v27  ;;  %9610 = vmatpush3.msra.mxu0 %v5429_v26  ;;  %v5471_v32 = vpop.xlane.xlu1 %5470 }
 0x712   :  { %5871 = vmatpush2.msra.mxu1 %v5594_v58 }
 0x713   :  { %5872 = vmatprep.subr.mxu1 %v15811_v27 }
 0x714   :  { %5873 = vmatpush2.msra.mxu1 %v14310_v34  ;;  %v5474_v44 = vpop.xlane.xlu0 %5473 }
 0x715   :  { %5874 = vmatprep.subr.mxu1 %v15811_v27  ;;  %9611 = vmatprep.subr.mxu0 %v5474_v44  ;;  %v5573_v50 = vpop.xlane.xlu1 %5572  ;;  %v10973_v44 = vld [vmem:[%s15547_s9] sm:$0xff]  }
 0x716   :  { %5875 = vmatpush2.msra.mxu1 %v5588_v49  ;;  %9612 = vmatpush3.msra.mxu0 %v5426_v59  ;;  %v10972_v59 = vld [vmem:[%s15547_s9 + $0x8] sm:$0xff]  }
 0x717   :  { %5876 = vmatprep.subr.mxu1 %v15811_v27  ;;  %9613 = vmatprep.subr.mxu0 %v5471_v32 }
 0x718   :  { %5877 = vmatpush2.msra.mxu1 %v5585_v12  ;;  %v5576_v57 = vpop.xlane.xlu0 %5575 }
 0x719   :  { %5878 = vmatprep.subr.mxu1 %v15811_v27  ;;  %v5567_v25 = vpop.xlane.xlu1 %5566 }
 0x71a   :  { %5879 = vmatpush2.msra.mxu1 %v5582_v43  ;;  %v5904_v43 = vld [vmem:[%s15549_s4] sm:$0xff] }
 0x71b   :  { %5880 = vmatprep.subr.mxu1 %v15811_v27 }
 0x71c   :  { %5881 = vmatpush2.msra.mxu1 %v5579_v2  ;;  %v5423_v15 = vpop.xlane.xlu0 %5422 }
 0x71d   :  { %5882 = vmatprep.subr.mxu1 %v15811_v27  ;;  %9614 = vmatpush3.msra.mxu0 %v5423_v15 }
 0x71e   :  { %5883 = vmatpush2.msra.mxu1 %v5576_v57  ;;  %5821 = vmatmul.mubr.f32.vlgmr.msra.gmra.mxu0 %v14179_v33  ;;  %v10966_v33 = vld [vmem:[%s15547_s9 + $0x38] sm:$0x7f]   ;;  %s11106_s9 = smov 116  }
 0x71f   :  { %5884 = vmatprep.subr.mxu1 %v15811_v27  ;;  %9983 = vmatprep.subr.bf16.mxu0 %v15811_v27  ;;  %v6194_v41 = vsel %vm6192_vm2, %v10966_v33, 0 }
 0x720   :  { %5885 = vmatpush2.msra.mxu1 %v5573_v50  ;;  %v5570_v62 = vpop.xlane.xlu0 %5569  ;;  %9984 = vmatpush3.bf16.msra.mxu0 %v6194_v41 }
 0x721   :  { %5886 = vmatprep.subr.mxu1 %v15811_v27  ;;  %9985 = vmatprep.subr.bf16.mxu0 %v15811_v27 }
 0x722   :  { %5887 = vmatpush2.msra.mxu1 %v5570_v62  ;;  %9999 = vmatprep.mubr.msk.bf16.mxu0 %vm11103_vm3, %v15811_v27 }
 0x723   :  { %5888 = vmatprep.subr.mxu1 %v15811_v27 }
 0x724   :  { %5889 = vmatpush2.msra.mxu1 %v5567_v25  ;;  %9986 = vmatpush3.bf16.msra.mxu0 %v10967_v0 }
 0x725   :  { %5891 = vmatmul.mubr.f32.vlgmr.msra.gmra.mxu1 %v14295_v14  ;;  %10043 = vmatprep.subr.bf16.mxu1 %v15811_v27 }
 0x726   :  { %9987 = vmatprep.subr.bf16.mxu0 %v15811_v27  ;;  %10049 = vmatprep.mubr.msk.bf16.mxu1 %vm11103_vm3, %v15811_v27 }
 0x728   :  { %9988 = vmatpush3.bf16.msra.mxu0 %v10968_v51 }
 0x729   :  { %9989 = vmatprep.subr.bf16.mxu0 %v15811_v27 }
 0x72c   :  { %9990 = vmatpush3.bf16.msra.mxu0 %v10969_v9 }
 0x72d   :  { %9991 = vmatprep.subr.bf16.mxu0 %v15811_v27 }
 0x730   :  { %9992 = vmatpush3.bf16.msra.mxu0 %v10970_v45 }
 0x731   :  { %9993 = vmatprep.subr.bf16.mxu0 %v15811_v27 }
 0x734   :  { %9994 = vmatpush3.bf16.msra.mxu0 %v10971_v29 }
 0x735   :  { %9995 = vmatprep.subr.bf16.mxu0 %v15811_v27 }
 0x738   :  { %9996 = vmatpush3.bf16.msra.mxu0 %v10972_v59  ;;  %v15815_v59 = vld [vmem:[#allocation42_spill] sm:$0xff] }
 0x739   :  { %9997 = vmatprep.subr.bf16.mxu0 %v15811_v27 }
 0x73c   :  { %9998 = vmatpush3.bf16.msra.mxu0 %v10973_v44 }
 0x73d   :  { %10093 = vmatprep.subr.bf16.mxu0 %v15811_v27 }
 0x746   :  { %v9580_v53 = vpop.f32.mrf.mxu1 }
 0x748   :  { %v9581_v18 = vpop.f32.mrf.mxu1 }
 0x749   :  { %v9582_v47 = vadd.f32 %v9581_v18, %v9580_v53 }
 0x7a7   :  { %v5750_v14 = vpop.f32.mrf.mxu1 }
 0x7a8   :  { %v5751_v63 = vadd.f32 %v9582_v47, %v5750_v14 }
 0x7a9   :  { %v5752_v39 = vpop.f32.mrf.mxu1 }
 0x7aa   :  { %v5755_v5 = vmul.f32 0.00012597632, %v5751_v63 }
 0x7ac   :  { %v5897_v12 = vmul.f32 %v5755_v5, %v5755_v5 }
 0x7de   :  { %v9615_v61 = vpop.f32.mrf.mxu0 }
 0x7e0   :  { %v9616_v34 = vpop.f32.mrf.mxu0 }
 0x7e1   :  { %v9617_v55 = vadd.f32 %v9616_v34, %v9615_v61 }
 0x7e5   :  { %v5892_v58 = vpop.f32.mrf.mxu1 }
 0x7e6   :  { %v5893_v40 = vadd.f32 %v9617_v55, %v5892_v58  ;;  %v15812_v58 = vld [vmem:[#allocation43_spill] sm:$0xff] }
 0x7e7   :  { %v5894_v19 = vpop.f32.mrf.mxu1 }
 0x7e8   :  { %v5896_v20 = vmul.f32 0.00012597632, %v5893_v40  ;;  %v15813_v19 = vld [vmem:[#allocation45_spill] sm:$0xff] }
 0x7ea   :  { %v5898_v23 = vsub.f32 %v5896_v20, %v5897_v12 }
 0x7ec   :  { %v5899_v49 = vmax.f32 %v5898_v23, 0.0 }
 0x7ee   :  { %v5901_v13 = vadd.f32 1e-05, %v5899_v49  ;;  %v15814_v49 = vld [vmem:[#allocation44_spill] sm:$0xff] }
 0x7f0   :  { %11028 = vrsqrt.f32 %v5901_v13 }
 0x7fd   :  { %v11029_v31 = vpop.eup %11028 }
 0x7fe   :  { %v5903_v2 = vmul.f32 %v11029_v31, %v5900_v1 }
 0x800   :  { %5909 = vperm.xlu0 %10363, %v5903_v2   ;;  %v5905_v26 = vmul.f32 %v5903_v2, %v5755_v5 }
 0x802   :  { %v5906_v32 = vsub.f32 %v5904_v43, %v5905_v26 }
 0x804   :  { %5977 = vperm.xlu1 %10364, %v5906_v32  }
 0x87b   :  { %v14403_v57 = vpop.permute.xlu0 %5909 }
 0x87c   :  { %v5912_v15 = vmul.f32 %v14403_v57, %v15810_v4  ;;  %v5913_v50 = vmul.f32 %v14403_v57, %v15806_v52  ;;  %v5915_v62 = vmul.f32 %v14403_v57, %v15802_v35  ;;  %v5914_v33 = vmul.f32 %v14403_v57, %v15807_v16 }
 0x87d   :  { %v5916_v41 = vmul.f32 %v14403_v57, %v15803_v17  ;;  %v5917_v0 = vmul.f32 %v14403_v57, %v13483_v24  ;;  %v5918_v35 = vmul.f32 %v14403_v57, %v15800_v6  ;;  %v5919_v16 = vmul.f32 %v14403_v57, %v13500_v10 }
 0x87e   :  { %v5921_v17 = vmul.f32 %v14403_v57, %v13503_v46  ;;  %v5922_v24 = vmul.f32 %v14403_v57, %v13530_v60  ;;  %v5920_v46 = vmul.f32 %v14403_v57, %v13492_v42  ;;  %v5923_v34 = vmul.f32 %v14403_v57, %v13556_v30 }
 0x87f   :  { %v14411_v25 = vpop.permute.xlu1 %5977  ;;  %v5924_v40 = vmul.f32 %v14403_v57, %v15812_v58  ;;  %v5925_v12 = vmul.f32 %v14403_v57, %v15813_v19  ;;  %v5927_v42 = vmul.f32 %v14403_v57, %v15814_v49  ;;  %v5928_v30 = vmul.f32 %v14403_v57, %v15808_v21  ;;  %v15822_v19 = vld [vmem:[#allocation16_spill] sm:$0xff]  ;;  %v15823_v49 = vld [vmem:[#allocation22_spill] sm:$0xff] }
 0x880   :  { %v5980_v51 = vadd.f32 %v14411_v25, %v5912_v15  ;;  %v5981_v4 = vadd.f32 %v14411_v25, %v5913_v50  ;;  %v5983_v52 = vadd.f32 %v14411_v25, %v5915_v62  ;;  %v5984_v9 = vadd.f32 %v14411_v25, %v5916_v41 }
 0x881   :  { %v5982_v45 = vadd.f32 %v14411_v25, %v5914_v33  ;;  %v5985_v53 = vadd.f32 %v14411_v25, %v5917_v0  ;;  %v5986_v14 = vadd.f32 %v14411_v25, %v5918_v35  ;;  %v5987_v6 = vadd.f32 %v14411_v25, %v5919_v16 }
 0x882   :  { %v6043_v18 = vmax.f32 %v5980_v51, %v5981_v4  ;;  %v6044_v39 = vmax.f32 %v5983_v52, %v5984_v9  ;;  %v5989_v47 = vadd.f32 %v14411_v25, %v5921_v17  ;;  %v5990_v10 = vadd.f32 %v14411_v25, %v5922_v24  ;;  %v15816_v51 = vld [vmem:[#allocation50_spill] sm:$0xff]  ;;  %v15817_v17 = vld [vmem:[#allocation52_spill] sm:$0xff] }
 0x883   :  { %v6045_v5 = vmax.f32 %v5986_v14, %v5987_v6  ;;  %v5988_v20 = vadd.f32 %v14411_v25, %v5920_v46  ;;  %v5991_v23 = vadd.f32 %v14411_v25, %v5923_v34  ;;  %v5992_v13 = vadd.f32 %v14411_v25, %v5924_v40 }
 0x884   :  { %v6064_v61 = vmax.f32 %v6043_v18, %v5982_v45  ;;  %v6065_v63 = vmax.f32 %v6044_v39, %v5985_v53  ;;  %v6046_v55 = vmax.f32 %v5989_v47, %v5990_v10  ;;  %v5993_v1 = vadd.f32 %v14411_v25, %v5925_v12  ;;  %v15818_v18 = vld [vmem:[#allocation17_spill] sm:$0xff]  ;;  %v15819_v39 = vld [vmem:[#allocation19_spill] sm:$0xff] }
 0x885   :  { %v6066_v29 = vmax.f32 %v6045_v5, %v5988_v20  ;;  %v5995_v2 = vadd.f32 %v14411_v25, %v5927_v42  ;;  %v5996_v43 = vadd.f32 %v14411_v25, %v5928_v30  ;;  %v5926_v26 = vmul.f32 %v14403_v57, %v15815_v59  ;;  %v15826_v59 = vld [vmem:[#allocation25_spill] sm:$0xff] }
 0x886   :  { %v6101_v60 = vpack.c.bf16 %v6065_v63, %v6064_v61  ;;  %v6067_v31 = vmax.f32 %v6046_v55, %v5991_v23  ;;  %v6047_v44 = vmax.f32 %v5992_v13, %v5993_v1  ;;  %v5929_v21 = vmul.f32 %v14403_v57, %v15809_v37  ;;  %v15820_v61 = vld [vmem:[#allocation18_spill] sm:$0xff]  ;;  %v15821_v63 = vld [vmem:[#allocation20_spill] sm:$0xff]  ;;  %v15824_v1 = vld [vmem:[#allocation21_spill] sm:$0xff] }
 0x887   :  { %v6048_v15 = vmax.f32 %v5995_v2, %v5996_v43  ;;  %v5994_v50 = vadd.f32 %v14411_v25, %v5926_v26  ;;  %v5930_v62 = vmul.f32 %v14403_v57, %v15804_v7  ;;  %v5931_v41 = vmul.f32 %v14403_v57, %v15805_v22  ;;  %v15825_v2 = vld [vmem:[#allocation23_spill] sm:$0xff] }
 0x888   :  { %10000 = vmatmul.mubr.msk.bf16.vlgmr.msra.gmra.mxu0 %vm5168_vm0, %v6101_v60  ;;  %v6102_v32 = vpack.c.bf16 %v6067_v31, %v6066_v29  ;;  %v5997_v33 = vadd.f32 %v14411_v25, %v5929_v21  ;;  %v5933_v0 = vmul.f32 %v14403_v57, %v15801_v3  ;;  %v5934_v4 = vmul.f32 %v14403_v57, %v15816_v51 }
 0x889   :  { %10003 = vmatprep.mubr.msk.bf16.mxu0 %vm11103_vm3, %v15811_v27  ;;  %v6068_v37 = vmax.f32 %v6047_v44, %v5994_v50  ;;  %v5998_v52 = vadd.f32 %v14411_v25, %v5930_v62  ;;  %v5999_v35 = vadd.f32 %v14411_v25, %v5931_v41  ;;  %v5932_v22 = vmul.f32 %v14403_v57, %v15799_v8  ;;  %v15827_v44 = vld [vmem:[#allocation26_spill] sm:$0xff] }
 0x88a   :  { %v6069_v7 = vmax.f32 %v6048_v15, %v5997_v33  ;;  %v6001_v9 = vadd.f32 %v14411_v25, %v5933_v0  ;;  %v6002_v16 = vadd.f32 %v14411_v25, %v5934_v4  ;;  %v5935_v24 = vmul.f32 %v14403_v57, %v15817_v17  ;;  %v15828_v0 = vld [vmem:[#allocation24_spill] sm:$0xff] }
 0x88b   :  { %v6049_v45 = vmax.f32 %v5998_v52, %v5999_v35  ;;  %v5936_v14 = vmul.f32 %v14403_v57, %v15818_v18  ;;  %v5937_v6 = vmul.f32 %v14403_v57, %v15819_v39  ;;  %v6000_v47 = vadd.f32 %v14411_v25, %v5932_v22  ;;  %v15831_v22 = vld [vmem:[#allocation2_spill] sm:$0xff] }
 0x88c   :  { %v6103_v3 = vpack.c.bf16 %v6069_v7, %v6068_v37  ;;  %v6050_v53 = vmax.f32 %v6001_v9, %v6002_v16  ;;  %v6003_v10 = vadd.f32 %v14411_v25, %v5935_v24  ;;  %v5939_v8 = vmul.f32 %v14403_v57, %v15820_v61  ;;  %v15829_v37 = vld [vmem:[#allocation27_spill] sm:$0xff]  ;;  %v15833_v18 = vld [vmem:[#allocation6_spill] sm:$0xff] }
 0x88d   :  { %v5940_v46 = vmul.f32 %v14403_v57, %v15821_v63  ;;  %v6004_v60 = vadd.f32 %v14411_v25, %v5936_v14  ;;  %v6005_v34 = vadd.f32 %v14411_v25, %v5937_v6  ;;  %v6070_v5 = vmax.f32 %v6049_v45, %v6000_v47  ;;  %v15830_v9 = vld [vmem:[#allocation3_spill] sm:$0xff]  ;;  %v15832_v45 = vld [vmem:[#allocation5_spill] sm:$0xff]  ;;  %v15834_v63 = vld [vmem:[#allocation4_spill] sm:$0xff] }
 0x88e   :  { %v6071_v55 = vmax.f32 %v6050_v53, %v6003_v10  ;;  %v6007_v58 = vadd.f32 %v14411_v25, %v5939_v8  ;;  %v5938_v12 = vmul.f32 %v14403_v57, %v15822_v19  ;;  %v5941_v42 = vmul.f32 %v14403_v57, %v15823_v49  ;;  %v15836_v19 = vld [vmem:[#allocation8_spill] sm:$0xff] }
 0x88f   :  { %v6008_v40 = vadd.f32 %v14411_v25, %v5940_v46  ;;  %v6051_v20 = vmax.f32 %v6004_v60, %v6005_v34  ;;  %v5942_v29 = vmul.f32 %v14403_v57, %v15824_v1  ;;  %v5943_v43 = vmul.f32 %v14403_v57, %v15825_v2 }
 0x890   :  { %10004 = vmatmul.mubr.msk.bf16.gmra.mxu0 %vm5168_vm0, %v6102_v32  ;;  %v6104_v23 = vpack.c.bf16 %v6071_v55, %v6070_v5  ;;  %v6006_v13 = vadd.f32 %v14411_v25, %v5938_v12  ;;  %v6009_v31 = vadd.f32 %v14411_v25, %v5941_v42  ;;  %v5945_v26 = vmul.f32 %v14403_v57, %v15826_v59  ;;  %v15835_v5 = vld [vmem:[#allocation28_spill] sm:$0xff]  ;;  %v15838_v42 = vld [vmem:[#allocation30_spill] sm:$0xff] }
 0x891   :  { %10007 = vmatprep.mubr.msk.bf16.mxu0 %vm11103_vm3, %v15811_v27  ;;  %v6052_v30 = vmax.f32 %v6007_v58, %v6008_v40  ;;  %v5946_v32 = vmul.f32 %v14403_v57, %v15827_v44  ;;  %v6010_v15 = vadd.f32 %v14411_v25, %v5942_v29  ;;  %v6011_v62 = vadd.f32 %v14411_v25, %v5943_v43  ;;  %v15840_v44 = vld [vmem:[#allocation10_spill] sm:$0xff] }
 0x892   :  { %v6072_v21 = vmax.f32 %v6051_v20, %v6006_v13  ;;  %v6013_v33 = vadd.f32 %v14411_v25, %v5945_v26  ;;  %v5944_v51 = vmul.f32 %v14403_v57, %v15828_v0  ;;  %v5947_v52 = vmul.f32 %v14403_v57, %v15829_v37  ;;  %v15839_v13 = vld [vmem:[#allocation54_spill] sm:$0xff] }
 0x893   :  { %v6073_v50 = vmax.f32 %v6052_v30, %v6009_v31  ;;  %v6014_v41 = vadd.f32 %v14411_v25, %v5946_v32  ;;  %v6053_v7 = vmax.f32 %v6010_v15, %v6011_v62  ;;  %v5948_v16 = vmul.f32 %v14403_v57, %v15830_v9  ;;  %v15841_v15 = vld [vmem:[#allocation55_spill] sm:$0xff] }
 0x894   :  { %v6012_v17 = vadd.f32 %v14411_v25, %v5944_v51  ;;  %v6015_v24 = vadd.f32 %v14411_v25, %v5947_v52  ;;  %v5951_v53 = vmul.f32 %v14403_v57, %v15832_v45  ;;  %v5952_v14 = vmul.f32 %v14403_v57, %v15833_v18  ;;  %v15842_v18 = vld [vmem:[#allocation7_spill] sm:$0xff] }
 0x895   :  { %v6105_v4 = vpack.c.bf16 %v6073_v50, %v6072_v21  ;;  %v6054_v35 = vmax.f32 %v6013_v33, %v6014_v41  ;;  %v6016_v39 = vadd.f32 %v14411_v25, %v5948_v16  ;;  %v5950_v46 = vmul.f32 %v14403_v57, %v15834_v63 }
 0x896   :  { %v6074_v47 = vmax.f32 %v6053_v7, %v6012_v17  ;;  %v6019_v61 = vadd.f32 %v14411_v25, %v5951_v53  ;;  %v6020_v8 = vadd.f32 %v14411_v25, %v5952_v14  ;;  %v5953_v55 = vmul.f32 %v14403_v57, %v15835_v5  ;;  %v15846_v5 = vld [vmem:[#allocation34_spill] sm:$0xff] }
 0x897   :  { %v6075_v10 = vmax.f32 %v6054_v35, %v6015_v24  ;;  %v6018_v40 = vadd.f32 %v14411_v25, %v5950_v46  ;;  %v5954_v12 = vmul.f32 %v14403_v57, %v15836_v19  ;;  %v5957_v30 = vmul.f32 %v14403_v57, %v15838_v42  ;;  %v15845_v46 = vld [vmem:[#allocation13_spill] sm:$0xff] }
 0x898   :  { %10008 = vmatmul.mubr.msk.bf16.gmra.mxu0 %vm5168_vm0, %v6103_v3  ;;  %v5949_v3 = vmul.f32 %v14403_v57, %v15831_v22  ;;  %v6056_v58 = vmax.f32 %v6019_v61, %v6020_v8  ;;  %v6021_v20 = vadd.f32 %v14411_v25, %v5953_v55  ;;  %v5958_v1 = vmul.f32 %v14403_v57, %v15839_v13 }
 0x899   :  { %10011 = vmatprep.mubr.msk.bf16.mxu0 %vm11103_vm3, %v15811_v27  ;;  %v6106_v34 = vpack.c.bf16 %v6075_v10, %v6074_v47  ;;  %v6022_v31 = vadd.f32 %v14411_v25, %v5954_v12  ;;  %v6025_v59 = vadd.f32 %v14411_v25, %v5957_v30  ;;  %v5956_v32 = vmul.f32 %v14403_v57, %v15840_v44 }
 0x89a   :  { %v6017_v6 = vadd.f32 %v14411_v25, %v5949_v3  ;;  %v6077_v2 = vmax.f32 %v6056_v58, %v6021_v20  ;;  %v6026_v26 = vadd.f32 %v14411_v25, %v5958_v1  ;;  %v5959_v50 = vmul.f32 %v14403_v57, %v15841_v15  ;;  %v15847_v20 = vld [vmem:[#allocation11_spill] sm:$0xff] }
 0x89b   :  { %v5960_v41 = vmul.f32 %v14403_v57, %v13890_v54  ;;  %v5961_v0 = vmul.f32 %v14403_v57, %v13840_v11  ;;  %v6024_v51 = vadd.f32 %v14411_v25, %v5956_v32  ;;  %v5963_v37 = vmul.f32 %v14403_v57, %v13851_v28 }
 0x89c   :  { %v6055_v60 = vmax.f32 %v6016_v39, %v6017_v6  ;;  %v6058_v33 = vmax.f32 %v6025_v59, %v6026_v26  ;;  %v5964_v52 = vmul.f32 %v14403_v57, %v13912_v38  ;;  %v5962_v22 = vmul.f32 %v14403_v57, %v13844_v36  ;;  %v15843_v39 = vld [vmem:[#allocation9_spill] sm:$0xff] }
 0x89d   :  { %v6028_v54 = vadd.f32 %v14411_v25, %v5960_v41  ;;  %v6029_v7 = vadd.f32 %v14411_v25, %v5961_v0  ;;  %v6031_v9 = vadd.f32 %v14411_v25, %v5963_v37  ;;  %v5965_v38 = vmul.f32 %v14403_v57, %v13867_v56  ;;  %v15844_v6 = vld [vmem:[#allocation33_spill] sm:$0xff]  ;;  %v10978_v0 = vld [vmem:[%s15550_s5] sm:$0xff]  }
 0x89e   :  { %v6076_v29 = vmax.f32 %v6055_v60, %v6018_v40  ;;  %v6032_v16 = vadd.f32 %v14411_v25, %v5964_v52  ;;  %v6030_v24 = vadd.f32 %v14411_v25, %v5962_v22  ;;  %v5966_v45 = vmul.f32 %v14403_v57, %v13879_v48 }
 0x89f   :  { %v6059_v28 = vmax.f32 %v6028_v54, %v6029_v7  ;;  %v6033_v53 = vadd.f32 %v14411_v25, %v5965_v38  ;;  %v5967_v14 = vmul.f32 %v14403_v57, %v15842_v18  ;;  %v5969_v36 = vmul.f32 %v14403_v57, %v15843_v39 }
 0x8a0   :  { %10012 = vmatmul.mubr.msk.bf16.gmra.mxu0 %vm5168_vm0, %v6104_v23  ;;  %v15837_v23 = vld [vmem:[#allocation29_spill] sm:$0xff]  ;;  %v6107_v21 = vpack.c.bf16 %v6077_v2, %v6076_v29  ;;  %v6060_v17 = vmax.f32 %v6031_v9, %v6032_v16  ;;  %v5970_v47 = vmul.f32 %v14403_v57, %v15844_v6  ;;  %v6034_v10 = vadd.f32 %v14411_v25, %v5966_v45  ;;  %v15849_v2 = vld [vmem:[#allocation32_spill] sm:$0xff] }
 0x8a1   :  { %10015 = vmatprep.mubr.msk.bf16.mxu0 %vm11103_vm3, %v15811_v27  ;;  %v5955_v49 = vmul.f32 %v14403_v57, %v15837_v23  ;;  %v6080_v56 = vmax.f32 %v6059_v28, %v6030_v24  ;;  %v6035_v61 = vadd.f32 %v14411_v25, %v5967_v14  ;;  %v6037_v8 = vadd.f32 %v14411_v25, %v5969_v36 }
 0x8a2   :  { %v6081_v48 = vmax.f32 %v6060_v17, %v6033_v53  ;;  %v6038_v63 = vadd.f32 %v14411_v25, %v5970_v47  ;;  %v5968_v60 = vmul.f32 %v14403_v57, %v15845_v46  ;;  %v5971_v55 = vmul.f32 %v14403_v57, %v15846_v5 }
 0x8a3   :  { %v6023_v43 = vadd.f32 %v14411_v25, %v5955_v49  ;;  %v6061_v58 = vmax.f32 %v6034_v10, %v6035_v61  ;;  %v5972_v23 = vmul.f32 %v14403_v57, %v15847_v20  ;;  %v15848_v49 = vld [vmem:[#allocation36_spill] sm:$0xff]  ;;  %v15850_v52 = vmov 0  }
 0x8a4   :  { %v6062_v40 = vmax.f32 %v6037_v8, %v6038_v63  ;;  %v6036_v19 = vadd.f32 %v14411_v25, %v5968_v60  ;;  %v6039_v12 = vadd.f32 %v14411_v25, %v5971_v55  ;;  %v5973_v42 = vmul.f32 %v14403_v57, %v15848_v49 }
 0x8a5   :  { %v6057_v62 = vmax.f32 %v6022_v31, %v6023_v43  ;;  %v6040_v1 = vadd.f32 %v14411_v25, %v5972_v23  ;;  %v5974_v43 = vmul.f32 %v14403_v57, %v15849_v2  ;;  %v10974_v57 = vld [vmem:[%s15550_s5 + $0x10] sm:$0x1f]  }
 0x8a6   :  { %v6082_v30 = vmax.f32 %v6061_v58, %v6036_v19  ;;  %v6083_v13 = vmax.f32 %v6062_v40, %v6039_v12  ;;  %v6041_v29 = vadd.f32 %v14411_v25, %v5973_v42 }
 0x8a7   :  { %v6078_v11 = vmax.f32 %v6057_v62, %v6024_v51  ;;  %v6042_v26 = vadd.f32 %v14411_v25, %v5974_v43  ;;  %v10977_v62 = vld [vmem:[%s15550_s5 + $0x20] sm:$0xff]   ;;  %v10979_v51 = vld [vmem:[%s15550_s5 + $0x18] sm:$0xff]  }
 0x8a8   :  { %10016 = vmatmul.mubr.msk.bf16.gmra.mxu0 %vm5168_vm0, %v6105_v4  ;;  %v6027_v4 = vadd.f32 %v14411_v25, %v5959_v50  ;;  %v6110_v31 = vpack.c.bf16 %v6083_v13, %v6082_v30  ;;  %v6063_v59 = vmax.f32 %v6040_v1, %v6041_v29  ;;  %v6575_v25 = vsel %vm6573_vm4, %v10974_v57, 0  ;;  %v10976_v50 = vld [vmem:[%s15550_s5 + $0x8] sm:$0xff]  }
 0x8a9   :  { %10019 = vmatprep.mubr.msk.bf16.mxu0 %vm11103_vm3, %v15811_v27  ;;  %10044 = vmatpush3.bf16.msra.mxu1 %v6575_v25 }
 0x8aa   :  { %v6079_v35 = vmax.f32 %v6058_v33, %v6027_v4  ;;  %v6084_v44 = vmax.f32 %v6063_v59, %v6042_v26  ;;  %10045 = vmatprep.subr.bf16.mxu1 %v15811_v27 }
 0x8ac   :  { %v6108_v3 = vpack.c.bf16 %v6079_v35, %v6078_v11  ;;  %v6111_v32 = vpack.c.bf16 %v6084_v44, %v6084_v44 }
 0x8ad   :  { %10046 = vmatpush3.bf16.msra.mxu1 %v10976_v50 }
 0x8ae   :  { %10047 = vmatprep.subr.bf16.mxu1 %v15811_v27 }
 0x8b0   :  { %10020 = vmatmul.mubr.msk.bf16.gmra.mxu0 %vm5168_vm0, %v6106_v34  ;;  %v6109_v34 = vpack.c.bf16 %v6081_v48, %v6080_v56 }
 0x8b1   :  { %10023 = vmatprep.mubr.msk.bf16.mxu0 %vm11103_vm3, %v15811_v27  ;;  %10048 = vmatpush3.bf16.msra.mxu1 %v10978_v0 }
 0x8b2   :  { %6952 = vmatprep.subr.bf16.mxu1 %v15850_v52 }
 0x8b8   :  { %10024 = vmatmul.mubr.msk.bf16.gmra.mxu0 %vm5168_vm0, %v6107_v21  ;;  %v10975_v21 = vld [vmem:[%s15550_s5 + $0x28] sm:$0x1f]  }
 0x8b9   :  { %10027 = vmatprep.mubr.msk.bf16.mxu0 %vm11103_vm3, %v15811_v27  ;;  %v6743_v15 = vsel %vm6573_vm4, %v10975_v21, 0 }
 0x8ba   :  { %10094 = vmatpush3.bf16.msra.mxu0 %v6743_v15 }
 0x8bb   :  { %10095 = vmatprep.subr.bf16.mxu0 %v15811_v27 }
 0x8be   :  { %10096 = vmatpush3.bf16.msra.mxu0 %v10977_v62 }
 0x8bf   :  { %10097 = vmatprep.subr.bf16.mxu0 %v15811_v27 }
 0x8c0   :  { %10028 = vmatmul.mubr.msk.bf16.gmra.mxu0 %vm5168_vm0, %v6108_v3 }
 0x8c1   :  { %10031 = vmatprep.mubr.msk.bf16.mxu0 %vm11103_vm3, %v15811_v27 }
 0x8c2   :  { %10098 = vmatpush3.bf16.msra.mxu0 %v10979_v51  ;;  %v10980_v51 = vld [vmem:[%s15550_s5 + $0x40] sm:$0x1f]  }
 0x8c3   :  { %10143 = vmatprep.subr.bf16.mxu0 %v15811_v27 }
 0x8c8   :  { %10032 = vmatmul.mubr.msk.bf16.gmra.mxu0 %vm5168_vm0, %v6109_v34 }
 0x8c9   :  { %10035 = vmatprep.mubr.msk.bf16.mxu0 %vm11103_vm3, %v15811_v27 }
 0x8d0   :  { %10036 = vmatmul.mubr.msk.bf16.gmra.mxu0 %vm5168_vm0, %v6110_v31 }
 0x8d1   :  { %10039 = vmatprep.mubr.msk.bf16.mxu0 %vm11103_vm3, %v15811_v27 }
 0x8d8   :  { %10040 = vmatmul.mubr.msk.bf16.gmra.mxu0 %vm5168_vm0, %v6111_v32 }
 0x8d9   :  { %10099 = vmatprep.mubr.msk.bf16.mxu0 %vm11103_vm3, %v15811_v27 }
 0x948   :  { %v14647_v33 = vpop.f32.mrf.mxu0 }
 0x94a   :  { %v10001_v41 = vpop.f32.mrf.mxu0 }
 0x94c   :  { %v14655_v4 = vpop.f32.mrf.mxu0 }
 0x94d   :  { %v10365_v37 = vpack.i.bf16 %v14655_v4, %v14647_v33 }
 0x94e   :  { %v10002_v54 = vpop.f32.mrf.mxu0 }
 0x94f   :  { %10366 = vrot.lane.b32.xlu1 %v10365_v37, %s11104_s16 }
 0x950   :  { %v14662_v7 = vpop.f32.mrf.mxu0 }
 0x952   :  { %v10005_v11 = vpop.f32.mrf.mxu0 }
 0x953   :  { %10371 = vrot.lane.b32.xlu1 %v10365_v37, %s11105_s17 }
 0x954   :  { %v14665_v35 = vpop.f32.mrf.mxu0 }
 0x955   :  { %v10375_v9 = vpack.i.bf16 %v14665_v35, %v14662_v7 }
 0x956   :  { %v10006_v16 = vpop.f32.mrf.mxu0 }
 0x957   :  { %10376 = vrot.lane.b32.xlu1 %v10375_v9, %s11104_s16 }
 0x958   :  { %v14670_v22 = vpop.f32.mrf.mxu0 }
 0x95a   :  { %v10009_v28 = vpop.f32.mrf.mxu0 }
 0x95b   :  { %10381 = vrot.lane.b32.xlu1 %v10375_v9, %s11105_s17 }
 0x95c   :  { %v14673_v3 = vpop.f32.mrf.mxu0 }
 0x95d   :  { %v10385_v38 = vpack.i.bf16 %v14673_v3, %v14670_v22 }
 0x95e   :  { %v10010_v17 = vpop.f32.mrf.mxu0 }
 0x95f   :  { %10386 = vrot.lane.b32.xlu1 %v10385_v38, %s11104_s16 }
 0x960   :  { %v14678_v24 = vpop.f32.mrf.mxu0 }
 0x962   :  { %v10013_v45 = vpop.f32.mrf.mxu0 }
 0x963   :  { %10391 = vrot.lane.b32.xlu1 %v10385_v38, %s11105_s17  ;;  %v7186_v38 = vsel %vm6573_vm4, %v10980_v51, 0 }
 0x964   :  { %v14681_v53 = vpop.f32.mrf.mxu0 }
 0x965   :  { %v10400_v18 = vpack.i.bf16 %v14681_v53, %v14678_v24 }
 0x966   :  { %v10014_v14 = vpop.f32.mrf.mxu0 }
 0x967   :  { %10401 = vrot.lane.b32.xlu0 %v10400_v18, %s11105_s17  ;;  %10396 = vrot.lane.b32.xlu1 %v10400_v18, %s11104_s16  ;;  %v10981_v14 = vld [vmem:[%s15550_s5 + $0x38] sm:$0xff]  }
 0x968   :  { %v14687_v39 = vpop.f32.mrf.mxu0 }
 0x96a   :  { %v10017_v36 = vpop.f32.mrf.mxu0 }
 0x96c   :  { %v14689_v6 = vpop.f32.mrf.mxu0 }
 0x96d   :  { %v10410_v47 = vpack.i.bf16 %v14689_v6, %v14687_v39 }
 0x96e   :  { %v10018_v56 = vpop.f32.mrf.mxu0 }
 0x96f   :  { %10411 = vrot.lane.b32.xlu0 %v10410_v47, %s11105_s17  ;;  %10406 = vrot.lane.b32.xlu1 %v10410_v47, %s11104_s16 }
 0x970   :  { %v14695_v10 = vpop.f32.mrf.mxu0 }
 0x972   :  { %v10021_v48 = vpop.f32.mrf.mxu0 }
 0x974   :  { %v14697_v61 = vpop.f32.mrf.mxu0 }
 0x975   :  { %v10420_v8 = vpack.i.bf16 %v14697_v61, %v14695_v10 }
 0x976   :  { %v10022_v63 = vpop.f32.mrf.mxu0 }
 0x977   :  { %10421 = vrot.lane.b32.xlu0 %v10420_v8, %s11105_s17  ;;  %10416 = vrot.lane.b32.xlu1 %v10420_v8, %s11104_s16 }
 0x978   :  { %v14703_v46 = vpop.f32.mrf.mxu0 }
 0x97a   :  { %v10025_v60 = vpop.f32.mrf.mxu0 }
 0x97c   :  { %v14705_v34 = vpop.f32.mrf.mxu0 }
 0x97d   :  { %v10430_v5 = vpack.i.bf16 %v14705_v34, %v14703_v46 }
 0x97e   :  { %v10026_v55 = vpop.f32.mrf.mxu0 }
 0x97f   :  { %10431 = vrot.lane.b32.xlu0 %v10430_v5, %s11105_s17  ;;  %10426 = vrot.lane.b32.xlu1 %v10430_v5, %s11104_s16 }
 0x980   :  { %v14711_v58 = vpop.f32.mrf.mxu0 }
 0x982   :  { %v10029_v40 = vpop.f32.mrf.mxu0 }
 0x984   :  { %v14713_v19 = vpop.f32.mrf.mxu0 }
 0x985   :  { %v10440_v12 = vpack.i.bf16 %v14713_v19, %v14711_v58 }
 0x986   :  { %v10030_v20 = vpop.f32.mrf.mxu0 }
 0x987   :  { %10441 = vrot.lane.b32.xlu0 %v10440_v12, %s11105_s17  ;;  %10436 = vrot.lane.b32.xlu1 %v10440_v12, %s11104_s16 }
 0x988   :  { %v14719_v23 = vpop.f32.mrf.mxu0 }
 0x98a   :  { %v10033_v49 = vpop.f32.mrf.mxu0 }
 0x98c   :  { %v14721_v42 = vpop.f32.mrf.mxu0 }
 0x98d   :  { %v10450_v30 = vpack.i.bf16 %v14721_v42, %v14719_v23 }
 0x98e   :  { %v10034_v13 = vpop.f32.mrf.mxu0 }
 0x98f   :  { %10451 = vrot.lane.b32.xlu0 %v10450_v30, %s11105_s17  ;;  %10446 = vrot.lane.b32.xlu1 %v10450_v30, %s11104_s16 }
 0x990   :  { %v14727_v1 = vpop.f32.mrf.mxu0 }
 0x992   :  { %v10037_v29 = vpop.f32.mrf.mxu0 }
 0x994   :  { %v14729_v31 = vpop.f32.mrf.mxu0 }
 0x995   :  { %v10460_v2 = vpack.i.bf16 %v14729_v31, %v14727_v1 }
 0x996   :  { %v10038_v43 = vpop.f32.mrf.mxu0 }
 0x997   :  { %10461 = vrot.lane.b32.xlu0 %v10460_v2, %s11105_s17  ;;  %10456 = vrot.lane.b32.xlu1 %v10460_v2, %s11104_s16 }
 0x998   :  { %v14735_v59 = vpop.f32.mrf.mxu0 }
 0x99a   :  { %v10041_v26 = vpop.f32.mrf.mxu0 }
 0x99b   :  { %6461 = vrot.lane.b32.xlu0 %v14735_v59, %s11105_s17  ;;  %6377 = vrot.lane.b32.xlu1 %v14735_v59, %s11104_s16 }
 0x99c   :  { %v6313_v44 = vpop.f32.mrf.mxu0 }
 0x99e   :  { %v10042_v32 = vpop.f32.mrf.mxu0 }
 0x9c1   :  { %v10367_v57 = vpop.permute.xlu1 %10366 }
 0x9c2   :  { %v10369_v21 = vunpack.i.h.bf16 %v10367_v57  ;;  %v10368_v25 = vunpack.i.l.bf16 %v10367_v57 }
 0x9c4   :  { %v6401_v50 = vmax.f32 %v14655_v4, %v10369_v21  ;;  %v6400_v62 = vmax.f32 %v14647_v33, %v10368_v25 }
 0x9c5   :  { %v10372_v15 = vpop.permute.xlu1 %10371 }
 0x9c6   :  { %v10374_v41 = vunpack.i.h.bf16 %v10372_v15  ;;  %v10373_v0 = vunpack.i.l.bf16 %v10372_v15 }
 0x9c8   :  { %v6484_v37 = vmax.f32 %v6400_v62, %v10373_v0  ;;  %v6485_v54 = vmax.f32 %v6401_v50, %v10374_v41 }
 0x9c9   :  { %v10377_v11 = vpop.permute.xlu1 %10376 }
 0x9ca   :  { %v14746_v9 = vpack.c.bf16 %v6485_v54, %v6484_v37  ;;  %v10379_v16 = vunpack.i.h.bf16 %v10377_v11  ;;  %v10378_v28 = vunpack.i.l.bf16 %v10377_v11 }
 0x9cc   :  { %10050 = vmatmul.mubr.msk.bf16.vlgmr.msra.gmra.mxu1 %vm6539_vm5, %v14746_v9  ;;  %10100 = vmatmul.mubr.msk.bf16.vlgmr.msra.gmra.mxu0 %vm6539_vm5, %v14746_v9  ;;  %v6403_v4 = vmax.f32 %v14665_v35, %v10379_v16  ;;  %v6402_v17 = vmax.f32 %v14662_v7, %v10378_v28  ;;  %v10982_v7 = vld [vmem:[%s15550_s5 + $0x30] sm:$0xff]  }
 0x9cd   :  { %v10382_v33 = vpop.permute.xlu1 %10381  ;;  %10053 = vmatprep.mubr.msk.bf16.mxu1 %vm11103_vm3, %v15811_v27  ;;  %10103 = vmatprep.mubr.msk.bf16.mxu0 %vm11103_vm3, %v15811_v27 }
 0x9ce   :  { %v10384_v45 = vunpack.i.h.bf16 %v10382_v33  ;;  %v10383_v18 = vunpack.i.l.bf16 %v10382_v33  ;;  %10144 = vmatpush3.bf16.msra.mxu0 %v7186_v38 }
 0x9cf   :  { %10145 = vmatprep.subr.bf16.mxu0 %v15811_v27 }
 0x9d0   :  { %v6486_v36 = vmax.f32 %v6402_v17, %v10383_v18  ;;  %v6487_v47 = vmax.f32 %v6403_v4, %v10384_v45 }
 0x9d1   :  { %v10387_v56 = vpop.permute.xlu1 %10386 }
 0x9d2   :  { %v14763_v48 = vpack.c.bf16 %v6487_v47, %v6486_v36  ;;  %v10389_v8 = vunpack.i.h.bf16 %v10387_v56  ;;  %v10388_v63 = vunpack.i.l.bf16 %v10387_v56  ;;  %10146 = vmatpush3.bf16.msra.mxu0 %v10981_v14 }
 0x9d3   :  { %10147 = vmatprep.subr.bf16.mxu0 %v15811_v27 }
 0x9d4   :  { %10054 = vmatmul.mubr.msk.bf16.gmra.mxu1 %vm6539_vm5, %v14763_v48  ;;  %10104 = vmatmul.mubr.msk.bf16.gmra.mxu0 %vm6539_vm5, %v14763_v48  ;;  %v6405_v60 = vmax.f32 %v14673_v3, %v10389_v8  ;;  %v6404_v5 = vmax.f32 %v14670_v22, %v10388_v63 }
 0x9d5   :  { %v10392_v35 = vpop.permute.xlu1 %10391  ;;  %10057 = vmatprep.mubr.msk.bf16.mxu1 %vm11103_vm3, %v15811_v27  ;;  %10107 = vmatprep.mubr.msk.bf16.mxu0 %vm11103_vm3, %v15811_v27 }
 0x9d6   :  { %v10394_v55 = vunpack.i.h.bf16 %v10392_v35  ;;  %v10393_v40 = vunpack.i.l.bf16 %v10392_v35  ;;  %10148 = vmatpush3.bf16.msra.mxu0 %v10982_v7 }
 0x9d7   :  { %10216 = vmatprep.subr.mxu0 %v15811_v27 }
 0x9d8   :  { %v6488_v12 = vmax.f32 %v6404_v5, %v10393_v40  ;;  %v6489_v20 = vmax.f32 %v6405_v60, %v10394_v55 }
 0x9d9   :  { %v10402_v49 = vpop.permute.xlu0 %10401  ;;  %v10397_v30 = vpop.permute.xlu1 %10396 }
 0x9da   :  { %v14780_v13 = vpack.c.bf16 %v6489_v20, %v6488_v12  ;;  %v10399_v29 = vunpack.i.h.bf16 %v10397_v30  ;;  %v10398_v2 = vunpack.i.l.bf16 %v10397_v30  ;;  %v10404_v43 = vunpack.i.h.bf16 %v10402_v49 }
 0x9db   :  { %v10403_v22 = vunpack.i.l.bf16 %v10402_v49 }
 0x9dc   :  { %v6407_v26 = vmax.f32 %v14681_v53, %v10399_v29  ;;  %10058 = vmatmul.mubr.msk.bf16.gmra.mxu1 %vm6539_vm5, %v14780_v13  ;;  %10108 = vmatmul.mubr.msk.bf16.gmra.mxu0 %vm6539_vm5, %v14780_v13  ;;  %v6406_v3 = vmax.f32 %v14678_v24, %v10398_v2 }
 0x9dd   :  { %10061 = vmatprep.mubr.msk.bf16.mxu1 %vm11103_vm3, %v15811_v27  ;;  %10111 = vmatprep.mubr.msk.bf16.mxu0 %vm11103_vm3, %v15811_v27 }
 0x9de   :  { %v6491_v44 = vmax.f32 %v6407_v26, %v10404_v43  ;;  %v6490_v32 = vmax.f32 %v6406_v3, %v10403_v22 }
 0x9e0   :  { %v14792_v53 = vpack.c.bf16 %v6491_v44, %v6490_v32 }
 0x9e1   :  { %v10412_v57 = vpop.permute.xlu0 %10411  ;;  %v10407_v21 = vpop.permute.xlu1 %10406 }
 0x9e2   :  { %v10409_v25 = vunpack.i.h.bf16 %v10407_v21  ;;  %v10408_v15 = vunpack.i.l.bf16 %v10407_v21  ;;  %v10414_v50 = vunpack.i.h.bf16 %v10412_v57  ;;  %v10413_v62 = vunpack.i.l.bf16 %v10412_v57 }
 0x9e4   :  { %v6409_v41 = vmax.f32 %v14689_v6, %v10409_v25  ;;  %v6408_v24 = vmax.f32 %v14687_v39, %v10408_v15  ;;  %10062 = vmatmul.mubr.msk.bf16.gmra.mxu1 %vm6539_vm5, %v14792_v53  ;;  %10112 = vmatmul.mubr.msk.bf16.gmra.mxu0 %vm6539_vm5, %v14792_v53 }
 0x9e5   :  { %10065 = vmatprep.mubr.msk.bf16.mxu1 %vm11103_vm3, %v15811_v27  ;;  %10115 = vmatprep.mubr.msk.bf16.mxu0 %vm11103_vm3, %v15811_v27 }
 0x9e6   :  { %v6493_v0 = vmax.f32 %v6409_v41, %v10414_v50  ;;  %v6492_v51 = vmax.f32 %v6408_v24, %v10413_v62 }
 0x9e8   :  { %v14804_v11 = vpack.c.bf16 %v6493_v0, %v6492_v51 }
 0x9e9   :  { %v10422_v37 = vpop.permute.xlu0 %10421  ;;  %v10417_v54 = vpop.permute.xlu1 %10416 }
 0x9ea   :  { %v10419_v6 = vunpack.i.h.bf16 %v10417_v54  ;;  %v10418_v39 = vunpack.i.l.bf16 %v10417_v54  ;;  %v10424_v16 = vunpack.i.h.bf16 %v10422_v37  ;;  %v10423_v28 = vunpack.i.l.bf16 %v10422_v37 }
 0x9ec   :  { %v6411_v38 = vmax.f32 %v14697_v61, %v10419_v6  ;;  %v6410_v33 = vmax.f32 %v14695_v10, %v10418_v39  ;;  %10066 = vmatmul.mubr.msk.bf16.gmra.mxu1 %vm6539_vm5, %v14804_v11  ;;  %10116 = vmatmul.mubr.msk.bf16.gmra.mxu0 %vm6539_vm5, %v14804_v11 }
 0x9ed   :  { %10069 = vmatprep.mubr.msk.bf16.mxu1 %vm11103_vm3, %v15811_v27  ;;  %10119 = vmatprep.mubr.msk.bf16.mxu0 %vm11103_vm3, %v15811_v27 }
 0x9ee   :  { %v6495_v4 = vmax.f32 %v6411_v38, %v10424_v16  ;;  %v6494_v17 = vmax.f32 %v6410_v33, %v10423_v28 }
 0x9f0   :  { %v14816_v14 = vpack.c.bf16 %v6495_v4, %v6494_v17 }
 0x9f1   :  { %v10432_v45 = vpop.permute.xlu0 %10431  ;;  %v10427_v18 = vpop.permute.xlu1 %10426 }
 0x9f2   :  { %v10429_v61 = vunpack.i.h.bf16 %v10427_v18  ;;  %v10428_v10 = vunpack.i.l.bf16 %v10427_v18  ;;  %v10434_v36 = vunpack.i.h.bf16 %v10432_v45  ;;  %v10433_v47 = vunpack.i.l.bf16 %v10432_v45 }
 0x9f4   :  { %v6413_v56 = vmax.f32 %v14705_v34, %v10429_v61  ;;  %v6412_v8 = vmax.f32 %v14703_v46, %v10428_v10  ;;  %10070 = vmatmul.mubr.msk.bf16.gmra.mxu1 %vm6539_vm5, %v14816_v14  ;;  %10120 = vmatmul.mubr.msk.bf16.gmra.mxu0 %vm6539_vm5, %v14816_v14 }
 0x9f5   :  { %10073 = vmatprep.mubr.msk.bf16.mxu1 %vm11103_vm3, %v15811_v27  ;;  %10123 = vmatprep.mubr.msk.bf16.mxu0 %vm11103_vm3, %v15811_v27 }
 0x9f6   :  { %v6497_v63 = vmax.f32 %v6413_v56, %v10434_v36  ;;  %v6496_v7 = vmax.f32 %v6412_v8, %v10433_v47 }
 0x9f8   :  { %v14828_v5 = vpack.c.bf16 %v6497_v63, %v6496_v7 }
 0x9f9   :  { %v10442_v35 = vpop.permute.xlu0 %10441  ;;  %v10437_v60 = vpop.permute.xlu1 %10436 }
 0x9fa   :  { %v10439_v34 = vunpack.i.h.bf16 %v10437_v60  ;;  %v10438_v46 = vunpack.i.l.bf16 %v10437_v60  ;;  %v10444_v55 = vunpack.i.h.bf16 %v10442_v35  ;;  %v10443_v40 = vunpack.i.l.bf16 %v10442_v35 }
 0x9fc   :  { %v6415_v12 = vmax.f32 %v14713_v19, %v10439_v34  ;;  %v6414_v20 = vmax.f32 %v14711_v58, %v10438_v46  ;;  %10074 = vmatmul.mubr.msk.bf16.gmra.mxu1 %vm6539_vm5, %v14828_v5  ;;  %10124 = vmatmul.mubr.msk.bf16.gmra.mxu0 %vm6539_vm5, %v14828_v5 }
 0x9fd   :  { %10077 = vmatprep.mubr.msk.bf16.mxu1 %vm11103_vm3, %v15811_v27  ;;  %10127 = vmatprep.mubr.msk.bf16.mxu0 %vm11103_vm3, %v15811_v27 }
 0x9fe   :  { %v6499_v49 = vmax.f32 %v6415_v12, %v10444_v55  ;;  %v6498_v30 = vmax.f32 %v6414_v20, %v10443_v40 }
 0xa00   :  { %v6512_v43 = vpack.c.bf16 %v6499_v49, %v6498_v30 }
 0xa01   :  { %v10452_v29 = vpop.permute.xlu0 %10451  ;;  %v10447_v2 = vpop.permute.xlu1 %10446 }
 0xa02   :  { %v10449_v19 = vunpack.i.h.bf16 %v10447_v2  ;;  %v10448_v26 = vunpack.i.l.bf16 %v10447_v2  ;;  %v10454_v58 = vunpack.i.h.bf16 %v10452_v29  ;;  %v10453_v22 = vunpack.i.l.bf16 %v10452_v29 }
 0xa04   :  { %v6417_v3 = vmax.f32 %v14721_v42, %v10449_v19  ;;  %v6416_v44 = vmax.f32 %v14719_v23, %v10448_v26  ;;  %10078 = vmatmul.mubr.msk.bf16.gmra.mxu1 %vm6539_vm5, %v6512_v43  ;;  %10128 = vmatmul.mubr.msk.bf16.gmra.mxu0 %vm6539_vm5, %v6512_v43 }
 0xa05   :  { %10081 = vmatprep.mubr.msk.bf16.mxu1 %vm11103_vm3, %v15811_v27  ;;  %10131 = vmatprep.mubr.msk.bf16.mxu0 %vm11103_vm3, %v15811_v27 }
 0xa06   :  { %v6501_v32 = vmax.f32 %v6417_v3, %v10454_v58  ;;  %v6500_v57 = vmax.f32 %v6416_v44, %v10453_v22 }
 0xa08   :  { %v6513_v15 = vpack.c.bf16 %v6501_v32, %v6500_v57 }
 0xa09   :  { %v10462_v21 = vpop.permute.xlu0 %10461  ;;  %v10457_v25 = vpop.permute.xlu1 %10456 }
 0xa0a   :  { %v10459_v50 = vunpack.i.h.bf16 %v10457_v25  ;;  %v10458_v62 = vunpack.i.l.bf16 %v10457_v25  ;;  %v10464_v42 = vunpack.i.h.bf16 %v10462_v21  ;;  %v10463_v41 = vunpack.i.l.bf16 %v10462_v21 }
 0xa0c   :  { %v6419_v23 = vmax.f32 %v14729_v31, %v10459_v50  ;;  %v6418_v24 = vmax.f32 %v14727_v1, %v10458_v62  ;;  %10082 = vmatmul.mubr.msk.bf16.gmra.mxu1 %vm6539_vm5, %v6513_v15  ;;  %10132 = vmatmul.mubr.msk.bf16.gmra.mxu0 %vm6539_vm5, %v6513_v15 }
 0xa0d   :  { %10085 = vmatprep.mubr.msk.bf16.mxu1 %vm11103_vm3, %v15811_v27  ;;  %10135 = vmatprep.mubr.msk.bf16.mxu0 %vm11103_vm3, %v15811_v27  ;;  %v6378_v37 = vpop.permute.xlu1 %6377  ;;  %v6462_v1 = vpop.permute.xlu0 %6461 }
 0xa0e   :  { %v6503_v0 = vmax.f32 %v6419_v23, %v10464_v42  ;;  %v6502_v51 = vmax.f32 %v6418_v24, %v10463_v41  ;;  %v6420_v6 = vmax.f32 %v14735_v59, %v6378_v37  ;;  %v10985_v59 = vld [vmem:[%s15551_s6 + $0x54] ss:$8 sps:$4 sm:$0xff]  }
 0xa10   :  { %v6514_v54 = vpack.c.bf16 %v6503_v0, %v6502_v51  ;;  %v6504_v31 = vmax.f32 %v6420_v6, %v6462_v1 }
 0xa12   :  { %v6515_v39 = vpack.c.bf16 %v6504_v31, %v6504_v31 }
 0xa14   :  { %10086 = vmatmul.mubr.msk.bf16.gmra.mxu1 %vm6539_vm5, %v6514_v54  ;;  %10136 = vmatmul.mubr.msk.bf16.gmra.mxu0 %vm6539_vm5, %v6514_v54 }
 0xa15   :  { %10089 = vmatprep.mubr.msk.bf16.mxu1 %vm11103_vm3, %v15811_v27  ;;  %10139 = vmatprep.mubr.msk.bf16.mxu0 %vm11103_vm3, %v15811_v27 }
 0xa1c   :  { %10090 = vmatmul.mubr.msk.bf16.gmra.mxu1 %vm6539_vm5, %v6515_v39  ;;  %10140 = vmatmul.mubr.msk.bf16.gmra.mxu0 %vm6539_vm5, %v6515_v39 }
 0xa1d   :  { %10149 = vmatprep.mubr.msk.bf16.mxu0 %vm11103_vm3, %v15811_v27  ;;  %9318 = vmatprep.mubr.msk.bf16.mxu1 %vm6932_vm6, %v10985_v59 }
 0xa24   :  { %10150 = vmatmul.mubr.msk.bf16.vlgmr.msra.gmra.mxu0 %vm6539_vm5, %v14746_v9 }
 0xa25   :  { %10153 = vmatprep.mubr.msk.bf16.mxu0 %vm11103_vm3, %v15811_v27 }
 0xa2c   :  { %10154 = vmatmul.mubr.msk.bf16.gmra.mxu0 %vm6539_vm5, %v14763_v48 }
 0xa2d   :  { %10157 = vmatprep.mubr.msk.bf16.mxu0 %vm11103_vm3, %v15811_v27 }
 0xa34   :  { %10158 = vmatmul.mubr.msk.bf16.gmra.mxu0 %vm6539_vm5, %v14780_v13 }
 0xa35   :  { %10161 = vmatprep.mubr.msk.bf16.mxu0 %vm11103_vm3, %v15811_v27 }
 0xa3c   :  { %10162 = vmatmul.mubr.msk.bf16.gmra.mxu0 %vm6539_vm5, %v14792_v53 }
 0xa3d   :  { %10165 = vmatprep.mubr.msk.bf16.mxu0 %vm11103_vm3, %v15811_v27 }
 0xa44   :  { %10166 = vmatmul.mubr.msk.bf16.gmra.mxu0 %vm6539_vm5, %v14804_v11 }
 0xa45   :  { %10169 = vmatprep.mubr.msk.bf16.mxu0 %vm11103_vm3, %v15811_v27 }
 0xa4c   :  { %10170 = vmatmul.mubr.msk.bf16.gmra.mxu0 %vm6539_vm5, %v14816_v14 }
 0xa4d   :  { %10173 = vmatprep.mubr.msk.bf16.mxu0 %vm11103_vm3, %v15811_v27 }
 0xa54   :  { %10174 = vmatmul.mubr.msk.bf16.gmra.mxu0 %vm6539_vm5, %v14828_v5 }
 0xa55   :  { %10177 = vmatprep.mubr.msk.bf16.mxu0 %vm11103_vm3, %v15811_v27 }
 0xa5c   :  { %10178 = vmatmul.mubr.msk.bf16.gmra.mxu0 %vm6539_vm5, %v6512_v43 }
 0xa5d   :  { %10181 = vmatprep.mubr.msk.bf16.mxu0 %vm11103_vm3, %v15811_v27 }
 0xa64   :  { %10182 = vmatmul.mubr.msk.bf16.gmra.mxu0 %vm6539_vm5, %v6513_v15 }
 0xa65   :  { %10185 = vmatprep.mubr.msk.bf16.mxu0 %vm11103_vm3, %v15811_v27 }
 0xa6c   :  { %10186 = vmatmul.mubr.msk.bf16.gmra.mxu0 %vm6539_vm5, %v6514_v54 }
 0xa6d   :  { %10189 = vmatprep.mubr.msk.bf16.mxu0 %vm11103_vm3, %v15811_v27 }
 0xa74   :  { %10190 = vmatmul.mubr.msk.bf16.gmra.mxu0 %vm6539_vm5, %v6515_v39 }
 0xa75   :  { %10236 = vmatprep.mubr.msk.f32.mxu0 %vm11103_vm3, %v15811_v27 }
 0xa8c   :  { %v14911_v9 = vpop.f32.mrf.mxu1  ;;  %v14913_v48 = vpop.f32.mrf.mxu0 }
 0xa8e   :  { %v10051_v13 = vpop.f32.mrf.mxu1  ;;  %v10101_v53 = vpop.f32.mrf.mxu0 }
 0xa90   :  { %v14915_v11 = vpop.f32.mrf.mxu1  ;;  %v14917_v16 = vpop.f32.mrf.mxu0 }
 0xa91   :  { %v6697_v28 = vpack.c.bf16 %v14915_v11, %v14911_v9  ;;  %v6865_v38 = vpack.c.bf16 %v14917_v16, %v14913_v48 }
 0xa92   :  { %v10052_v33 = vpop.f32.mrf.mxu1  ;;  %v10102_v4 = vpop.f32.mrf.mxu0 }
 0xa94   :  { %v14923_v17 = vpop.f32.mrf.mxu1  ;;  %v14925_v45 = vpop.f32.mrf.mxu0 }
 0xa96   :  { %v10055_v18 = vpop.f32.mrf.mxu1  ;;  %v10105_v14 = vpop.f32.mrf.mxu0 }
 0xa98   :  { %v14927_v61 = vpop.f32.mrf.mxu1  ;;  %v14929_v10 = vpop.f32.mrf.mxu0 }
 0xa99   :  { %v6698_v36 = vpack.c.bf16 %v14927_v61, %v14923_v17  ;;  %v6866_v47 = vpack.c.bf16 %v14929_v10, %v14925_v45  ;;  %v11000_v17 = vld [vmem:[%s15551_s6 + $0x4] ss:$8 sps:$4 sm:$0xff]  }
 0xa9a   :  { %v10056_v56 = vpop.f32.mrf.mxu1  ;;  %v10106_v8 = vpop.f32.mrf.mxu0 }
 0xa9c   :  { %v14935_v63 = vpop.f32.mrf.mxu1  ;;  %v14937_v7 = vpop.f32.mrf.mxu0 }
 0xa9e   :  { %v10059_v35 = vpop.f32.mrf.mxu1  ;;  %v10109_v60 = vpop.f32.mrf.mxu0 }
 0xaa0   :  { %v14939_v5 = vpop.f32.mrf.mxu1  ;;  %v14941_v34 = vpop.f32.mrf.mxu0 }
 0xaa1   :  { %v6699_v46 = vpack.c.bf16 %v14939_v5, %v14935_v63 }
 0xaa2   :  { %v10060_v55 = vpop.f32.mrf.mxu1  ;;  %v10110_v40 = vpop.f32.mrf.mxu0 }
 0xaa4   :  { %v14945_v12 = vpop.f32.mrf.mxu1  ;;  %v14947_v20 = vpop.f32.mrf.mxu0 }
 0xaa6   :  { %v10063_v49 = vpop.f32.mrf.mxu1  ;;  %v10113_v30 = vpop.f32.mrf.mxu0 }
 0xaa8   :  { %v14949_v29 = vpop.f32.mrf.mxu1  ;;  %v14951_v2 = vpop.f32.mrf.mxu0 }
 0xaa9   :  { %v6700_v43 = vpack.c.bf16 %v14949_v29, %v14945_v12 }
 0xaaa   :  { %v10064_v19 = vpop.f32.mrf.mxu1  ;;  %v10114_v26 = vpop.f32.mrf.mxu0 }
 0xaac   :  { %v14955_v58 = vpop.f32.mrf.mxu1  ;;  %v6811_v22 = vpop.f32.mrf.mxu0 }
 0xaae   :  { %v10067_v3 = vpop.f32.mrf.mxu1  ;;  %v10117_v44 = vpop.f32.mrf.mxu0 }
 0xab0   :  { %v14957_v32 = vpop.f32.mrf.mxu1  ;;  %v6814_v57 = vpop.f32.mrf.mxu0 }
 0xab1   :  { %v6701_v21 = vpack.c.bf16 %v14957_v32, %v14955_v58  ;;  %v10994_v32 = vld [vmem:[%s15551_s6 + $0x80] ss:$8 sps:$4 sm:$0xff]  }
 0xab2   :  { %v10068_v25 = vpop.f32.mrf.mxu1  ;;  %v10118_v15 = vpop.f32.mrf.mxu0 }
 0xab4   :  { %v14961_v50 = vpop.f32.mrf.mxu1  ;;  %v6819_v62 = vpop.f32.mrf.mxu0 }
 0xab6   :  { %v10071_v42 = vpop.f32.mrf.mxu1  ;;  %v10121_v41 = vpop.f32.mrf.mxu0 }
 0xab8   :  { %v14963_v23 = vpop.f32.mrf.mxu1  ;;  %v6822_v24 = vpop.f32.mrf.mxu0 }
 0xab9   :  { %v6702_v0 = vpack.c.bf16 %v14963_v23, %v14961_v50  ;;  %v6870_v25 = vpack.c.bf16 %v6822_v24, %v6819_v62  ;;  %v6868_v62 = vpack.c.bf16 %v14951_v2, %v14947_v20  ;;  %v10992_v50 = vld [vmem:[%s15551_s6 + $0x84] ss:$8 sps:$4 sm:$0xff]  }
 0xaba   :  { %v10072_v51 = vpop.f32.mrf.mxu1  ;;  %v10122_v37 = vpop.f32.mrf.mxu0 }
 0xabc   :  { %v14967_v54 = vpop.f32.mrf.mxu1  ;;  %v6827_v6 = vpop.f32.mrf.mxu0 }
 0xabe   :  { %v10075_v1 = vpop.f32.mrf.mxu1  ;;  %v10125_v31 = vpop.f32.mrf.mxu0 }
 0xac0   :  { %v14969_v39 = vpop.f32.mrf.mxu1  ;;  %v6830_v59 = vpop.f32.mrf.mxu0 }
 0xac1   :  { %v6871_v30 = vpack.c.bf16 %v6830_v59, %v6827_v6  ;;  %v6869_v6 = vpack.c.bf16 %v6814_v57, %v6811_v22  ;;  %v6867_v57 = vpack.c.bf16 %v14941_v34, %v14937_v7 }
 0xac2   :  { %v10076_v13 = vpop.f32.mrf.mxu1  ;;  %v10126_v53 = vpop.f32.mrf.mxu0 }
 0xac4   :  { %v14971_v33 = vpop.f32.mrf.mxu1  ;;  %v6835_v4 = vpop.f32.mrf.mxu0 }
 0xac6   :  { %v10079_v18 = vpop.f32.mrf.mxu1  ;;  %v10129_v14 = vpop.f32.mrf.mxu0 }
 0xac8   :  { %v14973_v56 = vpop.f32.mrf.mxu1  ;;  %v6838_v8 = vpop.f32.mrf.mxu0 }
 0xac9   :  { %v6872_v35 = vpack.c.bf16 %v6838_v8, %v6835_v4 }
 0xaca   :  { %v10080_v60 = vpop.f32.mrf.mxu1  ;;  %v10130_v55 = vpop.f32.mrf.mxu0 }
 0xacb   :  { %6953 = vmatpush1.bf16.msra.mxu1 %v6872_v35 }
 0xacc   :  { %v14975_v40 = vpop.f32.mrf.mxu1  ;;  %v14977_v49 = vpop.f32.mrf.mxu0  ;;  %6954 = vmatprep.subr.bf16.mxu1 %v15850_v52 }
 0xace   :  { %v10083_v19 = vpop.f32.mrf.mxu1  ;;  %v10133_v26 = vpop.f32.mrf.mxu0 }
 0xacf   :  { %6955 = vmatpush1.bf16.msra.mxu1 %v6871_v30 }
 0xad0   :  { %v14980_v3 = vpop.f32.mrf.mxu1  ;;  %v6846_v44 = vpop.f32.mrf.mxu0  ;;  %6956 = vmatprep.subr.bf16.mxu1 %v15850_v52 }
 0xad1   :  { %v6705_v15 = vpack.c.bf16 %v14980_v3, %v14975_v40  ;;  %v6873_v16 = vpack.c.bf16 %v6846_v44, %v14977_v49  ;;  %v6704_v49 = vpack.c.bf16 %v14973_v56, %v14971_v33  ;;  %v10989_v33 = vld [vmem:[%s15551_s6 + $0x74] ss:$8 sps:$4 sm:$0xff]   ;;  %v11003_v40 = vld [vmem:[%s15551_s6 + $0x10] ss:$8 sps:$4 sm:$0xff]   ;;  %v11004_v3 = vld [vmem:[%s15551_s6 + $0x24] ss:$8 sps:$4 sm:$0xff]  }
 0xad2   :  { %v10084_v42 = vpop.f32.mrf.mxu1  ;;  %v10134_v41 = vpop.f32.mrf.mxu0 }
 0xad3   :  { %6957 = vmatpush1.bf16.msra.mxu1 %v6870_v25  ;;  %v10983_v41 = vld [vmem:[%s15551_s6 + $0x50] ss:$8 sps:$4 sm:$0xff]  }
 0xad4   :  { %v14985_v51 = vpop.f32.mrf.mxu1  ;;  %v6851_v37 = vpop.f32.mrf.mxu0  ;;  %6958 = vmatprep.subr.bf16.mxu1 %v15850_v52 }
 0xad6   :  { %v10087_v1 = vpop.f32.mrf.mxu1  ;;  %v10137_v31 = vpop.f32.mrf.mxu0 }
 0xad7   :  { %6959 = vmatpush1.bf16.msra.mxu1 %v6869_v6  ;;  %v6703_v31 = vpack.c.bf16 %v14969_v39, %v14967_v54 }
 0xad8   :  { %v14988_v59 = vpop.f32.mrf.mxu1  ;;  %v6854_v13 = vpop.f32.mrf.mxu0  ;;  %6960 = vmatprep.subr.bf16.mxu1 %v15850_v52 }
 0xad9   :  { %v6706_v24 = vpack.c.bf16 %v14988_v59, %v14985_v51  ;;  %v6874_v26 = vpack.c.bf16 %v6854_v13, %v6851_v37  ;;  %v10986_v37 = vld [vmem:[%s15551_s6 + $0x64] ss:$8 sps:$4 sm:$0xff]  }
 0xada   :  { %v10088_v53 = vpop.f32.mrf.mxu1  ;;  %v10138_v4 = vpop.f32.mrf.mxu0 }
 0xadb   :  { %6961 = vmatpush1.bf16.msra.mxu1 %v6868_v62  ;;  %v10988_v62 = vld [vmem:[%s15551_s6 + $0x60] ss:$8 sps:$4 sm:$0xff]   ;;  %v10991_v4 = vld [vmem:[%s15551_s6 + $0x70] ss:$8 sps:$4 sm:$0xff]  }
 0xadc   :  { %v14995_v18 = vpop.f32.mrf.mxu1  ;;  %v6859_v22 = vpop.f32.mrf.mxu0  ;;  %6962 = vmatprep.subr.bf16.mxu1 %v15850_v52 }
 0xadd   :  { %v6875_v30 = vpack.c.bf16 %v6859_v22, %v6859_v22  ;;  %v6707_v63 = vpack.c.bf16 %v14995_v18, %v14995_v18 }
 0xade   :  { %v10091_v14 = vpop.f32.mrf.mxu1  ;;  %v10141_v8 = vpop.f32.mrf.mxu0 }
 0xadf   :  { %6963 = vmatpush1.bf16.msra.mxu1 %v6867_v57  ;;  %v6950_v45 = vsel %vm6948_vm7, %v6875_v30, 0  ;;  %v11001_v8 = vld [vmem:[%s15551_s6 + $0x14] ss:$8 sps:$4 sm:$0xff]  }
 0xae0   :  { %v6694_v35 = vpop.f32.mrf.mxu1  ;;  %v6862_v60 = vpop.f32.mrf.mxu0  ;;  %6964 = vmatprep.subr.bf16.mxu1 %v15850_v52 }
 0xae2   :  { %v10092_v20 = vpop.f32.mrf.mxu1  ;;  %v10142_v2 = vpop.f32.mrf.mxu0 }
 0xae3   :  { %6965 = vmatpush1.bf16.msra.mxu1 %v6866_v47 }
 0xae4   :  { %v15004_v55 = vpop.f32.mrf.mxu0  ;;  %6966 = vmatprep.subr.bf16.mxu1 %v15850_v52 }
 0xae6   :  { %v10151_v19 = vpop.f32.mrf.mxu0 }
 0xae7   :  { %6967 = vmatpush1.bf16.msra.mxu1 %v6865_v38 }
 0xae8   :  { %v15010_v7 = vpop.f32.mrf.mxu0  ;;  %6978 = vmatprep.subr.bf16.mxu1 %v15850_v52 }
 0xae9   :  { %v7308_v34 = vpack.c.bf16 %v15010_v7, %v15004_v55  ;;  %v11013_v7 = vld [vmem:[%s15551_s6 + $0xa0] ss:$8 sps:$4 sm:$0xff]  }
 0xaea   :  { %v10152_v10 = vpop.f32.mrf.mxu0 }
 0xaeb   :  { %6979 = vmatpush2.bf16.msra.mxu1 %v6950_v45 }
 0xaec   :  { %v15016_v47 = vpop.f32.mrf.mxu0  ;;  %6980 = vmatprep.subr.bf16.mxu1 %v15850_v52 }
 0xaee   :  { %v10155_v25 = vpop.f32.mrf.mxu0 }
 0xaef   :  { %6981 = vmatpush2.bf16.msra.mxu1 %v6874_v26  ;;  %v11006_v26 = vld [vmem:[%s15551_s6 + $0x20] ss:$8 sps:$4 sm:$0xff]   ;;  %v11007_v25 = vld [vmem:[%s15551_s6 + $0x34] ss:$8 sps:$4 sm:$0xff]  }
 0xaf0   :  { %v15019_v48 = vpop.f32.mrf.mxu0  ;;  %6982 = vmatprep.subr.bf16.mxu1 %v15850_v52 }
 0xaf1   :  { %v7309_v38 = vpack.c.bf16 %v15019_v48, %v15016_v47 }
 0xaf2   :  { %v10156_v42 = vpop.f32.mrf.mxu0 }
 0xaf3   :  { %6983 = vmatpush2.bf16.msra.mxu1 %v6873_v16 }
 0xaf4   :  { %v15031_v6 = vpop.f32.mrf.mxu0  ;;  %7088 = vmatprep.subr.bf16.mxu1 %v15850_v52 }
 0xaf6   :  { %v10159_v44 = vpop.f32.mrf.mxu0  ;;  %6985 = vmatmul.mubr.bf16.vlgmr.msra.gmra.mxu1 %v10983_v41 }
 0xaf7   :  { %7089 = vmatpush1.bf16.msra.mxu1 %v6704_v49  ;;  %9319 = vmatprep.mubr.msk.bf16.mxu1 %vm6932_vm6, %v10986_v37 }
 0xaf8   :  { %v15037_v1 = vpop.f32.mrf.mxu0  ;;  %7090 = vmatprep.subr.bf16.mxu1 %v15850_v52 }
 0xaf9   :  { %v7310_v49 = vpack.c.bf16 %v15037_v1, %v15031_v6  ;;  %v11012_v1 = vld [vmem:[%s15551_s6 + $0x40] ss:$8 sps:$4 sm:$0xff]  }
 0xafa   :  { %v10160_v13 = vpop.f32.mrf.mxu0 }
 0xafb   :  { %7091 = vmatpush1.bf16.msra.mxu1 %v6703_v31  ;;  %v11009_v31 = vld [vmem:[%s15551_s6 + $0x30] ss:$8 sps:$4 sm:$0xff]   ;;  %v11010_v13 = vld [vmem:[%s15551_s6 + $0x44] ss:$8 sps:$4 sm:$0xff]  }
 0xafc   :  { %v15048_v56 = vpop.f32.mrf.mxu0  ;;  %7092 = vmatprep.subr.bf16.mxu1 %v15850_v52 }
 0xafe   :  { %v10163_v53 = vpop.f32.mrf.mxu0  ;;  %6993 = vmatmul.mubr.bf16.gmra.mxu1 %v10988_v62 }
 0xaff   :  { %7093 = vmatpush1.bf16.msra.mxu1 %v6702_v0  ;;  %9320 = vmatprep.mubr.msk.bf16.mxu1 %vm6932_vm6, %v10989_v33  ;;  %v11021_v53 = vld [vmem:[%s15551_s6 + $0xc0] ss:$8 sps:$4 sm:$0xff]  }
 0xb00   :  { %v15055_v54 = vpop.f32.mrf.mxu0  ;;  %7094 = vmatprep.subr.bf16.mxu1 %v15850_v52 }
 0xb01   :  { %v7311_v42 = vpack.c.bf16 %v15055_v54, %v15048_v56  ;;  %v11015_v56 = vld [vmem:[%s15551_s6 + $0xa4] ss:$8 sps:$4 sm:$0xff]   ;;  %v11022_v54 = vld [vmem:[%s15551_s6 + $0xd4] ss:$8 sps:$4 sm:$0xff]  }
 0xb02   :  { %v10164_v39 = vpop.f32.mrf.mxu0 }
 0xb03   :  { %7095 = vmatpush1.bf16.msra.mxu1 %v6701_v21  ;;  %v10995_v21 = vld [vmem:[%s15551_s6 + $0x94] ss:$8 sps:$4 sm:$0xff]   ;;  %v11024_v39 = vld [vmem:[%s15551_s6 + $0xd0] ss:$8 sps:$4 sm:$0xff]  }
 0xb04   :  { %v15067_v23 = vpop.f32.mrf.mxu0  ;;  %7096 = vmatprep.subr.bf16.mxu1 %v15850_v52 }
 0xb06   :  { %v10167_v0 = vpop.f32.mrf.mxu0  ;;  %7001 = vmatmul.mubr.bf16.gmra.mxu1 %v10991_v4  ;;  %v11025_v4 = vld [vmem:[%s15551_s6 + $0xe4] ss:$8 sps:$4 sm:$0xff]  }
 0xb07   :  { %7097 = vmatpush1.bf16.msra.mxu1 %v6700_v43  ;;  %9321 = vmatprep.mubr.msk.bf16.mxu1 %vm6932_vm6, %v10992_v50  ;;  %v11027_v50 = vld [vmem:[%s15551_s6 + $0xe0] ss:$8 sps:$4 sm:$0xff]  }
 0xb08   :  { %v7257_v22 = vpop.f32.mrf.mxu0  ;;  %7098 = vmatprep.subr.bf16.mxu1 %v15850_v52 }
 0xb09   :  { %v7312_v45 = vpack.c.bf16 %v7257_v22, %v15067_v23 }
 0xb0a   :  { %v10168_v58 = vpop.f32.mrf.mxu0 }
 0xb0b   :  { %7099 = vmatpush1.bf16.msra.mxu1 %v6699_v46  ;;  %v10997_v46 = vld [vmem:[%s15551_s6 + $0x90] ss:$8 sps:$4 sm:$0xff]  }
 0xb0c   :  { %v7262_v12 = vpop.f32.mrf.mxu0  ;;  %7100 = vmatprep.subr.bf16.mxu1 %v15850_v52 }
 0xb0e   :  { %v10171_v29 = vpop.f32.mrf.mxu0  ;;  %7009 = vmatmul.mubr.bf16.gmra.mxu1 %v10994_v32 }
 0xb0f   :  { %7101 = vmatpush1.bf16.msra.mxu1 %v6698_v36  ;;  %9322 = vmatprep.mubr.msk.bf16.mxu1 %vm6932_vm6, %v10995_v21  ;;  %v7086_v36 = vsel %vm6948_vm7, %v6707_v63, 0 }
 0xb10   :  { %v7265_v43 = vpop.f32.mrf.mxu0  ;;  %7102 = vmatprep.subr.bf16.mxu1 %v15850_v52 }
 0xb11   :  { %v7313_v2 = vpack.c.bf16 %v7265_v43, %v7262_v12 }
 0xb12   :  { %v10172_v5 = vpop.f32.mrf.mxu0 }
 0xb13   :  { %7103 = vmatpush1.bf16.msra.mxu1 %v6697_v28  ;;  %v10998_v28 = vld [vmem:[%s15551_s6] ss:$8 sps:$4 sm:$0xff]  }
 0xb14   :  { %v7270_v61 = vpop.f32.mrf.mxu0  ;;  %7114 = vmatprep.subr.bf16.mxu1 %v15850_v52 }
 0xb16   :  { %v10175_v57 = vpop.f32.mrf.mxu0  ;;  %7017 = vmatmul.mubr.bf16.gmra.mxu1 %v10997_v46 }
 0xb17   :  { %7115 = vmatpush2.bf16.msra.mxu1 %v7086_v36  ;;  %9333 = vmatprep.mubr.msk.bf16.mxu1 %vm6932_vm6, %v11000_v17 }
 0xb18   :  { %v7273_v18 = vpop.f32.mrf.mxu0  ;;  %7116 = vmatprep.subr.bf16.mxu1 %v15850_v52 }
 0xb19   :  { %v7314_v60 = vpack.c.bf16 %v7273_v18, %v7270_v61 }
 0xb1a   :  { %v10176_v14 = vpop.f32.mrf.mxu0 }
 0xb1b   :  { %7117 = vmatpush2.bf16.msra.mxu1 %v6706_v24 }
 0xb1c   :  { %v7278_v9 = vpop.f32.mrf.mxu0  ;;  %7118 = vmatprep.subr.bf16.mxu1 %v15850_v52 }
 0xb1e   :  { %v10179_v11 = vpop.f32.mrf.mxu0 }
 0xb1f   :  { %7119 = vmatpush2.bf16.msra.mxu1 %v6705_v15 }
 0xb20   :  { %v7281_v35 = vpop.f32.mrf.mxu0  ;;  %7393 = vmatprep.subr.bf16.mxu1 %v15850_v52 }
 0xb21   :  { %v7315_v51 = vpack.c.bf16 %v7281_v35, %v7278_v9 }
 0xb22   :  { %v10180_v59 = vpop.f32.mrf.mxu0  ;;  %7121 = vmatmul.mubr.bf16.vlgmr.msra.gmra.mxu1 %v10998_v28 }
 0xb23   :  { %7394 = vmatpush1.bf16.msra.mxu1 %v7315_v51  ;;  %9334 = vmatprep.mubr.msk.bf16.mxu1 %vm6932_vm6, %v11001_v8 }
 0xb24   :  { %v7286_v24 = vpop.f32.mrf.mxu0  ;;  %7395 = vmatprep.subr.bf16.mxu1 %v15850_v52 }
 0xb26   :  { %v10183_v20 = vpop.f32.mrf.mxu0 }
 0xb27   :  { %7396 = vmatpush1.bf16.msra.mxu1 %v7314_v60 }
 0xb28   :  { %v7289_v15 = vpop.f32.mrf.mxu0  ;;  %7397 = vmatprep.subr.bf16.mxu1 %v15850_v52 }
 0xb29   :  { %v7316_v55 = vpack.c.bf16 %v7289_v15, %v7286_v24 }
 0xb2a   :  { %v10184_v30 = vpop.f32.mrf.mxu0  ;;  %7129 = vmatmul.mubr.bf16.gmra.mxu1 %v11003_v40 }
 0xb2b   :  { %7398 = vmatpush1.bf16.msra.mxu1 %v7313_v2  ;;  %9335 = vmatprep.mubr.msk.bf16.mxu1 %vm6932_vm6, %v11004_v3 }
 0xb2c   :  { %v7294_v19 = vpop.f32.mrf.mxu0  ;;  %7399 = vmatprep.subr.bf16.mxu1 %v15850_v52 }
 0xb2e   :  { %v10187_v10 = vpop.f32.mrf.mxu0 }
 0xb2f   :  { %7400 = vmatpush1.bf16.msra.mxu1 %v7312_v45 }
 0xb30   :  { %v7297_v16 = vpop.f32.mrf.mxu0  ;;  %7401 = vmatprep.subr.bf16.mxu1 %v15850_v52 }
 0xb31   :  { %v7317_v48 = vpack.c.bf16 %v7297_v16, %v7294_v19 }
 0xb32   :  { %v10188_v41 = vpop.f32.mrf.mxu0  ;;  %7137 = vmatmul.mubr.bf16.gmra.mxu1 %v11006_v26 }
 0xb33   :  { %7402 = vmatpush1.bf16.msra.mxu1 %v7311_v42  ;;  %9336 = vmatprep.mubr.msk.bf16.mxu1 %vm6932_vm6, %v11007_v25 }
 0xb34   :  { %v7302_v37 = vpop.f32.mrf.mxu0  ;;  %7403 = vmatprep.subr.bf16.mxu1 %v15850_v52 }
 0xb35   :  { %v7318_v6 = vpack.c.bf16 %v7302_v37, %v7302_v37 }
 0xb36   :  { %v10191_v44 = vpop.f32.mrf.mxu0 }
 0xb37   :  { %7404 = vmatpush1.bf16.msra.mxu1 %v7310_v49  ;;  %v7391_v47 = vsel %vm6948_vm7, %v7318_v6, 0 }
 0xb38   :  { %v7305_v62 = vpop.f32.mrf.mxu0  ;;  %7405 = vmatprep.subr.bf16.mxu1 %v15850_v52 }
 0xb3a   :  { %v10192_v33 = vpop.f32.mrf.mxu0  ;;  %7145 = vmatmul.mubr.bf16.gmra.mxu1 %v11009_v31 }
 0xb3b   :  { %7406 = vmatpush1.bf16.msra.mxu1 %v7309_v38  ;;  %9337 = vmatprep.mubr.msk.bf16.mxu1 %vm6932_vm6, %v11010_v13  ;;  %v11018_v38 = vld [vmem:[%s15551_s6 + $0xb0] ss:$8 sps:$4 sm:$0xff]  }
 0xb3c   :  { %7407 = vmatprep.subr.bf16.mxu1 %v15850_v52 }
 0xb3f   :  { %7408 = vmatpush1.bf16.msra.mxu1 %v7308_v34  ;;  %v11016_v34 = vld [vmem:[%s15551_s6 + $0xb4] ss:$8 sps:$4 sm:$0xff]  }
 0xb40   :  { %7419 = vmatprep.subr.bf16.mxu1 %v15850_v52 }
 0xb42   :  { %7153 = vmatmul.mubr.bf16.gmra.mxu1 %v11012_v1 }
 0xb43   :  { %7420 = vmatpush2.bf16.msra.mxu1 %v7391_v47  ;;  %9378 = vmatprep.mubr.msk.bf16.mxu1 %vm6932_vm6, %v11015_v56 }
 0xb44   :  { %7421 = vmatprep.subr.bf16.mxu1 %v15850_v52 }
 0xb47   :  { %7422 = vmatpush2.bf16.msra.mxu1 %v7317_v48 }
 0xb48   :  { %7423 = vmatprep.subr.bf16.mxu1 %v15850_v52  ;;  %v11019_v52 = vld [vmem:[%s15551_s6 + $0xc4] ss:$8 sps:$4 sm:$0xff]  }
 0xb4b   :  { %7424 = vmatpush2.bf16.msra.mxu1 %v7316_v55 }
 0xb4c   :  { %10193 = vmatprep.subr.mxu1 %v15811_v27 }
 0xb4e   :  { %7426 = vmatmul.mubr.bf16.vlgmr.msra.gmra.mxu1 %v11013_v7 }
 0xb4f   :  { %9379 = vmatprep.mubr.msk.bf16.mxu1 %vm6932_vm6, %v11016_v34 }
 0xb56   :  { %7434 = vmatmul.mubr.bf16.gmra.mxu1 %v11018_v38 }
 0xb57   :  { %9380 = vmatprep.mubr.msk.bf16.mxu1 %vm6932_vm6, %v11019_v52 }
 0xb5e   :  { %7442 = vmatmul.mubr.bf16.gmra.mxu1 %v11021_v53 }
 0xb5f   :  { %9381 = vmatprep.mubr.msk.bf16.mxu1 %vm6932_vm6, %v11022_v54 }
 0xb66   :  { %7450 = vmatmul.mubr.bf16.gmra.mxu1 %v11024_v39 }
 0xb67   :  { %9382 = vmatprep.mubr.msk.bf16.mxu1 %vm6932_vm6, %v11025_v4 }
 0xb6e   :  { %7458 = vmatmul.mubr.bf16.gmra.mxu1 %v11027_v50 }
 0xb6f   :  { %10213 = vmatprep.mubr.msk.f32.mxu1 %vm11103_vm3, %v15811_v27 }
 0xbb6   :  { %v6986_v23 = vpop.f32.mrf.mxu1 }
 0xbb8   :  { %v6988_v0 = vpop.f32.mrf.mxu1 }
 0xbba   :  { %v6989_v22 = vpop.f32.mrf.mxu1 }
 0xbbc   :  { %v6991_v58 = vpop.f32.mrf.mxu1 }
 0xbbe   :  { %v6994_v32 = vpop.f32.mrf.mxu1 }
 0xbc0   :  { %v6996_v21 = vpop.f32.mrf.mxu1 }
 0xbc2   :  { %v6997_v12 = vpop.f32.mrf.mxu1 }
 0xbc4   :  { %v6999_v29 = vpop.f32.mrf.mxu1 }
 0xbc6   :  { %v7002_v43 = vpop.f32.mrf.mxu1 }
 0xbc8   :  { %v7004_v63 = vpop.f32.mrf.mxu1 }
 0xbca   :  { %v7005_v5 = vpop.f32.mrf.mxu1 }
 0xbcc   :  { %v7007_v46 = vpop.f32.mrf.mxu1 }
 0xbce   :  { %v7010_v17 = vpop.f32.mrf.mxu1 }
 0xbd0   :  { %v7012_v61 = vpop.f32.mrf.mxu1 }
 0xbd2   :  { %v7013_v36 = vpop.f32.mrf.mxu1 }
 0xbd4   :  { %v7015_v57 = vpop.f32.mrf.mxu1 }
 0xbd6   :  { %v15204_v18 = vpop.f32.mrf.mxu1 }
 0xbd8   :  { %v7020_v14 = vpop.f32.mrf.mxu1 }
 0xbda   :  { %v15206_v9 = vpop.f32.mrf.mxu1 }
 0xbdc   :  { %v7023_v11 = vpop.f32.mrf.mxu1 }
 0xbe2   :  { %v7122_v28 = vpop.f32.mrf.mxu1 }
 0xbe3   :  { %v15208_v8 = vadd.f32 %v7122_v28, %v6986_v23 }
 0xbe4   :  { %v7124_v35 = vpop.f32.mrf.mxu1 }
 0xbe6   :  { %v7125_v51 = vpop.f32.mrf.mxu1 }
 0xbe7   :  { %v15210_v59 = vadd.f32 %v7125_v51, %v6989_v22 }
 0xbe8   :  { %v7127_v24 = vpop.f32.mrf.mxu1 }
 0xbea   :  { %v7130_v60 = vpop.f32.mrf.mxu1 }
 0xbeb   :  { %v15212_v20 = vadd.f32 %v7130_v60, %v6994_v32 }
 0xbec   :  { %v7132_v40 = vpop.f32.mrf.mxu1 }
 0xbee   :  { %v7133_v3 = vpop.f32.mrf.mxu1 }
 0xbef   :  { %v15214_v15 = vadd.f32 %v7133_v3, %v6997_v12 }
 0xbf0   :  { %v7135_v2 = vpop.f32.mrf.mxu1 }
 0xbf2   :  { %v7138_v30 = vpop.f32.mrf.mxu1 }
 0xbf3   :  { %v7139_v48 = vadd.f32 %v7138_v30, %v7002_v43 }
 0xbf4   :  { %v7140_v19 = vpop.f32.mrf.mxu1 }
 0xbf6   :  { %v7141_v45 = vpop.f32.mrf.mxu1 }
 0xbf7   :  { %v7142_v38 = vadd.f32 %v7141_v45, %v7005_v5 }
 0xbf8   :  { %v7143_v10 = vpop.f32.mrf.mxu1 }
 0xbfa   :  { %v7146_v26 = vpop.f32.mrf.mxu1 }
 0xbfb   :  { %v7147_v4 = vadd.f32 %v7146_v26, %v7010_v17 }
 0xbfc   :  { %v7148_v25 = vpop.f32.mrf.mxu1 }
 0xbfe   :  { %v7149_v16 = vpop.f32.mrf.mxu1 }
 0xbff   :  { %v7150_v21 = vadd.f32 %v7149_v16, %v7013_v36 }
 0xc00   :  { %v7151_v42 = vpop.f32.mrf.mxu1 }
 0xc02   :  { %v7154_v41 = vpop.f32.mrf.mxu1 }
 0xc03   :  { %v7155_v17 = vadd.f32 %v7154_v41, %v15204_v18 }
 0xc04   :  { %v7156_v37 = vpop.f32.mrf.mxu1 }
 0xc06   :  { %v7157_v49 = vpop.f32.mrf.mxu1 }
 0xc07   :  { %v7158_v35 = vadd.f32 %v7157_v49, %v15206_v9 }
 0xc08   :  { %v7159_v44 = vpop.f32.mrf.mxu1 }
 0xc0e   :  { %v15216_v31 = vpop.f32.mrf.mxu1 }
 0xc0f   :  { %v15277_v42 = vadd.f32 %v15216_v31, %v15208_v8 }
 0xc10   :  { %v7429_v13 = vpop.f32.mrf.mxu1 }
 0xc11   :  { %v7477_v49 = vsel %vm7476_vm8, %v15277_v42, 0.0  ;;  %v7507_v44 = vmul.f32 %v15277_v42, %v15277_v42 }
 0xc12   :  { %v15218_v62 = vpop.f32.mrf.mxu1 }
 0xc13   :  { %v15268_v26 = vadd.f32 %v15218_v62, %v15210_v59  ;;  %v7517_v13 = vsel %vm7476_vm8, %v7507_v44, 0.0 }
 0xc14   :  { %v7432_v33 = vpop.f32.mrf.mxu1 }
 0xc15   :  { %v7480_v41 = vsel %vm7476_vm8, %v15268_v26, 0.0  ;;  %v7508_v31 = vmul.f32 %v15268_v26, %v15268_v26 }
 0xc16   :  { %v7435_v6 = vpop.f32.mrf.mxu1 }
 0xc17   :  { %v15259_v9 = vadd.f32 %v7435_v6, %v15212_v20  ;;  %v7520_v62 = vsel %vm7476_vm8, %v7508_v31, 0.0 }
 0xc18   :  { %v7437_v1 = vpop.f32.mrf.mxu1 }
 0xc19   :  { %v7483_v25 = vsel %vm7476_vm8, %v15259_v9, 0.0  ;;  %v7509_v37 = vmul.f32 %v15259_v9, %v15259_v9 }
 0xc1a   :  { %v7438_v56 = vpop.f32.mrf.mxu1 }
 0xc1b   :  { %v15254_v3 = vadd.f32 %v7438_v56, %v15214_v15  ;;  %v7523_v8 = vsel %vm7476_vm8, %v7509_v37, 0.0 }
 0xc1c   :  { %v7440_v47 = vpop.f32.mrf.mxu1 }
 0xc1d   :  { %v7486_v45 = vsel %vm7476_vm8, %v15254_v3, 0.0  ;;  %v7510_v16 = vmul.f32 %v15254_v3, %v15254_v3 }
 0xc1e   :  { %v7443_v55 = vpop.f32.mrf.mxu1 }
 0xc1f   :  { %v15220_v7 = vadd.f32 %v7443_v55, %v7139_v48  ;;  %v7526_v59 = vsel %vm7476_vm8, %v7510_v16, 0.0 }
 0xc20   :  { %v7445_v34 = vpop.f32.mrf.mxu1 }
 0xc21   :  { %v7489_v52 = vsel %vm7476_vm8, %v15220_v7, 0.0  ;;  %v7511_v15 = vmul.f32 %v15220_v7, %v15220_v7 }
 0xc22   :  { %v7446_v53 = vpop.f32.mrf.mxu1  ;;  %7490 = vadd.xlane.f32.xlu1 %v7489_v52 }
 0xc23   :  { %v15224_v54 = vadd.f32 %v7446_v53, %v7142_v38  ;;  %v7529_v20 = vsel %vm7476_vm8, %v7511_v15, 0.0 }
 0xc24   :  { %v7448_v39 = vpop.f32.mrf.mxu1 }
 0xc25   :  { %v7512_v50 = vmul.f32 %v15224_v54, %v15224_v54  ;;  %v7492_v23 = vsel %vm7476_vm8, %v15224_v54, 0.0 }
 0xc26   :  { %v7451_v0 = vpop.f32.mrf.mxu1  ;;  %7493 = vadd.xlane.f32.xlu1 %v7492_v23 }
 0xc27   :  { %v15230_v22 = vadd.f32 %v7451_v0, %v7147_v4  ;;  %v7532_v58 = vsel %vm7476_vm8, %v7512_v50, 0.0 }
 0xc28   :  { %7533 = vadd.xlane.f32.xlu0 %v7532_v58  ;;  %v7453_v32 = vpop.f32.mrf.mxu1 }
 0xc29   :  { %v7513_v12 = vmul.f32 %v15230_v22, %v15230_v22  ;;  %v7495_v29 = vsel %vm7476_vm8, %v15230_v22, 0.0 }
 0xc2a   :  { %v7454_v43 = vpop.f32.mrf.mxu1  ;;  %7496 = vadd.xlane.f32.xlu1 %v7495_v29 }
 0xc2b   :  { %v15237_v63 = vadd.f32 %v7454_v43, %v7150_v21  ;;  %v7535_v5 = vsel %vm7476_vm8, %v7513_v12, 0.0  ;;  %v11100_v21 = vld [vmem:[%s15546_s14] sm:$0xff] }
 0xc2c   :  { %7536 = vadd.xlane.f32.xlu0 %v7535_v5  ;;  %v7456_v46 = vpop.f32.mrf.mxu1 }
 0xc2d   :  { %v7514_v61 = vmul.f32 %v15237_v63, %v15237_v63  ;;  %v7498_v36 = vsel %vm7476_vm8, %v15237_v63, 0.0 }
 0xc2e   :  { %v7459_v57 = vpop.f32.mrf.mxu1  ;;  %7499 = vadd.xlane.f32.xlu1 %v7498_v36 }
 0xc2f   :  { %v15245_v14 = vadd.f32 %v7459_v57, %v7155_v17  ;;  %v7538_v11 = vsel %vm7476_vm8, %v7514_v61, 0.0 }
 0xc30   :  { %7539 = vadd.xlane.f32.xlu0 %v7538_v11  ;;  %v7461_v28 = vpop.f32.mrf.mxu1 }
 0xc31   :  { %v7501_v18 = vsel %vm7476_vm8, %v15245_v14, 0.0  ;;  %v7515_v60 = vmul.f32 %v15245_v14, %v15245_v14 }
 0xc32   :  { %v7462_v51 = vpop.f32.mrf.mxu1 }
 0xc33   :  { %v7475_v24 = vadd.f32 %v7462_v51, %v7158_v35  ;;  %v7541_v19 = vsel %vm7476_vm8, %v7515_v60, 0.0  ;;  %v7697_v51 = vld [vmem:[%s15552_s7] sm:$0xff] }
 0xc34   :  { %7502 = vadd.xlane.f32.xlu0 %v7501_v18  ;;  %v7464_v40 = vpop.f32.mrf.mxu1  ;;  %v7701_v60 = vld [vmem:[%s15553_s8] sm:$0xff] }
 0xc35   :  { %v7504_v2 = vsel %vm7476_vm8, %v7475_v24, 0.0  ;;  %v7516_v30 = vmul.f32 %v7475_v24, %v7475_v24 }
 0xc36   :  { %7505 = vadd.xlane.f32.xlu1 %v7504_v2  ;;  %v7740_v2 = vld [vmem:[%s15554_s10 + $0x10] sm:$0xf] }
 0xc37   :  { %v7544_v10 = vsel %vm7476_vm8, %v7516_v30, 0.0  ;;  %v7739_v30 = vld [vmem:[%s15554_s10 + $0x8] sm:$0xff] }
 0xc38   :  { %7542 = vadd.xlane.f32.xlu0 %v7541_v19 }
 0xc3a   :  { %7487 = vadd.xlane.f32.xlu1 %v7486_v45  ;;  %v7738_v45 = vld [vmem:[%s15554_s10] sm:$0xff] }
 0xc3c   :  { %7545 = vadd.xlane.f32.xlu0 %v7544_v10 }
 0xc3e   :  { %7484 = vadd.xlane.f32.xlu1 %v7483_v25 }
 0xc40   :  { %7530 = vadd.xlane.f32.xlu0 %v7529_v20 }
 0xc42   :  { %7481 = vadd.xlane.f32.xlu1 %v7480_v41 }
 0xc44   :  { %7527 = vadd.xlane.f32.xlu0 %v7526_v59 }
 0xc46   :  { %7478 = vadd.xlane.f32.xlu1 %v7477_v49 }
 0xc48   :  { %7524 = vadd.xlane.f32.xlu0 %v7523_v8 }
 0xc4a   :  { %7518 = vadd.xlane.f32.xlu1 %v7517_v13 }
 0xc4c   :  { %7521 = vadd.xlane.f32.xlu0 %v7520_v62 }
 0xcab   :  { %v7491_v33 = vpop.xlane.xlu1 %7490 }
 0xcaf   :  { %v7494_v6 = vpop.xlane.xlu1 %7493 }
 0xcb1   :  { %v7534_v1 = vpop.xlane.xlu0 %7533 }
 0xcb3   :  { %v7497_v47 = vpop.xlane.xlu1 %7496 }
 0xcb5   :  { %v7537_v56 = vpop.xlane.xlu0 %7536 }
 0xcb7   :  { %v7500_v55 = vpop.xlane.xlu1 %7499 }
 0xcb9   :  { %v7540_v48 = vpop.xlane.xlu0 %7539 }
 0xcbd   :  { %v7503_v34 = vpop.xlane.xlu0 %7502 }
 0xcbf   :  { %v7506_v38 = vpop.xlane.xlu1 %7505 }
 0xcc0   :  { %10194 = vmatpush3.msra.mxu1 %v7506_v38 }
 0xcc1   :  { %v7543_v52 = vpop.xlane.xlu0 %7542  ;;  %10195 = vmatprep.subr.mxu1 %v15811_v27 }
 0xcc2   :  { %10196 = vmatpush3.msra.mxu1 %v7503_v34 }
 0xcc3   :  { %10197 = vmatprep.subr.mxu1 %v15811_v27  ;;  %v7488_v53 = vpop.xlane.xlu1 %7487 }
 0xcc4   :  { %10198 = vmatpush3.msra.mxu1 %v7500_v55 }
 0xcc5   :  { %v7546_v39 = vpop.xlane.xlu0 %7545  ;;  %10199 = vmatprep.subr.mxu1 %v15811_v27 }
 0xcc6   :  { %10200 = vmatpush3.msra.mxu1 %v7497_v47  ;;  %10217 = vmatpush3.msra.mxu0 %v7546_v39  ;;  %v7860_v39 = vld [vmem:[%s15556_s13] sm:$0xff] }
 0xcc7   :  { %10201 = vmatprep.subr.mxu1 %v15811_v27  ;;  %10218 = vmatprep.subr.mxu0 %v15811_v27  ;;  %v7485_v4 = vpop.xlane.xlu1 %7484 }
 0xcc8   :  { %10202 = vmatpush3.msra.mxu1 %v7494_v6  ;;  %10219 = vmatpush3.msra.mxu0 %v7543_v52 }
 0xcc9   :  { %10220 = vmatprep.subr.mxu0 %v15811_v27  ;;  %v7531_v50 = vpop.xlane.xlu0 %7530  ;;  %10203 = vmatprep.subr.mxu1 %v15811_v27 }
 0xcca   :  { %10204 = vmatpush3.msra.mxu1 %v7491_v33  ;;  %10221 = vmatpush3.msra.mxu0 %v7540_v48 }
 0xccb   :  { %10205 = vmatprep.subr.mxu1 %v15811_v27  ;;  %10222 = vmatprep.subr.mxu0 %v15811_v27  ;;  %v7482_v23 = vpop.xlane.xlu1 %7481 }
 0xccc   :  { %10206 = vmatpush3.msra.mxu1 %v7488_v53  ;;  %10223 = vmatpush3.msra.mxu0 %v7537_v56  ;;  %v7861_v53 = vld [vmem:[%s15556_s13 + $0x8] sm:$0xff] }
 0xccd   :  { %10224 = vmatprep.subr.mxu0 %v15811_v27  ;;  %v7528_v0 = vpop.xlane.xlu0 %7527  ;;  %10207 = vmatprep.subr.mxu1 %v15811_v27 }
 0xcce   :  { %10208 = vmatpush3.msra.mxu1 %v7485_v4  ;;  %10225 = vmatpush3.msra.mxu0 %v7534_v1  ;;  %v7863_v4 = vld [vmem:[%s15556_s13 + $0x18] sm:$0xff] }
 0xccf   :  { %10209 = vmatprep.subr.mxu1 %v15811_v27  ;;  %10226 = vmatprep.subr.mxu0 %v15811_v27  ;;  %v7479_v58 = vpop.xlane.xlu1 %7478 }
 0xcd0   :  { %10210 = vmatpush3.msra.mxu1 %v7482_v23  ;;  %10227 = vmatpush3.msra.mxu0 %v7531_v50  ;;  %v7862_v50 = vld [vmem:[%s15556_s13 + $0x10] sm:$0xff]  ;;  %v7864_v23 = vld [vmem:[%s15556_s13 + $0x20] sm:$0xff] }
 0xcd1   :  { %10228 = vmatprep.subr.mxu0 %v15811_v27  ;;  %v7525_v32 = vpop.xlane.xlu0 %7524  ;;  %10211 = vmatprep.subr.mxu1 %v15811_v27 }
 0xcd2   :  { %10212 = vmatpush3.msra.mxu1 %v7479_v58  ;;  %10229 = vmatpush3.msra.mxu0 %v7528_v0 }
 0xcd3   :  { %10230 = vmatprep.subr.mxu0 %v15811_v27  ;;  %10214 = vmatmul.mubr.msk.f32.vlgmr.msra.gmra.mxu1 %vm7547_vm9, %v11100_v21  ;;  %v7519_v29 = vpop.xlane.xlu1 %7518 }
 0xcd4   :  { %10231 = vmatpush3.msra.mxu0 %v7525_v32  ;;  %10350 = vmatprep.subr.mxu1 %v15811_v27 }
 0xcd5   :  { %10232 = vmatprep.subr.mxu0 %v15811_v27  ;;  %v7522_v12 = vpop.xlane.xlu0 %7521  ;;  %10248 = vmatprep.mubr.msk.f32.mxu1 %vm11103_vm3, %v15811_v27 }
 0xcd6   :  { %10233 = vmatpush3.msra.mxu0 %v7522_v12  ;;  %10353 = vmatpush3.msk.msra.mxu1 %vm6948_vm7, %v7740_v2  ;;  %v9398_v12 = vld [vmem:[%s15555_s11 + $0x8] sm:$0x3f] }
 0xcd7   :  { %10234 = vmatprep.subr.mxu0 %v15811_v27  ;;  %10351 = vmatprep.subr.mxu1 %v15811_v27 }
 0xcd8   :  { %10235 = vmatpush3.msra.mxu0 %v7519_v29  ;;  %10354 = vmatpush3.msra.mxu1 %v7739_v30 }
 0xcd9   :  { %10237 = vmatmul.mubr.msk.f32.vlgmr.msra.gmra.mxu0 %vm7547_vm9, %v11100_v21  ;;  %10239 = vmatprep.subr.mxu0 %v15811_v27 }
 0xcda   :  { %10245 = vmatprep.mubr.msk.f32.mxu0 %vm11103_vm3, %v15811_v27  ;;  %10240 = vmatpush3.msk.msra.mxu0 %vm6948_vm7, %v7740_v2  ;;  %v9413_v2 = vld [vmem:[%s15555_s11 + $0x10] sm:$0x3f] }
 0xcdb   :  { %10241 = vmatprep.subr.mxu0 %v15811_v27  ;;  %10352 = vmatprep.subr.mxu1 %v15811_v27 }
 0xcdc   :  { %10242 = vmatpush3.msra.mxu0 %v7739_v30  ;;  %10355 = vmatpush3.msra.mxu1 %v7738_v45 }
 0xcdd   :  { %10243 = vmatprep.subr.mxu0 %v15811_v27  ;;  %10265 = vmatprep.subr.mxu1 %v15811_v27 }
 0xcde   :  { %10244 = vmatpush3.msra.mxu0 %v7738_v45 }
 0xcdf   :  { %10254 = vmatprep.subr.mxu0 %v15811_v27 }
 0xd93   :  { %v7617_v43 = vpop.f32.mrf.mxu1 }
 0xd94   :  { %v7622_v5 = vmul.f32 0.005, %v7617_v43 }
 0xd95   :  { %v10215_v46 = vpop.f32.mrf.mxu1 }
 0xd96   :  { %v7694_v17 = vmul.f32 %v7622_v5, %v7622_v5 }
 0xd99   :  { %v7689_v61 = vpop.f32.mrf.mxu0 }
 0xd9a   :  { %v7693_v36 = vmul.f32 0.005, %v7689_v61 }
 0xd9b   :  { %v10238_v57 = vpop.f32.mrf.mxu0 }
 0xd9c   :  { %v7695_v11 = vsub.f32 %v7693_v36, %v7694_v17 }
 0xd9e   :  { %v7696_v28 = vmax.f32 %v7695_v11, 0.0 }
 0xda0   :  { %v7698_v35 = vadd.f32 1e-05, %v7696_v28 }
 0xda2   :  { %11030 = vrsqrt.f32 %v7698_v35 }
 0xdaf   :  { %v11031_v24 = vpop.eup %11030 }
 0xdb0   :  { %v7700_v18 = vmul.f32 %v11031_v24, %v7697_v51 }
 0xdb2   :  { %7706 = vperm.xlu0 %10363, %v7700_v18   ;;  %v7702_v40 = vmul.f32 %v7700_v18, %v7622_v5 }
 0xdb4   :  { %v7703_v19 = vsub.f32 %v7701_v60, %v7702_v40  ;;  %v7985_v60 = vld [vmem:[%s15557_s12] sm:$0xff] }
 0xdb6   :  { %7720 = vperm.xlu1 %10364, %v7703_v19   ;;  %v7986_v19 = vld [vmem:[%s15557_s12 + $0x8] sm:$0xff] }
 0xe2d   :  { %v7707_v10 = vpop.permute.xlu0 %7706 }
 0xe2e   :  { %v7709_v15 = vmul.f32 %v7707_v10, %v15277_v42  ;;  %v7710_v25 = vmul.f32 %v7707_v10, %v15268_v26  ;;  %v7712_v20 = vmul.f32 %v7707_v10, %v15254_v3  ;;  %v7713_v41 = vmul.f32 %v7707_v10, %v15220_v7 }
 0xe2f   :  { %v7715_v59 = vmul.f32 %v7707_v10, %v15230_v22  ;;  %v7716_v37 = vmul.f32 %v7707_v10, %v15237_v63  ;;  %v7711_v49 = vmul.f32 %v7707_v10, %v15259_v9  ;;  %v7714_v13 = vmul.f32 %v7707_v10, %v15224_v54 }
 0xe30   :  { %v7717_v22 = vmul.f32 %v7707_v10, %v15245_v14  ;;  %v7890_v14 = vld [vmem:[%s15555_s11] sm:$0x3f] }
 0xe31   :  { %v7721_v16 = vpop.permute.xlu1 %7720 }
 0xe32   :  { %v7723_v44 = vadd.f32 %v7721_v16, %v7709_v15  ;;  %v7724_v8 = vadd.f32 %v7721_v16, %v7710_v25  ;;  %v7726_v31 = vadd.f32 %v7721_v16, %v7712_v20  ;;  %v7727_v62 = vadd.f32 %v7721_v16, %v7713_v41  ;;  %v7987_v15 = vld [vmem:[%s15557_s12 + $0x10] sm:$0xff]  ;;  %v9403_v41 = vld [vmem:[%s15557_s12 + $0x28] sm:$0xff] }
 0xe33   :  { %v7729_v42 = vadd.f32 %v7721_v16, %v7715_v59  ;;  %v7730_v33 = vadd.f32 %v7721_v16, %v7716_v37  ;;  %v7725_v26 = vadd.f32 %v7721_v16, %v7711_v49  ;;  %v7728_v3 = vadd.f32 %v7721_v16, %v7714_v13  ;;  %v7989_v59 = vld [vmem:[%s15557_s12 + $0x20] sm:$0xff]  ;;  %v9404_v37 = vld [vmem:[%s15557_s12 + $0x30] sm:$0xff]  ;;  %v9405_v49 = vld [vmem:[%s15557_s12 + $0x38] sm:$0xff] }
 0xe34   :  { %v7732_v6 = vmax.f32 %v7723_v44, %v7724_v8  ;;  %v7733_v1 = vmax.f32 %v7726_v31, %v7727_v62  ;;  %v7731_v63 = vadd.f32 %v7721_v16, %v7717_v22  ;;  %v7988_v16 = vld [vmem:[%s15557_s12 + $0x18] sm:$0xff]  ;;  %v9406_v44 = vld [vmem:[%s15557_s12 + $0x40] sm:$0xff]  ;;  %v9407_v8 = vld [vmem:[%s15557_s12 + $0x48] sm:$0xff] }
 0xe35   :  { %v7734_v47 = vmax.f32 %v7729_v42, %v7730_v33 }
 0xe36   :  { %v7735_v56 = vmax.f32 %v7732_v6, %v7725_v26  ;;  %v7736_v7 = vmax.f32 %v7733_v1, %v7728_v3 }
 0xe37   :  { %v7737_v54 = vmax.f32 %v7734_v47, %v7731_v63 }
 0xe38   :  { %10246 = vmatmul.mubr.msk.f32.vlgmr.msra.gmra.mxu0 %vm7476_vm8, %v7735_v56  ;;  %10249 = vmatmul.mubr.msk.f32.vlgmr.msra.gmra.mxu1 %vm7476_vm8, %v7736_v7 }
 0xe39   :  { %10256 = vmatprep.mubr.msk.f32.mxu0 %vm11103_vm3, %v15811_v27  ;;  %10251 = vmatprep.mubr.msk.f32.mxu1 %vm11103_vm3, %v15811_v27 }
 0xe3a   :  { %10255 = vmatpush3.msk.msra.mxu0 %vm7901_vm10, %v7890_v14 }
 0xe3b   :  { %10286 = vmatprep.subr.mxu0 %v15811_v27 }
 0xe3c   :  { %10252 = vmatmul.mubr.msk.f32.gmra.mxu1 %vm7476_vm8, %v7737_v54 }
 0xe3d   :  { %10271 = vmatprep.mubr.msk.f32.mxu1 %vm11103_vm3, %v15811_v27 }
 0xef8   :  { %v7819_v9 = vpop.f32.mrf.mxu0  ;;  %v7824_v48 = vpop.f32.mrf.mxu1 }
 0xef9   :  { %7848 = vrot.lane.b32.xlu0 %v7819_v9, %s11106_s9  ;;  %7836 = vrot.lane.b32.xlu1 %v7819_v9, %s11107_s24 }
 0xefa   :  { %v10247_v55 = vpop.f32.mrf.mxu0  ;;  %v10250_v34 = vpop.f32.mrf.mxu1 }
 0xefc   :  { %v7829_v38 = vpop.f32.mrf.mxu1 }
 0xefd   :  { %7850 = vrot.lane.b32.xlu0 %v7824_v48, %s11106_s9  ;;  %7838 = vrot.lane.b32.xlu1 %v7824_v48, %s11107_s24 }
 0xefe   :  { %v10253_v52 = vpop.f32.mrf.mxu1 }
 0xf01   :  { %7852 = vrot.lane.b32.xlu0 %v7829_v38, %s11106_s9  ;;  %7840 = vrot.lane.b32.xlu1 %v7829_v38, %s11107_s24 }
 0xf05   :  { %7872 = vperm.xlu0 %10363, %v7861_v53   ;;  %7867 = vperm.xlu1 %10364, %v7860_v39  }
 0xf09   :  { %7882 = vperm.xlu0 %10363, %v7863_v4   ;;  %7877 = vperm.xlu1 %10364, %v7862_v50  }
 0xf0d   :  { %7887 = vperm.xlu1 %10364, %v7864_v23  }
 0xf6b   :  { %v7849_v0 = vpop.permute.xlu0 %7848  ;;  %v7837_v58 = vpop.permute.xlu1 %7836 }
 0xf6c   :  { %v7845_v32 = vmax.f32 %v7819_v9, %v7837_v58 }
 0xf6e   :  { %v15383_v21 = vmax.f32 %v7845_v32, %v7849_v0 }
 0xf6f   :  { %v7851_v29 = vpop.permute.xlu0 %7850  ;;  %v7839_v43 = vpop.permute.xlu1 %7838 }
 0xf70   :  { %v7846_v5 = vmax.f32 %v7824_v48, %v7839_v43  ;;  %10257 = vmatmul.mubr.msk.f32.vlgmr.msra.gmra.mxu0 %vm7891_vm11, %v15383_v21 }
 0xf71   :  { %10259 = vmatprep.mubr.msk.f32.mxu0 %vm11103_vm3, %v15811_v27  ;;  %10287 = vmatpush3.msk.msra.mxu0 %vm7901_vm10, %v9398_v12 }
 0xf72   :  { %v15393_v46 = vmax.f32 %v7846_v5, %v7851_v29  ;;  %10297 = vmatprep.subr.mxu0 %v15811_v27 }
 0xf73   :  { %v7841_v17 = vpop.permute.xlu1 %7840  ;;  %v7853_v36 = vpop.permute.xlu0 %7852 }
 0xf74   :  { %v7847_v61 = vmax.f32 %v7829_v38, %v7841_v17  ;;  %10260 = vmatmul.mubr.msk.f32.gmra.mxu0 %vm7891_vm11, %v15393_v46 }
 0xf75   :  { %10262 = vmatprep.mubr.msk.f32.mxu0 %vm11103_vm3, %v15811_v27 }
 0xf76   :  { %v15400_v57 = vmax.f32 %v7847_v61, %v7853_v36 }
 0xf78   :  { %10263 = vmatmul.mubr.msk.f32.gmra.mxu0 %vm7891_vm11, %v15400_v57 }
 0xf79   :  { %10288 = vmatprep.mubr.msk.f32.mxu0 %vm11103_vm3, %v15811_v27 }
 0xf7c   :  { %10289 = vmatmul.mubr.msk.f32.vlgmr.msra.gmra.mxu0 %vm7891_vm11, %v15383_v21 }
 0xf7d   :  { %10291 = vmatprep.mubr.msk.f32.mxu0 %vm11103_vm3, %v15811_v27 }
 0xf80   :  { %10292 = vmatmul.mubr.msk.f32.gmra.mxu0 %vm7891_vm11, %v15393_v46  ;;  %v7868_v26 = vpop.permute.xlu1 %7867  ;;  %v7873_v7 = vpop.permute.xlu0 %7872 }
 0xf81   :  { %10294 = vmatprep.mubr.msk.f32.mxu0 %vm11103_vm3, %v15811_v27 }
 0xf84   :  { %10295 = vmatmul.mubr.msk.f32.gmra.mxu0 %vm7891_vm11, %v15400_v57  ;;  %v7878_v48 = vpop.permute.xlu1 %7877  ;;  %v7883_v4 = vpop.permute.xlu0 %7882 }
 0xf85   :  { %10303 = vmatprep.mubr.msk.f32.mxu0 %vm11103_vm3, %v15811_v27 }
 0xf88   :  { %v7888_v12 = vpop.permute.xlu1 %7887 }
0x1030   :  { %v7971_v11 = vpop.f32.mrf.mxu0 }
0x1032   :  { %v10258_v28 = vpop.f32.mrf.mxu0 }
0x1033   :  { %v9418_v28 = vld [vmem:[%s15557_s12 + $0x50] sm:$0xff] }
0x1034   :  { %v7976_v35 = vpop.f32.mrf.mxu0 }
0x1036   :  { %v10261_v51 = vpop.f32.mrf.mxu0 }
0x1037   :  { %v9420_v51 = vld [vmem:[%s15557_s12 + $0x60] sm:$0xff] }
0x1038   :  { %v7981_v24 = vpop.f32.mrf.mxu0 }
0x1039   :  { %10266 = vmatpush3.msra.mxu1 %v7981_v24  ;;  %v9421_v24 = vld [vmem:[%s15557_s12 + $0x68] sm:$0xff] }
0x103a   :  { %v10264_v18 = vpop.f32.mrf.mxu0  ;;  %10267 = vmatprep.subr.mxu1 %v15811_v27 }
0x103b   :  { %10268 = vmatpush3.msra.mxu1 %v7976_v35  ;;  %v9419_v35 = vld [vmem:[%s15557_s12 + $0x58] sm:$0xff]  ;;  %v9422_v18 = vld [vmem:[%s15557_s12 + $0x70] sm:$0xff] }
0x103c   :  { %10269 = vmatprep.subr.mxu1 %v15811_v27  ;;  %v8172_v40 = vpop.f32.mrf.mxu0 }
0x103d   :  { %10270 = vmatpush3.msra.mxu1 %v7971_v11 }
0x103e   :  { %10272 = vmatmul.mubr.msk.f32.vlgmr.msra.gmra.mxu1 %vm7990_vm12, %v7985_v60  ;;  %v10290_v30 = vpop.f32.mrf.mxu0  ;;  %10318 = vmatprep.subr.mxu1 %v15811_v27 }
0x103f   :  { %10274 = vmatprep.mubr.msk.f32.mxu1 %vm11103_vm3, %v15811_v27  ;;  %10319 = vmatpush3.msk.msra.mxu1 %vm7901_vm10, %v9413_v2 }
0x1040   :  { %v8177_v45 = vpop.f32.mrf.mxu0  ;;  %10329 = vmatprep.subr.mxu1 %v15811_v27 }
0x1042   :  { %10275 = vmatmul.mubr.msk.f32.gmra.mxu1 %vm7990_vm12, %v7986_v19  ;;  %v10293_v10 = vpop.f32.mrf.mxu0 }
0x1043   :  { %10277 = vmatprep.mubr.msk.f32.mxu1 %vm11103_vm3, %v15811_v27 }
0x1044   :  { %v8182_v25 = vpop.f32.mrf.mxu0 }
0x1045   :  { %10298 = vmatpush3.msra.mxu0 %v8182_v25 }
0x1046   :  { %10278 = vmatmul.mubr.msk.f32.gmra.mxu1 %vm7990_vm12, %v7987_v15  ;;  %v10296_v20 = vpop.f32.mrf.mxu0  ;;  %10299 = vmatprep.subr.mxu0 %v15811_v27 }
0x1047   :  { %10300 = vmatpush3.msra.mxu0 %v8177_v45  ;;  %10280 = vmatprep.mubr.msk.f32.mxu1 %vm11103_vm3, %v15811_v27 }
0x1048   :  { %10301 = vmatprep.subr.mxu0 %v15811_v27 }
0x1049   :  { %10302 = vmatpush3.msra.mxu0 %v8172_v40 }
0x104a   :  { %10281 = vmatmul.mubr.msk.f32.gmra.mxu1 %vm7990_vm12, %v7988_v16  ;;  %10304 = vmatmul.mubr.msk.f32.vlgmr.msra.gmra.mxu0 %vm7990_vm12, %v9403_v41 }
0x104b   :  { %10283 = vmatprep.mubr.msk.f32.mxu1 %vm11103_vm3, %v15811_v27  ;;  %10306 = vmatprep.mubr.msk.f32.mxu0 %vm11103_vm3, %v15811_v27 }
0x104e   :  { %10284 = vmatmul.mubr.msk.f32.gmra.mxu1 %vm7990_vm12, %v7989_v59  ;;  %10307 = vmatmul.mubr.msk.f32.gmra.mxu0 %vm7990_vm12, %v9404_v37 }
0x104f   :  { %10309 = vmatprep.mubr.msk.f32.mxu0 %vm11103_vm3, %v15811_v27  ;;  %10320 = vmatprep.mubr.msk.f32.mxu1 %vm11103_vm3, %v15811_v27 }
0x1052   :  { %10310 = vmatmul.mubr.msk.f32.gmra.mxu0 %vm7990_vm12, %v9405_v49  ;;  %10321 = vmatmul.mubr.msk.f32.vlgmr.msra.gmra.mxu1 %vm7891_vm11, %v15383_v21 }
0x1053   :  { %10312 = vmatprep.mubr.msk.f32.mxu0 %vm11103_vm3, %v15811_v27  ;;  %10323 = vmatprep.mubr.msk.f32.mxu1 %vm11103_vm3, %v15811_v27 }
0x1056   :  { %10313 = vmatmul.mubr.msk.f32.gmra.mxu0 %vm7990_vm12, %v9406_v44  ;;  %10324 = vmatmul.mubr.msk.f32.gmra.mxu1 %vm7891_vm11, %v15393_v46 }
0x1057   :  { %10315 = vmatprep.mubr.msk.f32.mxu0 %vm11103_vm3, %v15811_v27  ;;  %10326 = vmatprep.mubr.msk.f32.mxu1 %vm11103_vm3, %v15811_v27 }
0x105a   :  { %10316 = vmatmul.mubr.msk.f32.gmra.mxu0 %vm7990_vm12, %v9407_v8  ;;  %10327 = vmatmul.mubr.msk.f32.gmra.mxu1 %vm7891_vm11, %v15400_v57 }
0x105b   :  { %10335 = vmatprep.mubr.msk.f32.mxu1 %vm11103_vm3, %v15811_v27 }
0x10fe   :  { %v8072_v31 = vpop.f32.mrf.mxu1 }
0x10ff   :  { %v8096_v3 = vadd.f32 %v8072_v31, %v7868_v26 }
0x1100   :  { %v10273_v13 = vpop.f32.mrf.mxu1 }
0x1102   :  { %v8077_v62 = vpop.f32.mrf.mxu1 }
0x1103   :  { %v8097_v54 = vadd.f32 %v8077_v62, %v7873_v7 }
0x1104   :  { %v10276_v42 = vpop.f32.mrf.mxu1 }
0x1106   :  { %v8082_v33 = vpop.f32.mrf.mxu1 }
0x1107   :  { %v8098_v52 = vadd.f32 %v8082_v33, %v7878_v48 }
0x1108   :  { %v10279_v6 = vpop.f32.mrf.mxu1 }
0x110a   :  { %v8087_v1 = vpop.f32.mrf.mxu1  ;;  %v8273_v56 = vpop.f32.mrf.mxu0 }
0x110b   :  { %v8297_v22 = vadd.f32 %v8273_v56, %v8096_v3  ;;  %v8099_v58 = vadd.f32 %v8087_v1, %v7883_v4 }
0x110c   :  { %v10282_v47 = vpop.f32.mrf.mxu1  ;;  %v10305_v63 = vpop.f32.mrf.mxu0 }
0x110e   :  { %v8092_v14 = vpop.f32.mrf.mxu1  ;;  %v8278_v9 = vpop.f32.mrf.mxu0 }
0x110f   :  { %v8298_v55 = vadd.f32 %v8278_v9, %v8097_v54  ;;  %v8100_v46 = vadd.f32 %v8092_v14, %v7888_v12 }
0x1110   :  { %v10285_v34 = vpop.f32.mrf.mxu1  ;;  %v10308_v38 = vpop.f32.mrf.mxu0 }
0x1112   :  { %v8283_v53 = vpop.f32.mrf.mxu0  ;;  %v8373_v39 = vpop.f32.mrf.mxu1 }
0x1113   :  { %v8299_v50 = vadd.f32 %v8283_v53, %v8098_v52 }
0x1114   :  { %v10311_v23 = vpop.f32.mrf.mxu0  ;;  %v10322_v0 = vpop.f32.mrf.mxu1 }
0x1116   :  { %v8288_v32 = vpop.f32.mrf.mxu0  ;;  %v8378_v21 = vpop.f32.mrf.mxu1 }
0x1117   :  { %v8300_v29 = vadd.f32 %v8288_v32, %v8099_v58 }
0x1118   :  { %v10314_v43 = vpop.f32.mrf.mxu0  ;;  %v10325_v5 = vpop.f32.mrf.mxu1 }
0x111a   :  { %v8293_v17 = vpop.f32.mrf.mxu0  ;;  %v8383_v61 = vpop.f32.mrf.mxu1 }
0x111b   :  { %v8301_v36 = vadd.f32 %v8293_v17, %v8100_v46  ;;  %10330 = vmatpush3.msra.mxu1 %v8383_v61 }
0x111c   :  { %v10328_v57 = vpop.f32.mrf.mxu1  ;;  %10331 = vmatprep.subr.mxu1 %v15811_v27  ;;  %v10317_v11 = vpop.f32.mrf.mxu0 }
0x111d   :  { %10332 = vmatpush3.msra.mxu1 %v8378_v21 }
0x111e   :  { %10333 = vmatprep.subr.mxu1 %v15811_v27 }
0x111f   :  { %10334 = vmatpush3.msra.mxu1 %v8373_v39 }
0x1120   :  { %10336 = vmatmul.mubr.msk.f32.vlgmr.msra.gmra.mxu1 %vm7990_vm12, %v9418_v28 }
0x1121   :  { %10338 = vmatprep.mubr.msk.f32.mxu1 %vm11103_vm3, %v15811_v27 }
0x1124   :  { %10339 = vmatmul.mubr.msk.f32.gmra.mxu1 %vm7990_vm12, %v9419_v35 }
0x1125   :  { %10341 = vmatprep.mubr.msk.f32.mxu1 %vm11103_vm3, %v15811_v27 }
0x1128   :  { %10342 = vmatmul.mubr.msk.f32.gmra.mxu1 %vm7990_vm12, %v9420_v51 }
0x1129   :  { %10344 = vmatprep.mubr.msk.f32.mxu1 %vm11103_vm3, %v15811_v27 }
0x112c   :  { %10345 = vmatmul.mubr.msk.f32.gmra.mxu1 %vm7990_vm12, %v9421_v24 }
0x112d   :  { %10347 = vmatprep.mubr.msk.f32.mxu1 %vm11103_vm3, %v15811_v27 }
0x1130   :  { %10348 = vmatmul.mubr.msk.f32.gmra.mxu1 %vm7990_vm12, %v9422_v18 }
0x11e0   :  { %v8474_v60 = vpop.f32.mrf.mxu1 }
0x11e1   :  { %v8498_v40 = vadd.f32 %v8474_v60, %v8297_v22 }
0x11e2   :  { %v10337_v2 = vpop.f32.mrf.mxu1 }
0x11e3   :  { %v8503_v30 = vsub.f32 0.0, %v8498_v40 }
0x11e4   :  { %v8479_v19 = vpop.f32.mrf.mxu1 }
0x11e5   :  { %v8508_v45 = vmul.f32 1.442695, %v8503_v30  ;;  %v8499_v10 = vadd.f32 %v8479_v19, %v8298_v55 }
0x11e6   :  { %v10340_v15 = vpop.f32.mrf.mxu1 }
0x11e7   :  { %11032 = vpow2.f32 %v8508_v45  ;;  %v8504_v25 = vsub.f32 0.0, %v8499_v10 }
0x11e8   :  { %v8484_v20 = vpop.f32.mrf.mxu1 }
0x11e9   :  { %v8510_v16 = vmul.f32 1.442695, %v8504_v25  ;;  %v8500_v41 = vadd.f32 %v8484_v20, %v8299_v50 }
0x11ea   :  { %v10343_v27 = vpop.f32.mrf.mxu1 }
0x11eb   :  { %11034 = vpow2.f32 %v8510_v16  ;;  %v8505_v59 = vsub.f32 0.0, %v8500_v41 }
0x11ec   :  { %v8489_v37 = vpop.f32.mrf.mxu1 }
0x11ed   :  { %v8512_v49 = vmul.f32 1.442695, %v8505_v59  ;;  %v8501_v44 = vadd.f32 %v8489_v37, %v8300_v29 }
0x11ee   :  { %v10346_v8 = vpop.f32.mrf.mxu1 }
0x11ef   :  { %11036 = vpow2.f32 %v8512_v49  ;;  %v8506_v31 = vsub.f32 0.0, %v8501_v44 }
0x11f0   :  { %v8494_v13 = vpop.f32.mrf.mxu1 }
0x11f1   :  { %v8514_v62 = vmul.f32 1.442695, %v8506_v31  ;;  %v8502_v42 = vadd.f32 %v8494_v13, %v8301_v36 }
0x11f2   :  { %v10349_v33 = vpop.f32.mrf.mxu1 }
0x11f3   :  { %11038 = vpow2.f32 %v8514_v62  ;;  %v8507_v26 = vsub.f32 0.0, %v8502_v42 }
0x11f4   :  { %v11033_v6 = vpop.eup %11032 }
0x11f5   :  { %v8518_v3 = vadd.f32 1.0, %v11033_v6  ;;  %v8516_v1 = vmul.f32 1.442695, %v8507_v26 }
0x11f7   :  { %11040 = vrcp.f32 %v8518_v3 }
0x11f8   :  { %v11035_v56 = vpop.eup %11034  ;;  %11042 = vpow2.f32 %v8516_v1 }
0x11f9   :  { %v8519_v7 = vadd.f32 1.0, %v11035_v56 }
0x11fb   :  { %11044 = vrcp.f32 %v8519_v7 }
0x11fc   :  { %v11037_v22 = vpop.eup %11036 }
0x11fd   :  { %v8520_v47 = vadd.f32 1.0, %v11037_v22 }
0x11ff   :  { %11046 = vrcp.f32 %v8520_v47 }
0x1200   :  { %v11039_v63 = vpop.eup %11038 }
0x1201   :  { %v8521_v54 = vadd.f32 1.0, %v11039_v63 }
0x1203   :  { %11048 = vrcp.f32 %v8521_v54 }
0x1204   :  { %v11041_v14 = vpop.eup %11040 }
0x1205   :  { %v11043_v9 = vpop.eup %11042  ;;  %8534 = vst.msk [vmem:[%s15558_s15] sm:$0xff] %vm8533_vm13, %v11041_v14 }
0x1206   :  { %v8522_v48 = vadd.f32 1.0, %v11043_v9 }
0x1208   :  { %v11045_v55 = vpop.eup %11044  ;;  %11050 = vrcp.f32 %v8522_v48 }
0x1209   :  { %8535 = vst.msk [vmem:[%s15558_s15 + $0x8] sm:$0xff] %vm8533_vm13, %v11045_v55 }
0x120c   :  { %v11047_v34 = vpop.eup %11046 }
0x120d   :  { %8536 = vst.msk [vmem:[%s15558_s15 + $0x10] sm:$0xff] %vm8533_vm13, %v11047_v34 }
0x1210   :  { %v11049_v38 = vpop.eup %11048 }
0x1211   :  { %8537 = vst.msk [vmem:[%s15558_s15 + $0x18] sm:$0xff] %vm8533_vm13, %v11049_v38 }
0x1215   :  { %v11051_v52 = vpop.eup %11050 }
0x1216   :  { %8538 = vst.msk [vmem:[%s15558_s15 + $0x20] sm:$0xff] %vm8533_vm13, %v11051_v52 }

</bundles_post_ra>
